<compile_context>
chip_gen: v7x
topology: tpu7x:2x2x1
jax: 0.10.0
libtpu: 0.0.40
codegen_flags: <defaults>
</compile_context>

<pallas_src>
import functools
import math
import numpy as np

import jax
import jax.numpy as jnp
from jax import lax
from jax.experimental import pallas as pl
from jax.experimental.pallas import tpu as pltpu

# ------------------------- small, module-consistent config -------------------------
BATCH = 2
CHANNELS = 4                 # latent channels handled by the DiffiT backbone
ENCODE_SIZE = 16             # latent spatial size (square)
PATCH = 2
HIDDEN = 64                  # hidden_size, divisible by NUM_HEADS
DEPTH = 2
NUM_HEADS = 4
MLP_RATIO = 4.0
NUM_CLASSES = 10
FREQ_DIM = 256               # TimestepEmbedder frequency embedding size
LN_EPS = 1e-5

T = (ENCODE_SIZE // PATCH) ** 2          # number of patches (tokens)       = 64
CPP = CHANNELS * PATCH * PATCH           # per-patch vector length          = 16
D_MLP = int(HIDDEN * MLP_RATIO)          #                                  = 256
HEAD_DIM = HIDDEN // NUM_HEADS           #                                  = 16
OUT_PP = PATCH * PATCH * CHANNELS        #                                  = 16
BT = BATCH * T                           # flattened token rows             = 128

# NOTE: at BT=128 the kernel is launch/fixed-cost bound; throughput deployments
# should raise BATCH (BT ~ 512-2048) — VMEM is not a constraint (<1 MiB).


# ------------------------- TPU-generation gating -------------------------
def _tpu_generation():
    try:
        kind = jax.devices()[0].device_kind.lower()
        for g in (7, 6, 5, 4):
            if ("v%d" % g) in kind:
                return g
    except Exception:
        pass
    return 0


_GEN = _tpu_generation()
USE_BF16_ELEM = _GEN >= 6      # v6e/v7x have bf16 VPU/EUP; v5e does not
USE_BATCH_GRID = _GEN >= 7     # v7x: 2 TensorCores per chip -> batch-parallel grid


# ------------------------------- kernel helpers -------------------------------
def _layernorm(v, g, b):
    mu = jnp.mean(v, axis=-1, keepdims=True)
    var = jnp.mean(jnp.square(v - mu), axis=-1, keepdims=True)
    return (v - mu) * lax.rsqrt(var + LN_EPS) * g + b


def _bf16(x):
    return x.astype(jnp.bfloat16)


# ------------------------------- fused Pallas kernel -------------------------------
def fused_forward_kernel(nb, grid_mode, use_bf16_elem,
                         patches_ref,    # (nb*T, CPP)        bf16
                         femb_ref,       # (BATCH, FREQ_DIM)  bf16
                         yemb_ref,       # (BATCH, HIDDEN)    f32
                         patch_w_ref,    # (CPP, HIDDEN)      bf16
                         pos_ref,        # (T, HIDDEN)        f32
                         t_w1_ref,       # (FREQ_DIM, HIDDEN) bf16
                         t_w2_ref,       # (HIDDEN, HIDDEN)   bf16
                         gvec_ref,       # (6, HIDDEN)        f32 packed global vectors
                         qkv_x_w_ref,    # (DEPTH, H, 3H)     bf16 (softmax scale folded into q cols)
                         qkv_t_w_ref,    # (DEPTH, H, 3H)     bf16 (softmax scale folded into q cols)
                         wo_ref,         # (DEPTH, H, H)      bf16
                         mlp_w1_ref,     # (DEPTH, H, D_MLP)  bf16
                         mlp_w2_ref,     # (DEPTH, D_MLP, H)  bf16
                         bvec_ref,       # (DEPTH, 6, HIDDEN) f32 packed per-block vectors
                         wide_b_ref,     # (DEPTH, 2, D_MLP)  f32 [qkv bias (padded), fc1 bias]
                         fin_w_ref,      # (HIDDEN, OUT_PP)   bf16
                         o_ref):         # (nb*T, OUT_PP)     f32
    gvec = gvec_ref[...]
    patch_b = gvec[0:1, :]
    t_b1 = gvec[1:2, :]
    t_b2 = gvec[2:3, :]
    fin_g = gvec[3:4, :]
    fin_b = gvec[4:5, :]
    fin_lin_b = gvec[5:6, :OUT_PP]

    # ---- patch embedding (conv-as-matmul) + positional embedding ----
    x = jnp.dot(patches_ref[...], patch_w_ref[...],
                preferred_element_type=jnp.float32) + patch_b          # (nb*T, H) f32
    pos = pos_ref[...]
    x = x + (pos if nb == 1 else jnp.concatenate([pos] * nb, axis=0))

    # ---- TimestepEmbedder MLP (Linear -> SiLU -> Linear) + label embedding ----
    th = jnp.dot(femb_ref[...], t_w1_ref[...],
                 preferred_element_type=jnp.float32) + t_b1            # (BATCH, H) f32
    if use_bf16_elem:
        th_e = _bf16(th)
        th_act = th_e * jax.nn.sigmoid(th_e)                           # bf16 SiLU (v6e/v7x)
    else:
        th_act = _bf16(th * jax.nn.sigmoid(th))                        # f32 SiLU (v5e-safe)
    temb = jnp.dot(th_act, t_w2_ref[...],
                   preferred_element_type=jnp.float32) + t_b2
    c_full = temb + yemb_ref[...]                                      # (BATCH, H) f32

    if grid_mode:
        # One batch per program (v7x, 2 TensorCores): pick this program's row.
        b_sel = pl.program_id(0)
        row_ids = lax.broadcasted_iota(jnp.int32, (BATCH, 1), 0)
        c = jnp.sum(jnp.where(row_ids == b_sel, c_full, 0.0),
                    axis=0, keepdims=True)                             # (1, H)
    else:
        c = c_full                                                     # (BATCH, H)
    c_bf = _bf16(c)                                                    # (nb, H)

    for d in range(DEPTH):                      # DEPTH = 2, static unroll
        bvec = bvec_ref[d]                      # (6, H) f32
        ln1g, ln1b = bvec[0:1, :], bvec[1:2, :]
        ln2g, ln2b = bvec[2:3, :], bvec[3:4, :]
        attn_bo, mlp_b2 = bvec[4:5, :], bvec[5:6, :]
        wide = wide_b_ref[d]                    # (2, D_MLP) f32
        qkv_b = wide[0:1, :3 * HIDDEN]
        mlp_b1 = wide[1:2, :]

        # ---- TMSA: time-dependent multi-head self-attention ----
        # Time-token contribution computed once per batch row (K=64, nb rows),
        # then broadcast to tokens; qkv bias folded in here.
        qkv_t = jnp.dot(c_bf, qkv_t_w_ref[d],
                        preferred_element_type=jnp.float32) + qkv_b    # (nb, 3H) f32
        if nb == 1:
            qkv_t_rows = jnp.broadcast_to(qkv_t, (T, 3 * HIDDEN))
        else:
            qkv_t_rows = jnp.concatenate(
                [jnp.broadcast_to(qkv_t[b:b + 1, :], (T, 3 * HIDDEN))
                 for b in range(nb)], axis=0)                          # (nb*T, 3H)

        h = _layernorm(x, ln1g, ln1b)
        qkv = jnp.dot(_bf16(h), qkv_x_w_ref[d],
                      preferred_element_type=jnp.float32) + qkv_t_rows  # (nb*T, 3H) f32
        qkv_bf = _bf16(qkv)                      # single cast; slice q/k/v from it
        q = qkv_bf[:, :HIDDEN]
        k = qkv_bf[:, HIDDEN:2 * HIDDEN]
        v = qkv_bf[:, 2 * HIDDEN:]

        # Per-(batch, head) attention; head outputs concatenated along lanes,
        # batches along rows, then ONE (nb*T, H)@(H, H) output projection.
        per_batch = []
        for b in range(nb):
            r0 = b * T
            q_b = q[r0:r0 + T]
            k_b = k[r0:r0 + T]
            v_b = v[r0:r0 + T]
            head_outs = []
            for hd in range(NUM_HEADS):
                c0 = hd * HEAD_DIM
                qh = q_b[:, c0:c0 + HEAD_DIM]
                kh = k_b[:, c0:c0 + HEAD_DIM]
                vh = v_b[:, c0:c0 + HEAD_DIM]
                s = lax.dot_general(qh, kh, (((1,), (1,)), ((), ())),
                                    preferred_element_type=jnp.float32)  # scale pre-folded
                s = s - jnp.max(s, axis=-1, keepdims=True)
                e = jnp.exp(s)
                p = e * pl.reciprocal(jnp.sum(e, axis=-1, keepdims=True),
                                      approx=True)
                head_outs.append(jnp.dot(_bf16(p), vh,
                                         preferred_element_type=jnp.float32))
            per_batch.append(_bf16(jnp.concatenate(head_outs, axis=-1)))  # (T, H) bf16
        attn = per_batch[0] if nb == 1 else jnp.concatenate(per_batch, axis=0)
        x = x + jnp.dot(attn, wo_ref[d],
                        preferred_element_type=jnp.float32) + attn_bo

        # ---- MLP ----
        h2 = _layernorm(x, ln2g, ln2b)
        m = jnp.dot(_bf16(h2), mlp_w1_ref[d],
                    preferred_element_type=jnp.float32) + mlp_b1
        if use_bf16_elem:
            g = jax.nn.gelu(_bf16(m), approximate=True)                # bf16 GELU (v6e/v7x)
        else:
            g = _bf16(jax.nn.gelu(m, approximate=True))                # f32 GELU (v5e-safe)
        x = x + jnp.dot(g, mlp_w2_ref[d],
                        preferred_element_type=jnp.float32) + mlp_b2

    # ---- FinalLayer: LayerNorm + Linear(D, p*p*C) ----
    hn = _layernorm(x, fin_g, fin_b)
    o_ref[...] = jnp.dot(_bf16(hn), fin_w_ref[...],
                         preferred_element_type=jnp.float32) + fin_lin_b


def fused_forward(patches_bf, femb_bf, yemb, params):
    args = (patches_bf, femb_bf, yemb,
            params['patch_w'], params['pos'], params['t_w1'], params['t_w2'],
            params['gvec'], params['qkv_x_w'], params['qkv_t_w'], params['wo'],
            params['mlp_w1'], params['mlp_w2'], params['bvec'], params['wide_b'],
            params['fin_w'])

    if USE_BATCH_GRID:
        # v7x: one image per TensorCore via a batch-parallel grid.
        def full(a):
            nd = a.ndim
            return pl.BlockSpec(a.shape, lambda b, _nd=nd: (0,) * _nd)

        in_specs = [
            pl.BlockSpec((T, CPP), lambda b: (b, 0)),                  # patches per batch
            full(femb_bf), full(yemb),
            full(params['patch_w']), full(params['pos']),
            full(params['t_w1']), full(params['t_w2']), full(params['gvec']),
            full(params['qkv_x_w']), full(params['qkv_t_w']), full(params['wo']),
            full(params['mlp_w1']), full(params['mlp_w2']), full(params['bvec']),
            full(params['wide_b']), full(params['fin_w']),
        ]
        return pl.pallas_call(
            functools.partial(fused_forward_kernel, 1, True, USE_BF16_ELEM),
            out_shape=jax.ShapeDtypeStruct((BT, OUT_PP), jnp.float32),
            grid=(BATCH,),
            in_specs=in_specs,
            out_specs=pl.BlockSpec((T, OUT_PP), lambda b: (b, 0)),
            compiler_params=pltpu.CompilerParams(dimension_semantics=("parallel",)),
        )(*args)

    # v5e / v6e / unknown: single gridless invocation, everything resident in VMEM.
    return pl.pallas_call(
        functools.partial(fused_forward_kernel, BATCH, False, USE_BF16_ELEM),
        out_shape=jax.ShapeDtypeStruct((BT, OUT_PP), jnp.float32),
    )(*args)


# ------------------------------- plain-JAX glue -------------------------------
def get_2d_sincos_pos_embed(embed_dim, grid_size):
    def _1d(dim, pos):
        omega = np.arange(dim // 2, dtype=np.float64) / (dim / 2.0)
        omega = 1.0 / (10000.0 ** omega)
        out = np.einsum('m,d->md', pos.reshape(-1), omega)
        return np.concatenate([np.sin(out), np.cos(out)], axis=1)
    grid_h = np.arange(grid_size, dtype=np.float64)
    grid_w = np.arange(grid_size, dtype=np.float64)
    grid = np.stack(np.meshgrid(grid_w, grid_h), axis=0)
    emb_h = _1d(embed_dim // 2, grid[0])
    emb_w = _1d(embed_dim // 2, grid[1])
    return np.concatenate([emb_h, emb_w], axis=1).astype(np.float32)   # (T, D)


def timestep_frequency_embedding(t, dim=FREQ_DIM, max_period=10000.0):
    half = dim // 2
    freqs = jnp.exp(-math.log(max_period) * jnp.arange(half, dtype=jnp.float32) / half)
    args = t.astype(jnp.float32)[:, None] * freqs[None, :]
    return jnp.concatenate([jnp.cos(args), jnp.sin(args)], axis=-1)    # (B, dim)


def patchify(lat):
    # (B, C, H, W) NCHW -> (B*T, C*p*p); per-patch vector is channel-major,
    # matching Conv2d(kernel=stride=p) weight flattening.
    B, C, H, W = lat.shape
    h, w = H // PATCH, W // PATCH
    x = lat.reshape(B, C, h, PATCH, w, PATCH)
    x = jnp.transpose(x, (0, 2, 4, 1, 3, 5))                 # (B, h, w, C, p, p)
    return x.reshape(B * h * w, C * PATCH * PATCH)


def unpatchify(x):
    # (B, T, p*p*C) -> (B, C, H, W), identical to the module's unpatchify.
    B = x.shape[0]
    h = w = int(round(math.sqrt(x.shape[1])))
    x = x.reshape(B, h, w, PATCH, PATCH, CHANNELS)
    x = jnp.einsum('nhwpqc->nchpwq', x)
    return x.reshape(B, CHANNELS, h * PATCH, w * PATCH)


# ------------------------------- parameter init -------------------------------
def xavier_uniform(key, shape):
    fan_in, fan_out = shape
    lim = math.sqrt(6.0 / (fan_in + fan_out))
    return jax.random.uniform(key, shape, jnp.float32, -lim, lim)


def init_params(key):
    keys = iter(jax.random.split(key, 8 + 8 * DEPTH))
    p = {}
    # PatchEmbed (conv-as-matmul), bf16 weights (f32 accumulation on MXU)
    p['patch_w'] = xavier_uniform(next(keys), (CPP, HIDDEN)).astype(jnp.bfloat16)
    p['pos'] = jnp.asarray(get_2d_sincos_pos_embed(HIDDEN, ENCODE_SIZE // PATCH))
    # TimestepEmbedder MLP (normal std=0.02 as in initialize_weights)
    p['t_w1'] = (0.02 * jax.random.normal(next(keys), (FREQ_DIM, HIDDEN),
                                          jnp.float32)).astype(jnp.bfloat16)
    p['t_w2'] = (0.02 * jax.random.normal(next(keys), (HIDDEN, HIDDEN),
                                          jnp.float32)).astype(jnp.bfloat16)
    # LabelEmbedder table (num_classes + 1 rows for the CFG "null" class)
    p['y_table'] = 0.02 * jax.random.normal(next(keys), (NUM_CLASSES + 1, HIDDEN),
                                            jnp.float32)

    # Packed global vectors: [patch_b, t_b1, t_b2, final_ln_g, final_ln_b, final_lin_b(pad)]
    gvec = np.zeros((6, HIDDEN), np.float32)
    gvec[3, :] = 1.0                                   # final LayerNorm gamma
    p['gvec'] = jnp.asarray(gvec)

    # Softmax 1/sqrt(head_dim) folded into the q columns of BOTH qkv weight halves.
    # NOTE: if pretrained weights are loaded, the q-third of the packed qkv bias
    # (wide_b[:, 0, :HIDDEN]) must be scaled identically (zeros here, so no-op).
    q_scale = np.ones((1, 3 * HIDDEN), np.float32)
    q_scale[:, :HIDDEN] = 1.0 / math.sqrt(HEAD_DIM)
    q_scale = jnp.asarray(q_scale)

    qkv_x_w, qkv_t_w, wo, w1, w2, bvec, wide_b = [], [], [], [], [], [], []
    for _ in range(DEPTH):
        qkv_x_w.append(xavier_uniform(next(keys), (HIDDEN, 3 * HIDDEN)) * q_scale)
        qkv_t_w.append(xavier_uniform(next(keys), (HIDDEN, 3 * HIDDEN)) * q_scale)
        wo.append(xavier_uniform(next(keys), (HIDDEN, HIDDEN)))  # attn out proj
        w1.append(xavier_uniform(next(keys), (HIDDEN, D_MLP)))   # mlp fc1
        w2.append(xavier_uniform(next(keys), (D_MLP, HIDDEN)))   # mlp fc2
        # packed per-block vectors: [ln1_g, ln1_b, ln2_g, ln2_b, attn_out_b, mlp_fc2_b]
        bv = np.zeros((6, HIDDEN), np.float32)
        bv[0, :] = 1.0
        bv[2, :] = 1.0
        bvec.append(bv)
        # packed wide biases: [qkv bias (zero, lanes 0:3H of D_MLP row), mlp_fc1_b]
        wide_b.append(np.zeros((2, D_MLP), np.float32))
    p['qkv_x_w'] = jnp.stack(qkv_x_w).astype(jnp.bfloat16)
    p['qkv_t_w'] = jnp.stack(qkv_t_w).astype(jnp.bfloat16)
    p['wo'] = jnp.stack(wo).astype(jnp.bfloat16)
    p['mlp_w1'] = jnp.stack(w1).astype(jnp.bfloat16)
    p['mlp_w2'] = jnp.stack(w2).astype(jnp.bfloat16)
    p['bvec'] = jnp.asarray(np.stack(bvec))
    p['wide_b'] = jnp.asarray(np.stack(wide_b))
    # FinalLayer linear
    p['fin_w'] = xavier_uniform(next(keys), (HIDDEN, OUT_PP)).astype(jnp.bfloat16)
    return p


# ------------------------------- forward pass -------------------------------
def latent_diffit_forward(params, x, t, y):
    # autoencoder.encode -> identity stub (see TODO at top)
    lat = x                                                       # (B, C, 16, 16)
    patches = patchify(lat).astype(jnp.bfloat16)                  # (B*T, CPP) bf16
    femb = timestep_frequency_embedding(t).astype(jnp.bfloat16)   # (B, 256) bf16
    yemb = jnp.take(params['y_table'], y, axis=0)                 # (B, D) eval: no label dropout

    out = fused_forward(patches, femb, yemb, params)              # (B*T, p*p*C) f32
    out = out.reshape(BATCH, T, OUT_PP)

    img = unpatchify(out)                                         # (B, C, 16, 16)
    # autoencoder.decode -> identity stub
    return img


if __name__ == "__main__":
    key = jax.random.PRNGKey(0)
    kp, kx, kt, ky = jax.random.split(key, 4)
    params = init_params(kp)
    x = jax.random.normal(kx, (BATCH, CHANNELS, ENCODE_SIZE, ENCODE_SIZE), jnp.float32)
    t = jax.random.uniform(kt, (BATCH,), jnp.float32, 0.0, 1000.0)
    y = jax.random.randint(ky, (BATCH,), 0, NUM_CLASSES)

    out = jax.jit(latent_diffit_forward)(params, x, t, y)
    out = jax.block_until_ready(out)
    assert out.shape == (BATCH, CHANNELS, ENCODE_SIZE, ENCODE_SIZE)
    assert bool(jnp.all(jnp.isfinite(out)))
    print("KERNEL_OK")
</pallas_src>

<mosaic_0001>
module attributes {stable_mosaic.version = 11 : i64} {
  func.func @fused_forward_kernel(%arg0: memref<128x16xbf16, #tpu.memory_space<vmem>>, %arg1: memref<2x256xbf16, #tpu.memory_space<vmem>>, %arg2: memref<2x64xf32, #tpu.memory_space<vmem>>, %arg3: memref<16x64xbf16, #tpu.memory_space<vmem>>, %arg4: memref<64x64xf32, #tpu.memory_space<vmem>>, %arg5: memref<256x64xbf16, #tpu.memory_space<vmem>>, %arg6: memref<64x64xbf16, #tpu.memory_space<vmem>>, %arg7: memref<6x64xf32, #tpu.memory_space<vmem>>, %arg8: memref<2x64x192xbf16, #tpu.memory_space<vmem>>, %arg9: memref<2x64x192xbf16, #tpu.memory_space<vmem>>, %arg10: memref<2x64x64xbf16, #tpu.memory_space<vmem>>, %arg11: memref<2x64x256xbf16, #tpu.memory_space<vmem>>, %arg12: memref<2x256x64xbf16, #tpu.memory_space<vmem>>, %arg13: memref<2x6x64xf32, #tpu.memory_space<vmem>>, %arg14: memref<2x2x256xf32, #tpu.memory_space<vmem>>, %arg15: memref<64x16xbf16, #tpu.memory_space<vmem>>, %arg16: memref<128x16xf32, #tpu.memory_space<vmem>>) attributes {dimension_semantics = [], scalar_prefetch = 0 : i64, scratch_operands = 0 : i64, tpu.core_type = #tpu.core_type<tc>} {
    %c0 = arith.constant 0 : index
    %c0_0 = arith.constant 0 : index
    %0 = vector.load %arg7[%c0, %c0_0] : memref<6x64xf32, #tpu.memory_space<vmem>>, vector<6x64xf32>
    %1 = vector.extract_strided_slice %0 {offsets = [0, 0], sizes = [1, 64], strides = [1, 1]} : vector<6x64xf32> to vector<1x64xf32>
    %2 = vector.extract_strided_slice %0 {offsets = [1, 0], sizes = [1, 64], strides = [1, 1]} : vector<6x64xf32> to vector<1x64xf32>
    %3 = vector.extract_strided_slice %0 {offsets = [2, 0], sizes = [1, 64], strides = [1, 1]} : vector<6x64xf32> to vector<1x64xf32>
    %4 = vector.extract_strided_slice %0 {offsets = [3, 0], sizes = [1, 64], strides = [1, 1]} : vector<6x64xf32> to vector<1x64xf32>
    %5 = vector.extract_strided_slice %0 {offsets = [4, 0], sizes = [1, 64], strides = [1, 1]} : vector<6x64xf32> to vector<1x64xf32>
    %6 = vector.extract_strided_slice %0 {offsets = [5, 0], sizes = [1, 16], strides = [1, 1]} : vector<6x64xf32> to vector<1x16xf32>
    %c0_1 = arith.constant 0 : index
    %c0_2 = arith.constant 0 : index
    %7 = vector.load %arg0[%c0_1, %c0_2] : memref<128x16xbf16, #tpu.memory_space<vmem>>, vector<128x16xbf16>
    %c0_3 = arith.constant 0 : index
    %c0_4 = arith.constant 0 : index
    %8 = vector.load %arg3[%c0_3, %c0_4] : memref<16x64xbf16, #tpu.memory_space<vmem>>, vector<16x64xbf16>
    %cst = arith.constant dense<0.000000e+00> : vector<128x64xf32>
    %9 = tpu.matmul %7, %8, %cst {dimension_numbers = #tpu.dot_dimension_numbers<[1], [0], [0], [1], [0, 0, 1, 1], [], []>} : vector<128x16xbf16>, vector<16x64xbf16>, vector<128x64xf32> -> vector<128x64xf32>
    %10 = vector.broadcast %1 : vector<1x64xf32> to vector<128x64xf32>
    %11 = arith.addf %9, %10 : vector<128x64xf32>
    %c0_5 = arith.constant 0 : index
    %c0_6 = arith.constant 0 : index
    %12 = vector.load %arg4[%c0_5, %c0_6] : memref<64x64xf32, #tpu.memory_space<vmem>>, vector<64x64xf32>
    %13 = tpu.concatenate %12, %12 in 0 : vector<64x64xf32>, vector<64x64xf32> -> vector<128x64xf32>
    %14 = arith.addf %11, %13 : vector<128x64xf32>
    %c0_7 = arith.constant 0 : index
    %c0_8 = arith.constant 0 : index
    %15 = vector.load %arg1[%c0_7, %c0_8] : memref<2x256xbf16, #tpu.memory_space<vmem>>, vector<2x256xbf16>
    %c0_9 = arith.constant 0 : index
    %c0_10 = arith.constant 0 : index
    %16 = vector.load %arg5[%c0_9, %c0_10] : memref<256x64xbf16, #tpu.memory_space<vmem>>, vector<256x64xbf16>
    %cst_11 = arith.constant dense<0.000000e+00> : vector<2x64xf32>
    %17 = tpu.matmul %15, %16, %cst_11 {dimension_numbers = #tpu.dot_dimension_numbers<[1], [0], [0], [1], [0, 0, 1, 1], [], []>} : vector<2x256xbf16>, vector<256x64xbf16>, vector<2x64xf32> -> vector<2x64xf32>
    %18 = vector.broadcast %2 : vector<1x64xf32> to vector<2x64xf32>
    %19 = arith.addf %17, %18 : vector<2x64xf32>
    %20 = arith.negf %19 : vector<2x64xf32>
    %21 = math.exp %20 : vector<2x64xf32>
    %cst_12 = arith.constant 1.000000e+00 : f32
    %22 = vector.broadcast %cst_12 : f32 to vector<2x64xf32>
    %23 = arith.addf %22, %21 : vector<2x64xf32>
    %24 = arith.divf %22, %23 : vector<2x64xf32>
    %25 = arith.mulf %19, %24 : vector<2x64xf32>
    %26 = arith.truncf %25 : vector<2x64xf32> to vector<2x64xbf16>
    %c0_13 = arith.constant 0 : index
    %c0_14 = arith.constant 0 : index
    %27 = vector.load %arg6[%c0_13, %c0_14] : memref<64x64xbf16, #tpu.memory_space<vmem>>, vector<64x64xbf16>
    %cst_15 = arith.constant dense<0.000000e+00> : vector<2x64xf32>
    %28 = tpu.matmul %26, %27, %cst_15 {dimension_numbers = #tpu.dot_dimension_numbers<[1], [0], [0], [1], [0, 0, 1, 1], [], []>} : vector<2x64xbf16>, vector<64x64xbf16>, vector<2x64xf32> -> vector<2x64xf32>
    %29 = vector.broadcast %3 : vector<1x64xf32> to vector<2x64xf32>
    %30 = arith.addf %28, %29 : vector<2x64xf32>
    %c0_16 = arith.constant 0 : index
    %c0_17 = arith.constant 0 : index
    %31 = vector.load %arg2[%c0_16, %c0_17] : memref<2x64xf32, #tpu.memory_space<vmem>>, vector<2x64xf32>
    %32 = arith.addf %30, %31 : vector<2x64xf32>
    %33 = arith.truncf %32 : vector<2x64xf32> to vector<2x64xbf16>
    %c0_18 = arith.constant 0 : index
    %c0_19 = arith.constant 0 : index
    %c0_20 = arith.constant 0 : index
    %34 = vector.load %arg13[%c0_18, %c0_19, %c0_20] : memref<2x6x64xf32, #tpu.memory_space<vmem>>, vector<1x6x64xf32>
    %35 = vector.shape_cast %34 : vector<1x6x64xf32> to vector<6x64xf32>
    %36 = vector.extract_strided_slice %35 {offsets = [0, 0], sizes = [1, 64], strides = [1, 1]} : vector<6x64xf32> to vector<1x64xf32>
    %37 = vector.extract_strided_slice %35 {offsets = [1, 0], sizes = [1, 64], strides = [1, 1]} : vector<6x64xf32> to vector<1x64xf32>
    %38 = vector.extract_strided_slice %35 {offsets = [2, 0], sizes = [1, 64], strides = [1, 1]} : vector<6x64xf32> to vector<1x64xf32>
    %39 = vector.extract_strided_slice %35 {offsets = [3, 0], sizes = [1, 64], strides = [1, 1]} : vector<6x64xf32> to vector<1x64xf32>
    %40 = vector.extract_strided_slice %35 {offsets = [4, 0], sizes = [1, 64], strides = [1, 1]} : vector<6x64xf32> to vector<1x64xf32>
    %41 = vector.extract_strided_slice %35 {offsets = [5, 0], sizes = [1, 64], strides = [1, 1]} : vector<6x64xf32> to vector<1x64xf32>
    %c0_21 = arith.constant 0 : index
    %c0_22 = arith.constant 0 : index
    %c0_23 = arith.constant 0 : index
    %42 = vector.load %arg14[%c0_21, %c0_22, %c0_23] : memref<2x2x256xf32, #tpu.memory_space<vmem>>, vector<1x2x256xf32>
    %43 = vector.shape_cast %42 : vector<1x2x256xf32> to vector<2x256xf32>
    %44 = vector.extract_strided_slice %43 {offsets = [0, 0], sizes = [1, 192], strides = [1, 1]} : vector<2x256xf32> to vector<1x192xf32>
    %45 = vector.extract_strided_slice %43 {offsets = [1, 0], sizes = [1, 256], strides = [1, 1]} : vector<2x256xf32> to vector<1x256xf32>
    %c0_24 = arith.constant 0 : index
    %c0_25 = arith.constant 0 : index
    %c0_26 = arith.constant 0 : index
    %46 = vector.load %arg9[%c0_24, %c0_25, %c0_26] : memref<2x64x192xbf16, #tpu.memory_space<vmem>>, vector<1x64x192xbf16>
    %47 = vector.shape_cast %46 : vector<1x64x192xbf16> to vector<64x192xbf16>
    %cst_27 = arith.constant dense<0.000000e+00> : vector<2x192xf32>
    %48 = tpu.matmul %33, %47, %cst_27 {dimension_numbers = #tpu.dot_dimension_numbers<[1], [0], [0], [1], [0, 0, 1, 1], [], []>} : vector<2x64xbf16>, vector<64x192xbf16>, vector<2x192xf32> -> vector<2x192xf32>
    %49 = vector.broadcast %44 : vector<1x192xf32> to vector<2x192xf32>
    %50 = arith.addf %48, %49 : vector<2x192xf32>
    %51 = vector.extract_strided_slice %50 {offsets = [0, 0], sizes = [1, 192], strides = [1, 1]} : vector<2x192xf32> to vector<1x192xf32>
    %52 = vector.shape_cast %51 : vector<1x192xf32> to vector<1x192xf32>
    %53 = vector.broadcast %52 : vector<1x192xf32> to vector<64x192xf32>
    %54 = vector.extract_strided_slice %50 {offsets = [1, 0], sizes = [1, 192], strides = [1, 1]} : vector<2x192xf32> to vector<1x192xf32>
    %55 = vector.shape_cast %54 : vector<1x192xf32> to vector<1x192xf32>
    %56 = vector.broadcast %55 : vector<1x192xf32> to vector<64x192xf32>
    %57 = tpu.concatenate %53, %56 in 0 : vector<64x192xf32>, vector<64x192xf32> -> vector<128x192xf32>
    %cst_28 = arith.constant dense<0.000000e+00> : vector<128xf32>
    %58 = vector.multi_reduction <add>, %14, %cst_28 [1] : vector<128x64xf32> to vector<128xf32>
    %59 = vector.shape_cast %58 : vector<128xf32> to vector<128x1xf32>
    %cst_29 = arith.constant 6.400000e+01 : f32
    %60 = vector.broadcast %cst_29 : f32 to vector<128x1xf32>
    %61 = arith.divf %59, %60 : vector<128x1xf32>
    %62 = vector.broadcast %61 : vector<128x1xf32> to vector<128x64xf32>
    %63 = arith.subf %14, %62 : vector<128x64xf32>
    %64 = arith.mulf %63, %63 : vector<128x64xf32>
    %cst_30 = arith.constant dense<0.000000e+00> : vector<128xf32>
    %65 = vector.multi_reduction <add>, %64, %cst_30 [1] : vector<128x64xf32> to vector<128xf32>
    %66 = vector.shape_cast %65 : vector<128xf32> to vector<128x1xf32>
    %cst_31 = arith.constant 6.400000e+01 : f32
    %67 = vector.broadcast %cst_31 : f32 to vector<128x1xf32>
    %68 = arith.divf %66, %67 : vector<128x1xf32>
    %69 = vector.broadcast %61 : vector<128x1xf32> to vector<128x64xf32>
    %70 = arith.subf %14, %69 : vector<128x64xf32>
    %cst_32 = arith.constant 9.99999974E-6 : f32
    %71 = vector.broadcast %cst_32 : f32 to vector<128x1xf32>
    %72 = arith.addf %68, %71 : vector<128x1xf32>
    %73 = math.rsqrt %72 : vector<128x1xf32>
    %74 = vector.broadcast %73 : vector<128x1xf32> to vector<128x64xf32>
    %75 = arith.mulf %70, %74 : vector<128x64xf32>
    %76 = vector.broadcast %36 : vector<1x64xf32> to vector<128x64xf32>
    %77 = arith.mulf %75, %76 : vector<128x64xf32>
    %78 = vector.broadcast %37 : vector<1x64xf32> to vector<128x64xf32>
    %79 = arith.addf %77, %78 : vector<128x64xf32>
    %80 = arith.truncf %79 : vector<128x64xf32> to vector<128x64xbf16>
    %c0_33 = arith.constant 0 : index
    %c0_34 = arith.constant 0 : index
    %c0_35 = arith.constant 0 : index
    %81 = vector.load %arg8[%c0_33, %c0_34, %c0_35] : memref<2x64x192xbf16, #tpu.memory_space<vmem>>, vector<1x64x192xbf16>
    %82 = vector.shape_cast %81 : vector<1x64x192xbf16> to vector<64x192xbf16>
    %cst_36 = arith.constant dense<0.000000e+00> : vector<128x192xf32>
    %83 = tpu.matmul %80, %82, %cst_36 {dimension_numbers = #tpu.dot_dimension_numbers<[1], [0], [0], [1], [0, 0, 1, 1], [], []>} : vector<128x64xbf16>, vector<64x192xbf16>, vector<128x192xf32> -> vector<128x192xf32>
    %84 = arith.addf %83, %57 : vector<128x192xf32>
    %85 = arith.truncf %84 : vector<128x192xf32> to vector<128x192xbf16>
    %86 = vector.extract_strided_slice %85 {offsets = [0, 0], sizes = [128, 64], strides = [1, 1]} : vector<128x192xbf16> to vector<128x64xbf16>
    %87 = vector.extract_strided_slice %85 {offsets = [0, 64], sizes = [128, 64], strides = [1, 1]} : vector<128x192xbf16> to vector<128x64xbf16>
    %88 = vector.extract_strided_slice %85 {offsets = [0, 128], sizes = [128, 64], strides = [1, 1]} : vector<128x192xbf16> to vector<128x64xbf16>
    %89 = vector.extract_strided_slice %86 {offsets = [0, 0], sizes = [64, 64], strides = [1, 1]} : vector<128x64xbf16> to vector<64x64xbf16>
    %90 = vector.extract_strided_slice %87 {offsets = [0, 0], sizes = [64, 64], strides = [1, 1]} : vector<128x64xbf16> to vector<64x64xbf16>
    %91 = vector.extract_strided_slice %88 {offsets = [0, 0], sizes = [64, 64], strides = [1, 1]} : vector<128x64xbf16> to vector<64x64xbf16>
    %92 = vector.extract_strided_slice %89 {offsets = [0, 0], sizes = [64, 16], strides = [1, 1]} : vector<64x64xbf16> to vector<64x16xbf16>
    %93 = vector.extract_strided_slice %90 {offsets = [0, 0], sizes = [64, 16], strides = [1, 1]} : vector<64x64xbf16> to vector<64x16xbf16>
    %94 = vector.extract_strided_slice %91 {offsets = [0, 0], sizes = [64, 16], strides = [1, 1]} : vector<64x64xbf16> to vector<64x16xbf16>
    %cst_37 = arith.constant dense<0.000000e+00> : vector<64x64xf32>
    %95 = tpu.matmul %92, %93, %cst_37 {dimension_numbers = #tpu.dot_dimension_numbers<[1], [1], [0], [0], [0, 0, 1, 0], [], []>} : vector<64x16xbf16>, vector<64x16xbf16>, vector<64x64xf32> -> vector<64x64xf32>
    %cst_38 = arith.constant dense<0xFF800000> : vector<64xf32>
    %96 = vector.multi_reduction <maximumf>, %95, %cst_38 [1] : vector<64x64xf32> to vector<64xf32>
    %97 = vector.shape_cast %96 : vector<64xf32> to vector<64x1xf32>
    %98 = vector.broadcast %97 : vector<64x1xf32> to vector<64x64xf32>
    %99 = arith.subf %95, %98 : vector<64x64xf32>
    %100 = math.exp %99 : vector<64x64xf32>
    %cst_39 = arith.constant dense<0.000000e+00> : vector<64xf32>
    %101 = vector.multi_reduction <add>, %100, %cst_39 [1] : vector<64x64xf32> to vector<64xf32>
    %102 = vector.shape_cast %101 : vector<64xf32> to vector<64x1xf32>
    %103 = tpu.reciprocal %102 {approx = true} : vector<64x1xf32> -> vector<64x1xf32>
    %104 = vector.broadcast %103 : vector<64x1xf32> to vector<64x64xf32>
    %105 = arith.mulf %100, %104 : vector<64x64xf32>
    %106 = arith.truncf %105 : vector<64x64xf32> to vector<64x64xbf16>
    %cst_40 = arith.constant dense<0.000000e+00> : vector<64x16xf32>
    %107 = tpu.matmul %106, %94, %cst_40 {dimension_numbers = #tpu.dot_dimension_numbers<[1], [0], [0], [1], [0, 0, 1, 1], [], []>} : vector<64x64xbf16>, vector<64x16xbf16>, vector<64x16xf32> -> vector<64x16xf32>
    %108 = vector.extract_strided_slice %89 {offsets = [0, 16], sizes = [64, 16], strides = [1, 1]} : vector<64x64xbf16> to vector<64x16xbf16>
    %109 = vector.extract_strided_slice %90 {offsets = [0, 16], sizes = [64, 16], strides = [1, 1]} : vector<64x64xbf16> to vector<64x16xbf16>
    %110 = vector.extract_strided_slice %91 {offsets = [0, 16], sizes = [64, 16], strides = [1, 1]} : vector<64x64xbf16> to vector<64x16xbf16>
    %cst_41 = arith.constant dense<0.000000e+00> : vector<64x64xf32>
    %111 = tpu.matmul %108, %109, %cst_41 {dimension_numbers = #tpu.dot_dimension_numbers<[1], [1], [0], [0], [0, 0, 1, 0], [], []>} : vector<64x16xbf16>, vector<64x16xbf16>, vector<64x64xf32> -> vector<64x64xf32>
    %cst_42 = arith.constant dense<0xFF800000> : vector<64xf32>
    %112 = vector.multi_reduction <maximumf>, %111, %cst_42 [1] : vector<64x64xf32> to vector<64xf32>
    %113 = vector.shape_cast %112 : vector<64xf32> to vector<64x1xf32>
    %114 = vector.broadcast %113 : vector<64x1xf32> to vector<64x64xf32>
    %115 = arith.subf %111, %114 : vector<64x64xf32>
    %116 = math.exp %115 : vector<64x64xf32>
    %cst_43 = arith.constant dense<0.000000e+00> : vector<64xf32>
    %117 = vector.multi_reduction <add>, %116, %cst_43 [1] : vector<64x64xf32> to vector<64xf32>
    %118 = vector.shape_cast %117 : vector<64xf32> to vector<64x1xf32>
    %119 = tpu.reciprocal %118 {approx = true} : vector<64x1xf32> -> vector<64x1xf32>
    %120 = vector.broadcast %119 : vector<64x1xf32> to vector<64x64xf32>
    %121 = arith.mulf %116, %120 : vector<64x64xf32>
    %122 = arith.truncf %121 : vector<64x64xf32> to vector<64x64xbf16>
    %cst_44 = arith.constant dense<0.000000e+00> : vector<64x16xf32>
    %123 = tpu.matmul %122, %110, %cst_44 {dimension_numbers = #tpu.dot_dimension_numbers<[1], [0], [0], [1], [0, 0, 1, 1], [], []>} : vector<64x64xbf16>, vector<64x16xbf16>, vector<64x16xf32> -> vector<64x16xf32>
    %124 = vector.extract_strided_slice %89 {offsets = [0, 32], sizes = [64, 16], strides = [1, 1]} : vector<64x64xbf16> to vector<64x16xbf16>
    %125 = vector.extract_strided_slice %90 {offsets = [0, 32], sizes = [64, 16], strides = [1, 1]} : vector<64x64xbf16> to vector<64x16xbf16>
    %126 = vector.extract_strided_slice %91 {offsets = [0, 32], sizes = [64, 16], strides = [1, 1]} : vector<64x64xbf16> to vector<64x16xbf16>
    %cst_45 = arith.constant dense<0.000000e+00> : vector<64x64xf32>
    %127 = tpu.matmul %124, %125, %cst_45 {dimension_numbers = #tpu.dot_dimension_numbers<[1], [1], [0], [0], [0, 0, 1, 0], [], []>} : vector<64x16xbf16>, vector<64x16xbf16>, vector<64x64xf32> -> vector<64x64xf32>
    %cst_46 = arith.constant dense<0xFF800000> : vector<64xf32>
    %128 = vector.multi_reduction <maximumf>, %127, %cst_46 [1] : vector<64x64xf32> to vector<64xf32>
    %129 = vector.shape_cast %128 : vector<64xf32> to vector<64x1xf32>
    %130 = vector.broadcast %129 : vector<64x1xf32> to vector<64x64xf32>
    %131 = arith.subf %127, %130 : vector<64x64xf32>
    %132 = math.exp %131 : vector<64x64xf32>
    %cst_47 = arith.constant dense<0.000000e+00> : vector<64xf32>
    %133 = vector.multi_reduction <add>, %132, %cst_47 [1] : vector<64x64xf32> to vector<64xf32>
    %134 = vector.shape_cast %133 : vector<64xf32> to vector<64x1xf32>
    %135 = tpu.reciprocal %134 {approx = true} : vector<64x1xf32> -> vector<64x1xf32>
    %136 = vector.broadcast %135 : vector<64x1xf32> to vector<64x64xf32>
    %137 = arith.mulf %132, %136 : vector<64x64xf32>
    %138 = arith.truncf %137 : vector<64x64xf32> to vector<64x64xbf16>
    %cst_48 = arith.constant dense<0.000000e+00> : vector<64x16xf32>
    %139 = tpu.matmul %138, %126, %cst_48 {dimension_numbers = #tpu.dot_dimension_numbers<[1], [0], [0], [1], [0, 0, 1, 1], [], []>} : vector<64x64xbf16>, vector<64x16xbf16>, vector<64x16xf32> -> vector<64x16xf32>
    %140 = vector.extract_strided_slice %89 {offsets = [0, 48], sizes = [64, 16], strides = [1, 1]} : vector<64x64xbf16> to vector<64x16xbf16>
    %141 = vector.extract_strided_slice %90 {offsets = [0, 48], sizes = [64, 16], strides = [1, 1]} : vector<64x64xbf16> to vector<64x16xbf16>
    %142 = vector.extract_strided_slice %91 {offsets = [0, 48], sizes = [64, 16], strides = [1, 1]} : vector<64x64xbf16> to vector<64x16xbf16>
    %cst_49 = arith.constant dense<0.000000e+00> : vector<64x64xf32>
    %143 = tpu.matmul %140, %141, %cst_49 {dimension_numbers = #tpu.dot_dimension_numbers<[1], [1], [0], [0], [0, 0, 1, 0], [], []>} : vector<64x16xbf16>, vector<64x16xbf16>, vector<64x64xf32> -> vector<64x64xf32>
    %cst_50 = arith.constant dense<0xFF800000> : vector<64xf32>
    %144 = vector.multi_reduction <maximumf>, %143, %cst_50 [1] : vector<64x64xf32> to vector<64xf32>
    %145 = vector.shape_cast %144 : vector<64xf32> to vector<64x1xf32>
    %146 = vector.broadcast %145 : vector<64x1xf32> to vector<64x64xf32>
    %147 = arith.subf %143, %146 : vector<64x64xf32>
    %148 = math.exp %147 : vector<64x64xf32>
    %cst_51 = arith.constant dense<0.000000e+00> : vector<64xf32>
    %149 = vector.multi_reduction <add>, %148, %cst_51 [1] : vector<64x64xf32> to vector<64xf32>
    %150 = vector.shape_cast %149 : vector<64xf32> to vector<64x1xf32>
    %151 = tpu.reciprocal %150 {approx = true} : vector<64x1xf32> -> vector<64x1xf32>
    %152 = vector.broadcast %151 : vector<64x1xf32> to vector<64x64xf32>
    %153 = arith.mulf %148, %152 : vector<64x64xf32>
    %154 = arith.truncf %153 : vector<64x64xf32> to vector<64x64xbf16>
    %cst_52 = arith.constant dense<0.000000e+00> : vector<64x16xf32>
    %155 = tpu.matmul %154, %142, %cst_52 {dimension_numbers = #tpu.dot_dimension_numbers<[1], [0], [0], [1], [0, 0, 1, 1], [], []>} : vector<64x64xbf16>, vector<64x16xbf16>, vector<64x16xf32> -> vector<64x16xf32>
    %156 = tpu.concatenate %107, %123, %139, %155 in 1 : vector<64x16xf32>, vector<64x16xf32>, vector<64x16xf32>, vector<64x16xf32> -> vector<64x64xf32>
    %157 = arith.truncf %156 : vector<64x64xf32> to vector<64x64xbf16>
    %158 = vector.extract_strided_slice %86 {offsets = [64, 0], sizes = [64, 64], strides = [1, 1]} : vector<128x64xbf16> to vector<64x64xbf16>
    %159 = vector.extract_strided_slice %87 {offsets = [64, 0], sizes = [64, 64], strides = [1, 1]} : vector<128x64xbf16> to vector<64x64xbf16>
    %160 = vector.extract_strided_slice %88 {offsets = [64, 0], sizes = [64, 64], strides = [1, 1]} : vector<128x64xbf16> to vector<64x64xbf16>
    %161 = vector.extract_strided_slice %158 {offsets = [0, 0], sizes = [64, 16], strides = [1, 1]} : vector<64x64xbf16> to vector<64x16xbf16>
    %162 = vector.extract_strided_slice %159 {offsets = [0, 0], sizes = [64, 16], strides = [1, 1]} : vector<64x64xbf16> to vector<64x16xbf16>
    %163 = vector.extract_strided_slice %160 {offsets = [0, 0], sizes = [64, 16], strides = [1, 1]} : vector<64x64xbf16> to vector<64x16xbf16>
    %cst_53 = arith.constant dense<0.000000e+00> : vector<64x64xf32>
    %164 = tpu.matmul %161, %162, %cst_53 {dimension_numbers = #tpu.dot_dimension_numbers<[1], [1], [0], [0], [0, 0, 1, 0], [], []>} : vector<64x16xbf16>, vector<64x16xbf16>, vector<64x64xf32> -> vector<64x64xf32>
    %cst_54 = arith.constant dense<0xFF800000> : vector<64xf32>
    %165 = vector.multi_reduction <maximumf>, %164, %cst_54 [1] : vector<64x64xf32> to vector<64xf32>
    %166 = vector.shape_cast %165 : vector<64xf32> to vector<64x1xf32>
    %167 = vector.broadcast %166 : vector<64x1xf32> to vector<64x64xf32>
    %168 = arith.subf %164, %167 : vector<64x64xf32>
    %169 = math.exp %168 : vector<64x64xf32>
    %cst_55 = arith.constant dense<0.000000e+00> : vector<64xf32>
    %170 = vector.multi_reduction <add>, %169, %cst_55 [1] : vector<64x64xf32> to vector<64xf32>
    %171 = vector.shape_cast %170 : vector<64xf32> to vector<64x1xf32>
    %172 = tpu.reciprocal %171 {approx = true} : vector<64x1xf32> -> vector<64x1xf32>
    %173 = vector.broadcast %172 : vector<64x1xf32> to vector<64x64xf32>
    %174 = arith.mulf %169, %173 : vector<64x64xf32>
    %175 = arith.truncf %174 : vector<64x64xf32> to vector<64x64xbf16>
    %cst_56 = arith.constant dense<0.000000e+00> : vector<64x16xf32>
    %176 = tpu.matmul %175, %163, %cst_56 {dimension_numbers = #tpu.dot_dimension_numbers<[1], [0], [0], [1], [0, 0, 1, 1], [], []>} : vector<64x64xbf16>, vector<64x16xbf16>, vector<64x16xf32> -> vector<64x16xf32>
    %177 = vector.extract_strided_slice %158 {offsets = [0, 16], sizes = [64, 16], strides = [1, 1]} : vector<64x64xbf16> to vector<64x16xbf16>
    %178 = vector.extract_strided_slice %159 {offsets = [0, 16], sizes = [64, 16], strides = [1, 1]} : vector<64x64xbf16> to vector<64x16xbf16>
    %179 = vector.extract_strided_slice %160 {offsets = [0, 16], sizes = [64, 16], strides = [1, 1]} : vector<64x64xbf16> to vector<64x16xbf16>
    %cst_57 = arith.constant dense<0.000000e+00> : vector<64x64xf32>
    %180 = tpu.matmul %177, %178, %cst_57 {dimension_numbers = #tpu.dot_dimension_numbers<[1], [1], [0], [0], [0, 0, 1, 0], [], []>} : vector<64x16xbf16>, vector<64x16xbf16>, vector<64x64xf32> -> vector<64x64xf32>
    %cst_58 = arith.constant dense<0xFF800000> : vector<64xf32>
    %181 = vector.multi_reduction <maximumf>, %180, %cst_58 [1] : vector<64x64xf32> to vector<64xf32>
    %182 = vector.shape_cast %181 : vector<64xf32> to vector<64x1xf32>
    %183 = vector.broadcast %182 : vector<64x1xf32> to vector<64x64xf32>
    %184 = arith.subf %180, %183 : vector<64x64xf32>
    %185 = math.exp %184 : vector<64x64xf32>
    %cst_59 = arith.constant dense<0.000000e+00> : vector<64xf32>
    %186 = vector.multi_reduction <add>, %185, %cst_59 [1] : vector<64x64xf32> to vector<64xf32>
    %187 = vector.shape_cast %186 : vector<64xf32> to vector<64x1xf32>
    %188 = tpu.reciprocal %187 {approx = true} : vector<64x1xf32> -> vector<64x1xf32>
    %189 = vector.broadcast %188 : vector<64x1xf32> to vector<64x64xf32>
    %190 = arith.mulf %185, %189 : vector<64x64xf32>
    %191 = arith.truncf %190 : vector<64x64xf32> to vector<64x64xbf16>
    %cst_60 = arith.constant dense<0.000000e+00> : vector<64x16xf32>
    %192 = tpu.matmul %191, %179, %cst_60 {dimension_numbers = #tpu.dot_dimension_numbers<[1], [0], [0], [1], [0, 0, 1, 1], [], []>} : vector<64x64xbf16>, vector<64x16xbf16>, vector<64x16xf32> -> vector<64x16xf32>
    %193 = vector.extract_strided_slice %158 {offsets = [0, 32], sizes = [64, 16], strides = [1, 1]} : vector<64x64xbf16> to vector<64x16xbf16>
    %194 = vector.extract_strided_slice %159 {offsets = [0, 32], sizes = [64, 16], strides = [1, 1]} : vector<64x64xbf16> to vector<64x16xbf16>
    %195 = vector.extract_strided_slice %160 {offsets = [0, 32], sizes = [64, 16], strides = [1, 1]} : vector<64x64xbf16> to vector<64x16xbf16>
    %cst_61 = arith.constant dense<0.000000e+00> : vector<64x64xf32>
    %196 = tpu.matmul %193, %194, %cst_61 {dimension_numbers = #tpu.dot_dimension_numbers<[1], [1], [0], [0], [0, 0, 1, 0], [], []>} : vector<64x16xbf16>, vector<64x16xbf16>, vector<64x64xf32> -> vector<64x64xf32>
    %cst_62 = arith.constant dense<0xFF800000> : vector<64xf32>
    %197 = vector.multi_reduction <maximumf>, %196, %cst_62 [1] : vector<64x64xf32> to vector<64xf32>
    %198 = vector.shape_cast %197 : vector<64xf32> to vector<64x1xf32>
    %199 = vector.broadcast %198 : vector<64x1xf32> to vector<64x64xf32>
    %200 = arith.subf %196, %199 : vector<64x64xf32>
    %201 = math.exp %200 : vector<64x64xf32>
    %cst_63 = arith.constant dense<0.000000e+00> : vector<64xf32>
    %202 = vector.multi_reduction <add>, %201, %cst_63 [1] : vector<64x64xf32> to vector<64xf32>
    %203 = vector.shape_cast %202 : vector<64xf32> to vector<64x1xf32>
    %204 = tpu.reciprocal %203 {approx = true} : vector<64x1xf32> -> vector<64x1xf32>
    %205 = vector.broadcast %204 : vector<64x1xf32> to vector<64x64xf32>
    %206 = arith.mulf %201, %205 : vector<64x64xf32>
    %207 = arith.truncf %206 : vector<64x64xf32> to vector<64x64xbf16>
    %cst_64 = arith.constant dense<0.000000e+00> : vector<64x16xf32>
    %208 = tpu.matmul %207, %195, %cst_64 {dimension_numbers = #tpu.dot_dimension_numbers<[1], [0], [0], [1], [0, 0, 1, 1], [], []>} : vector<64x64xbf16>, vector<64x16xbf16>, vector<64x16xf32> -> vector<64x16xf32>
    %209 = vector.extract_strided_slice %158 {offsets = [0, 48], sizes = [64, 16], strides = [1, 1]} : vector<64x64xbf16> to vector<64x16xbf16>
    %210 = vector.extract_strided_slice %159 {offsets = [0, 48], sizes = [64, 16], strides = [1, 1]} : vector<64x64xbf16> to vector<64x16xbf16>
    %211 = vector.extract_strided_slice %160 {offsets = [0, 48], sizes = [64, 16], strides = [1, 1]} : vector<64x64xbf16> to vector<64x16xbf16>
    %cst_65 = arith.constant dense<0.000000e+00> : vector<64x64xf32>
    %212 = tpu.matmul %209, %210, %cst_65 {dimension_numbers = #tpu.dot_dimension_numbers<[1], [1], [0], [0], [0, 0, 1, 0], [], []>} : vector<64x16xbf16>, vector<64x16xbf16>, vector<64x64xf32> -> vector<64x64xf32>
    %cst_66 = arith.constant dense<0xFF800000> : vector<64xf32>
    %213 = vector.multi_reduction <maximumf>, %212, %cst_66 [1] : vector<64x64xf32> to vector<64xf32>
    %214 = vector.shape_cast %213 : vector<64xf32> to vector<64x1xf32>
    %215 = vector.broadcast %214 : vector<64x1xf32> to vector<64x64xf32>
    %216 = arith.subf %212, %215 : vector<64x64xf32>
    %217 = math.exp %216 : vector<64x64xf32>
    %cst_67 = arith.constant dense<0.000000e+00> : vector<64xf32>
    %218 = vector.multi_reduction <add>, %217, %cst_67 [1] : vector<64x64xf32> to vector<64xf32>
    %219 = vector.shape_cast %218 : vector<64xf32> to vector<64x1xf32>
    %220 = tpu.reciprocal %219 {approx = true} : vector<64x1xf32> -> vector<64x1xf32>
    %221 = vector.broadcast %220 : vector<64x1xf32> to vector<64x64xf32>
    %222 = arith.mulf %217, %221 : vector<64x64xf32>
    %223 = arith.truncf %222 : vector<64x64xf32> to vector<64x64xbf16>
    %cst_68 = arith.constant dense<0.000000e+00> : vector<64x16xf32>
    %224 = tpu.matmul %223, %211, %cst_68 {dimension_numbers = #tpu.dot_dimension_numbers<[1], [0], [0], [1], [0, 0, 1, 1], [], []>} : vector<64x64xbf16>, vector<64x16xbf16>, vector<64x16xf32> -> vector<64x16xf32>
    %225 = tpu.concatenate %176, %192, %208, %224 in 1 : vector<64x16xf32>, vector<64x16xf32>, vector<64x16xf32>, vector<64x16xf32> -> vector<64x64xf32>
    %226 = arith.truncf %225 : vector<64x64xf32> to vector<64x64xbf16>
    %227 = tpu.concatenate %157, %226 in 0 : vector<64x64xbf16>, vector<64x64xbf16> -> vector<128x64xbf16>
    %c0_69 = arith.constant 0 : index
    %c0_70 = arith.constant 0 : index
    %c0_71 = arith.constant 0 : index
    %228 = vector.load %arg10[%c0_69, %c0_70, %c0_71] : memref<2x64x64xbf16, #tpu.memory_space<vmem>>, vector<1x64x64xbf16>
    %229 = vector.shape_cast %228 : vector<1x64x64xbf16> to vector<64x64xbf16>
    %cst_72 = arith.constant dense<0.000000e+00> : vector<128x64xf32>
    %230 = tpu.matmul %227, %229, %cst_72 {dimension_numbers = #tpu.dot_dimension_numbers<[1], [0], [0], [1], [0, 0, 1, 1], [], []>} : vector<128x64xbf16>, vector<64x64xbf16>, vector<128x64xf32> -> vector<128x64xf32>
    %231 = arith.addf %14, %230 : vector<128x64xf32>
    %232 = vector.broadcast %40 : vector<1x64xf32> to vector<128x64xf32>
    %233 = arith.addf %231, %232 : vector<128x64xf32>
    %cst_73 = arith.constant dense<0.000000e+00> : vector<128xf32>
    %234 = vector.multi_reduction <add>, %233, %cst_73 [1] : vector<128x64xf32> to vector<128xf32>
    %235 = vector.shape_cast %234 : vector<128xf32> to vector<128x1xf32>
    %cst_74 = arith.constant 6.400000e+01 : f32
    %236 = vector.broadcast %cst_74 : f32 to vector<128x1xf32>
    %237 = arith.divf %235, %236 : vector<128x1xf32>
    %238 = vector.broadcast %237 : vector<128x1xf32> to vector<128x64xf32>
    %239 = arith.subf %233, %238 : vector<128x64xf32>
    %240 = arith.mulf %239, %239 : vector<128x64xf32>
    %cst_75 = arith.constant dense<0.000000e+00> : vector<128xf32>
    %241 = vector.multi_reduction <add>, %240, %cst_75 [1] : vector<128x64xf32> to vector<128xf32>
    %242 = vector.shape_cast %241 : vector<128xf32> to vector<128x1xf32>
    %cst_76 = arith.constant 6.400000e+01 : f32
    %243 = vector.broadcast %cst_76 : f32 to vector<128x1xf32>
    %244 = arith.divf %242, %243 : vector<128x1xf32>
    %245 = vector.broadcast %237 : vector<128x1xf32> to vector<128x64xf32>
    %246 = arith.subf %233, %245 : vector<128x64xf32>
    %cst_77 = arith.constant 9.99999974E-6 : f32
    %247 = vector.broadcast %cst_77 : f32 to vector<128x1xf32>
    %248 = arith.addf %244, %247 : vector<128x1xf32>
    %249 = math.rsqrt %248 : vector<128x1xf32>
    %250 = vector.broadcast %249 : vector<128x1xf32> to vector<128x64xf32>
    %251 = arith.mulf %246, %250 : vector<128x64xf32>
    %252 = vector.broadcast %38 : vector<1x64xf32> to vector<128x64xf32>
    %253 = arith.mulf %251, %252 : vector<128x64xf32>
    %254 = vector.broadcast %39 : vector<1x64xf32> to vector<128x64xf32>
    %255 = arith.addf %253, %254 : vector<128x64xf32>
    %256 = arith.truncf %255 : vector<128x64xf32> to vector<128x64xbf16>
    %c0_78 = arith.constant 0 : index
    %c0_79 = arith.constant 0 : index
    %c0_80 = arith.constant 0 : index
    %257 = vector.load %arg11[%c0_78, %c0_79, %c0_80] : memref<2x64x256xbf16, #tpu.memory_space<vmem>>, vector<1x64x256xbf16>
    %258 = vector.shape_cast %257 : vector<1x64x256xbf16> to vector<64x256xbf16>
    %cst_81 = arith.constant dense<0.000000e+00> : vector<128x256xf32>
    %259 = tpu.matmul %256, %258, %cst_81 {dimension_numbers = #tpu.dot_dimension_numbers<[1], [0], [0], [1], [0, 0, 1, 1], [], []>} : vector<128x64xbf16>, vector<64x256xbf16>, vector<128x256xf32> -> vector<128x256xf32>
    %260 = vector.broadcast %45 : vector<1x256xf32> to vector<128x256xf32>
    %261 = arith.addf %259, %260 : vector<128x256xf32>
    %262 = arith.mulf %261, %261 : vector<128x256xf32>
    %263 = arith.mulf %261, %262 : vector<128x256xf32>
    %cst_82 = arith.constant 4.471500e-02 : f32
    %264 = vector.broadcast %cst_82 : f32 to vector<128x256xf32>
    %265 = arith.mulf %264, %263 : vector<128x256xf32>
    %266 = arith.addf %261, %265 : vector<128x256xf32>
    %cst_83 = arith.constant 0.797884583 : f32
    %267 = vector.broadcast %cst_83 : f32 to vector<128x256xf32>
    %268 = arith.mulf %267, %266 : vector<128x256xf32>
    %269 = math.tanh %268 : vector<128x256xf32>
    %cst_84 = arith.constant 1.000000e+00 : f32
    %270 = vector.broadcast %cst_84 : f32 to vector<128x256xf32>
    %271 = arith.addf %270, %269 : vector<128x256xf32>
    %cst_85 = arith.constant 5.000000e-01 : f32
    %272 = vector.broadcast %cst_85 : f32 to vector<128x256xf32>
    %273 = arith.mulf %272, %271 : vector<128x256xf32>
    %274 = arith.mulf %261, %273 : vector<128x256xf32>
    %275 = arith.truncf %274 : vector<128x256xf32> to vector<128x256xbf16>
    %c0_86 = arith.constant 0 : index
    %c0_87 = arith.constant 0 : index
    %c0_88 = arith.constant 0 : index
    %276 = vector.load %arg12[%c0_86, %c0_87, %c0_88] : memref<2x256x64xbf16, #tpu.memory_space<vmem>>, vector<1x256x64xbf16>
    %277 = vector.shape_cast %276 : vector<1x256x64xbf16> to vector<256x64xbf16>
    %cst_89 = arith.constant dense<0.000000e+00> : vector<128x64xf32>
    %278 = tpu.matmul %275, %277, %cst_89 {dimension_numbers = #tpu.dot_dimension_numbers<[1], [0], [0], [1], [0, 0, 1, 1], [], []>} : vector<128x256xbf16>, vector<256x64xbf16>, vector<128x64xf32> -> vector<128x64xf32>
    %279 = arith.addf %233, %278 : vector<128x64xf32>
    %280 = vector.broadcast %41 : vector<1x64xf32> to vector<128x64xf32>
    %281 = arith.addf %279, %280 : vector<128x64xf32>
    %c1 = arith.constant 1 : index
    %c0_90 = arith.constant 0 : index
    %c0_91 = arith.constant 0 : index
    %282 = vector.load %arg13[%c1, %c0_90, %c0_91] : memref<2x6x64xf32, #tpu.memory_space<vmem>>, vector<1x6x64xf32>
    %283 = vector.shape_cast %282 : vector<1x6x64xf32> to vector<6x64xf32>
    %284 = vector.extract_strided_slice %283 {offsets = [0, 0], sizes = [1, 64], strides = [1, 1]} : vector<6x64xf32> to vector<1x64xf32>
    %285 = vector.extract_strided_slice %283 {offsets = [1, 0], sizes = [1, 64], strides = [1, 1]} : vector<6x64xf32> to vector<1x64xf32>
    %286 = vector.extract_strided_slice %283 {offsets = [2, 0], sizes = [1, 64], strides = [1, 1]} : vector<6x64xf32> to vector<1x64xf32>
    %287 = vector.extract_strided_slice %283 {offsets = [3, 0], sizes = [1, 64], strides = [1, 1]} : vector<6x64xf32> to vector<1x64xf32>
    %288 = vector.extract_strided_slice %283 {offsets = [4, 0], sizes = [1, 64], strides = [1, 1]} : vector<6x64xf32> to vector<1x64xf32>
    %289 = vector.extract_strided_slice %283 {offsets = [5, 0], sizes = [1, 64], strides = [1, 1]} : vector<6x64xf32> to vector<1x64xf32>
    %c1_92 = arith.constant 1 : index
    %c0_93 = arith.constant 0 : index
    %c0_94 = arith.constant 0 : index
    %290 = vector.load %arg14[%c1_92, %c0_93, %c0_94] : memref<2x2x256xf32, #tpu.memory_space<vmem>>, vector<1x2x256xf32>
    %291 = vector.shape_cast %290 : vector<1x2x256xf32> to vector<2x256xf32>
    %292 = vector.extract_strided_slice %291 {offsets = [0, 0], sizes = [1, 192], strides = [1, 1]} : vector<2x256xf32> to vector<1x192xf32>
    %293 = vector.extract_strided_slice %291 {offsets = [1, 0], sizes = [1, 256], strides = [1, 1]} : vector<2x256xf32> to vector<1x256xf32>
    %c1_95 = arith.constant 1 : index
    %c0_96 = arith.constant 0 : index
    %c0_97 = arith.constant 0 : index
    %294 = vector.load %arg9[%c1_95, %c0_96, %c0_97] : memref<2x64x192xbf16, #tpu.memory_space<vmem>>, vector<1x64x192xbf16>
    %295 = vector.shape_cast %294 : vector<1x64x192xbf16> to vector<64x192xbf16>
    %cst_98 = arith.constant dense<0.000000e+00> : vector<2x192xf32>
    %296 = tpu.matmul %33, %295, %cst_98 {dimension_numbers = #tpu.dot_dimension_numbers<[1], [0], [0], [1], [0, 0, 1, 1], [], []>} : vector<2x64xbf16>, vector<64x192xbf16>, vector<2x192xf32> -> vector<2x192xf32>
    %297 = vector.broadcast %292 : vector<1x192xf32> to vector<2x192xf32>
    %298 = arith.addf %296, %297 : vector<2x192xf32>
    %299 = vector.extract_strided_slice %298 {offsets = [0, 0], sizes = [1, 192], strides = [1, 1]} : vector<2x192xf32> to vector<1x192xf32>
    %300 = vector.shape_cast %299 : vector<1x192xf32> to vector<1x192xf32>
    %301 = vector.broadcast %300 : vector<1x192xf32> to vector<64x192xf32>
    %302 = vector.extract_strided_slice %298 {offsets = [1, 0], sizes = [1, 192], strides = [1, 1]} : vector<2x192xf32> to vector<1x192xf32>
    %303 = vector.shape_cast %302 : vector<1x192xf32> to vector<1x192xf32>
    %304 = vector.broadcast %303 : vector<1x192xf32> to vector<64x192xf32>
    %305 = tpu.concatenate %301, %304 in 0 : vector<64x192xf32>, vector<64x192xf32> -> vector<128x192xf32>
    %cst_99 = arith.constant dense<0.000000e+00> : vector<128xf32>
    %306 = vector.multi_reduction <add>, %281, %cst_99 [1] : vector<128x64xf32> to vector<128xf32>
    %307 = vector.shape_cast %306 : vector<128xf32> to vector<128x1xf32>
    %cst_100 = arith.constant 6.400000e+01 : f32
    %308 = vector.broadcast %cst_100 : f32 to vector<128x1xf32>
    %309 = arith.divf %307, %308 : vector<128x1xf32>
    %310 = vector.broadcast %309 : vector<128x1xf32> to vector<128x64xf32>
    %311 = arith.subf %281, %310 : vector<128x64xf32>
    %312 = arith.mulf %311, %311 : vector<128x64xf32>
    %cst_101 = arith.constant dense<0.000000e+00> : vector<128xf32>
    %313 = vector.multi_reduction <add>, %312, %cst_101 [1] : vector<128x64xf32> to vector<128xf32>
    %314 = vector.shape_cast %313 : vector<128xf32> to vector<128x1xf32>
    %cst_102 = arith.constant 6.400000e+01 : f32
    %315 = vector.broadcast %cst_102 : f32 to vector<128x1xf32>
    %316 = arith.divf %314, %315 : vector<128x1xf32>
    %317 = vector.broadcast %309 : vector<128x1xf32> to vector<128x64xf32>
    %318 = arith.subf %281, %317 : vector<128x64xf32>
    %cst_103 = arith.constant 9.99999974E-6 : f32
    %319 = vector.broadcast %cst_103 : f32 to vector<128x1xf32>
    %320 = arith.addf %316, %319 : vector<128x1xf32>
    %321 = math.rsqrt %320 : vector<128x1xf32>
    %322 = vector.broadcast %321 : vector<128x1xf32> to vector<128x64xf32>
    %323 = arith.mulf %318, %322 : vector<128x64xf32>
    %324 = vector.broadcast %284 : vector<1x64xf32> to vector<128x64xf32>
    %325 = arith.mulf %323, %324 : vector<128x64xf32>
    %326 = vector.broadcast %285 : vector<1x64xf32> to vector<128x64xf32>
    %327 = arith.addf %325, %326 : vector<128x64xf32>
    %328 = arith.truncf %327 : vector<128x64xf32> to vector<128x64xbf16>
    %c1_104 = arith.constant 1 : index
    %c0_105 = arith.constant 0 : index
    %c0_106 = arith.constant 0 : index
    %329 = vector.load %arg8[%c1_104, %c0_105, %c0_106] : memref<2x64x192xbf16, #tpu.memory_space<vmem>>, vector<1x64x192xbf16>
    %330 = vector.shape_cast %329 : vector<1x64x192xbf16> to vector<64x192xbf16>
    %cst_107 = arith.constant dense<0.000000e+00> : vector<128x192xf32>
    %331 = tpu.matmul %328, %330, %cst_107 {dimension_numbers = #tpu.dot_dimension_numbers<[1], [0], [0], [1], [0, 0, 1, 1], [], []>} : vector<128x64xbf16>, vector<64x192xbf16>, vector<128x192xf32> -> vector<128x192xf32>
    %332 = arith.addf %331, %305 : vector<128x192xf32>
    %333 = arith.truncf %332 : vector<128x192xf32> to vector<128x192xbf16>
    %334 = vector.extract_strided_slice %333 {offsets = [0, 0], sizes = [128, 64], strides = [1, 1]} : vector<128x192xbf16> to vector<128x64xbf16>
    %335 = vector.extract_strided_slice %333 {offsets = [0, 64], sizes = [128, 64], strides = [1, 1]} : vector<128x192xbf16> to vector<128x64xbf16>
    %336 = vector.extract_strided_slice %333 {offsets = [0, 128], sizes = [128, 64], strides = [1, 1]} : vector<128x192xbf16> to vector<128x64xbf16>
    %337 = vector.extract_strided_slice %334 {offsets = [0, 0], sizes = [64, 64], strides = [1, 1]} : vector<128x64xbf16> to vector<64x64xbf16>
    %338 = vector.extract_strided_slice %335 {offsets = [0, 0], sizes = [64, 64], strides = [1, 1]} : vector<128x64xbf16> to vector<64x64xbf16>
    %339 = vector.extract_strided_slice %336 {offsets = [0, 0], sizes = [64, 64], strides = [1, 1]} : vector<128x64xbf16> to vector<64x64xbf16>
    %340 = vector.extract_strided_slice %337 {offsets = [0, 0], sizes = [64, 16], strides = [1, 1]} : vector<64x64xbf16> to vector<64x16xbf16>
    %341 = vector.extract_strided_slice %338 {offsets = [0, 0], sizes = [64, 16], strides = [1, 1]} : vector<64x64xbf16> to vector<64x16xbf16>
    %342 = vector.extract_strided_slice %339 {offsets = [0, 0], sizes = [64, 16], strides = [1, 1]} : vector<64x64xbf16> to vector<64x16xbf16>
    %cst_108 = arith.constant dense<0.000000e+00> : vector<64x64xf32>
    %343 = tpu.matmul %340, %341, %cst_108 {dimension_numbers = #tpu.dot_dimension_numbers<[1], [1], [0], [0], [0, 0, 1, 0], [], []>} : vector<64x16xbf16>, vector<64x16xbf16>, vector<64x64xf32> -> vector<64x64xf32>
    %cst_109 = arith.constant dense<0xFF800000> : vector<64xf32>
    %344 = vector.multi_reduction <maximumf>, %343, %cst_109 [1] : vector<64x64xf32> to vector<64xf32>
    %345 = vector.shape_cast %344 : vector<64xf32> to vector<64x1xf32>
    %346 = vector.broadcast %345 : vector<64x1xf32> to vector<64x64xf32>
    %347 = arith.subf %343, %346 : vector<64x64xf32>
    %348 = math.exp %347 : vector<64x64xf32>
    %cst_110 = arith.constant dense<0.000000e+00> : vector<64xf32>
    %349 = vector.multi_reduction <add>, %348, %cst_110 [1] : vector<64x64xf32> to vector<64xf32>
    %350 = vector.shape_cast %349 : vector<64xf32> to vector<64x1xf32>
    %351 = tpu.reciprocal %350 {approx = true} : vector<64x1xf32> -> vector<64x1xf32>
    %352 = vector.broadcast %351 : vector<64x1xf32> to vector<64x64xf32>
    %353 = arith.mulf %348, %352 : vector<64x64xf32>
    %354 = arith.truncf %353 : vector<64x64xf32> to vector<64x64xbf16>
    %cst_111 = arith.constant dense<0.000000e+00> : vector<64x16xf32>
    %355 = tpu.matmul %354, %342, %cst_111 {dimension_numbers = #tpu.dot_dimension_numbers<[1], [0], [0], [1], [0, 0, 1, 1], [], []>} : vector<64x64xbf16>, vector<64x16xbf16>, vector<64x16xf32> -> vector<64x16xf32>
    %356 = vector.extract_strided_slice %337 {offsets = [0, 16], sizes = [64, 16], strides = [1, 1]} : vector<64x64xbf16> to vector<64x16xbf16>
    %357 = vector.extract_strided_slice %338 {offsets = [0, 16], sizes = [64, 16], strides = [1, 1]} : vector<64x64xbf16> to vector<64x16xbf16>
    %358 = vector.extract_strided_slice %339 {offsets = [0, 16], sizes = [64, 16], strides = [1, 1]} : vector<64x64xbf16> to vector<64x16xbf16>
    %cst_112 = arith.constant dense<0.000000e+00> : vector<64x64xf32>
    %359 = tpu.matmul %356, %357, %cst_112 {dimension_numbers = #tpu.dot_dimension_numbers<[1], [1], [0], [0], [0, 0, 1, 0], [], []>} : vector<64x16xbf16>, vector<64x16xbf16>, vector<64x64xf32> -> vector<64x64xf32>
    %cst_113 = arith.constant dense<0xFF800000> : vector<64xf32>
    %360 = vector.multi_reduction <maximumf>, %359, %cst_113 [1] : vector<64x64xf32> to vector<64xf32>
    %361 = vector.shape_cast %360 : vector<64xf32> to vector<64x1xf32>
    %362 = vector.broadcast %361 : vector<64x1xf32> to vector<64x64xf32>
    %363 = arith.subf %359, %362 : vector<64x64xf32>
    %364 = math.exp %363 : vector<64x64xf32>
    %cst_114 = arith.constant dense<0.000000e+00> : vector<64xf32>
    %365 = vector.multi_reduction <add>, %364, %cst_114 [1] : vector<64x64xf32> to vector<64xf32>
    %366 = vector.shape_cast %365 : vector<64xf32> to vector<64x1xf32>
    %367 = tpu.reciprocal %366 {approx = true} : vector<64x1xf32> -> vector<64x1xf32>
    %368 = vector.broadcast %367 : vector<64x1xf32> to vector<64x64xf32>
    %369 = arith.mulf %364, %368 : vector<64x64xf32>
    %370 = arith.truncf %369 : vector<64x64xf32> to vector<64x64xbf16>
    %cst_115 = arith.constant dense<0.000000e+00> : vector<64x16xf32>
    %371 = tpu.matmul %370, %358, %cst_115 {dimension_numbers = #tpu.dot_dimension_numbers<[1], [0], [0], [1], [0, 0, 1, 1], [], []>} : vector<64x64xbf16>, vector<64x16xbf16>, vector<64x16xf32> -> vector<64x16xf32>
    %372 = vector.extract_strided_slice %337 {offsets = [0, 32], sizes = [64, 16], strides = [1, 1]} : vector<64x64xbf16> to vector<64x16xbf16>
    %373 = vector.extract_strided_slice %338 {offsets = [0, 32], sizes = [64, 16], strides = [1, 1]} : vector<64x64xbf16> to vector<64x16xbf16>
    %374 = vector.extract_strided_slice %339 {offsets = [0, 32], sizes = [64, 16], strides = [1, 1]} : vector<64x64xbf16> to vector<64x16xbf16>
    %cst_116 = arith.constant dense<0.000000e+00> : vector<64x64xf32>
    %375 = tpu.matmul %372, %373, %cst_116 {dimension_numbers = #tpu.dot_dimension_numbers<[1], [1], [0], [0], [0, 0, 1, 0], [], []>} : vector<64x16xbf16>, vector<64x16xbf16>, vector<64x64xf32> -> vector<64x64xf32>
    %cst_117 = arith.constant dense<0xFF800000> : vector<64xf32>
    %376 = vector.multi_reduction <maximumf>, %375, %cst_117 [1] : vector<64x64xf32> to vector<64xf32>
    %377 = vector.shape_cast %376 : vector<64xf32> to vector<64x1xf32>
    %378 = vector.broadcast %377 : vector<64x1xf32> to vector<64x64xf32>
    %379 = arith.subf %375, %378 : vector<64x64xf32>
    %380 = math.exp %379 : vector<64x64xf32>
    %cst_118 = arith.constant dense<0.000000e+00> : vector<64xf32>
    %381 = vector.multi_reduction <add>, %380, %cst_118 [1] : vector<64x64xf32> to vector<64xf32>
    %382 = vector.shape_cast %381 : vector<64xf32> to vector<64x1xf32>
    %383 = tpu.reciprocal %382 {approx = true} : vector<64x1xf32> -> vector<64x1xf32>
    %384 = vector.broadcast %383 : vector<64x1xf32> to vector<64x64xf32>
    %385 = arith.mulf %380, %384 : vector<64x64xf32>
    %386 = arith.truncf %385 : vector<64x64xf32> to vector<64x64xbf16>
    %cst_119 = arith.constant dense<0.000000e+00> : vector<64x16xf32>
    %387 = tpu.matmul %386, %374, %cst_119 {dimension_numbers = #tpu.dot_dimension_numbers<[1], [0], [0], [1], [0, 0, 1, 1], [], []>} : vector<64x64xbf16>, vector<64x16xbf16>, vector<64x16xf32> -> vector<64x16xf32>
    %388 = vector.extract_strided_slice %337 {offsets = [0, 48], sizes = [64, 16], strides = [1, 1]} : vector<64x64xbf16> to vector<64x16xbf16>
    %389 = vector.extract_strided_slice %338 {offsets = [0, 48], sizes = [64, 16], strides = [1, 1]} : vector<64x64xbf16> to vector<64x16xbf16>
    %390 = vector.extract_strided_slice %339 {offsets = [0, 48], sizes = [64, 16], strides = [1, 1]} : vector<64x64xbf16> to vector<64x16xbf16>
    %cst_120 = arith.constant dense<0.000000e+00> : vector<64x64xf32>
    %391 = tpu.matmul %388, %389, %cst_120 {dimension_numbers = #tpu.dot_dimension_numbers<[1], [1], [0], [0], [0, 0, 1, 0], [], []>} : vector<64x16xbf16>, vector<64x16xbf16>, vector<64x64xf32> -> vector<64x64xf32>
    %cst_121 = arith.constant dense<0xFF800000> : vector<64xf32>
    %392 = vector.multi_reduction <maximumf>, %391, %cst_121 [1] : vector<64x64xf32> to vector<64xf32>
    %393 = vector.shape_cast %392 : vector<64xf32> to vector<64x1xf32>
    %394 = vector.broadcast %393 : vector<64x1xf32> to vector<64x64xf32>
    %395 = arith.subf %391, %394 : vector<64x64xf32>
    %396 = math.exp %395 : vector<64x64xf32>
    %cst_122 = arith.constant dense<0.000000e+00> : vector<64xf32>
    %397 = vector.multi_reduction <add>, %396, %cst_122 [1] : vector<64x64xf32> to vector<64xf32>
    %398 = vector.shape_cast %397 : vector<64xf32> to vector<64x1xf32>
    %399 = tpu.reciprocal %398 {approx = true} : vector<64x1xf32> -> vector<64x1xf32>
    %400 = vector.broadcast %399 : vector<64x1xf32> to vector<64x64xf32>
    %401 = arith.mulf %396, %400 : vector<64x64xf32>
    %402 = arith.truncf %401 : vector<64x64xf32> to vector<64x64xbf16>
    %cst_123 = arith.constant dense<0.000000e+00> : vector<64x16xf32>
    %403 = tpu.matmul %402, %390, %cst_123 {dimension_numbers = #tpu.dot_dimension_numbers<[1], [0], [0], [1], [0, 0, 1, 1], [], []>} : vector<64x64xbf16>, vector<64x16xbf16>, vector<64x16xf32> -> vector<64x16xf32>
    %404 = tpu.concatenate %355, %371, %387, %403 in 1 : vector<64x16xf32>, vector<64x16xf32>, vector<64x16xf32>, vector<64x16xf32> -> vector<64x64xf32>
    %405 = arith.truncf %404 : vector<64x64xf32> to vector<64x64xbf16>
    %406 = vector.extract_strided_slice %334 {offsets = [64, 0], sizes = [64, 64], strides = [1, 1]} : vector<128x64xbf16> to vector<64x64xbf16>
    %407 = vector.extract_strided_slice %335 {offsets = [64, 0], sizes = [64, 64], strides = [1, 1]} : vector<128x64xbf16> to vector<64x64xbf16>
    %408 = vector.extract_strided_slice %336 {offsets = [64, 0], sizes = [64, 64], strides = [1, 1]} : vector<128x64xbf16> to vector<64x64xbf16>
    %409 = vector.extract_strided_slice %406 {offsets = [0, 0], sizes = [64, 16], strides = [1, 1]} : vector<64x64xbf16> to vector<64x16xbf16>
    %410 = vector.extract_strided_slice %407 {offsets = [0, 0], sizes = [64, 16], strides = [1, 1]} : vector<64x64xbf16> to vector<64x16xbf16>
    %411 = vector.extract_strided_slice %408 {offsets = [0, 0], sizes = [64, 16], strides = [1, 1]} : vector<64x64xbf16> to vector<64x16xbf16>
    %cst_124 = arith.constant dense<0.000000e+00> : vector<64x64xf32>
    %412 = tpu.matmul %409, %410, %cst_124 {dimension_numbers = #tpu.dot_dimension_numbers<[1], [1], [0], [0], [0, 0, 1, 0], [], []>} : vector<64x16xbf16>, vector<64x16xbf16>, vector<64x64xf32> -> vector<64x64xf32>
    %cst_125 = arith.constant dense<0xFF800000> : vector<64xf32>
    %413 = vector.multi_reduction <maximumf>, %412, %cst_125 [1] : vector<64x64xf32> to vector<64xf32>
    %414 = vector.shape_cast %413 : vector<64xf32> to vector<64x1xf32>
    %415 = vector.broadcast %414 : vector<64x1xf32> to vector<64x64xf32>
    %416 = arith.subf %412, %415 : vector<64x64xf32>
    %417 = math.exp %416 : vector<64x64xf32>
    %cst_126 = arith.constant dense<0.000000e+00> : vector<64xf32>
    %418 = vector.multi_reduction <add>, %417, %cst_126 [1] : vector<64x64xf32> to vector<64xf32>
    %419 = vector.shape_cast %418 : vector<64xf32> to vector<64x1xf32>
    %420 = tpu.reciprocal %419 {approx = true} : vector<64x1xf32> -> vector<64x1xf32>
    %421 = vector.broadcast %420 : vector<64x1xf32> to vector<64x64xf32>
    %422 = arith.mulf %417, %421 : vector<64x64xf32>
    %423 = arith.truncf %422 : vector<64x64xf32> to vector<64x64xbf16>
    %cst_127 = arith.constant dense<0.000000e+00> : vector<64x16xf32>
    %424 = tpu.matmul %423, %411, %cst_127 {dimension_numbers = #tpu.dot_dimension_numbers<[1], [0], [0], [1], [0, 0, 1, 1], [], []>} : vector<64x64xbf16>, vector<64x16xbf16>, vector<64x16xf32> -> vector<64x16xf32>
    %425 = vector.extract_strided_slice %406 {offsets = [0, 16], sizes = [64, 16], strides = [1, 1]} : vector<64x64xbf16> to vector<64x16xbf16>
    %426 = vector.extract_strided_slice %407 {offsets = [0, 16], sizes = [64, 16], strides = [1, 1]} : vector<64x64xbf16> to vector<64x16xbf16>
    %427 = vector.extract_strided_slice %408 {offsets = [0, 16], sizes = [64, 16], strides = [1, 1]} : vector<64x64xbf16> to vector<64x16xbf16>
    %cst_128 = arith.constant dense<0.000000e+00> : vector<64x64xf32>
    %428 = tpu.matmul %425, %426, %cst_128 {dimension_numbers = #tpu.dot_dimension_numbers<[1], [1], [0], [0], [0, 0, 1, 0], [], []>} : vector<64x16xbf16>, vector<64x16xbf16>, vector<64x64xf32> -> vector<64x64xf32>
    %cst_129 = arith.constant dense<0xFF800000> : vector<64xf32>
    %429 = vector.multi_reduction <maximumf>, %428, %cst_129 [1] : vector<64x64xf32> to vector<64xf32>
    %430 = vector.shape_cast %429 : vector<64xf32> to vector<64x1xf32>
    %431 = vector.broadcast %430 : vector<64x1xf32> to vector<64x64xf32>
    %432 = arith.subf %428, %431 : vector<64x64xf32>
    %433 = math.exp %432 : vector<64x64xf32>
    %cst_130 = arith.constant dense<0.000000e+00> : vector<64xf32>
    %434 = vector.multi_reduction <add>, %433, %cst_130 [1] : vector<64x64xf32> to vector<64xf32>
    %435 = vector.shape_cast %434 : vector<64xf32> to vector<64x1xf32>
    %436 = tpu.reciprocal %435 {approx = true} : vector<64x1xf32> -> vector<64x1xf32>
    %437 = vector.broadcast %436 : vector<64x1xf32> to vector<64x64xf32>
    %438 = arith.mulf %433, %437 : vector<64x64xf32>
    %439 = arith.truncf %438 : vector<64x64xf32> to vector<64x64xbf16>
    %cst_131 = arith.constant dense<0.000000e+00> : vector<64x16xf32>
    %440 = tpu.matmul %439, %427, %cst_131 {dimension_numbers = #tpu.dot_dimension_numbers<[1], [0], [0], [1], [0, 0, 1, 1], [], []>} : vector<64x64xbf16>, vector<64x16xbf16>, vector<64x16xf32> -> vector<64x16xf32>
    %441 = vector.extract_strided_slice %406 {offsets = [0, 32], sizes = [64, 16], strides = [1, 1]} : vector<64x64xbf16> to vector<64x16xbf16>
    %442 = vector.extract_strided_slice %407 {offsets = [0, 32], sizes = [64, 16], strides = [1, 1]} : vector<64x64xbf16> to vector<64x16xbf16>
    %443 = vector.extract_strided_slice %408 {offsets = [0, 32], sizes = [64, 16], strides = [1, 1]} : vector<64x64xbf16> to vector<64x16xbf16>
    %cst_132 = arith.constant dense<0.000000e+00> : vector<64x64xf32>
    %444 = tpu.matmul %441, %442, %cst_132 {dimension_numbers = #tpu.dot_dimension_numbers<[1], [1], [0], [0], [0, 0, 1, 0], [], []>} : vector<64x16xbf16>, vector<64x16xbf16>, vector<64x64xf32> -> vector<64x64xf32>
    %cst_133 = arith.constant dense<0xFF800000> : vector<64xf32>
    %445 = vector.multi_reduction <maximumf>, %444, %cst_133 [1] : vector<64x64xf32> to vector<64xf32>
    %446 = vector.shape_cast %445 : vector<64xf32> to vector<64x1xf32>
    %447 = vector.broadcast %446 : vector<64x1xf32> to vector<64x64xf32>
    %448 = arith.subf %444, %447 : vector<64x64xf32>
    %449 = math.exp %448 : vector<64x64xf32>
    %cst_134 = arith.constant dense<0.000000e+00> : vector<64xf32>
    %450 = vector.multi_reduction <add>, %449, %cst_134 [1] : vector<64x64xf32> to vector<64xf32>
    %451 = vector.shape_cast %450 : vector<64xf32> to vector<64x1xf32>
    %452 = tpu.reciprocal %451 {approx = true} : vector<64x1xf32> -> vector<64x1xf32>
    %453 = vector.broadcast %452 : vector<64x1xf32> to vector<64x64xf32>
    %454 = arith.mulf %449, %453 : vector<64x64xf32>
    %455 = arith.truncf %454 : vector<64x64xf32> to vector<64x64xbf16>
    %cst_135 = arith.constant dense<0.000000e+00> : vector<64x16xf32>
    %456 = tpu.matmul %455, %443, %cst_135 {dimension_numbers = #tpu.dot_dimension_numbers<[1], [0], [0], [1], [0, 0, 1, 1], [], []>} : vector<64x64xbf16>, vector<64x16xbf16>, vector<64x16xf32> -> vector<64x16xf32>
    %457 = vector.extract_strided_slice %406 {offsets = [0, 48], sizes = [64, 16], strides = [1, 1]} : vector<64x64xbf16> to vector<64x16xbf16>
    %458 = vector.extract_strided_slice %407 {offsets = [0, 48], sizes = [64, 16], strides = [1, 1]} : vector<64x64xbf16> to vector<64x16xbf16>
    %459 = vector.extract_strided_slice %408 {offsets = [0, 48], sizes = [64, 16], strides = [1, 1]} : vector<64x64xbf16> to vector<64x16xbf16>
    %cst_136 = arith.constant dense<0.000000e+00> : vector<64x64xf32>
    %460 = tpu.matmul %457, %458, %cst_136 {dimension_numbers = #tpu.dot_dimension_numbers<[1], [1], [0], [0], [0, 0, 1, 0], [], []>} : vector<64x16xbf16>, vector<64x16xbf16>, vector<64x64xf32> -> vector<64x64xf32>
    %cst_137 = arith.constant dense<0xFF800000> : vector<64xf32>
    %461 = vector.multi_reduction <maximumf>, %460, %cst_137 [1] : vector<64x64xf32> to vector<64xf32>
    %462 = vector.shape_cast %461 : vector<64xf32> to vector<64x1xf32>
    %463 = vector.broadcast %462 : vector<64x1xf32> to vector<64x64xf32>
    %464 = arith.subf %460, %463 : vector<64x64xf32>
    %465 = math.exp %464 : vector<64x64xf32>
    %cst_138 = arith.constant dense<0.000000e+00> : vector<64xf32>
    %466 = vector.multi_reduction <add>, %465, %cst_138 [1] : vector<64x64xf32> to vector<64xf32>
    %467 = vector.shape_cast %466 : vector<64xf32> to vector<64x1xf32>
    %468 = tpu.reciprocal %467 {approx = true} : vector<64x1xf32> -> vector<64x1xf32>
    %469 = vector.broadcast %468 : vector<64x1xf32> to vector<64x64xf32>
    %470 = arith.mulf %465, %469 : vector<64x64xf32>
    %471 = arith.truncf %470 : vector<64x64xf32> to vector<64x64xbf16>
    %cst_139 = arith.constant dense<0.000000e+00> : vector<64x16xf32>
    %472 = tpu.matmul %471, %459, %cst_139 {dimension_numbers = #tpu.dot_dimension_numbers<[1], [0], [0], [1], [0, 0, 1, 1], [], []>} : vector<64x64xbf16>, vector<64x16xbf16>, vector<64x16xf32> -> vector<64x16xf32>
    %473 = tpu.concatenate %424, %440, %456, %472 in 1 : vector<64x16xf32>, vector<64x16xf32>, vector<64x16xf32>, vector<64x16xf32> -> vector<64x64xf32>
    %474 = arith.truncf %473 : vector<64x64xf32> to vector<64x64xbf16>
    %475 = tpu.concatenate %405, %474 in 0 : vector<64x64xbf16>, vector<64x64xbf16> -> vector<128x64xbf16>
    %c1_140 = arith.constant 1 : index
    %c0_141 = arith.constant 0 : index
    %c0_142 = arith.constant 0 : index
    %476 = vector.load %arg10[%c1_140, %c0_141, %c0_142] : memref<2x64x64xbf16, #tpu.memory_space<vmem>>, vector<1x64x64xbf16>
    %477 = vector.shape_cast %476 : vector<1x64x64xbf16> to vector<64x64xbf16>
    %cst_143 = arith.constant dense<0.000000e+00> : vector<128x64xf32>
    %478 = tpu.matmul %475, %477, %cst_143 {dimension_numbers = #tpu.dot_dimension_numbers<[1], [0], [0], [1], [0, 0, 1, 1], [], []>} : vector<128x64xbf16>, vector<64x64xbf16>, vector<128x64xf32> -> vector<128x64xf32>
    %479 = arith.addf %281, %478 : vector<128x64xf32>
    %480 = vector.broadcast %288 : vector<1x64xf32> to vector<128x64xf32>
    %481 = arith.addf %479, %480 : vector<128x64xf32>
    %cst_144 = arith.constant dense<0.000000e+00> : vector<128xf32>
    %482 = vector.multi_reduction <add>, %481, %cst_144 [1] : vector<128x64xf32> to vector<128xf32>
    %483 = vector.shape_cast %482 : vector<128xf32> to vector<128x1xf32>
    %cst_145 = arith.constant 6.400000e+01 : f32
    %484 = vector.broadcast %cst_145 : f32 to vector<128x1xf32>
    %485 = arith.divf %483, %484 : vector<128x1xf32>
    %486 = vector.broadcast %485 : vector<128x1xf32> to vector<128x64xf32>
    %487 = arith.subf %481, %486 : vector<128x64xf32>
    %488 = arith.mulf %487, %487 : vector<128x64xf32>
    %cst_146 = arith.constant dense<0.000000e+00> : vector<128xf32>
    %489 = vector.multi_reduction <add>, %488, %cst_146 [1] : vector<128x64xf32> to vector<128xf32>
    %490 = vector.shape_cast %489 : vector<128xf32> to vector<128x1xf32>
    %cst_147 = arith.constant 6.400000e+01 : f32
    %491 = vector.broadcast %cst_147 : f32 to vector<128x1xf32>
    %492 = arith.divf %490, %491 : vector<128x1xf32>
    %493 = vector.broadcast %485 : vector<128x1xf32> to vector<128x64xf32>
    %494 = arith.subf %481, %493 : vector<128x64xf32>
    %cst_148 = arith.constant 9.99999974E-6 : f32
    %495 = vector.broadcast %cst_148 : f32 to vector<128x1xf32>
    %496 = arith.addf %492, %495 : vector<128x1xf32>
    %497 = math.rsqrt %496 : vector<128x1xf32>
    %498 = vector.broadcast %497 : vector<128x1xf32> to vector<128x64xf32>
    %499 = arith.mulf %494, %498 : vector<128x64xf32>
    %500 = vector.broadcast %286 : vector<1x64xf32> to vector<128x64xf32>
    %501 = arith.mulf %499, %500 : vector<128x64xf32>
    %502 = vector.broadcast %287 : vector<1x64xf32> to vector<128x64xf32>
    %503 = arith.addf %501, %502 : vector<128x64xf32>
    %504 = arith.truncf %503 : vector<128x64xf32> to vector<128x64xbf16>
    %c1_149 = arith.constant 1 : index
    %c0_150 = arith.constant 0 : index
    %c0_151 = arith.constant 0 : index
    %505 = vector.load %arg11[%c1_149, %c0_150, %c0_151] : memref<2x64x256xbf16, #tpu.memory_space<vmem>>, vector<1x64x256xbf16>
    %506 = vector.shape_cast %505 : vector<1x64x256xbf16> to vector<64x256xbf16>
    %cst_152 = arith.constant dense<0.000000e+00> : vector<128x256xf32>
    %507 = tpu.matmul %504, %506, %cst_152 {dimension_numbers = #tpu.dot_dimension_numbers<[1], [0], [0], [1], [0, 0, 1, 1], [], []>} : vector<128x64xbf16>, vector<64x256xbf16>, vector<128x256xf32> -> vector<128x256xf32>
    %508 = vector.broadcast %293 : vector<1x256xf32> to vector<128x256xf32>
    %509 = arith.addf %507, %508 : vector<128x256xf32>
    %510 = arith.mulf %509, %509 : vector<128x256xf32>
    %511 = arith.mulf %509, %510 : vector<128x256xf32>
    %cst_153 = arith.constant 4.471500e-02 : f32
    %512 = vector.broadcast %cst_153 : f32 to vector<128x256xf32>
    %513 = arith.mulf %512, %511 : vector<128x256xf32>
    %514 = arith.addf %509, %513 : vector<128x256xf32>
    %cst_154 = arith.constant 0.797884583 : f32
    %515 = vector.broadcast %cst_154 : f32 to vector<128x256xf32>
    %516 = arith.mulf %515, %514 : vector<128x256xf32>
    %517 = math.tanh %516 : vector<128x256xf32>
    %cst_155 = arith.constant 1.000000e+00 : f32
    %518 = vector.broadcast %cst_155 : f32 to vector<128x256xf32>
    %519 = arith.addf %518, %517 : vector<128x256xf32>
    %cst_156 = arith.constant 5.000000e-01 : f32
    %520 = vector.broadcast %cst_156 : f32 to vector<128x256xf32>
    %521 = arith.mulf %520, %519 : vector<128x256xf32>
    %522 = arith.mulf %509, %521 : vector<128x256xf32>
    %523 = arith.truncf %522 : vector<128x256xf32> to vector<128x256xbf16>
    %c1_157 = arith.constant 1 : index
    %c0_158 = arith.constant 0 : index
    %c0_159 = arith.constant 0 : index
    %524 = vector.load %arg12[%c1_157, %c0_158, %c0_159] : memref<2x256x64xbf16, #tpu.memory_space<vmem>>, vector<1x256x64xbf16>
    %525 = vector.shape_cast %524 : vector<1x256x64xbf16> to vector<256x64xbf16>
    %cst_160 = arith.constant dense<0.000000e+00> : vector<128x64xf32>
    %526 = tpu.matmul %523, %525, %cst_160 {dimension_numbers = #tpu.dot_dimension_numbers<[1], [0], [0], [1], [0, 0, 1, 1], [], []>} : vector<128x256xbf16>, vector<256x64xbf16>, vector<128x64xf32> -> vector<128x64xf32>
    %527 = arith.addf %481, %526 : vector<128x64xf32>
    %528 = vector.broadcast %289 : vector<1x64xf32> to vector<128x64xf32>
    %529 = arith.addf %527, %528 : vector<128x64xf32>
    %cst_161 = arith.constant dense<0.000000e+00> : vector<128xf32>
    %530 = vector.multi_reduction <add>, %529, %cst_161 [1] : vector<128x64xf32> to vector<128xf32>
    %531 = vector.shape_cast %530 : vector<128xf32> to vector<128x1xf32>
    %cst_162 = arith.constant 6.400000e+01 : f32
    %532 = vector.broadcast %cst_162 : f32 to vector<128x1xf32>
    %533 = arith.divf %531, %532 : vector<128x1xf32>
    %534 = vector.broadcast %533 : vector<128x1xf32> to vector<128x64xf32>
    %535 = arith.subf %529, %534 : vector<128x64xf32>
    %536 = arith.mulf %535, %535 : vector<128x64xf32>
    %cst_163 = arith.constant dense<0.000000e+00> : vector<128xf32>
    %537 = vector.multi_reduction <add>, %536, %cst_163 [1] : vector<128x64xf32> to vector<128xf32>
    %538 = vector.shape_cast %537 : vector<128xf32> to vector<128x1xf32>
    %cst_164 = arith.constant 6.400000e+01 : f32
    %539 = vector.broadcast %cst_164 : f32 to vector<128x1xf32>
    %540 = arith.divf %538, %539 : vector<128x1xf32>
    %541 = vector.broadcast %533 : vector<128x1xf32> to vector<128x64xf32>
    %542 = arith.subf %529, %541 : vector<128x64xf32>
    %cst_165 = arith.constant 9.99999974E-6 : f32
    %543 = vector.broadcast %cst_165 : f32 to vector<128x1xf32>
    %544 = arith.addf %540, %543 : vector<128x1xf32>
    %545 = math.rsqrt %544 : vector<128x1xf32>
    %546 = vector.broadcast %545 : vector<128x1xf32> to vector<128x64xf32>
    %547 = arith.mulf %542, %546 : vector<128x64xf32>
    %548 = vector.broadcast %4 : vector<1x64xf32> to vector<128x64xf32>
    %549 = arith.mulf %547, %548 : vector<128x64xf32>
    %550 = vector.broadcast %5 : vector<1x64xf32> to vector<128x64xf32>
    %551 = arith.addf %549, %550 : vector<128x64xf32>
    %552 = arith.truncf %551 : vector<128x64xf32> to vector<128x64xbf16>
    %c0_166 = arith.constant 0 : index
    %c0_167 = arith.constant 0 : index
    %553 = vector.load %arg15[%c0_166, %c0_167] : memref<64x16xbf16, #tpu.memory_space<vmem>>, vector<64x16xbf16>
    %cst_168 = arith.constant dense<0.000000e+00> : vector<128x16xf32>
    %554 = tpu.matmul %552, %553, %cst_168 {dimension_numbers = #tpu.dot_dimension_numbers<[1], [0], [0], [1], [0, 0, 1, 1], [], []>} : vector<128x64xbf16>, vector<64x16xbf16>, vector<128x16xf32> -> vector<128x16xf32>
    %555 = vector.broadcast %6 : vector<1x16xf32> to vector<128x16xf32>
    %556 = arith.addf %554, %555 : vector<128x16xf32>
    %c0_169 = arith.constant 0 : index
    %c0_170 = arith.constant 0 : index
    %557 = vector.load %arg16[%c0_169, %c0_170] : memref<128x16xf32, #tpu.memory_space<vmem>>, vector<128x16xf32>
    tpu.vector_store %arg16[%c0_169, %c0_170], %556 {strides = array<i32>} : memref<128x16xf32, #tpu.memory_space<vmem>>, vector<128x16xf32>,
    return
  }
}

</mosaic_0001>

<bundles_post_ra>
// kernel: latent_diffit_forward.1
= control target key start
LH: loop header
LB: loop body
LE: loop exit
PB: predicated region body
PF: predicated region fallthrough
CT: control target
= control target key end

     0   :  { %vm123_vm0 = vcmask 130048   ;;  %v73_v11 = vlaneseq  ;;  %v12345_v12 = vmov 1966171168   ;;  %v12346_v36 = vmov 0.0   ;;  %s12351_s17 = smov 112   ;;  %s12353_s18 = smov 96   ;;  %s17088_s3 = inlined_call_operand.vmem [shape: bf16[16,64], index: 3, kind: input, shape index: {}]   ;;  %s17089_s0 = inlined_call_operand.vmem [shape: bf16[128,16], index: 0, kind: input, shape index: {}]   ;;  %s17090_s5 = inlined_call_operand.vmem [shape: bf16[256,64], index: 5, kind: input, shape index: {}]   ;;  %s17091_s1 = inlined_call_operand.vmem [shape: bf16[2,256], index: 1, kind: input, shape index: {}]   ;;  %s17092_s6 = inlined_call_operand.vmem [shape: bf16[64,64], index: 6, kind: input, shape index: {}]   ;;  %s17093_s7 = inlined_call_operand.vmem [shape: f32[6,64], index: 7, kind: input, shape index: {}]   ;;  %s17094_s4 = inlined_call_operand.vmem [shape: f32[64,64], index: 4, kind: input, shape index: {}]   ;;  %s17095_s9 = inlined_call_operand.vmem [shape: bf16[2,64,192], index: 9, kind: input, shape index: {}]   ;;  %s17096_s8 = inlined_call_operand.vmem [shape: bf16[2,64,192], index: 8, kind: input, shape index: {}]   ;;  %s17097_s2 = inlined_call_operand.vmem [shape: f32[2,64], index: 2, kind: input, shape index: {}]   ;;  %s17098_s13 = inlined_call_operand.vmem [shape: f32[2,6,64], index: 13, kind: input, shape index: {}]   ;;  %s17099_s14 = inlined_call_operand.vmem [shape: f32[2,2,256], index: 14, kind: input, shape index: {}]   ;;  %s17100_s10 = inlined_call_operand.vmem [shape: bf16[2,64,64], index: 10, kind: input, shape index: {}]   ;;  %s17101_s11 = inlined_call_operand.vmem [shape: bf16[2,64,256], index: 11, kind: input, shape index: {}]   ;;  %s17102_s12 = inlined_call_operand.vmem [shape: bf16[2,256,64], index: 12, kind: input, shape index: {}]   ;;  %s17103_s15 = inlined_call_operand.vmem [shape: bf16[64,16], index: 15, kind: input, shape index: {}]   ;;  %s17104_s16 = inlined_call_operand.vmem [shape: f32[128,16], index: 16, kind: output, shape index: {}]  }
   0x1   :  { %17174 = sst [smem:[#allocation43_spill]] %s17088_s3  ;;  %v11390_v1 = vld [vmem:[%s17089_s0] sm:$0xff]   ;;  %v11391_v2 = vld [vmem:[%s17089_s0 + $0x8] sm:$0xff]   ;;  %v11392_v3 = vld [vmem:[%s17089_s0 + $0x10] sm:$0xff]   ;;  %v316_v13 = vunpack.c.l.s4 %v12345_v12  ;;  %vm12347_vm1 = vmmov 0   ;;  %vm511_vm2 = vcmask 523264  }
   0x2   :  { %s17175_s23 = sld [smem:[#allocation43_spill]]  ;;  %10462 = vmatprep.mubr.msk.bf16.mxu0 %vm123_vm0, %v11390_v1  ;;  %v11394_v4 = vld [vmem:[%s17090_s5 + $0x40] sm:$0xff]   ;;  %v11396_v6 = vld [vmem:[%s17090_s5 + $0x48] sm:$0xff]   ;;  %v11398_v8 = vld [vmem:[%s17090_s5 + $0x50] sm:$0xff]   ;;  %v12484_v16 = vshrl.u32 %v73_v11, 7  ;;  %s12350_s3 = smov 48  }
   0x3   :  { %v11395_v5 = vld [vmem:[%s17090_s5] sm:$0xff]   ;;  %10013 = vmatprep.subr.bf16.mxu1 %v11394_v4  ;;  %v11397_v7 = vld [vmem:[%s17090_s5 + $0x8] sm:$0xff]   ;;  %v11393_v9 = vld [vmem:[%s17089_s0 + $0x18] sm:$0xff]   ;;  %v317_v17 = vunpack.c.0.s8 %v316_v13  ;;  %s12355_s19 = smov 80   ;;  %vm2390_vm3 = vcmask 392192   ;;  %vm2381_vm4 = vcmask 261120  }
   0x4   :  { %10014 = vmatpush3.bf16.msra.mxu1 %v11395_v5  ;;  %v11399_v10 = vld [vmem:[%s17090_s5 + $0x10] sm:$0xff]   ;;  %v11400_v14 = vld [vmem:[%s17090_s5 + $0x58] sm:$0xff]   ;;  %17176 = vst [vmem:[#allocation2_spill] sm:$0xff] %v12484_v16  ;;  %v11402_v18 = vld [vmem:[%s17090_s5 + $0x60] sm:$0xff]   ;;  %v12543_v40 = vsub.s32 0, %v12484_v16 }
   0x5   :  { %10015 = vmatprep.subr.bf16.mxu1 %v11396_v6  ;;  %v11401_v15 = vld [vmem:[%s17090_s5 + $0x18] sm:$0xff]   ;;  %v11403_v19 = vld [vmem:[%s17090_s5 + $0x20] sm:$0xff]   ;;  %v320_v20 = vsub.s32 %v317_v17, %v12484_v16  ;;  %v11404_v21 = vld [vmem:[%s17090_s5 + $0x68] sm:$0xff]  }
   0x6   :  { %v9637_v22 = vld.sshfl [vmem:[%s17091_s1] sm:$0x11 pattern:$0x75316420]  ;;  %v11405_v23 = vld [vmem:[%s17090_s5 + $0x28] sm:$0xff]   ;;  %v11412_v28 = vld [vmem:[%s17089_s0 + $0x30] sm:$0xff]  }
   0x7   :  { %v314_v24 = vcombine.high %v9637_v22, %v9637_v22  ;;  %v11410_v25 = vld [vmem:[%s17089_s0 + $0x20] sm:$0xff]   ;;  %v11411_v26 = vld [vmem:[%s17089_s0 + $0x28] sm:$0xff]   ;;  %v11406_v29 = vld [vmem:[%s17090_s5 + $0x70] sm:$0xff]   ;;  %v321_v34 = vrot.slane %v9637_v22, %v320_v20  ;;  %17177 = vst [vmem:[#allocation3_spill] sm:$0xff] %v12543_v40  ;;  %s12354_s1 = smov 16  }
   0x8   :  { %v11389_v0 = vld [vmem:[%s17175_s23] sm:$0xff]   ;;  %10016 = vmatpush3.bf16.msra.mxu1 %v11397_v7  ;;  %v11407_v30 = vld [vmem:[%s17090_s5 + $0x30] sm:$0xff]   ;;  %v11408_v31 = vld [vmem:[%s17090_s5 + $0x78] sm:$0xff]  }
   0x9   :  { %10460 = vmatprep.subr.bf16.mxu0 %v11389_v0  ;;  %10017 = vmatprep.subr.bf16.mxu1 %v11398_v8  ;;  %v328_v27 = vrot.slane %v314_v24, %v320_v20  ;;  %v11413_v32 = vld [vmem:[%s17089_s0 + $0x38] sm:$0xff]   ;;  %v11414_v35 = vld [vmem:[%s17092_s6] sm:$0xff]   ;;  %v11415_v37 = vld [vmem:[%s17092_s6 + $0x8] sm:$0xff]   ;;  %v12625_v20 = vsub.s32 1, %v12484_v16 }
   0xa   :  { %10461 = vmatpush3.bf16.msra.mxu0 %v11389_v0  ;;  %v11409_v33 = vld [vmem:[%s17090_s5 + $0x38] sm:$0xff]   ;;  %v11416_v38 = vld [vmem:[%s17092_s6 + $0x10] sm:$0xff]   ;;  %v12548_v41 = vld [vmem:[%s17093_s7] sm:$0x3f]  ;;  %s12349_s5 = smov 64  }
   0xb   :  { %459 = vmatprep.mubr.bf16.mxu1 %v328_v27  ;;  %10478 = vmatprep.subr.bf16.mxu0 %v12346_v36  ;;  %v11417_v39 = vld [vmem:[%s17092_s6 + $0x18] sm:$0xff]   ;;  %v12552_v42 = vrot.slane %v12548_v41, %v12543_v40  ;;  %v12557_v44 = vld [vmem:[%s17094_s4 + $0x10] sm:$0xff]  ;;  %v245_v47 = vld [vmem:[%s17094_s4] sm:$0xff]  ;;  %17186 = vst [vmem:[#allocation12_spill] sm:$0xff] %v12625_v20  ;;  %v305_v22 = vrot.slane %v12548_v41, %v12625_v20 }
   0xc   :  { %10018 = vmatpush3.bf16.msra.mxu1 %v11399_v10  ;;  %v12567_v50 = vld [vmem:[%s17094_s4 + $0x18] sm:$0xff]  ;;  %v246_v54 = vld [vmem:[%s17094_s4 + $0x8] sm:$0xff]  ;;  %v249_v1 = vld [vmem:[%s17094_s4 + $0x20] sm:$0xff] }
   0xd   :  { %10463 = vmatmul.mubr.msk.bf16.vlgmr.msra.gmra.mrb[0].mxu0 %vm123_vm0, %v11391_v2  ;;  %10019 = vmatprep.subr.bf16.mxu1 %v11400_v14  ;;  %v251_v2 = vld [vmem:[%s17094_s4 + $0x30] sm:$0xff]  ;;  %v250_v8 = vld [vmem:[%s17094_s4 + $0x28] sm:$0xff] }
   0xe   :  { %10466 = vmatprep.mubr.msk.bf16.mxu0 %vm123_vm0, %v11392_v3  ;;  %10479 = vmatpush3.bf16.msra.mxu0 %v11414_v35 }
   0xf   :  { %10480 = vmatprep.subr.bf16.mxu0 %v12346_v36 }
  0x10   :  { %10020 = vmatpush3.bf16.msra.mxu1 %v11401_v15 }
  0x11   :  { %10021 = vmatprep.subr.bf16.mxu1 %v11402_v18 }
  0x12   :  { %10481 = vmatpush3.bf16.msra.mxu0 %v11415_v37 }
  0x13   :  { %10482 = vmatprep.subr.bf16.mxu0 %v12346_v36 }
  0x14   :  { %10022 = vmatpush3.bf16.msra.mxu1 %v11403_v19 }
  0x15   :  { %10467 = vmatmul.mubr.msk.bf16.gmra.mrb[4].mxu0 %vm123_vm0, %v11393_v9  ;;  %10023 = vmatprep.subr.bf16.mxu1 %v11404_v21  ;;  %v252_v9 = vld [vmem:[%s17094_s4 + $0x38] sm:$0xff]  ;;  %s12352_s4 = smov 32  }
  0x16   :  { %10470 = vmatprep.mubr.msk.bf16.mxu0 %vm123_vm0, %v11410_v25  ;;  %10483 = vmatpush3.bf16.msra.mxu0 %v11416_v38 }
  0x17   :  { %10484 = vmatprep.subr.bf16.mxu0 %v12346_v36 }
  0x18   :  { %10024 = vmatpush3.bf16.msra.mxu1 %v11405_v23 }
  0x19   :  { %10025 = vmatprep.subr.bf16.mxu1 %v11406_v29 }
  0x1a   :  { %10485 = vmatpush3.bf16.msra.mxu0 %v11417_v39 }
  0x1c   :  { %10026 = vmatpush3.bf16.msra.mxu1 %v11407_v30 }
  0x1d   :  { %10471 = vmatmul.mubr.msk.bf16.gmra.mrb[8].mxu0 %vm123_vm0, %v11411_v26  ;;  %10027 = vmatprep.subr.bf16.mxu1 %v11408_v31 }
  0x1e   :  { %10474 = vmatprep.mubr.msk.bf16.mxu0 %vm123_vm0, %v11412_v28 }
  0x20   :  { %10028 = vmatpush3.bf16.msra.mxu1 %v11409_v33 }
  0x23   :  { %460 = vmatmul.mubr.bf16.vlgmr.msra.gmra.mrb[0].mxu1 %v321_v34 }
  0x25   :  { %10475 = vmatmul.mubr.msk.bf16.gmra.mrb[12].mxu0 %vm123_vm0, %v11413_v32 }
  0x26   :  { %10486 = vmatprep.mubr.msk.bf16.mxu0 %vm12347_vm1, %v12346_v36 }
  0xe0   :  { %v10464_v43 = vpop.f32.mrb[0].mxu0 }
  0xe1   :  { %v191_v45 = vadd.f32 %v10464_v43, %v12552_v42  ;;  %v182_v46 = vpop.f32.mrb[1].mxu0 }
  0xe2   :  { %v183_v48 = vadd.f32 %v182_v46, %v12552_v42  ;;  %v10465_v49 = vpop.f32.mrb[2].mxu0 }
  0xe3   :  { %v194_v51 = vadd.f32 %v10465_v49, %v12552_v42  ;;  %v185_v52 = vpop.f32.mrb[3].mxu0  ;;  %v12571_v53 = vadd.f32 %v12557_v44, %v191_v45 }
  0xe4   :  { %v186_v55 = vadd.f32 %v185_v52, %v12552_v42  ;;  %v12577_v56 = vadd.f32 %v245_v47, %v183_v48 }
  0xe5   :  { %17178 = vst [vmem:[#allocation4_spill] sm:$0xff] %v12571_v53  ;;  %v693_v57 = vsel %vm511_vm2, %v12571_v53, 0.0  ;;  %v12582_v58 = vadd.f32 %v12567_v50, %v194_v51 }
  0xe6   :  { %17179 = vst [vmem:[#allocation5_spill] sm:$0xff] %v12577_v56  ;;  %694 = vadd.xlane.f32.xlu1 %v693_v57  ;;  %v687_v59 = vsel %vm511_vm2, %v12577_v56, 0.0  ;;  %v12586_v60 = vadd.f32 %v246_v54, %v186_v55 }
  0xe7   :  { %17180 = vst [vmem:[#allocation6_spill] sm:$0xff] %v12582_v58  ;;  %688 = vadd.xlane.f32.xlu0 %v687_v59  ;;  %v696_v0 = vsel %vm511_vm2, %v12582_v58, 0.0 }
  0xe8   :  { %17181 = vst [vmem:[#allocation7_spill] sm:$0xff] %v12586_v60  ;;  %v10468_v61 = vpop.f32.mrb[4].mxu0  ;;  %v690_v5 = vsel %vm511_vm2, %v12586_v60, 0.0 }
  0xe9   :  { %v207_v62 = vadd.f32 %v10468_v61, %v12552_v42  ;;  %v198_v63 = vpop.f32.mrb[5].mxu0 }
  0xea   :  { %v199_v3 = vadd.f32 %v198_v63, %v12552_v42  ;;  %697 = vadd.xlane.f32.xlu1 %v696_v0  ;;  %v10469_v4 = vpop.f32.mrb[6].mxu0  ;;  %v11420_v63 = vld [vmem:[%s17095_s9 + $0x4] ss:$8 sps:$4 sm:$0xff]  }
  0xeb   :  { %v210_v6 = vadd.f32 %v10469_v4, %v12552_v42  ;;  %v201_v7 = vpop.f32.mrb[7].mxu0  ;;  %691 = vadd.xlane.f32.xlu0 %v690_v5  ;;  %v12610_v12 = vadd.f32 %v251_v2, %v207_v62  ;;  %630 = vmatprep.subr.bf16.mxu1 %v11420_v63  ;;  %v11424_v5 = vld [vmem:[%s17095_s9 + $0x20] ss:$8 sps:$4 sm:$0xff]  }
  0xec   :  { %v202_v10 = vadd.f32 %v201_v7, %v12552_v42  ;;  %v12608_v11 = vadd.f32 %v249_v1, %v199_v3 }
  0xed   :  { %17183 = vst [vmem:[#allocation9_spill] sm:$0xff] %v12610_v12  ;;  %v12616_v15 = vadd.f32 %v252_v9, %v210_v6  ;;  %v705_v18 = vsel %vm511_vm2, %v12610_v12, 0.0 }
  0xee   :  { %17182 = vst [vmem:[#allocation8_spill] sm:$0xff] %v12608_v11  ;;  %v699_v13 = vsel %vm511_vm2, %v12608_v11, 0.0  ;;  %v12614_v14 = vadd.f32 %v250_v8, %v202_v10 }
  0xef   :  { %17185 = vst [vmem:[#allocation11_spill] sm:$0xff] %v12616_v15  ;;  %700 = vadd.xlane.f32.xlu0 %v699_v13  ;;  %v708_v19 = vsel %vm511_vm2, %v12616_v15, 0.0 }
  0xf0   :  { %17184 = vst [vmem:[#allocation10_spill] sm:$0xff] %v12614_v14  ;;  %v702_v17 = vsel %vm511_vm2, %v12614_v14, 0.0  ;;  %v10472_v28 = vpop.f32.mrb[8].mxu0 }
  0xf1   :  { %703 = vadd.xlane.f32.xlu1 %v702_v17  ;;  %v223_v29 = vadd.f32 %v10472_v28, %v12552_v42  ;;  %v214_v30 = vpop.f32.mrb[9].mxu0 }
  0xf2   :  { %v215_v32 = vadd.f32 %v214_v30, %v12552_v42  ;;  %v10473_v33 = vpop.f32.mrb[10].mxu0 }
  0xf3   :  { %706 = vadd.xlane.f32.xlu0 %v705_v18  ;;  %v226_v34 = vadd.f32 %v10473_v33, %v12552_v42  ;;  %v217_v35 = vpop.f32.mrb[11].mxu0  ;;  %v12639_v46 = vadd.f32 %v12557_v44, %v223_v29  ;;  %v11429_v33 = vld [vmem:[%s17095_s9 + $0x34] ss:$8 sps:$4 sm:$0xff]  }
  0xf4   :  { %v12632_v36 = vadd.f32 %v245_v47, %v215_v32  ;;  %v218_v37 = vadd.f32 %v217_v35, %v12552_v42  ;;  %v11427_v32 = vld [vmem:[%s17095_s9 + $0x30] ss:$8 sps:$4 sm:$0xff]  }
  0xf5   :  { %709 = vadd.xlane.f32.xlu1 %v708_v19  ;;  %17189 = vst [vmem:[#allocation15_spill] sm:$0xff] %v12639_v46  ;;  %v12643_v51 = vadd.f32 %v12567_v50, %v226_v34  ;;  %v11418_v50 = vld [vmem:[%s17095_s9] ss:$8 sps:$4 sm:$0xff]  }
  0xf6   :  { %v10029_v21 = vpop.f32.mrb[0].mxu1  ;;  %17187 = vst [vmem:[#allocation13_spill] sm:$0xff] %v12632_v36  ;;  %v12635_v39 = vadd.f32 %v246_v54, %v218_v37  ;;  %631 = vmatpush1.bf16.msra.mxu1 %v11418_v50 }
  0xf7   :  { %v10030_v23 = vpop.f32.mrb[1].mxu1  ;;  %17190 = vst [vmem:[#allocation16_spill] sm:$0xff] %v12643_v51 }
  0xf8   :  { %v10031_v24 = vadd.f32 %v10030_v23, %v10029_v21  ;;  %v10032_v25 = vpop.f32.mrb[2].mxu1  ;;  %v10476_v38 = vpop.f32.mrb[12].mxu0  ;;  %17188 = vst [vmem:[#allocation14_spill] sm:$0xff] %v12635_v39 }
  0xf9   :  { %v10033_v26 = vpop.f32.mrb[3].mxu1  ;;  %v239_v43 = vadd.f32 %v10476_v38, %v12552_v42  ;;  %v230_v45 = vpop.f32.mrb[13].mxu0 }
  0xfa   :  { %v462_v27 = vadd.f32 %v10031_v24, %v305_v22  ;;  %v231_v48 = vadd.f32 %v230_v45, %v12552_v42  ;;  %v10477_v49 = vpop.f32.mrb[14].mxu0 }
  0xfb   :  { %v242_v47 = vadd.f32 %v10477_v49, %v12552_v42  ;;  %v233_v52 = vpop.f32.mrb[15].mxu0  ;;  %v12651_v62 = vadd.f32 %v251_v2, %v239_v43  ;;  %v11426_v2 = vld [vmem:[%s17095_s9 + $0x24] ss:$8 sps:$4 sm:$0xff]  }
  0xfc   :  { %v9654_v31 = vmul.f32 -1.442695, %v462_v27  ;;  %v12646_v55 = vadd.f32 %v249_v1, %v231_v48  ;;  %v234_v54 = vadd.f32 %v233_v52, %v12552_v42  ;;  %v11423_v42 = vld [vmem:[%s17095_s9 + $0x14] ss:$8 sps:$4 sm:$0xff]   ;;  %v11421_v1 = vld [vmem:[%s17095_s9 + $0x10] ss:$8 sps:$4 sm:$0xff]  }
  0xfd   :  { %17193 = vst [vmem:[#allocation19_spill] sm:$0xff] %v12651_v62  ;;  %v12653_v44 = vadd.f32 %v252_v9, %v242_v47  ;;  %632 = vmatprep.subr.bf16.mxu1 %v11423_v42 }
  0xfe   :  { %11534 = vpow2.f32 %v9654_v31  ;;  %17191 = vst [vmem:[#allocation17_spill] sm:$0xff] %v12646_v55  ;;  %v12649_v61 = vadd.f32 %v250_v8, %v234_v54  ;;  %633 = vmatpush1.bf16.msra.mxu1 %v11421_v1 }
  0xff   :  { %17194 = vst [vmem:[#allocation20_spill] sm:$0xff] %v12653_v44  ;;  %634 = vmatprep.subr.bf16.mxu1 %v11426_v2 }
 0x100   :  { %17192 = vst [vmem:[#allocation18_spill] sm:$0xff] %v12649_v61 }
 0x102   :  { %635 = vmatpush1.bf16.msra.mxu1 %v11424_v5  ;;  %v714_v5 = vsel %vm511_vm2, %v12635_v39, 0.0 }
 0x103   :  { %636 = vmatprep.subr.bf16.mxu1 %v11429_v33 }
 0x106   :  { %637 = vmatpush1.bf16.msra.mxu1 %v11427_v32 }
 0x108   :  { %v11535_v57 = vpop.eup %11534 }
 0x109   :  { %v470_v59 = vadd.f32 1.0, %v11535_v57 }
 0x10b   :  { %11536 = vrcp.f32 %v470_v59 }
 0x115   :  { %v11537_v0 = vpop.eup %11536 }
 0x116   :  { %v473_v3 = vmul.f32 %v11537_v0, %v462_v27 }
 0x118   :  { %v474_v4 = vpack.c.bf16 %v473_v3, %v473_v3  ;;  %v711_v3 = vsel %vm511_vm2, %v12632_v36, 0.0 }
 0x11a   :  { %10487 = vmatmul.mubr.msk.bf16.vlgmr.msra.gmra.mrb[16].mxu0 %vm511_vm2, %v474_v4 }
 0x173   :  { %v695_v6 = vpop.xlane.xlu1 %694 }
 0x174   :  { %v738_v7 = vmul.f32 0.015625, %v695_v6  ;;  %v689_v8 = vpop.xlane.xlu0 %688  ;;  %v717_v6 = vsel %vm511_vm2, %v12639_v46, 0.0 }
 0x175   :  { %v736_v9 = vmul.f32 0.015625, %v689_v8  ;;  %v720_v8 = vsel %vm511_vm2, %v12643_v51, 0.0 }
 0x176   :  { %v12675_v10 = vsub.f32 %v12571_v53, %v738_v7  ;;  %v17105_v7 = vmov 0  }
 0x177   :  { %v12678_v13 = vsub.f32 %v12577_v56, %v736_v9  ;;  %v698_v17 = vpop.xlane.xlu1 %697  ;;  %662 = vmatprep.mubr.bf16.mxu1 %v17105_v7  ;;  %1048 = vmatprep.mubr.bf16.mxu0 %v17105_v7  ;;  %v723_v9 = vsel %vm511_vm2, %v12646_v55, 0.0 }
 0x178   :  { %v739_v18 = vmul.f32 0.015625, %v698_v17  ;;  %v692_v19 = vpop.xlane.xlu0 %691  ;;  %v770_v26 = vmul.f32 %v12675_v10, %v12675_v10  ;;  %v11432_v17 = vld [vmem:[%s17096_s8 + $0x4] ss:$8 sps:$4 sm:$0xff]  }
 0x179   :  { %v737_v21 = vmul.f32 0.015625, %v692_v19  ;;  %v768_v22 = vmul.f32 %v12678_v13, %v12678_v13  ;;  %v729_v19 = vsel %vm511_vm2, %v12651_v62, 0.0  ;;  %1016 = vmatprep.subr.bf16.mxu0 %v11432_v17 }
 0x17a   :  { %v12683_v23 = vsub.f32 %v12582_v58, %v739_v18  ;;  %v790_v37 = vsel %vm511_vm2, %v770_v26, 0.0  ;;  %v726_v18 = vsel %vm511_vm2, %v12649_v61, 0.0  ;;  %v11433_v26 = vld [vmem:[%s17096_s8 + $0x10] ss:$8 sps:$4 sm:$0xff]  }
 0x17b   :  { %v12686_v24 = vsub.f32 %v12586_v60, %v737_v21  ;;  %v784_v25 = vsel %vm511_vm2, %v768_v22, 0.0  ;;  %v11430_v21 = vld [vmem:[%s17096_s8] ss:$8 sps:$4 sm:$0xff]   ;;  %v11435_v22 = vld [vmem:[%s17096_s8 + $0x14] ss:$8 sps:$4 sm:$0xff]  }
 0x17c   :  { %785 = vadd.xlane.f32.xlu0 %v784_v25  ;;  %v701_v27 = vpop.xlane.xlu0 %700  ;;  %v771_v31 = vmul.f32 %v12683_v23, %v12683_v23  ;;  %1017 = vmatpush1.bf16.msra.mxu0 %v11430_v21  ;;  %v732_v25 = vsel %vm511_vm2, %v12653_v44, 0.0 }
 0x17d   :  { %v740_v28 = vmul.f32 0.015625, %v701_v27  ;;  %v769_v29 = vmul.f32 %v12686_v24, %v12686_v24  ;;  %1018 = vmatprep.subr.bf16.mxu0 %v11435_v22  ;;  %v11438_v27 = vld [vmem:[%s17096_s8 + $0x24] ss:$8 sps:$4 sm:$0xff]  }
 0x17e   :  { %v704_v30 = vpop.xlane.xlu1 %703  ;;  %v793_v52 = vsel %vm511_vm2, %v771_v31, 0.0  ;;  %v12771_v31 = vsub.s32 2, %v12484_v16 }
 0x17f   :  { %v12702_v34 = vsub.f32 %v12608_v11, %v740_v28  ;;  %v741_v35 = vmul.f32 0.015625, %v704_v30  ;;  %v787_v38 = vsel %vm511_vm2, %v769_v29, 0.0  ;;  %v11436_v28 = vld [vmem:[%s17096_s8 + $0x20] ss:$8 sps:$4 sm:$0xff]   ;;  %v11439_v29 = vld [vmem:[%s17096_s8 + $0x30] ss:$8 sps:$4 sm:$0xff]  }
 0x180   :  { %791 = vadd.xlane.f32.xlu0 %v790_v37  ;;  %788 = vadd.xlane.f32.xlu1 %v787_v38  ;;  %v707_v43 = vpop.xlane.xlu0 %706  ;;  %v11441_v30 = vld [vmem:[%s17096_s8 + $0x34] ss:$8 sps:$4 sm:$0xff]   ;;  %17195 = vst [vmem:[#allocation21_spill] sm:$0xff] %v12771_v31  ;;  %v486_v32 = vrot.slane %v12548_v41, %v12771_v31 }
 0x181   :  { %v12707_v45 = vsub.f32 %v12614_v14, %v741_v35  ;;  %v742_v48 = vmul.f32 0.015625, %v707_v43  ;;  %v772_v49 = vmul.f32 %v12702_v34, %v12702_v34  ;;  %1019 = vmatpush1.bf16.msra.mxu0 %v11433_v26  ;;  %v555_v35 = vld [vmem:[%s17097_s2] sm:$0x3] }
 0x182   :  { %v710_v47 = vpop.xlane.xlu1 %709  ;;  %1020 = vmatprep.subr.bf16.mxu0 %v11438_v27 }
 0x183   :  { %v12713_v54 = vsub.f32 %v12610_v12, %v742_v48  ;;  %v743_v57 = vmul.f32 0.015625, %v710_v47  ;;  %v796_v59 = vsel %vm511_vm2, %v772_v49, 0.0  ;;  %v773_v50 = vmul.f32 %v12707_v45, %v12707_v45 }
 0x184   :  { %794 = vadd.xlane.f32.xlu1 %v793_v52  ;;  %797 = vadd.xlane.f32.xlu0 %v796_v59 }
 0x185   :  { %v12719_v63 = vsub.f32 %v12616_v15, %v743_v57  ;;  %v774_v42 = vmul.f32 %v12713_v54, %v12713_v54  ;;  %v799_v0 = vsel %vm511_vm2, %v773_v50, 0.0  ;;  %1021 = vmatpush1.bf16.msra.mxu0 %v11436_v28 }
 0x186   :  { %1022 = vmatprep.subr.bf16.mxu0 %v11441_v30 }
 0x187   :  { %v802_v1 = vsel %vm511_vm2, %v774_v42, 0.0  ;;  %v775_v2 = vmul.f32 %v12719_v63, %v12719_v63 }
 0x188   :  { %800 = vadd.xlane.f32.xlu1 %v799_v0  ;;  %803 = vadd.xlane.f32.xlu0 %v802_v1 }
 0x189   :  { %v805_v4 = vsel %vm511_vm2, %v775_v2, 0.0  ;;  %1023 = vmatpush1.bf16.msra.mxu0 %v11439_v29 }
 0x18c   :  { %806 = vadd.xlane.f32.xlu1 %v805_v4  ;;  %712 = vadd.xlane.f32.xlu0 %v711_v3 }
 0x190   :  { %715 = vadd.xlane.f32.xlu1 %v714_v5  ;;  %718 = vadd.xlane.f32.xlu0 %v717_v6 }
 0x194   :  { %721 = vadd.xlane.f32.xlu1 %v720_v8  ;;  %724 = vadd.xlane.f32.xlu0 %v723_v9 }
 0x198   :  { %727 = vadd.xlane.f32.xlu1 %v726_v18  ;;  %730 = vadd.xlane.f32.xlu0 %v729_v19  ;;  %v558_v18 = vld [vmem:[%s17098_s13] sm:$0x3f] }
 0x199   :  { %v12786_v26 = vrot.slane %v558_v18, %v12543_v40 }
 0x19c   :  { %733 = vadd.xlane.f32.xlu1 %v732_v25 }
 0x1ed   :  { %v549_v33 = vpop.f32.mrb[16].mxu0 }
 0x1ee   :  { %v550_v37 = vadd.f32 %v549_v33, %v486_v32  ;;  %v10488_v38 = vpop.f32.mrb[17].mxu0 }
 0x1ef   :  { %v552_v43 = vpop.f32.mrb[18].mxu0 }
 0x1f0   :  { %v556_v48 = vadd.f32 %v555_v35, %v550_v37  ;;  %v10489_v49 = vpop.f32.mrb[19].mxu0  ;;  %v12790_v37 = vrot.slane %v558_v18, %v12625_v20 }
 0x1f2   :  { %v12778_v47 = vpack.c.bf16 %v556_v48, %v556_v48 }
 0x1f4   :  { %17196 = vst [vmem:[#allocation22_spill] sm:$0xff] %v12778_v47  ;;  %9668 = vmatmul.mubr.msk.bf16.vlgmr.msra.gmra.mrb[4].mxu1 %vm511_vm2, %v12778_v47 }
 0x209   :  { %v786_v52 = vpop.xlane.xlu0 %785 }
 0x20a   :  { %v832_v57 = vmul.f32 0.015625, %v786_v52 }
 0x20c   :  { %v848_v59 = vadd.f32 1e-05, %v832_v57 }
 0x20d   :  { %v789_v50 = vpop.xlane.xlu1 %788  ;;  %v792_v41 = vpop.xlane.xlu0 %791 }
 0x20e   :  { %11538 = vrsqrt.f32 %v848_v59  ;;  %v833_v42 = vmul.f32 0.015625, %v789_v50  ;;  %v834_v0 = vmul.f32 0.015625, %v792_v41 }
 0x210   :  { %v849_v1 = vadd.f32 1e-05, %v833_v42  ;;  %v850_v2 = vadd.f32 1e-05, %v834_v0 }
 0x211   :  { %v795_v3 = vpop.xlane.xlu1 %794  ;;  %v798_v4 = vpop.xlane.xlu0 %797 }
 0x212   :  { %11540 = vrsqrt.f32 %v849_v1  ;;  %v835_v5 = vmul.f32 0.015625, %v795_v3  ;;  %v836_v8 = vmul.f32 0.015625, %v798_v4 }
 0x213   :  { %11542 = vrsqrt.f32 %v850_v2 }
 0x214   :  { %v851_v6 = vadd.f32 1e-05, %v835_v5  ;;  %v852_v22 = vadd.f32 1e-05, %v836_v8 }
 0x215   :  { %v801_v9 = vpop.xlane.xlu1 %800  ;;  %v804_v17 = vpop.xlane.xlu0 %803 }
 0x216   :  { %11544 = vrsqrt.f32 %v851_v6  ;;  %v837_v19 = vmul.f32 0.015625, %v801_v9  ;;  %v838_v35 = vmul.f32 0.015625, %v804_v17 }
 0x218   :  { %v11539_v21 = vpop.eup %11538  ;;  %v853_v25 = vadd.f32 1e-05, %v837_v19  ;;  %v854_v42 = vadd.f32 1e-05, %v838_v35 }
 0x219   :  { %v880_v27 = vmul.f32 %v11539_v21, %v12678_v13  ;;  %v807_v28 = vpop.xlane.xlu1 %806  ;;  %v713_v29 = vpop.xlane.xlu0 %712 }
 0x21a   :  { %11546 = vrsqrt.f32 %v853_v25  ;;  %v839_v30 = vmul.f32 0.015625, %v807_v28  ;;  %v744_v32 = vmul.f32 0.015625, %v713_v29 }
 0x21b   :  { %11548 = vrsqrt.f32 %v852_v22  ;;  %v900_v38 = vmul.f32 %v12786_v26, %v880_v27 }
 0x21c   :  { %v11541_v33 = vpop.eup %11540  ;;  %v855_v57 = vadd.f32 1e-05, %v839_v30  ;;  %v12796_v50 = vsub.f32 %v12632_v36, %v744_v32 }
 0x21d   :  { %v881_v43 = vmul.f32 %v11541_v33, %v12686_v24  ;;  %v716_v48 = vpop.xlane.xlu1 %715  ;;  %v719_v49 = vpop.xlane.xlu0 %718  ;;  %v920_v24 = vadd.f32 %v12790_v37, %v900_v38 }
 0x21e   :  { %v11543_v52 = vpop.eup %11542  ;;  %v746_v13 = vmul.f32 0.015625, %v719_v49  ;;  %v745_v0 = vmul.f32 0.015625, %v716_v48  ;;  %11550 = vrsqrt.f32 %v855_v57  ;;  %v776_v19 = vmul.f32 %v12796_v50, %v12796_v50 }
 0x21f   :  { %v901_v59 = vmul.f32 %v12786_v26, %v881_v43  ;;  %v882_v5 = vmul.f32 %v11543_v52, %v12675_v10  ;;  %11552 = vrsqrt.f32 %v854_v42 }
 0x220   :  { %v11545_v41 = vpop.eup %11544  ;;  %v12799_v1 = vsub.f32 %v12639_v46, %v746_v13  ;;  %v12811_v25 = vsub.f32 %v12635_v39, %v745_v0  ;;  %v808_v38 = vsel %vm511_vm2, %v776_v19, 0.0 }
 0x221   :  { %v722_v2 = vpop.xlane.xlu1 %721  ;;  %v725_v3 = vpop.xlane.xlu0 %724  ;;  %v921_v4 = vadd.f32 %v12790_v37, %v901_v59  ;;  %v883_v6 = vmul.f32 %v11545_v41, %v12683_v23  ;;  %v902_v30 = vmul.f32 %v12786_v26, %v882_v5 }
 0x222   :  { %v747_v8 = vmul.f32 0.015625, %v722_v2  ;;  %v748_v9 = vmul.f32 0.015625, %v725_v3  ;;  %v778_v17 = vmul.f32 %v12799_v1, %v12799_v1  ;;  %v777_v13 = vmul.f32 %v12811_v25, %v12811_v25 }
 0x223   :  { %v936_v18 = vpack.c.bf16 %v921_v4, %v920_v24  ;;  %v903_v21 = vmul.f32 %v12786_v26, %v883_v6  ;;  %v922_v41 = vadd.f32 %v12790_v37, %v902_v30 }
 0x224   :  { %v11547_v22 = vpop.eup %11546  ;;  %v12814_v10 = vsub.f32 %v12643_v51, %v747_v8  ;;  %v814_v23 = vsel %vm511_vm2, %v778_v17, 0.0  ;;  %v12818_v27 = vsub.f32 %v12646_v55, %v748_v9  ;;  %v811_v5 = vsel %vm511_vm2, %v777_v13, 0.0 }
 0x225   :  { %v728_v28 = vpop.xlane.xlu1 %727  ;;  %9677 = vmatmul.mubr.msk.bf16.vlgmr.msra.gmra.mrb[20].mxu0 %vm511_vm2, %v936_v18  ;;  %815 = vadd.xlane.f32.xlu0 %v814_v23  ;;  %v731_v29 = vpop.xlane.xlu0 %730  ;;  %v923_v43 = vadd.f32 %v12790_v37, %v903_v21  ;;  %v885_v48 = vmul.f32 %v11547_v22, %v12707_v45 }
 0x226   :  { %v11549_v32 = vpop.eup %11548  ;;  %v749_v33 = vmul.f32 0.015625, %v728_v28  ;;  %v779_v35 = vmul.f32 %v12814_v10, %v12814_v10  ;;  %1058 = vmatprep.mubr.bf16.mxu0 %v17105_v7  ;;  %v750_v52 = vmul.f32 0.015625, %v731_v29  ;;  %v780_v42 = vmul.f32 %v12818_v27, %v12818_v27 }
 0x227   :  { %v884_v0 = vmul.f32 %v11549_v32, %v12702_v34  ;;  %v937_v45 = vpack.c.bf16 %v923_v43, %v922_v41  ;;  %v905_v2 = vmul.f32 %v12786_v26, %v885_v48  ;;  %v12872_v48 = vsub.s32 3, %v12484_v16 }
 0x228   :  { %v12829_v49 = vsub.f32 %v12649_v61, %v749_v33  ;;  %v817_v57 = vsel %vm511_vm2, %v779_v35, 0.0  ;;  %v11551_v3 = vpop.eup %11550  ;;  %v12840_v24 = vsub.f32 %v12651_v62, %v750_v52  ;;  %v820_v8 = vsel %vm511_vm2, %v780_v42, 0.0  ;;  %v12877_v52 = vld [vmem:[%s17099_s14] sm:$0xf] }
 0x229   :  { %818 = vadd.xlane.f32.xlu1 %v817_v57  ;;  %v734_v59 = vpop.xlane.xlu1 %733  ;;  %809 = vadd.xlane.f32.xlu0 %v808_v38  ;;  %v904_v34 = vmul.f32 %v12786_v26, %v884_v0  ;;  %v11553_v9 = vpop.eup %11552  ;;  %v925_v17 = vadd.f32 %v12790_v37, %v905_v2  ;;  %v887_v18 = vmul.f32 %v11551_v3, %v12719_v63 }
 0x22a   :  { %v751_v4 = vmul.f32 0.015625, %v734_v59  ;;  %v781_v6 = vmul.f32 %v12829_v49, %v12829_v49  ;;  %v782_v22 = vmul.f32 %v12840_v24, %v12840_v24  ;;  %v886_v28 = vmul.f32 %v11553_v9, %v12713_v54  ;;  %17197 = vst [vmem:[#allocation23_spill] sm:$0xff] %v12872_v48  ;;  %17198 = vst [vmem:[#allocation24_spill] sm:$0xff] %v12877_v52 }
 0x22b   :  { %v924_v23 = vadd.f32 %v12790_v37, %v904_v34  ;;  %v907_v30 = vmul.f32 %v12786_v26, %v887_v18 }
 0x22c   :  { %v12852_v19 = vsub.f32 %v12653_v44, %v751_v4  ;;  %v823_v21 = vsel %vm511_vm2, %v781_v6, 0.0  ;;  %v826_v32 = vsel %vm511_vm2, %v782_v22, 0.0  ;;  %v906_v33 = vmul.f32 %v12786_v26, %v886_v28 }
 0x22d   :  { %812 = vadd.xlane.f32.xlu1 %v811_v5  ;;  %9678 = vmatmul.mubr.msk.bf16.gmra.mrb[24].mxu0 %vm511_vm2, %v937_v45  ;;  %v938_v29 = vpack.c.bf16 %v925_v17, %v924_v23  ;;  %v927_v35 = vadd.f32 %v12790_v37, %v907_v30 }
 0x22e   :  { %821 = vadd.xlane.f32.xlu0 %v820_v8  ;;  %1068 = vmatprep.mubr.bf16.mxu0 %v17105_v7  ;;  %v783_v63 = vmul.f32 %v12852_v19, %v12852_v19  ;;  %v926_v54 = vadd.f32 %v12790_v37, %v906_v33 }
 0x230   :  { %v829_v38 = vsel %vm511_vm2, %v783_v63, 0.0  ;;  %v939_v43 = vpack.c.bf16 %v927_v35, %v926_v54 }
 0x231   :  { %824 = vadd.xlane.f32.xlu1 %v823_v21 }
 0x235   :  { %9679 = vmatmul.mubr.msk.bf16.gmra.mrb[28].mxu0 %vm511_vm2, %v938_v29  ;;  %827 = vadd.xlane.f32.xlu1 %v826_v32 }
 0x236   :  { %1078 = vmatprep.mubr.bf16.mxu0 %v17105_v7 }
 0x239   :  { %830 = vadd.xlane.f32.xlu1 %v829_v38 }
 0x23d   :  { %9680 = vmatmul.mubr.msk.bf16.gmra.mrb[32].mxu0 %vm511_vm2, %v939_v43 }
 0x23e   :  { %1088 = vmatprep.mubr.bf16.mxu0 %v17105_v7 }
 0x2b2   :  { %v816_v13 = vpop.xlane.xlu0 %815 }
 0x2b3   :  { %v842_v45 = vmul.f32 0.015625, %v816_v13 }
 0x2b5   :  { %v858_v6 = vadd.f32 1e-05, %v842_v45 }
 0x2b6   :  { %v819_v59 = vpop.xlane.xlu1 %818  ;;  %v810_v41 = vpop.xlane.xlu0 %809 }
 0x2b7   :  { %v843_v42 = vmul.f32 0.015625, %v819_v59  ;;  %v840_v0 = vmul.f32 0.015625, %v810_v41 }
 0x2b9   :  { %v856_v2 = vadd.f32 1e-05, %v840_v0  ;;  %v859_v3 = vadd.f32 1e-05, %v843_v42  ;;  %v576_v42 = vrot.slane %v12877_v52, %v12771_v31 }
 0x2ba   :  { %v813_v4 = vpop.xlane.xlu1 %812 }
 0x2bb   :  { %v841_v5 = vmul.f32 0.015625, %v813_v4  ;;  %11554 = vrsqrt.f32 %v856_v2  ;;  %v822_v34 = vpop.xlane.xlu0 %821  ;;  %v586_v4 = vrot.slane %v576_v42, %v12543_v40 }
 0x2bc   :  { %11556 = vrsqrt.f32 %v859_v3  ;;  %v844_v18 = vmul.f32 0.015625, %v822_v34 }
 0x2bd   :  { %v857_v8 = vadd.f32 1e-05, %v841_v5 }
 0x2be   :  { %v825_v9 = vpop.xlane.xlu1 %824  ;;  %v860_v23 = vadd.f32 1e-05, %v844_v18 }
 0x2bf   :  { %11558 = vrsqrt.f32 %v857_v8  ;;  %v845_v17 = vmul.f32 0.015625, %v825_v9 }
 0x2c0   :  { %11560 = vrsqrt.f32 %v858_v6 }
 0x2c1   :  { %v861_v22 = vadd.f32 1e-05, %v845_v17 }
 0x2c2   :  { %v828_v21 = vpop.xlane.xlu1 %827 }
 0x2c3   :  { %11562 = vrsqrt.f32 %v861_v22  ;;  %v846_v35 = vmul.f32 0.015625, %v828_v21 }
 0x2c4   :  { %11564 = vrsqrt.f32 %v860_v23 }
 0x2c5   :  { %v11555_v28 = vpop.eup %11554  ;;  %v862_v0 = vadd.f32 1e-05, %v846_v35 }
 0x2c6   :  { %v831_v29 = vpop.xlane.xlu1 %830  ;;  %v888_v32 = vmul.f32 %v11555_v28, %v12796_v50  ;;  %v11557_v63 = vpop.eup %11556 }
 0x2c7   :  { %v847_v30 = vmul.f32 0.015625, %v831_v29  ;;  %v891_v41 = vmul.f32 %v11557_v63, %v12814_v10  ;;  %v664_v6 = vpop.f32.mrb[4].mxu1 }
 0x2c8   :  { %v908_v54 = vmul.f32 %v12786_v26, %v888_v32  ;;  %v666_v34 = vpop.f32.mrb[5].mxu1 }
 0x2c9   :  { %v11559_v33 = vpop.eup %11558  ;;  %v863_v13 = vadd.f32 1e-05, %v847_v30  ;;  %v911_v3 = vmul.f32 %v12786_v26, %v891_v41  ;;  %v668_v17 = vpop.f32.mrb[6].mxu1 }
 0x2ca   :  { %v889_v38 = vmul.f32 %v11559_v33, %v12811_v25  ;;  %v11561_v43 = vpop.eup %11560  ;;  %v928_v50 = vadd.f32 %v12790_v37, %v908_v54  ;;  %v669_v21 = vpop.f32.mrb[7].mxu1 }
 0x2cb   :  { %v890_v2 = vmul.f32 %v11561_v43, %v12799_v1  ;;  %11566 = vrsqrt.f32 %v863_v13  ;;  %v931_v9 = vadd.f32 %v12790_v37, %v911_v3  ;;  %v12897_v1 = vadd.f32 %v666_v34, %v586_v4 }
 0x2cc   :  { %v909_v59 = vmul.f32 %v12786_v26, %v889_v38  ;;  %11568 = vrsqrt.f32 %v862_v0 }
 0x2cd   :  { %v11563_v5 = vpop.eup %11562  ;;  %v910_v10 = vmul.f32 %v12786_v26, %v890_v2 }
 0x2ce   :  { %v929_v45 = vadd.f32 %v12790_v37, %v909_v59  ;;  %v11565_v8 = vpop.eup %11564  ;;  %v893_v18 = vmul.f32 %v11563_v5, %v12829_v49 }
 0x2cf   :  { %v930_v22 = vadd.f32 %v12790_v37, %v910_v10  ;;  %v892_v23 = vmul.f32 %v11565_v8, %v12818_v27 }
 0x2d0   :  { %v940_v25 = vpack.c.bf16 %v929_v45, %v928_v50  ;;  %v913_v29 = vmul.f32 %v12786_v26, %v893_v18 }
 0x2d1   :  { %v941_v28 = vpack.c.bf16 %v931_v9, %v930_v22  ;;  %v912_v32 = vmul.f32 %v12786_v26, %v892_v23 }
 0x2d2   :  { %9681 = vmatmul.mubr.msk.bf16.gmra.mrb[36].mxu0 %vm511_vm2, %v940_v25  ;;  %v933_v33 = vadd.f32 %v12790_v37, %v913_v29 }
 0x2d3   :  { %1098 = vmatprep.mubr.bf16.mxu0 %v17105_v7  ;;  %v932_v35 = vadd.f32 %v12790_v37, %v912_v32 }
 0x2d5   :  { %v11567_v30 = vpop.eup %11566  ;;  %v942_v27 = vpack.c.bf16 %v933_v33, %v932_v35 }
 0x2d6   :  { %v11569_v63 = vpop.eup %11568  ;;  %v895_v49 = vmul.f32 %v11567_v30, %v12852_v19  ;;  %v572_v19 = vrot.slane %v12877_v52, %v12543_v40 }
 0x2d7   :  { %v894_v38 = vmul.f32 %v11569_v63, %v12840_v24 }
 0x2d8   :  { %v915_v54 = vmul.f32 %v12786_v26, %v895_v49  ;;  %v582_v24 = vrot.slane %v572_v19, %v12543_v40 }
 0x2d9   :  { %v914_v43 = vmul.f32 %v12786_v26, %v894_v38  ;;  %v678_v26 = vrot.slane %v12897_v1, %v12543_v40 }
 0x2da   :  { %9682 = vmatmul.mubr.msk.bf16.gmra.mrb[40].mxu0 %vm511_vm2, %v941_v28  ;;  %v935_v13 = vadd.f32 %v12790_v37, %v915_v54  ;;  %v12920_v42 = vadd.f32 %v664_v6, %v582_v24 }
 0x2db   :  { %1108 = vmatprep.mubr.bf16.mxu0 %v17105_v7  ;;  %v934_v59 = vadd.f32 %v12790_v37, %v914_v43 }
 0x2dc   :  { %v674_v0 = vrot.slane %v12920_v42, %v12543_v40 }
 0x2dd   :  { %v943_v41 = vpack.c.bf16 %v935_v13, %v934_v59 }
 0x2e2   :  { %9683 = vmatmul.mubr.msk.bf16.gmra.mrb[44].mxu0 %vm511_vm2, %v942_v27 }
 0x2e3   :  { %1118 = vmatprep.mubr.bf16.mxu0 %v17105_v7 }
 0x2ea   :  { %9684 = vmatmul.mubr.msk.bf16.gmra.mrb[48].mxu0 %vm511_vm2, %v943_v41 }
 0x2f8   :  { %v1050_v50 = vpop.f32.mrb[20].mxu0 }
 0x2f9   :  { %v1051_v45 = vadd.f32 %v1050_v50, %v674_v0  ;;  %v1052_v2 = vpop.f32.mrb[21].mxu0 }
 0x2fa   :  { %v1053_v37 = vadd.f32 %v1052_v2, %v678_v26  ;;  %v1054_v25 = vpop.f32.mrb[22].mxu0 }
 0x2fb   :  { %v1055_v3 = vadd.f32 %v1054_v25, %v674_v0  ;;  %v1056_v4 = vpop.f32.mrb[23].mxu0 }
 0x2fc   :  { %v1057_v5 = vadd.f32 %v1056_v4, %v678_v26 }
 0x2fd   :  { %v12926_v10 = vpack.c.bf16 %v1055_v3, %v1051_v45 }
 0x2fe   :  { %v12928_v8 = vpack.c.bf16 %v1057_v5, %v1053_v37 }
 0x2ff   :  { %10498 = vmatprep.mubr.msk.bf16.mxu1 %vm123_vm0, %v12926_v10  ;;  %1149 = vrot.lane.b32.xlu0 %v12926_v10, %s12349_s5 }
 0x300   :  { %v1060_v6 = vpop.f32.mrb[24].mxu0 }
 0x301   :  { %v1061_v34 = vadd.f32 %v1060_v6, %v674_v0  ;;  %v1062_v9 = vpop.f32.mrb[25].mxu0 }
 0x302   :  { %v1063_v17 = vadd.f32 %v1062_v9, %v678_v26  ;;  %v1064_v18 = vpop.f32.mrb[26].mxu0 }
 0x303   :  { %v1065_v21 = vadd.f32 %v1064_v18, %v674_v0  ;;  %v1066_v22 = vpop.f32.mrb[27].mxu0 }
 0x304   :  { %v1067_v23 = vadd.f32 %v1066_v22, %v678_v26 }
 0x305   :  { %v12934_v28 = vpack.c.bf16 %v1065_v21, %v1061_v34 }
 0x306   :  { %v12936_v29 = vpack.c.bf16 %v1067_v23, %v1063_v17 }
 0x307   :  { %1151 = vrot.lane.b32.xlu1 %v12934_v28, %s12349_s5 }
 0x308   :  { %v1070_v30 = vpop.f32.mrb[28].mxu0 }
 0x309   :  { %v1071_v32 = vadd.f32 %v1070_v30, %v674_v0  ;;  %v1072_v63 = vpop.f32.mrb[29].mxu0 }
 0x30a   :  { %v1073_v33 = vadd.f32 %v1072_v63, %v678_v26  ;;  %v1074_v49 = vpop.f32.mrb[30].mxu0 }
 0x30b   :  { %v1075_v35 = vadd.f32 %v1074_v49, %v674_v0  ;;  %v1076_v38 = vpop.f32.mrb[31].mxu0  ;;  %1423 = vrot.lane.b32.xlu1 %v12926_v10, %s12350_s3 }
 0x30c   :  { %v1077_v27 = vadd.f32 %v1076_v38, %v678_v26  ;;  %v682_v38 = vrot.slane %v12920_v42, %v12625_v20 }
 0x30d   :  { %v12942_v54 = vpack.c.bf16 %v1075_v35, %v1071_v32 }
 0x30e   :  { %v12944_v43 = vpack.c.bf16 %v1077_v27, %v1073_v33  ;;  %v686_v27 = vrot.slane %v12897_v1, %v12625_v20 }
 0x30f   :  { %1153 = vrot.lane.b32.xlu0 %v12942_v54, %s12349_s5  ;;  %1425 = vrot.lane.b32.xlu1 %v12934_v28, %s12350_s3 }
 0x310   :  { %v1080_v13 = vpop.f32.mrb[32].mxu0 }
 0x311   :  { %v1081_v59 = vadd.f32 %v1080_v13, %v674_v0  ;;  %v1082_v41 = vpop.f32.mrb[33].mxu0 }
 0x312   :  { %v1083_v19 = vadd.f32 %v1082_v41, %v678_v26  ;;  %v1084_v24 = vpop.f32.mrb[34].mxu0 }
 0x313   :  { %v1085_v50 = vadd.f32 %v1084_v24, %v674_v0  ;;  %v1086_v45 = vpop.f32.mrb[35].mxu0 }
 0x314   :  { %v1087_v2 = vadd.f32 %v1086_v45, %v678_v26 }
 0x315   :  { %v12950_v37 = vpack.c.bf16 %v1085_v50, %v1081_v59 }
 0x316   :  { %v12952_v25 = vpack.c.bf16 %v1087_v2, %v1083_v19 }
 0x317   :  { %1155 = vrot.lane.b32.xlu0 %v12950_v37, %s12349_s5  ;;  %1429 = vrot.lane.b32.xlu1 %v12950_v37, %s12350_s3 }
 0x31b   :  { %1427 = vrot.lane.b32.xlu0 %v12942_v54, %s12350_s3  ;;  %1417 = vrot.lane.b32.xlu1 %v12934_v28, %s12351_s17 }
 0x31f   :  { %1415 = vrot.lane.b32.xlu0 %v12926_v10, %s12351_s17  ;;  %1421 = vrot.lane.b32.xlu1 %v12950_v37, %s12351_s17 }
 0x323   :  { %1419 = vrot.lane.b32.xlu0 %v12942_v54, %s12351_s17 }
 0x371   :  { %v1150_v0 = vpop.permute.xlu0 %1149 }
 0x372   :  { %11074 = vmatprep.subr.msk.bf16.mxu1 %vm123_vm0, %v1150_v0  ;;  %v1170_v26 = vsel %vm123_vm0, %v1150_v0, 0 }
 0x373   :  { %10491 = vmatpush3.bf16.xpose.msra.mxu1 %v1170_v26 }
 0x379   :  { %v1152_v3 = vpop.permute.xlu1 %1151 }
 0x37a   :  { %11075 = vmatprep.subr.msk.bf16.mxu1 %vm123_vm0, %v1152_v3  ;;  %v1173_v4 = vsel %vm123_vm0, %v1152_v3, 0 }
 0x37b   :  { %10493 = vmatpush3.bf16.xpose.msra.mxu1 %v1173_v4 }
 0x37d   :  { %v1424_v5 = vpop.permute.xlu1 %1423 }
 0x37e   :  { %11078 = vmatprep.subr.msk.bf16.mxu0 %vm123_vm0, %v1424_v5  ;;  %v1444_v6 = vsel %vm123_vm0, %v1424_v5, 0 }
 0x37f   :  { %10523 = vmatpush3.bf16.xpose.msra.mxu0 %v1444_v6 }
 0x381   :  { %v1426_v34 = vpop.permute.xlu1 %1425  ;;  %v1154_v9 = vpop.permute.xlu0 %1153 }
 0x382   :  { %11076 = vmatprep.subr.msk.bf16.mxu1 %vm123_vm0, %v1154_v9  ;;  %11079 = vmatprep.subr.msk.bf16.mxu0 %vm123_vm0, %v1426_v34  ;;  %v1176_v17 = vsel %vm123_vm0, %v1154_v9, 0  ;;  %v1447_v18 = vsel %vm123_vm0, %v1426_v34, 0 }
 0x383   :  { %10495 = vmatpush3.bf16.xpose.msra.mxu1 %v1176_v17 }
 0x387   :  { %10525 = vmatpush3.bf16.xpose.msra.mxu0 %v1447_v18 }
 0x389   :  { %v1156_v21 = vpop.permute.xlu0 %1155  ;;  %v1430_v32 = vpop.permute.xlu1 %1429 }
 0x38a   :  { %11077 = vmatprep.subr.msk.bf16.mxu1 %vm123_vm0, %v1156_v21  ;;  %v1179_v22 = vsel %vm123_vm0, %v1156_v21, 0  ;;  %v1453_v33 = vsel %vm123_vm0, %v1430_v32, 0 }
 0x38b   :  { %10497 = vmatpush3.bf16.xpose.msra.mxu1 %v1179_v22 }
 0x38c   :  { %10506 = vmatprep.subr.bf16.mxu1 %v12928_v8 }
 0x38d   :  { %v1428_v23 = vpop.permute.xlu0 %1427  ;;  %v1418_v49 = vpop.permute.xlu1 %1417 }
 0x38e   :  { %11080 = vmatprep.subr.msk.bf16.mxu0 %vm123_vm0, %v1428_v23  ;;  %v1450_v30 = vsel %vm123_vm0, %v1428_v23, 0 }
 0x38f   :  { %10527 = vmatpush3.bf16.xpose.msra.mxu0 %v1450_v30 }
 0x390   :  { %11081 = vmatprep.subr.msk.bf16.mxu0 %vm123_vm0, %v1430_v32 }
 0x391   :  { %v1416_v63 = vpop.permute.xlu0 %1415  ;;  %v1422_v13 = vpop.permute.xlu1 %1421 }
 0x392   :  { %10499 = vmatmul.mubr.msk.bf16.vlgmr.msra.gmra.mrb[8].mxu1 %vm123_vm0, %v12934_v28  ;;  %10530 = vmatprep.mubr.msk.bf16.mxu0 %vm123_vm0, %v1416_v63 }
 0x393   :  { %10502 = vmatprep.mubr.msk.bf16.mxu1 %vm123_vm0, %v12942_v54  ;;  %10507 = vmatpush3.bf16.msra.mxu1 %v12928_v8 }
 0x394   :  { %10508 = vmatprep.subr.bf16.mxu1 %v12936_v29 }
 0x395   :  { %v1420_v35 = vpop.permute.xlu0 %1419 }
 0x397   :  { %10509 = vmatpush3.bf16.msra.mxu1 %v12936_v29  ;;  %10529 = vmatpush3.bf16.xpose.msra.mxu0 %v1453_v33 }
 0x398   :  { %10510 = vmatprep.subr.bf16.mxu1 %v12944_v43 }
 0x39a   :  { %10503 = vmatmul.mubr.msk.bf16.gmra.mrb[12].mxu1 %vm123_vm0, %v12950_v37 }
 0x39b   :  { %10511 = vmatpush3.bf16.msra.mxu1 %v12944_v43 }
 0x39c   :  { %10512 = vmatprep.subr.bf16.mxu1 %v12952_v25 }
 0x39e   :  { %10531 = vmatmul.mubr.msk.bf16.vlgmr.msra.gmra.mrb[52].mxu0 %vm123_vm0, %v1418_v49 }
 0x39f   :  { %10513 = vmatpush3.bf16.msra.mxu1 %v12952_v25  ;;  %10534 = vmatprep.mubr.msk.bf16.mxu0 %vm123_vm0, %v1420_v35 }
 0x3a5   :  { %v1090_v59 = vpop.f32.mrb[36].mxu0 }
 0x3a6   :  { %v1091_v41 = vadd.f32 %v1090_v59, %v682_v38  ;;  %v1092_v19 = vpop.f32.mrb[37].mxu0  ;;  %10535 = vmatmul.mubr.msk.bf16.gmra.mrb[56].mxu0 %vm123_vm0, %v1422_v13 }
 0x3a7   :  { %v1093_v24 = vadd.f32 %v1092_v19, %v686_v27  ;;  %v1094_v50 = vpop.f32.mrb[38].mxu0 }
 0x3a8   :  { %v1095_v45 = vadd.f32 %v1094_v50, %v682_v38  ;;  %v1096_v2 = vpop.f32.mrb[39].mxu0 }
 0x3a9   :  { %v1097_v0 = vadd.f32 %v1096_v2, %v686_v27 }
 0x3aa   :  { %v13006_v26 = vpack.c.bf16 %v1095_v45, %v1091_v41 }
 0x3ab   :  { %v13008_v3 = vpack.c.bf16 %v1097_v0, %v1093_v24 }
 0x3ad   :  { %v1100_v4 = vpop.f32.mrb[40].mxu0 }
 0x3ae   :  { %v1101_v42 = vadd.f32 %v1100_v4, %v682_v38  ;;  %v1102_v5 = vpop.f32.mrb[41].mxu0 }
 0x3af   :  { %v1103_v6 = vadd.f32 %v1102_v5, %v686_v27  ;;  %v1104_v1 = vpop.f32.mrb[42].mxu0 }
 0x3b0   :  { %v1105_v34 = vadd.f32 %v1104_v1, %v682_v38  ;;  %v1106_v9 = vpop.f32.mrb[43].mxu0 }
 0x3b1   :  { %v1107_v17 = vadd.f32 %v1106_v9, %v686_v27 }
 0x3b2   :  { %v13010_v18 = vpack.c.bf16 %v1105_v34, %v1101_v42 }
 0x3b3   :  { %v13012_v21 = vpack.c.bf16 %v1107_v17, %v1103_v6 }
 0x3b5   :  { %v1110_v22 = vpop.f32.mrb[44].mxu0 }
 0x3b6   :  { %v1111_v23 = vadd.f32 %v1110_v22, %v682_v38  ;;  %v1112_v30 = vpop.f32.mrb[45].mxu0 }
 0x3b7   :  { %v1113_v32 = vadd.f32 %v1112_v30, %v686_v27  ;;  %v1114_v63 = vpop.f32.mrb[46].mxu0 }
 0x3b8   :  { %v1115_v33 = vadd.f32 %v1114_v63, %v682_v38  ;;  %v1116_v49 = vpop.f32.mrb[47].mxu0 }
 0x3b9   :  { %v1117_v35 = vadd.f32 %v1116_v49, %v686_v27 }
 0x3ba   :  { %v13014_v13 = vpack.c.bf16 %v1115_v33, %v1111_v23 }
 0x3bb   :  { %v13016_v59 = vpack.c.bf16 %v1117_v35, %v1113_v32 }
 0x3bd   :  { %v1120_v41 = vpop.f32.mrb[48].mxu0 }
 0x3be   :  { %v1121_v19 = vadd.f32 %v1120_v41, %v682_v38  ;;  %v1122_v24 = vpop.f32.mrb[49].mxu0 }
 0x3bf   :  { %v1123_v50 = vadd.f32 %v1122_v24, %v686_v27  ;;  %v1124_v45 = vpop.f32.mrb[50].mxu0 }
 0x3c0   :  { %v1125_v2 = vadd.f32 %v1124_v45, %v682_v38  ;;  %v1126_v0 = vpop.f32.mrb[51].mxu0 }
 0x3c1   :  { %v1127_v4 = vadd.f32 %v1126_v0, %v686_v27 }
 0x3c2   :  { %v13018_v42 = vpack.c.bf16 %v1125_v2, %v1121_v19 }
 0x3c3   :  { %v13020_v5 = vpack.c.bf16 %v1127_v4, %v1123_v50 }
 0x465   :  { %v10500_v6 = vpop.f32.mrb[8].mxu1 }
 0x466   :  { %v13022_v1 = vpop.f32.mrb[9].mxu1  ;;  %v1252_v34 = vsel %vm511_vm2, %v10500_v6, -inf }
 0x467   :  { %1253 = vmax.xlane.f32.xlu0 %v1252_v34  ;;  %v10501_v9 = vpop.f32.mrb[10].mxu1  ;;  %v1246_v38 = vsel %vm511_vm2, %v13022_v1, -inf }
 0x468   :  { %v13025_v17 = vpop.f32.mrb[11].mxu1  ;;  %v1255_v30 = vsel %vm511_vm2, %v10501_v9, -inf }
 0x469   :  { %v1249_v22 = vsel %vm511_vm2, %v13025_v17, -inf }
 0x46a   :  { %1250 = vmax.xlane.f32.xlu1 %v1249_v22 }
 0x46b   :  { %1247 = vmax.xlane.f32.xlu0 %v1246_v38 }
 0x46d   :  { %v13031_v27 = vpop.f32.mrb[12].mxu1 }
 0x46e   :  { %v13033_v23 = vpop.f32.mrb[13].mxu1  ;;  %v1264_v50 = vsel %vm511_vm2, %v13031_v27, -inf }
 0x46f   :  { %1256 = vmax.xlane.f32.xlu0 %v1255_v30  ;;  %v13036_v32 = vpop.f32.mrb[14].mxu1  ;;  %v1258_v34 = vsel %vm511_vm2, %v13033_v23, -inf }
 0x470   :  { %v13038_v63 = vpop.f32.mrb[15].mxu1 }
 0x471   :  { %v13040_v33 = vpop.f32.mrb[52].mxu0 }
 0x472   :  { %v13042_v49 = vpop.f32.mrb[53].mxu0  ;;  %v1526_v38 = vsel %vm511_vm2, %v13040_v33, -inf }
 0x473   :  { %v10533_v35 = vpop.f32.mrb[54].mxu0  ;;  %v1520_v41 = vsel %vm511_vm2, %v13042_v49, -inf }
 0x474   :  { %1521 = vmax.xlane.f32.xlu0 %v1520_v41  ;;  %v1492_v19 = vpop.f32.mrb[55].mxu0  ;;  %v1529_v2 = vsel %vm511_vm2, %v10533_v35, -inf }
 0x475   :  { %v1523_v24 = vsel %vm511_vm2, %v1492_v19, -inf }
 0x476   :  { %1524 = vmax.xlane.f32.xlu1 %v1523_v24  ;;  %v1267_v24 = vsel %vm511_vm2, %v13036_v32, -inf }
 0x478   :  { %1265 = vmax.xlane.f32.xlu0 %v1264_v50 }
 0x479   :  { %v13049_v45 = vpop.f32.mrb[56].mxu0 }
 0x47a   :  { %1530 = vmax.xlane.f32.xlu1 %v1529_v2  ;;  %v13052_v0 = vpop.f32.mrb[57].mxu0  ;;  %v1538_v30 = vsel %vm511_vm2, %v13049_v45, -inf  ;;  %v1261_v2 = vsel %vm511_vm2, %v13038_v63, -inf }
 0x47b   :  { %v13054_v4 = vpop.f32.mrb[58].mxu0  ;;  %v1532_v41 = vsel %vm511_vm2, %v13052_v0, -inf }
 0x47c   :  { %1259 = vmax.xlane.f32.xlu0 %v1258_v34  ;;  %v13058_v22 = vpop.f32.mrb[59].mxu0  ;;  %v1541_v50 = vsel %vm511_vm2, %v13054_v4, -inf }
 0x47d   :  { %v1535_v34 = vsel %vm511_vm2, %v13058_v22, -inf }
 0x480   :  { %1527 = vmax.xlane.f32.xlu0 %v1526_v38 }
 0x484   :  { %1539 = vmax.xlane.f32.xlu0 %v1538_v30 }
 0x488   :  { %1533 = vmax.xlane.f32.xlu0 %v1532_v41 }
 0x48b   :  { %1618 = vrot.lane.b32.xlu1 %v12936_v29, %s12351_s17 }
 0x48f   :  { %1620 = vrot.lane.b32.xlu1 %v12944_v43, %s12351_s17 }
 0x493   :  { %1622 = vrot.lane.b32.xlu1 %v12952_v25, %s12351_s17 }
 0x49e   :  { %1616 = vrot.lane.b32.xlu0 %v12928_v8, %s12351_s17 }
 0x4b7   :  { %1268 = vmax.xlane.f32.xlu1 %v1267_v24 }
 0x4bb   :  { %1542 = vmax.xlane.f32.xlu1 %v1541_v50 }
 0x4bf   :  { %1262 = vmax.xlane.f32.xlu1 %v1261_v2 }
 0x4c3   :  { %1536 = vmax.xlane.f32.xlu1 %v1535_v34 }
 0x4f4   :  { %v1254_v38 = vpop.xlane.xlu0 %1253 }
 0x4f5   :  { %v1272_v30 = vsub.f32 %v10500_v6, %v1254_v38 }
 0x4f7   :  { %v1282_v41 = vmul.f32 1.442695, %v1272_v30  ;;  %v1251_v24 = vpop.xlane.xlu1 %1250 }
 0x4f8   :  { %v1248_v57 = vpop.xlane.xlu0 %1247  ;;  %v1271_v34 = vsub.f32 %v13025_v17, %v1251_v24 }
 0x4f9   :  { %11570 = vpow2.f32 %v1282_v41 }
 0x4fa   :  { %v1280_v62 = vmul.f32 1.442695, %v1271_v34 }
 0x4fc   :  { %v1257_v7 = vpop.xlane.xlu0 %1256 }
 0x4fd   :  { %v1273_v40 = vsub.f32 %v10501_v9, %v1257_v7 }
 0x4ff   :  { %v1284_v47 = vmul.f32 1.442695, %v1273_v40  ;;  %v1270_v40 = vsub.f32 %v13022_v1, %v1248_v57 }
 0x501   :  { %11572 = vpow2.f32 %v1284_v47  ;;  %v1522_v61 = vpop.xlane.xlu0 %1521  ;;  %v1278_v24 = vmul.f32 1.442695, %v1270_v40 }
 0x503   :  { %v13082_v50 = vpop.eup %11570  ;;  %v1525_v44 = vpop.xlane.xlu1 %1524 }
 0x504   :  { %v1300_v2 = vsel %vm511_vm2, %v13082_v50, 0.0  ;;  %v1545_v30 = vsub.f32 %v1492_v19, %v1525_v44  ;;  %v1544_v44 = vsub.f32 %v13042_v49, %v1522_v61 }
 0x505   :  { %1301 = vadd.xlane.f32.xlu0 %v1300_v2  ;;  %v1266_v55 = vpop.xlane.xlu0 %1265 }
 0x506   :  { %v1554_v39 = vmul.f32 1.442695, %v1545_v30  ;;  %v1552_v34 = vmul.f32 1.442695, %v1544_v44  ;;  %v1276_v57 = vsub.f32 %v13031_v27, %v1266_v55 }
 0x507   :  { %v1531_v6 = vpop.xlane.xlu1 %1530 }
 0x508   :  { %v1547_v38 = vsub.f32 %v10533_v35, %v1531_v6 }
 0x509   :  { %v1260_v41 = vpop.xlane.xlu0 %1259 }
 0x50a   :  { %v1558_v7 = vmul.f32 1.442695, %v1547_v38  ;;  %v1274_v30 = vsub.f32 %v13033_v23, %v1260_v41 }
 0x50b   :  { %v13087_v9 = vpop.eup %11572 }
 0x50c   :  { %11574 = vpow2.f32 %v1558_v7  ;;  %v1303_v47 = vsel %vm511_vm2, %v13087_v9, 0.0 }
 0x50d   :  { %1304 = vadd.xlane.f32.xlu1 %v1303_v47  ;;  %v1528_v2 = vpop.xlane.xlu0 %1527  ;;  %11576 = vpow2.f32 %v1280_v62 }
 0x50e   :  { %v1546_v17 = vsub.f32 %v13040_v33, %v1528_v2  ;;  %11578 = vpow2.f32 %v1554_v39  ;;  %v1290_v33 = vmul.f32 1.442695, %v1276_v57  ;;  %v1286_v2 = vmul.f32 1.442695, %v1274_v30 }
 0x510   :  { %v1556_v35 = vmul.f32 1.442695, %v1546_v17 }
 0x511   :  { %v1540_v19 = vpop.xlane.xlu0 %1539 }
 0x512   :  { %11580 = vpow2.f32 %v1556_v35  ;;  %v1550_v61 = vsub.f32 %v13049_v45, %v1540_v19 }
 0x513   :  { %11582 = vpow2.f32 %v1278_v24 }
 0x514   :  { %11584 = vpow2.f32 %v1552_v34  ;;  %v1564_v7 = vmul.f32 1.442695, %v1550_v61 }
 0x515   :  { %v1534_v1 = vpop.xlane.xlu0 %1533  ;;  %11586 = vpow2.f32 %v1290_v33  ;;  %v13139_v33 = vpop.permute.xlu1 %1618 }
 0x516   :  { %v13095_v6 = vpop.eup %11574  ;;  %11588 = vpow2.f32 %v1564_v7  ;;  %v1548_v17 = vsub.f32 %v13052_v0, %v1534_v1 }
 0x517   :  { %v1577_v38 = vsel %vm511_vm2, %v13095_v6, 0.0  ;;  %v13099_v62 = vpop.eup %11576  ;;  %11590 = vpow2.f32 %v1286_v2 }
 0x518   :  { %1578 = vadd.xlane.f32.xlu1 %v1577_v38  ;;  %v13105_v49 = vpop.eup %11578  ;;  %v1297_v55 = vsel %vm511_vm2, %v13099_v62, 0.0  ;;  %v1560_v41 = vmul.f32 1.442695, %v1548_v17 }
 0x519   :  { %v13102_v39 = vpop.permute.xlu0 %1616  ;;  %v1571_v47 = vsel %vm511_vm2, %v13105_v49, 0.0 }
 0x51a   :  { %10538 = vmatprep.subr.bf16.mxu1 %v13102_v39  ;;  %11592 = vpow2.f32 %v1560_v41 }
 0x51c   :  { %v13109_v27 = vpop.eup %11580  ;;  %1298 = vadd.xlane.f32.xlu1 %v1297_v55  ;;  %v1621_v55 = vpop.permute.xlu1 %1620 }
 0x51d   :  { %v1574_v45 = vsel %vm511_vm2, %v13109_v27, 0.0  ;;  %v13114_v40 = vpop.eup %11582 }
 0x51e   :  { %1575 = vadd.xlane.f32.xlu0 %v1574_v45  ;;  %v1294_v24 = vsel %vm511_vm2, %v13114_v40, 0.0  ;;  %v13121_v23 = vpop.eup %11584 }
 0x51f   :  { %v1568_v44 = vsel %vm511_vm2, %v13121_v23, 0.0  ;;  %v13125_v35 = vpop.eup %11586 }
 0x520   :  { %1572 = vadd.xlane.f32.xlu1 %v1571_v47  ;;  %v1312_v19 = vsel %vm511_vm2, %v13125_v35, 0.0  ;;  %v13129_v0 = vpop.eup %11588  ;;  %v13143_v30 = vpop.permute.xlu1 %1622 }
 0x521   :  { %v1586_v34 = vsel %vm511_vm2, %v13129_v0, 0.0  ;;  %v13133_v57 = vpop.eup %11590 }
 0x522   :  { %1295 = vadd.xlane.f32.xlu0 %v1294_v24  ;;  %v1306_v1 = vsel %vm511_vm2, %v13133_v57, 0.0 }
 0x524   :  { %v13137_v38 = vpop.eup %11592 }
 0x525   :  { %v1580_v61 = vsel %vm511_vm2, %v13137_v38, 0.0 }
 0x526   :  { %1569 = vadd.xlane.f32.xlu0 %v1568_v44 }
 0x52a   :  { %1313 = vadd.xlane.f32.xlu0 %v1312_v19 }
 0x52e   :  { %1587 = vadd.xlane.f32.xlu0 %v1586_v34 }
 0x532   :  { %1307 = vadd.xlane.f32.xlu0 %v1306_v1 }
 0x536   :  { %1581 = vadd.xlane.f32.xlu0 %v1580_v61 }
 0x544   :  { %v1269_v7 = vpop.xlane.xlu1 %1268 }
 0x545   :  { %v1277_v45 = vsub.f32 %v13036_v32, %v1269_v7 }
 0x547   :  { %v1292_v47 = vmul.f32 1.442695, %v1277_v45 }
 0x548   :  { %v1543_v2 = vpop.xlane.xlu1 %1542 }
 0x549   :  { %11594 = vpow2.f32 %v1292_v47  ;;  %v1551_v17 = vsub.f32 %v13054_v4, %v1543_v2 }
 0x54b   :  { %v1566_v24 = vmul.f32 1.442695, %v1551_v17 }
 0x54c   :  { %v1263_v32 = vpop.xlane.xlu1 %1262 }
 0x54d   :  { %11596 = vpow2.f32 %v1566_v24  ;;  %v1275_v4 = vsub.f32 %v13038_v63, %v1263_v32 }
 0x54f   :  { %v1288_v1 = vmul.f32 1.442695, %v1275_v4 }
 0x550   :  { %v1537_v45 = vpop.xlane.xlu1 %1536 }
 0x551   :  { %11598 = vpow2.f32 %v1288_v1  ;;  %v1549_v63 = vsub.f32 %v13058_v22, %v1537_v45 }
 0x553   :  { %v13147_v41 = vpop.eup %11594 }
 0x554   :  { %v1315_v44 = vsel %vm511_vm2, %v13147_v41, 0.0 }
 0x555   :  { %1316 = vadd.xlane.f32.xlu1 %v1315_v44 }
 0x557   :  { %v13151_v19 = vpop.eup %11596 }
 0x558   :  { %v1589_v34 = vsel %vm511_vm2, %v13151_v19, 0.0 }
 0x559   :  { %1590 = vadd.xlane.f32.xlu0 %v1589_v34  ;;  %v1562_v34 = vmul.f32 1.442695, %v1549_v63 }
 0x55b   :  { %v13164_v61 = vpop.eup %11598 }
 0x55c   :  { %v1309_v7 = vsel %vm511_vm2, %v13164_v61, 0.0 }
 0x566   :  { %1715 = vrot.lane.b32.xlu1 %v12934_v28, %s12352_s4 }
 0x56f   :  { %1713 = vrot.lane.b32.xlu0 %v12926_v10, %s12352_s4 }
 0x573   :  { %1705 = vrot.lane.b32.xlu0 %v12926_v10, %s12353_s18 }
 0x577   :  { %1709 = vrot.lane.b32.xlu0 %v12942_v54, %s12353_s18 }
 0x58a   :  { %1310 = vadd.xlane.f32.xlu1 %v1309_v7 }
 0x592   :  { %v1302_v17 = vpop.xlane.xlu0 %1301 }
 0x59a   :  { %v1305_v47 = vpop.xlane.xlu1 %1304 }
 0x59b   :  { %1717 = vrot.lane.b32.xlu1 %v12942_v54, %s12352_s4  ;;  %11600 = vrcp.f32 %v1305_v47 }
 0x5a5   :  { %v1579_v2 = vpop.xlane.xlu1 %1578  ;;  %v11601_v4 = vpop.eup %11600 }
 0x5a6   :  { %v1329_v36 = vmul.f32 %v11601_v4, %v13087_v9 }
 0x5a9   :  { %v1299_v24 = vpop.xlane.xlu1 %1298 }
 0x5aa   :  { %11602 = vrcp.f32 %v1299_v24 }
 0x5ab   :  { %v1576_v44 = vpop.xlane.xlu0 %1575  ;;  %11604 = vrcp.f32 %v1302_v17 }
 0x5af   :  { %v1296_v32 = vpop.xlane.xlu0 %1295 }
 0x5b0   :  { %11606 = vrcp.f32 %v1296_v32 }
 0x5b1   :  { %11608 = vpow2.f32 %v1562_v34 }
 0x5b4   :  { %v11603_v1 = vpop.eup %11602 }
 0x5b5   :  { %v11605_v7 = vpop.eup %11604  ;;  %v1327_v22 = vmul.f32 %v11603_v1, %v13099_v62 }
 0x5b6   :  { %v1328_v45 = vmul.f32 %v11605_v7, %v13082_v50 }
 0x5b8   :  { %v1335_v63 = vpack.c.bf16 %v1329_v36, %v1328_v45 }
 0x5ba   :  { %v11607_v51 = vpop.eup %11606 }
 0x5bb   :  { %v13172_v46 = vpop.eup %11608  ;;  %v1326_v52 = vmul.f32 %v11607_v51, %v13114_v40  ;;  %v1570_v51 = vpop.xlane.xlu0 %1569 }
 0x5bc   :  { %v1583_v17 = vsel %vm511_vm2, %v13172_v46, 0.0  ;;  %v1573_v40 = vpop.xlane.xlu1 %1572 }
 0x5bd   :  { %v1334_v47 = vpack.c.bf16 %v1327_v22, %v1326_v52  ;;  %11610 = vrcp.f32 %v1573_v40 }
 0x5be   :  { %11612 = vrcp.f32 %v1570_v51 }
 0x5bf   :  { %1584 = vadd.xlane.f32.xlu1 %v1583_v17  ;;  %10514 = vmatprep.mubr.msk.bf16.mxu1 %vm511_vm2, %v1334_v47  ;;  %v1314_v36 = vpop.xlane.xlu0 %1313 }
 0x5c0   :  { %10515 = vmatmul.mubr.msk.bf16.vlgmr.msra.gmra.mrb[16].mxu1 %vm511_vm2, %v1335_v63 }
 0x5c1   :  { %10539 = vmatpush3.bf16.msra.mxu1 %v13102_v39 }
 0x5c2   :  { %10540 = vmatprep.subr.bf16.mxu1 %v13139_v33 }
 0x5c3   :  { %v1588_v52 = vpop.xlane.xlu0 %1587 }
 0x5c5   :  { %10541 = vmatpush3.bf16.msra.mxu1 %v13139_v33 }
 0x5c6   :  { %10542 = vmatprep.subr.bf16.mxu1 %v1621_v55 }
 0x5c7   :  { %v1308_v50 = vpop.xlane.xlu0 %1307  ;;  %v11611_v24 = vpop.eup %11610 }
 0x5c8   :  { %v11613_v34 = vpop.eup %11612 }
 0x5c9   :  { %10543 = vmatpush3.bf16.msra.mxu1 %v1621_v55  ;;  %v1600_v63 = vmul.f32 %v11613_v34, %v13121_v23 }
 0x5ca   :  { %10544 = vmatprep.subr.bf16.mxu1 %v13143_v30 }
 0x5cb   :  { %v1582_v9 = vpop.xlane.xlu0 %1581 }
 0x5cd   :  { %10545 = vmatpush3.bf16.msra.mxu1 %v13143_v30 }
 0x5d0   :  { %1719 = vrot.lane.b32.xlu1 %v12950_v37, %s12352_s4 }
 0x5d4   :  { %1707 = vrot.lane.b32.xlu1 %v12934_v28, %s12353_s18 }
 0x5d8   :  { %1711 = vrot.lane.b32.xlu1 %v12950_v37, %s12353_s18 }
 0x5e2   :  { %v1317_v33 = vpop.xlane.xlu1 %1316 }
 0x5e3   :  { %11614 = vrcp.f32 %v1317_v33 }
 0x5e4   :  { %11616 = vrcp.f32 %v1308_v50 }
 0x5e5   :  { %11618 = vrcp.f32 %v1314_v36  ;;  %v1601_v36 = vmul.f32 %v11611_v24, %v13105_v49 }
 0x5e6   :  { %v1591_v62 = vpop.xlane.xlu0 %1590  ;;  %v1716_v55 = vpop.permute.xlu1 %1715 }
 0x5e7   :  { %v1737_v49 = vsel %vm123_vm0, %v1716_v55, 0 }
 0x5ea   :  { %v1714_v39 = vpop.permute.xlu0 %1713 }
 0x5eb   :  { %11082 = vmatprep.subr.msk.bf16.mxu1 %vm123_vm0, %v1714_v39 }
 0x5ed   :  { %v11615_v32 = vpop.eup %11614 }
 0x5ee   :  { %v11617_v4 = vpop.eup %11616  ;;  %v1333_v22 = vmul.f32 %v11615_v32, %v13147_v41 }
 0x5ef   :  { %v11619_v1 = vpop.eup %11618  ;;  %v1330_v45 = vmul.f32 %v11617_v4, %v13133_v57 }
 0x5f0   :  { %v1332_v17 = vmul.f32 %v11619_v1, %v13125_v35  ;;  %v1734_v35 = vsel %vm123_vm0, %v1714_v39, 0 }
 0x617   :  { %v1311_v30 = vpop.xlane.xlu1 %1310 }
 0x618   :  { %11620 = vrcp.f32 %v1311_v30 }
 0x619   :  { %11622 = vrcp.f32 %v1576_v44  ;;  %v1337_v44 = vpack.c.bf16 %v1333_v22, %v1332_v17 }
 0x61a   :  { %11624 = vrcp.f32 %v1579_v2  ;;  %v1608_v2 = vpack.c.bf16 %v1601_v36, %v1600_v63 }
 0x61b   :  { %11626 = vrcp.f32 %v1591_v62 }
 0x61c   :  { %11628 = vrcp.f32 %v1582_v9 }
 0x61d   :  { %11630 = vrcp.f32 %v1588_v52 }
 0x622   :  { %v11621_v7 = vpop.eup %11620 }
 0x623   :  { %v1331_v47 = vmul.f32 %v11621_v7, %v13164_v61  ;;  %v11623_v50 = vpop.eup %11622  ;;  %v1718_v61 = vpop.permute.xlu1 %1717 }
 0x624   :  { %v11625_v40 = vpop.eup %11624  ;;  %v1602_v57 = vmul.f32 %v11623_v50, %v13109_v27  ;;  %v1740_v33 = vsel %vm123_vm0, %v1718_v61, 0  ;;  %v1706_v7 = vpop.permute.xlu0 %1705 }
 0x625   :  { %v1336_v51 = vpack.c.bf16 %v1331_v47, %v1330_v45  ;;  %v1603_v41 = vmul.f32 %v11625_v40, %v13095_v6  ;;  %v11627_v30 = vpop.eup %11626 }
 0x626   :  { %v1607_v32 = vmul.f32 %v11627_v30, %v13151_v19 }
 0x627   :  { %10518 = vmatprep.mubr.msk.bf16.mxu1 %vm511_vm2, %v1336_v51  ;;  %v1609_v23 = vpack.c.bf16 %v1603_v41, %v1602_v57 }
 0x628   :  { %10519 = vmatmul.mubr.msk.bf16.gmra.mrb[20].mxu1 %vm511_vm2, %v1337_v44  ;;  %v1710_v45 = vpop.permute.xlu0 %1709 }
 0x629   :  { %10546 = vmatprep.mubr.msk.bf16.mxu1 %vm511_vm2, %v1608_v2 }
 0x630   :  { %10547 = vmatmul.mubr.msk.bf16.vlgmr.msra.gmra.mrb[24].mxu1 %vm511_vm2, %v1609_v23 }
 0x631   :  { %10555 = vmatpush3.bf16.xpose.msra.mxu1 %v1734_v35 }
 0x632   :  { %11083 = vmatprep.subr.msk.bf16.mxu1 %vm123_vm0, %v1716_v55  ;;  %v11629_v55 = vpop.eup %11628 }
 0x633   :  { %v11631_v24 = vpop.eup %11630  ;;  %v1604_v4 = vmul.f32 %v11629_v55, %v13137_v38 }
 0x634   :  { %v1606_v52 = vmul.f32 %v11631_v24, %v13129_v0 }
 0x636   :  { %v1611_v1 = vpack.c.bf16 %v1607_v32, %v1606_v52 }
 0x639   :  { %10557 = vmatpush3.bf16.xpose.msra.mxu1 %v1737_v49 }
 0x63a   :  { %11084 = vmatprep.subr.msk.bf16.mxu1 %vm123_vm0, %v1718_v61 }
 0x641   :  { %10559 = vmatpush3.bf16.xpose.msra.mxu1 %v1740_v33 }
 0x64c   :  { %v1585_v6 = vpop.xlane.xlu1 %1584 }
 0x64d   :  { %11632 = vrcp.f32 %v1585_v6 }
 0x650   :  { %v1720_v27 = vpop.permute.xlu1 %1719 }
 0x651   :  { %11085 = vmatprep.subr.msk.bf16.mxu1 %vm123_vm0, %v1720_v27  ;;  %v1743_v39 = vsel %vm123_vm0, %v1720_v27, 0 }
 0x652   :  { %10561 = vmatpush3.bf16.xpose.msra.mxu1 %v1743_v39 }
 0x654   :  { %v1708_v22 = vpop.permute.xlu1 %1707 }
 0x657   :  { %v11633_v34 = vpop.eup %11632 }
 0x658   :  { %v1605_v62 = vmul.f32 %v11633_v34, %v13172_v46  ;;  %v1712_v38 = vpop.permute.xlu1 %1711 }
 0x65a   :  { %v1610_v9 = vpack.c.bf16 %v1605_v62, %v1604_v4 }
 0x65c   :  { %10550 = vmatprep.mubr.msk.bf16.mxu1 %vm511_vm2, %v1610_v9 }
 0x65d   :  { %10551 = vmatmul.mubr.msk.bf16.gmra.mrb[28].mxu1 %vm511_vm2, %v1611_v1 }
 0x65e   :  { %10562 = vmatprep.mubr.msk.bf16.mxu1 %vm123_vm0, %v1706_v7 }
 0x665   :  { %10563 = vmatmul.mubr.msk.bf16.vlgmr.msra.gmra.mrb[32].mxu1 %vm123_vm0, %v1708_v22 }
 0x666   :  { %10566 = vmatprep.mubr.msk.bf16.mxu1 %vm123_vm0, %v1710_v45 }
 0x66d   :  { %10567 = vmatmul.mubr.msk.bf16.gmra.mrb[36].mxu1 %vm123_vm0, %v1712_v38 }
 0x693   :  { %v13222_v46 = vpop.f32.mrb[16].mxu1 }
 0x694   :  { %v13224_v0 = vpop.f32.mrb[17].mxu1 }
 0x695   :  { %v13226_v19 = vpop.f32.mrb[18].mxu1 }
 0x696   :  { %v13228_v47 = vpop.f32.mrb[19].mxu1 }
 0x6fb   :  { %v13230_v63 = vpop.f32.mrb[20].mxu1 }
 0x6fc   :  { %17199 = vst [vmem:[#allocation25_spill] sm:$0xff] %v13230_v63  ;;  %v13232_v17 = vpop.f32.mrb[21].mxu1 }
 0x6fd   :  { %v13234_v51 = vpop.f32.mrb[22].mxu1 }
 0x6fe   :  { %v13236_v36 = vpop.f32.mrb[23].mxu1 }
 0x703   :  { %v13238_v44 = vpop.f32.mrb[24].mxu1 }
 0x704   :  { %v13240_v50 = vpop.f32.mrb[25].mxu1 }
 0x705   :  { %v13242_v2 = vpop.f32.mrb[26].mxu1 }
 0x706   :  { %v13246_v57 = vpop.f32.mrb[27].mxu1 }
 0x730   :  { %v13250_v23 = vpop.f32.mrb[28].mxu1 }
 0x731   :  { %v13252_v35 = vpop.f32.mrb[29].mxu1 }
 0x732   :  { %v13254_v49 = vpop.f32.mrb[30].mxu1 }
 0x733   :  { %v13258_v33 = vpop.f32.mrb[31].mxu1 }
 0x738   :  { %v10564_v27 = vpop.f32.mrb[32].mxu1 }
 0x739   :  { %v1779_v39 = vpop.f32.mrb[33].mxu1  ;;  %v1816_v30 = vsel %vm511_vm2, %v10564_v27, -inf }
 0x73a   :  { %1817 = vmax.xlane.f32.xlu0 %v1816_v30  ;;  %v10565_v55 = vpop.f32.mrb[34].mxu1  ;;  %v1810_v32 = vsel %vm511_vm2, %v1779_v39, -inf }
 0x73b   :  { %v1782_v24 = vpop.f32.mrb[35].mxu1  ;;  %v1819_v52 = vsel %vm511_vm2, %v10565_v55, -inf }
 0x73c   :  { %v1813_v34 = vsel %vm511_vm2, %v1782_v24, -inf }
 0x73d   :  { %1814 = vmax.xlane.f32.xlu1 %v1813_v34 }
 0x73e   :  { %1811 = vmax.xlane.f32.xlu0 %v1810_v32 }
 0x740   :  { %v10568_v4 = vpop.f32.mrb[36].mxu1 }
 0x741   :  { %v1795_v62 = vpop.f32.mrb[37].mxu1  ;;  %v1828_v7 = vsel %vm511_vm2, %v10568_v4, -inf }
 0x742   :  { %1820 = vmax.xlane.f32.xlu0 %v1819_v52  ;;  %v13266_v9 = vpop.f32.mrb[38].mxu1  ;;  %v1822_v22 = vsel %vm511_vm2, %v1795_v62, -inf }
 0x743   :  { %v13268_v1 = vpop.f32.mrb[39].mxu1  ;;  %v1831_v45 = vsel %vm511_vm2, %v13266_v9, -inf }
 0x744   :  { %v1825_v38 = vsel %vm511_vm2, %v13268_v1, -inf }
 0x746   :  { %1829 = vmax.xlane.f32.xlu0 %v1828_v7 }
 0x74a   :  { %1823 = vmax.xlane.f32.xlu0 %v1822_v22 }
 0x74e   :  { %1904 = vrot.lane.b32.xlu1 %v12936_v29, %s12353_s18 }
 0x752   :  { %1906 = vrot.lane.b32.xlu1 %v12944_v43, %s12353_s18 }
 0x760   :  { %1902 = vrot.lane.b32.xlu0 %v12928_v8, %s12353_s18 }
 0x776   :  { %1832 = vmax.xlane.f32.xlu1 %v1831_v45 }
 0x77a   :  { %1826 = vmax.xlane.f32.xlu1 %v1825_v38 }
 0x78b   :  { %1908 = vrot.lane.b32.xlu1 %v12952_v25, %s12353_s18 }
 0x7c7   :  { %v1818_v30 = vpop.xlane.xlu0 %1817 }
 0x7c8   :  { %v1836_v34 = vsub.f32 %v10564_v27, %v1818_v30 }
 0x7ca   :  { %v1846_v32 = vmul.f32 1.442695, %v1836_v34  ;;  %v1815_v52 = vpop.xlane.xlu1 %1814 }
 0x7cb   :  { %v1812_v7 = vpop.xlane.xlu0 %1811  ;;  %v1835_v61 = vsub.f32 %v1782_v24, %v1815_v52 }
 0x7cc   :  { %11634 = vpow2.f32 %v1846_v32  ;;  %v1834_v22 = vsub.f32 %v1779_v39, %v1812_v7 }
 0x7cd   :  { %v1844_v45 = vmul.f32 1.442695, %v1835_v61 }
 0x7ce   :  { %v1842_v6 = vmul.f32 1.442695, %v1834_v22 }
 0x7cf   :  { %v1821_v40 = vpop.xlane.xlu0 %1820 }
 0x7d0   :  { %11636 = vpow2.f32 %v1842_v6  ;;  %v1837_v41 = vsub.f32 %v10565_v55, %v1821_v40  ;;  %v1905_v40 = vpop.permute.xlu1 %1904 }
 0x7d2   :  { %v1848_v20 = vmul.f32 1.442695, %v1837_v41 }
 0x7d3   :  { %v1830_v48 = vpop.xlane.xlu0 %1829 }
 0x7d4   :  { %11638 = vpow2.f32 %v1848_v20  ;;  %v1840_v38 = vsub.f32 %v10568_v4, %v1830_v48 }
 0x7d5   :  { %11640 = vpow2.f32 %v1844_v45 }
 0x7d6   :  { %v13284_v31 = vpop.eup %11634  ;;  %v1854_v12 = vmul.f32 1.442695, %v1840_v38 }
 0x7d7   :  { %v1824_v27 = vpop.xlane.xlu0 %1823  ;;  %v1864_v30 = vsel %vm511_vm2, %v13284_v31, 0.0 }
 0x7d8   :  { %11642 = vpow2.f32 %v1854_v12  ;;  %v1838_v39 = vsub.f32 %v1795_v62, %v1824_v27  ;;  %1865 = vadd.xlane.f32.xlu0 %v1864_v30  ;;  %v1907_v12 = vpop.permute.xlu1 %1906 }
 0x7da   :  { %v13288_v24 = vpop.eup %11636  ;;  %v1850_v6 = vmul.f32 1.442695, %v1838_v39 }
 0x7db   :  { %v1903_v61 = vpop.permute.xlu0 %1902  ;;  %v1858_v20 = vsel %vm511_vm2, %v13288_v24, 0.0 }
 0x7dc   :  { %11644 = vpow2.f32 %v1850_v6  ;;  %1859 = vadd.xlane.f32.xlu0 %v1858_v20  ;;  %10570 = vmatprep.subr.bf16.mxu0 %v1903_v61 }
 0x7dd   :  { %10571 = vmatpush3.bf16.msra.mxu0 %v1903_v61 }
 0x7de   :  { %v11639_v48 = vpop.eup %11638  ;;  %10572 = vmatprep.subr.bf16.mxu0 %v1905_v40 }
 0x7df   :  { %v1867_v41 = vsel %vm511_vm2, %v11639_v48, 0.0  ;;  %v11641_v55 = vpop.eup %11640 }
 0x7e0   :  { %1868 = vadd.xlane.f32.xlu1 %v1867_v41  ;;  %v1861_v62 = vsel %vm511_vm2, %v11641_v55, 0.0 }
 0x7e1   :  { %10573 = vmatpush3.bf16.msra.mxu0 %v1905_v40 }
 0x7e2   :  { %v13293_v4 = vpop.eup %11642  ;;  %10574 = vmatprep.subr.bf16.mxu0 %v1907_v12 }
 0x7e3   :  { %v1876_v34 = vsel %vm511_vm2, %v13293_v4, 0.0 }
 0x7e4   :  { %1862 = vadd.xlane.f32.xlu1 %v1861_v62  ;;  %1877 = vadd.xlane.f32.xlu0 %v1876_v34 }
 0x7e5   :  { %10575 = vmatpush3.bf16.msra.mxu0 %v1907_v12 }
 0x7e6   :  { %v13298_v32 = vpop.eup %11644 }
 0x7e7   :  { %v1870_v52 = vsel %vm511_vm2, %v13298_v32, 0.0 }
 0x7e8   :  { %1871 = vadd.xlane.f32.xlu0 %v1870_v52 }
 0x7f5   :  { %2001 = vrot.lane.b32.xlu1 %v12934_v28, %s12354_s1 }
 0x7f9   :  { %2003 = vrot.lane.b32.xlu1 %v12942_v54, %s12354_s1 }
 0x803   :  { %v1833_v7 = vpop.xlane.xlu1 %1832 }
 0x804   :  { %v1841_v22 = vsub.f32 %v13266_v9, %v1833_v7 }
 0x806   :  { %v1856_v45 = vmul.f32 1.442695, %v1841_v22 }
 0x807   :  { %v1827_v38 = vpop.xlane.xlu1 %1826 }
 0x808   :  { %11646 = vpow2.f32 %v1856_v45  ;;  %v1839_v27 = vsub.f32 %v13268_v1, %v1827_v38 }
 0x80a   :  { %v1852_v30 = vmul.f32 1.442695, %v1839_v27 }
 0x80b   :  { %v1909_v39 = vpop.permute.xlu1 %1908 }
 0x80c   :  { %10576 = vmatprep.subr.bf16.mxu0 %v1909_v39  ;;  %11648 = vpow2.f32 %v1852_v30 }
 0x80d   :  { %10577 = vmatpush3.bf16.msra.mxu0 %v1909_v39 }
 0x812   :  { %v11647_v6 = vpop.eup %11646 }
 0x813   :  { %v1879_v40 = vsel %vm511_vm2, %v11647_v6, 0.0 }
 0x814   :  { %1880 = vadd.xlane.f32.xlu0 %v1879_v40 }
 0x816   :  { %v11649_v61 = vpop.eup %11648 }
 0x817   :  { %v1873_v20 = vsel %vm511_vm2, %v11649_v61, 0.0 }
 0x81d   :  { %1874 = vadd.xlane.f32.xlu1 %v1873_v20 }
 0x82a   :  { %1999 = vrot.lane.b32.xlu0 %v12926_v10, %s12354_s1 }
 0x82e   :  { %2005 = vrot.lane.b32.xlu1 %v12950_v37, %s12354_s1  ;;  %1991 = vrot.lane.b32.xlu0 %v12926_v10, %s12355_s19 }
 0x832   :  { %1993 = vrot.lane.b32.xlu1 %v12934_v28, %s12355_s19  ;;  %1995 = vrot.lane.b32.xlu0 %v12942_v54, %s12355_s19 }
 0x836   :  { %1997 = vrot.lane.b32.xlu1 %v12950_v37, %s12355_s19 }
 0x865   :  { %v1866_v9 = vpop.xlane.xlu0 %1865 }
 0x869   :  { %v1860_v1 = vpop.xlane.xlu0 %1859 }
 0x86d   :  { %v1869_v41 = vpop.xlane.xlu1 %1868 }
 0x86e   :  { %11650 = vrcp.f32 %v1869_v41 }
 0x86f   :  { %11652 = vrcp.f32 %v1860_v1 }
 0x870   :  { %11654 = vrcp.f32 %v1866_v9 }
 0x871   :  { %v1863_v12 = vpop.xlane.xlu1 %1862  ;;  %v1878_v38 = vpop.xlane.xlu0 %1877 }
 0x872   :  { %11656 = vrcp.f32 %v1863_v12 }
 0x875   :  { %v1872_v27 = vpop.xlane.xlu0 %1871  ;;  %v2002_v30 = vpop.permute.xlu1 %2001 }
 0x878   :  { %v11651_v62 = vpop.eup %11650 }
 0x879   :  { %v11653_v34 = vpop.eup %11652  ;;  %v1893_v7 = vmul.f32 %v11651_v62, %v11639_v48  ;;  %v2004_v20 = vpop.permute.xlu1 %2003 }
 0x87a   :  { %v11655_v10 = vpop.eup %11654  ;;  %v1890_v28 = vmul.f32 %v11653_v34, %v13288_v24  ;;  %v2023_v24 = vsel %vm123_vm0, %v2002_v30, 0  ;;  %v2026_v62 = vsel %vm123_vm0, %v2004_v20, 0 }
 0x87b   :  { %v1892_v54 = vmul.f32 %v11655_v10, %v13284_v31 }
 0x87c   :  { %v11657_v52 = vpop.eup %11656 }
 0x87d   :  { %v1891_v22 = vmul.f32 %v11657_v52, %v11641_v55  ;;  %v1899_v37 = vpack.c.bf16 %v1893_v7, %v1892_v54 }
 0x87f   :  { %v1898_v45 = vpack.c.bf16 %v1891_v22, %v1890_v28 }
 0x881   :  { %10578 = vmatprep.mubr.msk.bf16.mxu0 %vm511_vm2, %v1898_v45 }
 0x882   :  { %10579 = vmatmul.mubr.msk.bf16.vlgmr.msra.gmra.mrb[60].mxu0 %vm511_vm2, %v1899_v37 }
 0x8a1   :  { %v1881_v39 = vpop.xlane.xlu0 %1880 }
 0x8a2   :  { %11658 = vrcp.f32 %v1881_v39 }
 0x8a3   :  { %11660 = vrcp.f32 %v1872_v27 }
 0x8a4   :  { %11662 = vrcp.f32 %v1878_v38 }
 0x8a5   :  { %v2000_v40 = vpop.permute.xlu0 %1999 }
 0x8a6   :  { %11086 = vmatprep.subr.msk.bf16.mxu0 %vm123_vm0, %v2000_v40  ;;  %v2020_v48 = vsel %vm123_vm0, %v2000_v40, 0 }
 0x8a7   :  { %10587 = vmatpush3.bf16.xpose.msra.mxu0 %v2020_v48 }
 0x8a8   :  { %11087 = vmatprep.subr.msk.bf16.mxu0 %vm123_vm0, %v2002_v30 }
 0x8a9   :  { %v1992_v54 = vpop.permute.xlu0 %1991 }
 0x8aa   :  { %v1875_v31 = vpop.xlane.xlu1 %1874 }
 0x8ab   :  { %11664 = vrcp.f32 %v1875_v31 }
 0x8ac   :  { %v11659_v55 = vpop.eup %11658 }
 0x8ad   :  { %v11661_v9 = vpop.eup %11660  ;;  %v1897_v12 = vmul.f32 %v11659_v55, %v11647_v6 }
 0x8ae   :  { %v11663_v1 = vpop.eup %11662  ;;  %v1894_v34 = vmul.f32 %v11661_v9, %v13298_v32  ;;  %v2006_v52 = vpop.permute.xlu1 %2005 }
 0x8af   :  { %10589 = vmatpush3.bf16.xpose.msra.mxu0 %v2023_v24  ;;  %v1896_v7 = vmul.f32 %v11663_v1, %v13293_v4  ;;  %v2029_v6 = vsel %vm123_vm0, %v2006_v52, 0 }
 0x8b0   :  { %11088 = vmatprep.subr.msk.bf16.mxu0 %vm123_vm0, %v2004_v20 }
 0x8b1   :  { %v1901_v22 = vpack.c.bf16 %v1897_v12, %v1896_v7 }
 0x8b2   :  { %v1994_v32 = vpop.permute.xlu1 %1993 }
 0x8b5   :  { %v11665_v41 = vpop.eup %11664 }
 0x8b6   :  { %v1895_v10 = vmul.f32 %v11665_v41, %v11649_v61  ;;  %v1996_v61 = vpop.permute.xlu0 %1995  ;;  %v1998_v4 = vpop.permute.xlu1 %1997 }
 0x8b7   :  { %10591 = vmatpush3.bf16.xpose.msra.mxu0 %v2026_v62 }
 0x8b8   :  { %11089 = vmatprep.subr.msk.bf16.mxu0 %vm123_vm0, %v2006_v52  ;;  %v1900_v28 = vpack.c.bf16 %v1895_v10, %v1894_v34 }
 0x8ba   :  { %10582 = vmatprep.mubr.msk.bf16.mxu0 %vm511_vm2, %v1900_v28 }
 0x8bb   :  { %10583 = vmatmul.mubr.msk.bf16.gmra.mrb[64].mxu0 %vm511_vm2, %v1901_v22 }
 0x8bc   :  { %10594 = vmatprep.mubr.msk.bf16.mxu0 %vm123_vm0, %v1992_v54 }
 0x8bf   :  { %10593 = vmatpush3.bf16.xpose.msra.mxu0 %v2029_v6 }
 0x8c0   :  { %10634 = vmatprep.subr.bf16.mxu0 %v13008_v3 }
 0x8c6   :  { %10595 = vmatmul.mubr.msk.bf16.vlgmr.msra.gmra.mrb[68].mxu0 %vm123_vm0, %v1994_v32 }
 0x8c7   :  { %10598 = vmatprep.mubr.msk.bf16.mxu0 %vm123_vm0, %v1996_v61  ;;  %10635 = vmatpush3.bf16.msra.mxu0 %v13008_v3 }
 0x8c8   :  { %10636 = vmatprep.subr.bf16.mxu0 %v13012_v21 }
 0x8cb   :  { %10637 = vmatpush3.bf16.msra.mxu0 %v13012_v21 }
 0x8cc   :  { %10638 = vmatprep.subr.bf16.mxu0 %v13016_v59 }
 0x8ce   :  { %10599 = vmatmul.mubr.msk.bf16.gmra.mrb[72].mxu0 %vm123_vm0, %v1998_v4 }
 0x8cf   :  { %10639 = vmatpush3.bf16.msra.mxu0 %v13016_v59 }
 0x8d0   :  { %10640 = vmatprep.subr.bf16.mxu0 %v13020_v5 }
 0x8d3   :  { %10641 = vmatpush3.bf16.msra.mxu0 %v13020_v5 }
 0x955   :  { %v13350_v45 = vpop.f32.mrb[60].mxu0 }
 0x956   :  { %v13352_v37 = vpop.f32.mrb[61].mxu0 }
 0x957   :  { %v13354_v38 = vpop.f32.mrb[62].mxu0 }
 0x958   :  { %v13358_v30 = vpop.f32.mrb[63].mxu0 }
 0x98e   :  { %v13362_v40 = vpop.f32.mrb[64].mxu0 }
 0x98f   :  { %v13364_v20 = vpop.f32.mrb[65].mxu0 }
 0x990   :  { %v13366_v48 = vpop.f32.mrb[66].mxu0 }
 0x991   :  { %v13370_v24 = vpop.f32.mrb[67].mxu0 }
 0x999   :  { %v10596_v9 = vpop.f32.mrb[68].mxu0 }
 0x99a   :  { %v2065_v1 = vpop.f32.mrb[69].mxu0  ;;  %v2102_v41 = vsel %vm511_vm2, %v10596_v9, -inf }
 0x99b   :  { %2103 = vmax.xlane.f32.xlu0 %v2102_v41  ;;  %v10597_v12 = vpop.f32.mrb[70].mxu0  ;;  %v2096_v10 = vsel %vm511_vm2, %v2065_v1, -inf }
 0x99c   :  { %v2068_v62 = vpop.f32.mrb[71].mxu0  ;;  %v2105_v28 = vsel %vm511_vm2, %v10597_v12, -inf }
 0x99d   :  { %v2099_v34 = vsel %vm511_vm2, %v2068_v62, -inf }
 0x99e   :  { %2100 = vmax.xlane.f32.xlu1 %v2099_v34 }
 0x99f   :  { %2097 = vmax.xlane.f32.xlu0 %v2096_v10 }
 0x9a1   :  { %v10600_v52 = vpop.f32.mrb[72].mxu0 }
 0x9a2   :  { %v2081_v7 = vpop.f32.mrb[73].mxu0  ;;  %v2114_v6 = vsel %vm511_vm2, %v10600_v52, -inf }
 0x9a3   :  { %2106 = vmax.xlane.f32.xlu0 %v2105_v28  ;;  %v13378_v22 = vpop.f32.mrb[74].mxu0  ;;  %v2108_v32 = vsel %vm511_vm2, %v2081_v7, -inf }
 0x9a4   :  { %v13380_v54 = vpop.f32.mrb[75].mxu0  ;;  %v2117_v61 = vsel %vm511_vm2, %v13378_v22, -inf }
 0x9a5   :  { %v2111_v4 = vsel %vm511_vm2, %v13380_v54, -inf }
 0x9a7   :  { %2115 = vmax.xlane.f32.xlu0 %v2114_v6 }
 0x9ab   :  { %2109 = vmax.xlane.f32.xlu0 %v2108_v32 }
 0x9af   :  { %2190 = vrot.lane.b32.xlu1 %v12936_v29, %s12355_s19 }
 0x9b3   :  { %2192 = vrot.lane.b32.xlu1 %v12944_v43, %s12355_s19 }
 0x9c1   :  { %2188 = vrot.lane.b32.xlu0 %v12928_v8, %s12355_s19 }
 0x9d7   :  { %2118 = vmax.xlane.f32.xlu1 %v2117_v61 }
 0x9db   :  { %2112 = vmax.xlane.f32.xlu1 %v2111_v4 }
 0x9ec   :  { %2194 = vrot.lane.b32.xlu1 %v12952_v25, %s12355_s19 }
 0xa28   :  { %v2104_v41 = vpop.xlane.xlu0 %2103 }
 0xa29   :  { %v2122_v34 = vsub.f32 %v10596_v9, %v2104_v41 }
 0xa2b   :  { %v2132_v29 = vmul.f32 1.442695, %v2122_v34  ;;  %v2101_v10 = vpop.xlane.xlu1 %2100 }
 0xa2c   :  { %v2098_v28 = vpop.xlane.xlu0 %2097  ;;  %v2121_v6 = vsub.f32 %v2068_v62, %v2101_v10 }
 0xa2d   :  { %11666 = vpow2.f32 %v2132_v29  ;;  %v2120_v43 = vsub.f32 %v2065_v1, %v2098_v28 }
 0xa2e   :  { %v2130_v61 = vmul.f32 1.442695, %v2121_v6 }
 0xa2f   :  { %v2128_v8 = vmul.f32 1.442695, %v2120_v43  ;;  %v2191_v29 = vpop.permute.xlu1 %2190 }
 0xa30   :  { %v2107_v32 = vpop.xlane.xlu0 %2106 }
 0xa31   :  { %11668 = vpow2.f32 %v2128_v8  ;;  %v2123_v31 = vsub.f32 %v10597_v12, %v2107_v32 }
 0xa33   :  { %v2134_v55 = vmul.f32 1.442695, %v2123_v31  ;;  %v2193_v10 = vpop.permute.xlu1 %2192 }
 0xa34   :  { %v2116_v39 = vpop.xlane.xlu0 %2115 }
 0xa35   :  { %11670 = vpow2.f32 %v2134_v55  ;;  %v2126_v4 = vsub.f32 %v10600_v52, %v2116_v39 }
 0xa36   :  { %11672 = vpow2.f32 %v2130_v61 }
 0xa37   :  { %v13396_v27 = vpop.eup %11666  ;;  %v2140_v25 = vmul.f32 1.442695, %v2126_v4 }
 0xa38   :  { %v2110_v9 = vpop.xlane.xlu0 %2109  ;;  %v2150_v41 = vsel %vm511_vm2, %v13396_v27, 0.0 }
 0xa39   :  { %11674 = vpow2.f32 %v2140_v25  ;;  %v2124_v1 = vsub.f32 %v2081_v7, %v2110_v9  ;;  %2151 = vadd.xlane.f32.xlu0 %v2150_v41 }
 0xa3b   :  { %v11669_v62 = vpop.eup %11668  ;;  %v2136_v34 = vmul.f32 1.442695, %v2124_v1 }
 0xa3c   :  { %v2189_v12 = vpop.permute.xlu0 %2188  ;;  %v2144_v31 = vsel %vm511_vm2, %v11669_v62, 0.0 }
 0xa3d   :  { %11676 = vpow2.f32 %v2136_v34  ;;  %2145 = vadd.xlane.f32.xlu0 %v2144_v31  ;;  %10602 = vmatprep.subr.bf16.mxu1 %v2189_v12 }
 0xa3e   :  { %10603 = vmatpush3.bf16.msra.mxu1 %v2189_v12 }
 0xa3f   :  { %v11671_v39 = vpop.eup %11670  ;;  %10604 = vmatprep.subr.bf16.mxu1 %v2191_v29 }
 0xa40   :  { %v2153_v55 = vsel %vm511_vm2, %v11671_v39, 0.0  ;;  %v11673_v52 = vpop.eup %11672 }
 0xa41   :  { %2154 = vadd.xlane.f32.xlu1 %v2153_v55  ;;  %v2147_v28 = vsel %vm511_vm2, %v11673_v52, 0.0 }
 0xa42   :  { %10605 = vmatpush3.bf16.msra.mxu1 %v2191_v29 }
 0xa43   :  { %v13402_v7 = vpop.eup %11674  ;;  %10606 = vmatprep.subr.bf16.mxu1 %v2193_v10 }
 0xa44   :  { %v2162_v43 = vsel %vm511_vm2, %v13402_v7, 0.0 }
 0xa45   :  { %2148 = vadd.xlane.f32.xlu1 %v2147_v28  ;;  %2163 = vadd.xlane.f32.xlu0 %v2162_v43 }
 0xa46   :  { %10607 = vmatpush3.bf16.msra.mxu1 %v2193_v10 }
 0xa47   :  { %v13407_v6 = vpop.eup %11676 }
 0xa48   :  { %v2156_v8 = vsel %vm511_vm2, %v13407_v6, 0.0 }
 0xa49   :  { %2157 = vadd.xlane.f32.xlu0 %v2156_v8 }
 0xa56   :  { %2409 = vrot.lane.b32.xlu1 %v13010_v18, %s12349_s5 }
 0xa5a   :  { %2411 = vrot.lane.b32.xlu1 %v13014_v13, %s12349_s5 }
 0xa64   :  { %v2119_v32 = vpop.xlane.xlu1 %2118 }
 0xa65   :  { %v2127_v61 = vsub.f32 %v13378_v22, %v2119_v32 }
 0xa67   :  { %v2142_v4 = vmul.f32 1.442695, %v2127_v61 }
 0xa68   :  { %v2113_v25 = vpop.xlane.xlu1 %2112 }
 0xa69   :  { %11678 = vpow2.f32 %v2142_v4  ;;  %v2125_v9 = vsub.f32 %v13380_v54, %v2113_v25 }
 0xa6b   :  { %v2138_v41 = vmul.f32 1.442695, %v2125_v9 }
 0xa6c   :  { %v2195_v1 = vpop.permute.xlu1 %2194 }
 0xa6d   :  { %10608 = vmatprep.subr.bf16.mxu1 %v2195_v1  ;;  %11680 = vpow2.f32 %v2138_v41 }
 0xa6e   :  { %10609 = vmatpush3.bf16.msra.mxu1 %v2195_v1 }
 0xa73   :  { %v11679_v34 = vpop.eup %11678 }
 0xa74   :  { %v2165_v29 = vsel %vm511_vm2, %v11679_v34, 0.0 }
 0xa75   :  { %2166 = vadd.xlane.f32.xlu0 %v2165_v29 }
 0xa77   :  { %v11681_v12 = vpop.eup %11680 }
 0xa78   :  { %v2159_v31 = vsel %vm511_vm2, %v11681_v12, 0.0 }
 0xa7e   :  { %2160 = vadd.xlane.f32.xlu1 %v2159_v31 }
 0xa8b   :  { %2407 = vrot.lane.b32.xlu0 %v13006_v26, %s12349_s5 }
 0xa8f   :  { %2413 = vrot.lane.b32.xlu1 %v13018_v42, %s12349_s5 }
 0xac6   :  { %v2152_v22 = vpop.xlane.xlu0 %2151 }
 0xaca   :  { %v2146_v54 = vpop.xlane.xlu0 %2145 }
 0xace   :  { %v2155_v55 = vpop.xlane.xlu1 %2154 }
 0xacf   :  { %11682 = vrcp.f32 %v2155_v55 }
 0xad0   :  { %11684 = vrcp.f32 %v2146_v54 }
 0xad1   :  { %11686 = vrcp.f32 %v2152_v22 }
 0xad2   :  { %v2149_v10 = vpop.xlane.xlu1 %2148  ;;  %v2164_v29 = vpop.xlane.xlu0 %2163 }
 0xad3   :  { %11688 = vrcp.f32 %v2149_v10 }
 0xad6   :  { %v2158_v31 = vpop.xlane.xlu0 %2157  ;;  %v2410_v22 = vpop.permute.xlu1 %2409 }
 0xad9   :  { %v11683_v28 = vpop.eup %11682 }
 0xada   :  { %v11685_v43 = vpop.eup %11684  ;;  %v2179_v61 = vmul.f32 %v11683_v28, %v11671_v39  ;;  %v2412_v10 = vpop.permute.xlu1 %2411 }
 0xadb   :  { %v11687_v8 = vpop.eup %11686  ;;  %v2176_v4 = vmul.f32 %v11685_v43, %v11669_v62  ;;  %v2431_v62 = vsel %vm123_vm0, %v2410_v22, 0 }
 0xadc   :  { %v2178_v9 = vmul.f32 %v11687_v8, %v13396_v27 }
 0xadd   :  { %v11689_v32 = vpop.eup %11688 }
 0xade   :  { %v2177_v25 = vmul.f32 %v11689_v32, %v11673_v52  ;;  %v2185_v1 = vpack.c.bf16 %v2179_v61, %v2178_v9  ;;  %v2434_v61 = vsel %vm123_vm0, %v2412_v10, 0 }
 0xae0   :  { %v2184_v41 = vpack.c.bf16 %v2177_v25, %v2176_v4 }
 0xae2   :  { %10610 = vmatprep.mubr.msk.bf16.mxu1 %vm511_vm2, %v2184_v41 }
 0xae3   :  { %10611 = vmatmul.mubr.msk.bf16.vlgmr.msra.gmra.mrb[40].mxu1 %vm511_vm2, %v2185_v1 }
 0xb02   :  { %v2167_v54 = vpop.xlane.xlu0 %2166 }
 0xb03   :  { %11690 = vrcp.f32 %v2167_v54 }
 0xb04   :  { %11692 = vrcp.f32 %v2158_v31 }
 0xb05   :  { %11694 = vrcp.f32 %v2164_v29 }
 0xb06   :  { %v2408_v55 = vpop.permute.xlu0 %2407 }
 0xb07   :  { %11090 = vmatprep.subr.msk.bf16.mxu1 %vm123_vm0, %v2408_v55  ;;  %v2428_v39 = vsel %vm123_vm0, %v2408_v55, 0 }
 0xb08   :  { %10619 = vmatpush3.bf16.xpose.msra.mxu1 %v2428_v39 }
 0xb09   :  { %11091 = vmatprep.subr.msk.bf16.mxu1 %vm123_vm0, %v2410_v22 }
 0xb0b   :  { %v2161_v27 = vpop.xlane.xlu1 %2160 }
 0xb0c   :  { %11696 = vrcp.f32 %v2161_v27 }
 0xb0d   :  { %v11691_v52 = vpop.eup %11690 }
 0xb0e   :  { %v11693_v28 = vpop.eup %11692  ;;  %v2183_v32 = vmul.f32 %v11691_v52, %v11679_v34 }
 0xb0f   :  { %v11695_v43 = vpop.eup %11694  ;;  %v2180_v4 = vmul.f32 %v11693_v28, %v13407_v6  ;;  %v2414_v9 = vpop.permute.xlu1 %2413 }
 0xb10   :  { %10621 = vmatpush3.bf16.xpose.msra.mxu1 %v2431_v62  ;;  %v2182_v41 = vmul.f32 %v11695_v43, %v13402_v7  ;;  %v2437_v34 = vsel %vm123_vm0, %v2414_v9, 0 }
 0xb11   :  { %11092 = vmatprep.subr.msk.bf16.mxu1 %vm123_vm0, %v2412_v10 }
 0xb12   :  { %v2187_v29 = vpack.c.bf16 %v2183_v32, %v2182_v41 }
 0xb16   :  { %v11697_v8 = vpop.eup %11696 }
 0xb17   :  { %v2181_v25 = vmul.f32 %v11697_v8, %v11681_v12 }
 0xb18   :  { %10623 = vmatpush3.bf16.xpose.msra.mxu1 %v2434_v61 }
 0xb19   :  { %11093 = vmatprep.subr.msk.bf16.mxu1 %vm123_vm0, %v2414_v9  ;;  %v2186_v1 = vpack.c.bf16 %v2181_v25, %v2180_v4 }
 0xb1b   :  { %10614 = vmatprep.mubr.msk.bf16.mxu1 %vm511_vm2, %v2186_v1 }
 0xb1c   :  { %10615 = vmatmul.mubr.msk.bf16.gmra.mrb[44].mxu1 %vm511_vm2, %v2187_v29 }
 0xb1d   :  { %10626 = vmatprep.mubr.msk.bf16.mxu1 %vm123_vm0, %v13006_v26 }
 0xb20   :  { %10625 = vmatpush3.bf16.xpose.msra.mxu1 %v2437_v34 }
 0xb27   :  { %10627 = vmatmul.mubr.msk.bf16.vlgmr.msra.gmra.mrb[48].mxu1 %vm123_vm0, %v13010_v18 }
 0xb28   :  { %10630 = vmatprep.mubr.msk.bf16.mxu1 %vm123_vm0, %v13014_v13 }
 0xb2f   :  { %10631 = vmatmul.mubr.msk.bf16.gmra.mrb[52].mxu1 %vm123_vm0, %v13018_v42 }
 0xbb6   :  { %v13446_v7 = vpop.f32.mrb[40].mxu1 }
 0xbb7   :  { %v13448_v6 = vpop.f32.mrb[41].mxu1 }
 0xbb8   :  { %v13450_v12 = vpop.f32.mrb[42].mxu1 }
 0xbb9   :  { %v13454_v22 = vpop.f32.mrb[43].mxu1 }
 0xbef   :  { %v13458_v55 = vpop.f32.mrb[44].mxu1 }
 0xbf0   :  { %v13460_v10 = vpop.f32.mrb[45].mxu1 }
 0xbf1   :  { %v13462_v39 = vpop.f32.mrb[46].mxu1 }
 0xbf2   :  { %v13466_v62 = vpop.f32.mrb[47].mxu1 }
 0xbfa   :  { %v10628_v28 = vpop.f32.mrb[48].mxu1 }
 0xbfb   :  { %v2473_v43 = vpop.f32.mrb[49].mxu1  ;;  %v2510_v25 = vsel %vm511_vm2, %v10628_v28, -inf }
 0xbfc   :  { %v10629_v8 = vpop.f32.mrb[50].mxu1  ;;  %v2504_v32 = vsel %vm511_vm2, %v2473_v43, -inf }
 0xbfd   :  { %2505 = vmax.xlane.f32.xlu0 %v2504_v32  ;;  %v2476_v61 = vpop.f32.mrb[51].mxu1  ;;  %v2513_v29 = vsel %vm511_vm2, %v10629_v8, -inf }
 0xbfe   :  { %v2507_v4 = vsel %vm511_vm2, %v2476_v61, -inf }
 0xbff   :  { %2508 = vmax.xlane.f32.xlu1 %v2507_v4 }
 0xc01   :  { %2511 = vmax.xlane.f32.xlu0 %v2510_v25 }
 0xc02   :  { %v10632_v9 = vpop.f32.mrb[52].mxu1 }
 0xc03   :  { %v2489_v41 = vpop.f32.mrb[53].mxu1  ;;  %v2522_v25 = vsel %vm511_vm2, %v10632_v9, -inf }
 0xc04   :  { %v13473_v1 = vpop.f32.mrb[54].mxu1  ;;  %v2516_v32 = vsel %vm511_vm2, %v2489_v41, -inf }
 0xc05   :  { %2514 = vmax.xlane.f32.xlu0 %v2513_v29  ;;  %v2492_v34 = vpop.f32.mrb[55].mxu1  ;;  %v2525_v4 = vsel %vm511_vm2, %v13473_v1, -inf }
 0xc06   :  { %v2519_v27 = vsel %vm511_vm2, %v2492_v34, -inf }
 0xc07   :  { %2520 = vmax.xlane.f32.xlu1 %v2519_v27 }
 0xc09   :  { %2517 = vmax.xlane.f32.xlu0 %v2516_v32 }
 0xc0b   :  { %2526 = vmax.xlane.f32.xlu1 %v2525_v4 }
 0xc0d   :  { %2523 = vmax.xlane.f32.xlu0 %v2522_v25 }
 0xc8a   :  { %v2506_v31 = vpop.xlane.xlu0 %2505 }
 0xc8b   :  { %v2528_v52 = vsub.f32 %v2473_v43, %v2506_v31 }
 0xc8c   :  { %v2509_v54 = vpop.xlane.xlu1 %2508 }
 0xc8d   :  { %v2536_v29 = vmul.f32 1.442695, %v2528_v52  ;;  %v2529_v11 = vsub.f32 %v2476_v61, %v2509_v54 }
 0xc8e   :  { %v2512_v14 = vpop.xlane.xlu0 %2511 }
 0xc8f   :  { %v2530_v15 = vsub.f32 %v10628_v28, %v2512_v14  ;;  %v2538_v32 = vmul.f32 1.442695, %v2529_v11 }
 0xc91   :  { %v2540_v58 = vmul.f32 1.442695, %v2530_v15 }
 0xc92   :  { %v2515_v60 = vpop.xlane.xlu0 %2514 }
 0xc93   :  { %11698 = vpow2.f32 %v2540_v58  ;;  %v2531_v27 = vsub.f32 %v10629_v8, %v2515_v60 }
 0xc94   :  { %11700 = vpow2.f32 %v2536_v29  ;;  %v2521_v8 = vpop.xlane.xlu1 %2520 }
 0xc95   :  { %v2542_v56 = vmul.f32 1.442695, %v2531_v27 }
 0xc96   :  { %v2518_v53 = vpop.xlane.xlu0 %2517 }
 0xc97   :  { %11702 = vpow2.f32 %v2542_v56  ;;  %v2532_v4 = vsub.f32 %v2489_v41, %v2518_v53  ;;  %v2533_v41 = vsub.f32 %v2492_v34, %v2521_v8 }
 0xc98   :  { %11704 = vpow2.f32 %v2538_v32  ;;  %v2527_v61 = vpop.xlane.xlu1 %2526 }
 0xc99   :  { %v2544_v31 = vmul.f32 1.442695, %v2532_v4  ;;  %v2546_v27 = vmul.f32 1.442695, %v2533_v41 }
 0xc9a   :  { %v2524_v16 = vpop.xlane.xlu0 %2523 }
 0xc9b   :  { %v2534_v25 = vsub.f32 %v10632_v9, %v2524_v16  ;;  %v2535_v9 = vsub.f32 %v13473_v1, %v2527_v61 }
 0xc9d   :  { %v11699_v63 = vpop.eup %11698  ;;  %v2548_v43 = vmul.f32 1.442695, %v2534_v25  ;;  %v2550_v29 = vmul.f32 1.442695, %v2535_v9 }
 0xc9e   :  { %v2558_v14 = vsel %vm511_vm2, %v11699_v63, 0.0  ;;  %v11701_v52 = vpop.eup %11700 }
 0xc9f   :  { %11706 = vpow2.f32 %v2548_v43  ;;  %2559 = vadd.xlane.f32.xlu0 %v2558_v14  ;;  %v2552_v58 = vsel %vm511_vm2, %v11701_v52, 0.0 }
 0xca0   :  { %11708 = vpow2.f32 %v2544_v31 }
 0xca1   :  { %v11703_v15 = vpop.eup %11702  ;;  %11710 = vpow2.f32 %v2550_v29 }
 0xca2   :  { %v2561_v60 = vsel %vm511_vm2, %v11703_v15, 0.0  ;;  %v11705_v11 = vpop.eup %11704  ;;  %11712 = vpow2.f32 %v2546_v27 }
 0xca3   :  { %2553 = vadd.xlane.f32.xlu0 %v2552_v58  ;;  %2562 = vadd.xlane.f32.xlu1 %v2561_v60  ;;  %v2555_v53 = vsel %vm511_vm2, %v11705_v11, 0.0 }
 0xca7   :  { %2556 = vadd.xlane.f32.xlu1 %v2555_v53 }
 0xca9   :  { %v13485_v16 = vpop.eup %11706 }
 0xcaa   :  { %v2570_v56 = vsel %vm511_vm2, %v13485_v16, 0.0  ;;  %v13489_v54 = vpop.eup %11708 }
 0xcab   :  { %2571 = vadd.xlane.f32.xlu0 %v2570_v56  ;;  %v2564_v28 = vsel %vm511_vm2, %v13489_v54, 0.0  ;;  %v11711_v32 = vpop.eup %11710 }
 0xcac   :  { %v2573_v4 = vsel %vm511_vm2, %v11711_v32, 0.0  ;;  %v11713_v25 = vpop.eup %11712 }
 0xcad   :  { %v2567_v31 = vsel %vm511_vm2, %v11713_v25, 0.0 }
 0xcaf   :  { %2565 = vadd.xlane.f32.xlu0 %v2564_v28 }
 0xcb8   :  { %2683 = vrot.lane.b32.xlu1 %v13010_v18, %s12350_s3 }
 0xcbc   :  { %2685 = vrot.lane.b32.xlu1 %v13014_v13, %s12350_s3 }
 0xcc5   :  { %2681 = vrot.lane.b32.xlu0 %v13006_v26, %s12350_s3 }
 0xcc9   :  { %2673 = vrot.lane.b32.xlu0 %v13006_v26, %s12351_s17 }
 0xccd   :  { %2677 = vrot.lane.b32.xlu0 %v13014_v13, %s12351_s17 }
 0xce0   :  { %2574 = vadd.xlane.f32.xlu1 %v2573_v4 }
 0xce4   :  { %2568 = vadd.xlane.f32.xlu1 %v2567_v31 }
 0xcf5   :  { %2687 = vrot.lane.b32.xlu1 %v13018_v42, %s12350_s3 }
 0xcf9   :  { %2675 = vrot.lane.b32.xlu1 %v13010_v18, %s12351_s17 }
 0xcfd   :  { %2679 = vrot.lane.b32.xlu1 %v13018_v42, %s12351_s17 }
 0xd2c   :  { %v2560_v1 = vpop.xlane.xlu0 %2559 }
 0xd30   :  { %v2554_v34 = vpop.xlane.xlu0 %2553  ;;  %v2563_v43 = vpop.xlane.xlu1 %2562 }
 0xd31   :  { %11714 = vrcp.f32 %v2563_v43 }
 0xd32   :  { %11716 = vrcp.f32 %v2554_v34 }
 0xd33   :  { %11718 = vrcp.f32 %v2560_v1 }
 0xd34   :  { %v2557_v14 = vpop.xlane.xlu1 %2556 }
 0xd35   :  { %11720 = vrcp.f32 %v2557_v14 }
 0xd38   :  { %v2572_v58 = vpop.xlane.xlu0 %2571  ;;  %v2684_v34 = vpop.permute.xlu1 %2683 }
 0xd3b   :  { %v11715_v60 = vpop.eup %11714 }
 0xd3c   :  { %v2566_v53 = vpop.xlane.xlu0 %2565  ;;  %v11717_v56 = vpop.eup %11716  ;;  %v2587_v61 = vmul.f32 %v11715_v60, %v11703_v15  ;;  %v2705_v15 = vsel %vm123_vm0, %v2684_v34, 0 }
 0xd3d   :  { %v11719_v28 = vpop.eup %11718  ;;  %v2584_v41 = vmul.f32 %v11717_v56, %v11701_v52  ;;  %v2686_v43 = vpop.permute.xlu1 %2685 }
 0xd3e   :  { %v2586_v27 = vmul.f32 %v11719_v28, %v11699_v63  ;;  %v2708_v63 = vsel %vm123_vm0, %v2686_v43, 0 }
 0xd3f   :  { %v11721_v8 = vpop.eup %11720 }
 0xd40   :  { %v2682_v9 = vpop.permute.xlu0 %2681  ;;  %v2585_v29 = vmul.f32 %v11721_v8, %v11705_v11  ;;  %v2593_v31 = vpack.c.bf16 %v2587_v61, %v2586_v27 }
 0xd41   :  { %11094 = vmatprep.subr.msk.bf16.mxu0 %vm123_vm0, %v2682_v9  ;;  %v2702_v1 = vsel %vm123_vm0, %v2682_v9, 0 }
 0xd42   :  { %v2592_v4 = vpack.c.bf16 %v2585_v29, %v2584_v41 }
 0xd44   :  { %10642 = vmatprep.mubr.msk.bf16.mxu0 %vm511_vm2, %v2592_v4  ;;  %v2674_v4 = vpop.permute.xlu0 %2673 }
 0xd45   :  { %10643 = vmatmul.mubr.msk.bf16.vlgmr.msra.gmra.mrb[76].mxu0 %vm511_vm2, %v2593_v31 }
 0xd46   :  { %10651 = vmatpush3.bf16.xpose.msra.mxu0 %v2702_v1 }
 0xd47   :  { %11095 = vmatprep.subr.msk.bf16.mxu0 %vm123_vm0, %v2684_v34 }
 0xd48   :  { %v2678_v1 = vpop.permute.xlu0 %2677 }
 0xd4e   :  { %10653 = vmatpush3.bf16.xpose.msra.mxu0 %v2705_v15 }
 0xd4f   :  { %11096 = vmatprep.subr.msk.bf16.mxu0 %vm123_vm0, %v2686_v43 }
 0xd56   :  { %10655 = vmatpush3.bf16.xpose.msra.mxu0 %v2708_v63 }
 0xd6d   :  { %v2575_v52 = vpop.xlane.xlu1 %2574 }
 0xd6e   :  { %11722 = vrcp.f32 %v2575_v52 }
 0xd6f   :  { %11724 = vrcp.f32 %v2566_v53 }
 0xd70   :  { %11726 = vrcp.f32 %v2572_v58 }
 0xd71   :  { %v2569_v11 = vpop.xlane.xlu1 %2568 }
 0xd72   :  { %11728 = vrcp.f32 %v2569_v11 }
 0xd75   :  { %v2688_v14 = vpop.permute.xlu1 %2687 }
 0xd76   :  { %11097 = vmatprep.subr.msk.bf16.mxu0 %vm123_vm0, %v2688_v14  ;;  %v2711_v60 = vsel %vm123_vm0, %v2688_v14, 0 }
 0xd77   :  { %10657 = vmatpush3.bf16.xpose.msra.mxu0 %v2711_v60 }
 0xd78   :  { %v11723_v56 = vpop.eup %11722 }
 0xd79   :  { %v11725_v28 = vpop.eup %11724  ;;  %v2591_v9 = vmul.f32 %v11723_v56, %v11711_v32  ;;  %v2676_v31 = vpop.permute.xlu1 %2675 }
 0xd7a   :  { %v11727_v8 = vpop.eup %11726  ;;  %v2588_v41 = vmul.f32 %v11725_v28, %v13489_v54 }
 0xd7b   :  { %v2590_v27 = vmul.f32 %v11727_v8, %v13485_v16 }
 0xd7c   :  { %v11729_v61 = vpop.eup %11728 }
 0xd7d   :  { %v2589_v29 = vmul.f32 %v11729_v61, %v11713_v25  ;;  %v2595_v58 = vpack.c.bf16 %v2591_v9, %v2590_v27  ;;  %v2680_v32 = vpop.permute.xlu1 %2679 }
 0xd7f   :  { %v2594_v53 = vpack.c.bf16 %v2589_v29, %v2588_v41 }
 0xd81   :  { %10646 = vmatprep.mubr.msk.bf16.mxu0 %vm511_vm2, %v2594_v53 }
 0xd82   :  { %10647 = vmatmul.mubr.msk.bf16.gmra.mrb[80].mxu0 %vm511_vm2, %v2595_v58 }
 0xd83   :  { %10658 = vmatprep.mubr.msk.bf16.mxu0 %vm123_vm0, %v2674_v4 }
 0xd8a   :  { %10659 = vmatmul.mubr.msk.bf16.vlgmr.msra.gmra.mrb[84].mxu0 %vm123_vm0, %v2676_v31 }
 0xd8b   :  { %10662 = vmatprep.mubr.msk.bf16.mxu0 %vm123_vm0, %v2678_v1 }
 0xd92   :  { %10663 = vmatmul.mubr.msk.bf16.gmra.mrb[88].mxu0 %vm123_vm0, %v2680_v32 }
 0xe18   :  { %v13530_v54 = vpop.f32.mrb[76].mxu0 }
 0xe19   :  { %17200 = vst [vmem:[#allocation26_spill] sm:$0xff] %v13530_v54  ;;  %v13532_v16 = vpop.f32.mrb[77].mxu0 }
 0xe1a   :  { %17201 = vst [vmem:[#allocation27_spill] sm:$0xff] %v13532_v16  ;;  %v13534_v25 = vpop.f32.mrb[78].mxu0 }
 0xe1b   :  { %17202 = vst [vmem:[#allocation28_spill] sm:$0xff] %v13534_v25  ;;  %v13536_v34 = vpop.f32.mrb[79].mxu0 }
 0xe1c   :  { %17203 = vst [vmem:[#allocation29_spill] sm:$0xff] %v13536_v34 }
 0xe55   :  { %v13538_v15 = vpop.f32.mrb[80].mxu0 }
 0xe56   :  { %17204 = vst [vmem:[#allocation30_spill] sm:$0xff] %v13538_v15  ;;  %v13540_v43 = vpop.f32.mrb[81].mxu0 }
 0xe57   :  { %17205 = vst [vmem:[#allocation31_spill] sm:$0xff] %v13540_v43  ;;  %v13542_v63 = vpop.f32.mrb[82].mxu0 }
 0xe58   :  { %17206 = vst [vmem:[#allocation32_spill] sm:$0xff] %v13542_v63  ;;  %v13544_v52 = vpop.f32.mrb[83].mxu0 }
 0xe59   :  { %17207 = vst [vmem:[#allocation33_spill] sm:$0xff] %v13544_v52 }
 0xe5d   :  { %v10660_v11 = vpop.f32.mrb[84].mxu0 }
 0xe5e   :  { %v2747_v14 = vpop.f32.mrb[85].mxu0  ;;  %v2784_v60 = vsel %vm511_vm2, %v10660_v11, -inf }
 0xe5f   :  { %2785 = vmax.xlane.f32.xlu0 %v2784_v60  ;;  %v10661_v56 = vpop.f32.mrb[86].mxu0  ;;  %v2778_v61 = vsel %vm511_vm2, %v2747_v14, -inf }
 0xe60   :  { %v2750_v28 = vpop.f32.mrb[87].mxu0  ;;  %v2787_v29 = vsel %vm511_vm2, %v10661_v56, -inf }
 0xe61   :  { %v2781_v8 = vsel %vm511_vm2, %v2750_v28, -inf }
 0xe62   :  { %2782 = vmax.xlane.f32.xlu1 %v2781_v8 }
 0xe63   :  { %2779 = vmax.xlane.f32.xlu0 %v2778_v61 }
 0xe65   :  { %v10664_v9 = vpop.f32.mrb[88].mxu0 }
 0xe66   :  { %v2763_v41 = vpop.f32.mrb[89].mxu0  ;;  %v2796_v58 = vsel %vm511_vm2, %v10664_v9, -inf }
 0xe67   :  { %2788 = vmax.xlane.f32.xlu0 %v2787_v29  ;;  %v13550_v27 = vpop.f32.mrb[90].mxu0  ;;  %v2790_v4 = vsel %vm511_vm2, %v2763_v41, -inf }
 0xe68   :  { %v13552_v53 = vpop.f32.mrb[91].mxu0  ;;  %v2799_v31 = vsel %vm511_vm2, %v13550_v27, -inf }
 0xe69   :  { %v2793_v1 = vsel %vm511_vm2, %v13552_v53, -inf }
 0xe6b   :  { %2797 = vmax.xlane.f32.xlu0 %v2796_v58 }
 0xe6f   :  { %2791 = vmax.xlane.f32.xlu0 %v2790_v4 }
 0xe73   :  { %2876 = vrot.lane.b32.xlu1 %v13012_v21, %s12351_s17 }
 0xe77   :  { %2878 = vrot.lane.b32.xlu1 %v13016_v59, %s12351_s17 }
 0xe85   :  { %2874 = vrot.lane.b32.xlu0 %v13008_v3, %s12351_s17 }
 0xe9b   :  { %2800 = vmax.xlane.f32.xlu1 %v2799_v31 }
 0xe9f   :  { %2794 = vmax.xlane.f32.xlu1 %v2793_v1 }
 0xeb0   :  { %2880 = vrot.lane.b32.xlu1 %v13020_v5, %s12351_s17 }
 0xeec   :  { %v2786_v32 = vpop.xlane.xlu0 %2785 }
 0xeed   :  { %v2804_v60 = vsub.f32 %v10660_v11, %v2786_v32 }
 0xeef   :  { %v2814_v8 = vmul.f32 1.442695, %v2804_v60  ;;  %v2783_v61 = vpop.xlane.xlu1 %2782 }
 0xef0   :  { %v2780_v29 = vpop.xlane.xlu0 %2779  ;;  %v2803_v4 = vsub.f32 %v2750_v28, %v2783_v61 }
 0xef1   :  { %11730 = vpow2.f32 %v2814_v8  ;;  %v2802_v58 = vsub.f32 %v2747_v14, %v2780_v29 }
 0xef2   :  { %v2812_v31 = vmul.f32 1.442695, %v2803_v4 }
 0xef3   :  { %v2810_v15 = vmul.f32 1.442695, %v2802_v58 }
 0xef4   :  { %v2789_v63 = vpop.xlane.xlu0 %2788 }
 0xef5   :  { %11732 = vpow2.f32 %v2810_v15  ;;  %v2805_v43 = vsub.f32 %v10661_v56, %v2789_v63  ;;  %v2877_v63 = vpop.permute.xlu1 %2876 }
 0xef7   :  { %v2816_v52 = vmul.f32 1.442695, %v2805_v43 }
 0xef8   :  { %v2798_v54 = vpop.xlane.xlu0 %2797 }
 0xef9   :  { %11734 = vpow2.f32 %v2816_v52  ;;  %v2808_v1 = vsub.f32 %v10664_v9, %v2798_v54 }
 0xefa   :  { %11736 = vpow2.f32 %v2812_v31 }
 0xefb   :  { %v13568_v25 = vpop.eup %11730  ;;  %v2822_v16 = vmul.f32 1.442695, %v2808_v1 }
 0xefc   :  { %v2792_v11 = vpop.xlane.xlu0 %2791  ;;  %v2832_v32 = vsel %vm511_vm2, %v13568_v25, 0.0 }
 0xefd   :  { %11738 = vpow2.f32 %v2822_v16  ;;  %v2806_v14 = vsub.f32 %v2763_v41, %v2792_v11  ;;  %2833 = vadd.xlane.f32.xlu0 %v2832_v32  ;;  %v2879_v16 = vpop.permute.xlu1 %2878 }
 0xeff   :  { %v13572_v28 = vpop.eup %11732  ;;  %v2818_v15 = vmul.f32 1.442695, %v2806_v14 }
 0xf00   :  { %v2875_v56 = vpop.permute.xlu0 %2874  ;;  %v2826_v43 = vsel %vm511_vm2, %v13572_v28, 0.0 }
 0xf01   :  { %11740 = vpow2.f32 %v2818_v15  ;;  %2827 = vadd.xlane.f32.xlu0 %v2826_v43  ;;  %10666 = vmatprep.subr.bf16.mxu1 %v2875_v56 }
 0xf02   :  { %10667 = vmatpush3.bf16.msra.mxu1 %v2875_v56 }
 0xf03   :  { %v11735_v54 = vpop.eup %11734  ;;  %10668 = vmatprep.subr.bf16.mxu1 %v2877_v63 }
 0xf04   :  { %v2835_v52 = vsel %vm511_vm2, %v11735_v54, 0.0  ;;  %v11737_v9 = vpop.eup %11736 }
 0xf05   :  { %2836 = vadd.xlane.f32.xlu1 %v2835_v52  ;;  %v2829_v8 = vsel %vm511_vm2, %v11737_v9, 0.0 }
 0xf06   :  { %10669 = vmatpush3.bf16.msra.mxu1 %v2877_v63 }
 0xf07   :  { %v13577_v41 = vpop.eup %11738  ;;  %10670 = vmatprep.subr.bf16.mxu1 %v2879_v16 }
 0xf08   :  { %v2844_v60 = vsel %vm511_vm2, %v13577_v41, 0.0 }
 0xf09   :  { %2845 = vadd.xlane.f32.xlu0 %v2844_v60  ;;  %2830 = vadd.xlane.f32.xlu1 %v2829_v8 }
 0xf0a   :  { %10671 = vmatpush3.bf16.msra.mxu1 %v2879_v16 }
 0xf0b   :  { %v13582_v61 = vpop.eup %11740 }
 0xf0c   :  { %v2838_v29 = vsel %vm511_vm2, %v13582_v61, 0.0 }
 0xf0d   :  { %2839 = vadd.xlane.f32.xlu0 %v2838_v29 }
 0xf1a   :  { %2973 = vrot.lane.b32.xlu1 %v13010_v18, %s12352_s4 }
 0xf1e   :  { %2975 = vrot.lane.b32.xlu1 %v13014_v13, %s12352_s4 }
 0xf28   :  { %v2801_v58 = vpop.xlane.xlu1 %2800 }
 0xf29   :  { %v2809_v4 = vsub.f32 %v13550_v27, %v2801_v58 }
 0xf2b   :  { %v2824_v31 = vmul.f32 1.442695, %v2809_v4 }
 0xf2c   :  { %v2795_v1 = vpop.xlane.xlu1 %2794 }
 0xf2d   :  { %11742 = vpow2.f32 %v2824_v31  ;;  %v2807_v11 = vsub.f32 %v13552_v53, %v2795_v1 }
 0xf2f   :  { %v2820_v32 = vmul.f32 1.442695, %v2807_v11 }
 0xf30   :  { %v2881_v14 = vpop.permute.xlu1 %2880 }
 0xf31   :  { %10672 = vmatprep.subr.bf16.mxu1 %v2881_v14  ;;  %11744 = vpow2.f32 %v2820_v32 }
 0xf32   :  { %10673 = vmatpush3.bf16.msra.mxu1 %v2881_v14 }
 0xf37   :  { %v11743_v15 = vpop.eup %11742 }
 0xf38   :  { %v2847_v63 = vsel %vm511_vm2, %v11743_v15, 0.0 }
 0xf39   :  { %2848 = vadd.xlane.f32.xlu0 %v2847_v63 }
 0xf3b   :  { %v11745_v56 = vpop.eup %11744 }
 0xf3c   :  { %v2841_v43 = vsel %vm511_vm2, %v11745_v56, 0.0 }
 0xf42   :  { %2842 = vadd.xlane.f32.xlu1 %v2841_v43 }
 0xf4f   :  { %2971 = vrot.lane.b32.xlu0 %v13006_v26, %s12352_s4 }
 0xf53   :  { %2963 = vrot.lane.b32.xlu0 %v13006_v26, %s12353_s18  ;;  %2977 = vrot.lane.b32.xlu1 %v13018_v42, %s12352_s4 }
 0xf57   :  { %2967 = vrot.lane.b32.xlu0 %v13014_v13, %s12353_s18  ;;  %2965 = vrot.lane.b32.xlu1 %v13010_v18, %s12353_s18 }
 0xf5b   :  { %2969 = vrot.lane.b32.xlu1 %v13018_v42, %s12353_s18 }
 0xf8a   :  { %v2834_v27 = vpop.xlane.xlu0 %2833 }
 0xf8e   :  { %v2828_v52 = vpop.xlane.xlu0 %2827 }
 0xf92   :  { %v2837_v53 = vpop.xlane.xlu1 %2836 }
 0xf93   :  { %11746 = vrcp.f32 %v2837_v53 }
 0xf94   :  { %11748 = vrcp.f32 %v2828_v52 }
 0xf95   :  { %11750 = vrcp.f32 %v2834_v27 }
 0xf96   :  { %v2831_v16 = vpop.xlane.xlu1 %2830  ;;  %v2846_v63 = vpop.xlane.xlu0 %2845 }
 0xf97   :  { %11752 = vrcp.f32 %v2831_v16 }
 0xf9a   :  { %v2840_v43 = vpop.xlane.xlu0 %2839  ;;  %v2974_v27 = vpop.permute.xlu1 %2973 }
 0xf9d   :  { %v11747_v60 = vpop.eup %11746 }
 0xf9e   :  { %v11749_v8 = vpop.eup %11748  ;;  %v2861_v4 = vmul.f32 %v11747_v60, %v11735_v54  ;;  %v2976_v16 = vpop.permute.xlu1 %2975 }
 0xf9f   :  { %v11751_v29 = vpop.eup %11750  ;;  %v2858_v31 = vmul.f32 %v11749_v8, %v13572_v28  ;;  %v2995_v28 = vsel %vm123_vm0, %v2974_v27, 0 }
 0xfa0   :  { %v2860_v11 = vmul.f32 %v11751_v29, %v13568_v25 }
 0xfa1   :  { %v11753_v58 = vpop.eup %11752 }
 0xfa2   :  { %v2859_v1 = vmul.f32 %v11753_v58, %v11737_v9  ;;  %v2867_v14 = vpack.c.bf16 %v2861_v4, %v2860_v11  ;;  %v2998_v4 = vsel %vm123_vm0, %v2976_v16, 0 }
 0xfa4   :  { %v2866_v32 = vpack.c.bf16 %v2859_v1, %v2858_v31 }
 0xfa6   :  { %10674 = vmatprep.mubr.msk.bf16.mxu1 %vm511_vm2, %v2866_v32 }
 0xfa7   :  { %10675 = vmatmul.mubr.msk.bf16.vlgmr.msra.gmra.mrb[56].mxu1 %vm511_vm2, %v2867_v14 }
 0xfc6   :  { %v2849_v53 = vpop.xlane.xlu0 %2848 }
 0xfc7   :  { %11754 = vrcp.f32 %v2849_v53 }
 0xfc8   :  { %11756 = vrcp.f32 %v2840_v43 }
 0xfc9   :  { %11758 = vrcp.f32 %v2846_v63 }
 0xfca   :  { %v2972_v52 = vpop.permute.xlu0 %2971 }
 0xfcb   :  { %11098 = vmatprep.subr.msk.bf16.mxu1 %vm123_vm0, %v2972_v52  ;;  %v2992_v54 = vsel %vm123_vm0, %v2972_v52, 0 }
 0xfcc   :  { %10683 = vmatpush3.bf16.xpose.msra.mxu1 %v2992_v54 }
 0xfcd   :  { %11099 = vmatprep.subr.msk.bf16.mxu1 %vm123_vm0, %v2974_v27 }
 0xfce   :  { %v2964_v43 = vpop.permute.xlu0 %2963 }
 0xfcf   :  { %v2843_v25 = vpop.xlane.xlu1 %2842 }
 0xfd0   :  { %11760 = vrcp.f32 %v2843_v25 }
 0xfd1   :  { %v11755_v9 = vpop.eup %11754 }
 0xfd2   :  { %v11757_v60 = vpop.eup %11756  ;;  %v2865_v58 = vmul.f32 %v11755_v9, %v11743_v15 }
 0xfd3   :  { %v11759_v8 = vpop.eup %11758  ;;  %v2862_v31 = vmul.f32 %v11757_v60, %v13582_v61  ;;  %v2978_v11 = vpop.permute.xlu1 %2977 }
 0xfd4   :  { %10685 = vmatpush3.bf16.xpose.msra.mxu1 %v2995_v28  ;;  %v2864_v32 = vmul.f32 %v11759_v8, %v13577_v41  ;;  %v3001_v15 = vsel %vm123_vm0, %v2978_v11, 0 }
 0xfd5   :  { %11100 = vmatprep.subr.msk.bf16.mxu1 %vm123_vm0, %v2976_v16 }
 0xfd6   :  { %v2869_v63 = vpack.c.bf16 %v2865_v58, %v2864_v32 }
 0xfd7   :  { %v2966_v61 = vpop.permute.xlu1 %2965 }
 0xfda   :  { %v11761_v29 = vpop.eup %11760 }
 0xfdb   :  { %v2863_v1 = vmul.f32 %v11761_v29, %v11745_v56  ;;  %v2968_v56 = vpop.permute.xlu0 %2967  ;;  %v2970_v41 = vpop.permute.xlu1 %2969 }
 0xfdc   :  { %10687 = vmatpush3.bf16.xpose.msra.mxu1 %v2998_v4 }
 0xfdd   :  { %11101 = vmatprep.subr.msk.bf16.mxu1 %vm123_vm0, %v2978_v11  ;;  %v2868_v14 = vpack.c.bf16 %v2863_v1, %v2862_v31 }
 0xfdf   :  { %10678 = vmatprep.mubr.msk.bf16.mxu1 %vm511_vm2, %v2868_v14 }
 0xfe0   :  { %10679 = vmatmul.mubr.msk.bf16.gmra.mrb[60].mxu1 %vm511_vm2, %v2869_v63 }
 0xfe1   :  { %10690 = vmatprep.mubr.msk.bf16.mxu1 %vm123_vm0, %v2964_v43 }
 0xfe4   :  { %10689 = vmatpush3.bf16.xpose.msra.mxu1 %v3001_v15 }
 0xfeb   :  { %10691 = vmatmul.mubr.msk.bf16.vlgmr.msra.gmra.mrb[64].mxu1 %vm123_vm0, %v2966_v61 }
 0xfec   :  { %10694 = vmatprep.mubr.msk.bf16.mxu1 %vm123_vm0, %v2968_v56 }
 0xff3   :  { %10695 = vmatmul.mubr.msk.bf16.gmra.mrb[68].mxu1 %vm123_vm0, %v2970_v41 }
0x107a   :  { %v13626_v27 = vpop.f32.mrb[56].mxu1 }
0x107b   :  { %17208 = vst [vmem:[#allocation34_spill] sm:$0xff] %v13626_v27  ;;  %v13628_v53 = vpop.f32.mrb[57].mxu1 }
0x107c   :  { %17209 = vst [vmem:[#allocation35_spill] sm:$0xff] %v13628_v53  ;;  %v13630_v52 = vpop.f32.mrb[58].mxu1 }
0x107d   :  { %v13634_v54 = vpop.f32.mrb[59].mxu1 }
0x107e   :  { %17210 = vst [vmem:[#allocation36_spill] sm:$0xff] %v13634_v54 }
0x10b3   :  { %v13638_v28 = vpop.f32.mrb[60].mxu1 }
0x10b4   :  { %17211 = vst [vmem:[#allocation37_spill] sm:$0xff] %v13638_v28  ;;  %v13640_v9 = vpop.f32.mrb[61].mxu1 }
0x10b5   :  { %17212 = vst [vmem:[#allocation38_spill] sm:$0xff] %v13640_v9  ;;  %v13642_v60 = vpop.f32.mrb[62].mxu1 }
0x10b6   :  { %17213 = vst [vmem:[#allocation39_spill] sm:$0xff] %v13642_v60  ;;  %v13646_v29 = vpop.f32.mrb[63].mxu1 }
0x10b7   :  { %17214 = vst [vmem:[#allocation40_spill] sm:$0xff] %v13646_v29 }
0x10be   :  { %v10692_v4 = vpop.f32.mrb[64].mxu1 }
0x10bf   :  { %v3037_v31 = vpop.f32.mrb[65].mxu1  ;;  %v3074_v1 = vsel %vm511_vm2, %v10692_v4, -inf }
0x10c0   :  { %3075 = vmax.xlane.f32.xlu0 %v3074_v1  ;;  %v10693_v11 = vpop.f32.mrb[66].mxu1  ;;  %v3068_v63 = vsel %vm511_vm2, %v3037_v31, -inf }
0x10c1   :  { %v3040_v32 = vpop.f32.mrb[67].mxu1  ;;  %v3077_v61 = vsel %vm511_vm2, %v10693_v11, -inf }
0x10c2   :  { %v3071_v14 = vsel %vm511_vm2, %v3040_v32, -inf }
0x10c3   :  { %3072 = vmax.xlane.f32.xlu1 %v3071_v14 }
0x10c4   :  { %3069 = vmax.xlane.f32.xlu0 %v3068_v63 }
0x10c6   :  { %v10696_v43 = vpop.f32.mrb[68].mxu1 }
0x10c7   :  { %v3053_v15 = vpop.f32.mrb[69].mxu1  ;;  %v3086_v8 = vsel %vm511_vm2, %v10696_v43, -inf }
0x10c8   :  { %3078 = vmax.xlane.f32.xlu0 %v3077_v61  ;;  %v13654_v56 = vpop.f32.mrb[70].mxu1  ;;  %v3080_v1 = vsel %vm511_vm2, %v3053_v15, -inf }
0x10c9   :  { %v13656_v41 = vpop.f32.mrb[71].mxu1  ;;  %v3089_v14 = vsel %vm511_vm2, %v13654_v56, -inf }
0x10ca   :  { %v3083_v63 = vsel %vm511_vm2, %v13656_v41, -inf }
0x10cc   :  { %3087 = vmax.xlane.f32.xlu0 %v3086_v8 }
0x10d0   :  { %3081 = vmax.xlane.f32.xlu0 %v3080_v1 }
0x10d4   :  { %3162 = vrot.lane.b32.xlu1 %v13012_v21, %s12353_s18 }
0x10d8   :  { %3164 = vrot.lane.b32.xlu1 %v13016_v59, %s12353_s18 }
0x10e6   :  { %3160 = vrot.lane.b32.xlu0 %v13008_v3, %s12353_s18 }
0x10fc   :  { %3090 = vmax.xlane.f32.xlu1 %v3089_v14 }
0x1100   :  { %3084 = vmax.xlane.f32.xlu1 %v3083_v63 }
0x1111   :  { %3166 = vrot.lane.b32.xlu1 %v13020_v5, %s12353_s18 }
0x114d   :  { %v3076_v8 = vpop.xlane.xlu0 %3075 }
0x114e   :  { %v3094_v61 = vsub.f32 %v10692_v4, %v3076_v8 }
0x1150   :  { %v3104_v1 = vmul.f32 1.442695, %v3094_v61  ;;  %v3073_v58 = vpop.xlane.xlu1 %3072 }
0x1151   :  { %v3070_v25 = vpop.xlane.xlu0 %3069  ;;  %v3093_v34 = vsub.f32 %v3040_v32, %v3073_v58 }
0x1152   :  { %11762 = vpow2.f32 %v3104_v1  ;;  %v3092_v16 = vsub.f32 %v3037_v31, %v3070_v25 }
0x1153   :  { %v3102_v14 = vmul.f32 1.442695, %v3093_v34 }
0x1154   :  { %v3100_v28 = vmul.f32 1.442695, %v3092_v16 }
0x1155   :  { %v3079_v60 = vpop.xlane.xlu0 %3078 }
0x1156   :  { %11764 = vpow2.f32 %v3100_v28  ;;  %v3095_v9 = vsub.f32 %v10693_v11, %v3079_v60  ;;  %v3163_v60 = vpop.permute.xlu1 %3162 }
0x1158   :  { %v3106_v29 = vmul.f32 1.442695, %v3095_v9 }
0x1159   :  { %v3088_v53 = vpop.xlane.xlu0 %3087 }
0x115a   :  { %11766 = vpow2.f32 %v3106_v29  ;;  %v3098_v63 = vsub.f32 %v10696_v43, %v3088_v53 }
0x115b   :  { %11768 = vpow2.f32 %v3102_v14 }
0x115c   :  { %v13672_v54 = vpop.eup %11762  ;;  %v3112_v27 = vmul.f32 1.442695, %v3098_v63 }
0x115d   :  { %v3082_v4 = vpop.xlane.xlu0 %3081  ;;  %v3122_v8 = vsel %vm511_vm2, %v13672_v54, 0.0 }
0x115e   :  { %11770 = vpow2.f32 %v3112_v27  ;;  %v3096_v25 = vsub.f32 %v3053_v15, %v3082_v4  ;;  %3123 = vadd.xlane.f32.xlu0 %v3122_v8  ;;  %v3165_v27 = vpop.permute.xlu1 %3164 }
0x1160   :  { %v13676_v16 = vpop.eup %11764  ;;  %v3108_v28 = vmul.f32 1.442695, %v3096_v25 }
0x1161   :  { %v3161_v34 = vpop.permute.xlu0 %3160  ;;  %v3116_v9 = vsel %vm511_vm2, %v13676_v16, 0.0 }
0x1162   :  { %11772 = vpow2.f32 %v3108_v28  ;;  %3117 = vadd.xlane.f32.xlu0 %v3116_v9  ;;  %10698 = vmatprep.subr.bf16.mxu0 %v3161_v34 }
0x1163   :  { %10699 = vmatpush3.bf16.msra.mxu0 %v3161_v34 }
0x1164   :  { %v11767_v53 = vpop.eup %11766  ;;  %10700 = vmatprep.subr.bf16.mxu0 %v3163_v60 }
0x1165   :  { %v3125_v29 = vsel %vm511_vm2, %v11767_v53, 0.0  ;;  %v11769_v58 = vpop.eup %11768 }
0x1166   :  { %3126 = vadd.xlane.f32.xlu1 %v3125_v29  ;;  %v3119_v32 = vsel %vm511_vm2, %v11769_v58, 0.0 }
0x1167   :  { %10701 = vmatpush3.bf16.msra.mxu0 %v3163_v60 }
0x1168   :  { %v13681_v31 = vpop.eup %11770  ;;  %10702 = vmatprep.subr.bf16.mxu0 %v3165_v27 }
0x1169   :  { %v3134_v11 = vsel %vm511_vm2, %v13681_v31, 0.0 }
0x116a   :  { %3135 = vadd.xlane.f32.xlu0 %v3134_v11  ;;  %3120 = vadd.xlane.f32.xlu1 %v3119_v32 }
0x116b   :  { %10703 = vmatpush3.bf16.msra.mxu0 %v3165_v27 }
0x116c   :  { %v13686_v43 = vpop.eup %11772 }
0x116d   :  { %v3128_v15 = vsel %vm511_vm2, %v13686_v43, 0.0 }
0x116e   :  { %3129 = vadd.xlane.f32.xlu0 %v3128_v15 }
0x117b   :  { %3259 = vrot.lane.b32.xlu1 %v13010_v18, %s12354_s1 }
0x117f   :  { %3261 = vrot.lane.b32.xlu1 %v13014_v13, %s12354_s1 }
0x1189   :  { %v3091_v61 = vpop.xlane.xlu1 %3090 }
0x118a   :  { %v3099_v1 = vsub.f32 %v13654_v56, %v3091_v61 }
0x118c   :  { %v3114_v14 = vmul.f32 1.442695, %v3099_v1 }
0x118d   :  { %v3085_v63 = vpop.xlane.xlu1 %3084 }
0x118e   :  { %11774 = vpow2.f32 %v3114_v14  ;;  %v3097_v4 = vsub.f32 %v13656_v41, %v3085_v63 }
0x1190   :  { %v3110_v8 = vmul.f32 1.442695, %v3097_v4 }
0x1191   :  { %v3167_v25 = vpop.permute.xlu1 %3166 }
0x1192   :  { %10704 = vmatprep.subr.bf16.mxu0 %v3167_v25  ;;  %11776 = vpow2.f32 %v3110_v8 }
0x1193   :  { %10705 = vmatpush3.bf16.msra.mxu0 %v3167_v25 }
0x1198   :  { %v11775_v28 = vpop.eup %11774 }
0x1199   :  { %v3137_v60 = vsel %vm511_vm2, %v11775_v28, 0.0 }
0x119a   :  { %3138 = vadd.xlane.f32.xlu0 %v3137_v60 }
0x119c   :  { %v11777_v34 = vpop.eup %11776 }
0x119d   :  { %v3131_v9 = vsel %vm511_vm2, %v11777_v34, 0.0 }
0x11a3   :  { %3132 = vadd.xlane.f32.xlu1 %v3131_v9 }
0x11b0   :  { %3257 = vrot.lane.b32.xlu0 %v13006_v26, %s12354_s1 }
0x11b4   :  { %3249 = vrot.lane.b32.xlu0 %v13006_v26, %s12355_s19  ;;  %3263 = vrot.lane.b32.xlu1 %v13018_v42, %s12354_s1 }
0x11b8   :  { %3253 = vrot.lane.b32.xlu0 %v13014_v13, %s12355_s19  ;;  %3251 = vrot.lane.b32.xlu1 %v13010_v18, %s12355_s19 }
0x11bc   :  { %3255 = vrot.lane.b32.xlu1 %v13018_v42, %s12355_s19 }
0x11eb   :  { %v3124_v56 = vpop.xlane.xlu0 %3123 }
0x11ef   :  { %v3118_v29 = vpop.xlane.xlu0 %3117 }
0x11f3   :  { %v3127_v41 = vpop.xlane.xlu1 %3126 }
0x11f4   :  { %11778 = vrcp.f32 %v3127_v41 }
0x11f5   :  { %11780 = vrcp.f32 %v3118_v29 }
0x11f6   :  { %11782 = vrcp.f32 %v3124_v56 }
0x11f7   :  { %v3121_v27 = vpop.xlane.xlu1 %3120  ;;  %v3136_v63 = vpop.xlane.xlu0 %3135 }
0x11f8   :  { %11784 = vrcp.f32 %v3121_v27 }
0x11fb   :  { %v3130_v4 = vpop.xlane.xlu0 %3129  ;;  %v3260_v8 = vpop.permute.xlu1 %3259 }
0x11fe   :  { %v11779_v26 = vpop.eup %11778 }
0x11ff   :  { %v11781_v11 = vpop.eup %11780  ;;  %v3151_v61 = vmul.f32 %v11779_v26, %v11767_v53  ;;  %v3262_v9 = vpop.permute.xlu1 %3261 }
0x1200   :  { %v11783_v32 = vpop.eup %11782  ;;  %v3148_v13 = vmul.f32 %v11781_v11, %v13676_v16  ;;  %v3281_v16 = vsel %vm123_vm0, %v3260_v8, 0  ;;  %v3284_v26 = vsel %vm123_vm0, %v3262_v9, 0 }
0x1201   :  { %v3150_v18 = vmul.f32 %v11783_v32, %v13672_v54 }
0x1202   :  { %v11785_v15 = vpop.eup %11784 }
0x1203   :  { %v3149_v1 = vmul.f32 %v11785_v15, %v11769_v58  ;;  %v3157_v42 = vpack.c.bf16 %v3151_v61, %v3150_v18 }
0x1205   :  { %v3156_v14 = vpack.c.bf16 %v3149_v1, %v3148_v13 }
0x1207   :  { %10706 = vmatprep.mubr.msk.bf16.mxu0 %vm511_vm2, %v3156_v14  ;;  %v17215_v14 = vmov 0  }
0x1208   :  { %10707 = vmatmul.mubr.msk.bf16.vlgmr.msra.gmra.mrb[92].mxu0 %vm511_vm2, %v3157_v42 }
0x1227   :  { %v3139_v25 = vpop.xlane.xlu0 %3138 }
0x1228   :  { %11786 = vrcp.f32 %v3139_v25 }
0x1229   :  { %11788 = vrcp.f32 %v3130_v4 }
0x122a   :  { %11790 = vrcp.f32 %v3136_v63 }
0x122b   :  { %v3258_v60 = vpop.permute.xlu0 %3257 }
0x122c   :  { %11102 = vmatprep.subr.msk.bf16.mxu0 %vm123_vm0, %v3258_v60  ;;  %v3278_v53 = vsel %vm123_vm0, %v3258_v60, 0 }
0x122d   :  { %10715 = vmatpush3.bf16.xpose.msra.mxu0 %v3278_v53 }
0x122e   :  { %11103 = vmatprep.subr.msk.bf16.mxu0 %vm123_vm0, %v3260_v8 }
0x122f   :  { %v3250_v18 = vpop.permute.xlu0 %3249 }
0x1230   :  { %v3133_v54 = vpop.xlane.xlu1 %3132 }
0x1231   :  { %11792 = vrcp.f32 %v3133_v54 }
0x1232   :  { %v11787_v58 = vpop.eup %11786 }
0x1233   :  { %v11789_v56 = vpop.eup %11788  ;;  %v3155_v27 = vmul.f32 %v11787_v58, %v11775_v28 }
0x1234   :  { %v11791_v41 = vpop.eup %11790  ;;  %v3152_v11 = vmul.f32 %v11789_v56, %v13686_v43  ;;  %v3264_v15 = vpop.permute.xlu1 %3263 }
0x1235   :  { %10717 = vmatpush3.bf16.xpose.msra.mxu0 %v3281_v16  ;;  %v3154_v61 = vmul.f32 %v11791_v41, %v13681_v31  ;;  %v3287_v28 = vsel %vm123_vm0, %v3264_v15, 0 }
0x1236   :  { %11104 = vmatprep.subr.msk.bf16.mxu0 %vm123_vm0, %v3262_v9 }
0x1237   :  { %v3159_v1 = vpack.c.bf16 %v3155_v27, %v3154_v61 }
0x1238   :  { %v3252_v43 = vpop.permute.xlu1 %3251 }
0x123b   :  { %v11793_v29 = vpop.eup %11792 }
0x123c   :  { %v3153_v32 = vmul.f32 %v11793_v29, %v11777_v34  ;;  %v3254_v34 = vpop.permute.xlu0 %3253  ;;  %v3256_v31 = vpop.permute.xlu1 %3255 }
0x123d   :  { %10719 = vmatpush3.bf16.xpose.msra.mxu0 %v3284_v26 }
0x123e   :  { %11105 = vmatprep.subr.msk.bf16.mxu0 %vm123_vm0, %v3264_v15  ;;  %v3158_v13 = vpack.c.bf16 %v3153_v32, %v3152_v11 }
0x1240   :  { %10710 = vmatprep.mubr.msk.bf16.mxu0 %vm511_vm2, %v3158_v13 }
0x1241   :  { %10711 = vmatmul.mubr.msk.bf16.gmra.mrb[96].mxu0 %vm511_vm2, %v3159_v1 }
0x1242   :  { %10722 = vmatprep.mubr.msk.bf16.mxu0 %vm123_vm0, %v3250_v18 }
0x1245   :  { %10721 = vmatpush3.bf16.xpose.msra.mxu0 %v3287_v28 }
0x124c   :  { %10723 = vmatmul.mubr.msk.bf16.vlgmr.msra.gmra.mrb[100].mxu0 %vm123_vm0, %v3252_v43 }
0x124d   :  { %10726 = vmatprep.mubr.msk.bf16.mxu0 %vm123_vm0, %v3254_v34 }
0x1254   :  { %10727 = vmatmul.mubr.msk.bf16.gmra.mrb[104].mxu0 %vm123_vm0, %v3256_v31  ;;  %v17216_v31 = vpack.i.bf16 %v13246_v57, %v13240_v50 }
0x1255   :  { %4226 = vmatprep.mubr.bf16.mxu0 %v17215_v14 }
0x12db   :  { %v13731_v42 = vpop.f32.mrb[92].mxu0 }
0x12dc   :  { %v13733_v63 = vpop.f32.mrb[93].mxu0 }
0x12dd   :  { %v13735_v4 = vpop.f32.mrb[94].mxu0 }
0x12de   :  { %v11224_v8 = vpack.i.bf16 %v13735_v4, %v13731_v42  ;;  %v13739_v25 = vpop.f32.mrb[95].mxu0 }
0x12df   :  { %v11219_v60 = vpack.i.bf16 %v13739_v25, %v13733_v63  ;;  %v17244_v63 = vld [vmem:[#allocation40_spill] sm:$0xff]  ;;  %v17245_v25 = vld [vmem:[#allocation38_spill] sm:$0xff] }
0x1314   :  { %v13743_v9 = vpop.f32.mrb[96].mxu0 }
0x1315   :  { %v13745_v53 = vpop.f32.mrb[97].mxu0 }
0x1316   :  { %v13747_v54 = vpop.f32.mrb[98].mxu0 }
0x1317   :  { %v13751_v58 = vpop.f32.mrb[99].mxu0 }
0x1318   :  { %v17250_v4 = vpack.i.bf16 %v13751_v58, %v13745_v53 }
0x131f   :  { %v10724_v41 = vpop.f32.mrb[100].mxu0 }
0x1320   :  { %v3323_v29 = vpop.f32.mrb[101].mxu0  ;;  %v3360_v27 = vsel %vm511_vm2, %v10724_v41, -inf }
0x1321   :  { %3361 = vmax.xlane.f32.xlu0 %v3360_v27  ;;  %v10725_v26 = vpop.f32.mrb[102].mxu0  ;;  %v3354_v15 = vsel %vm511_vm2, %v3323_v29, -inf }
0x1322   :  { %v3326_v11 = vpop.f32.mrb[103].mxu0  ;;  %v3363_v1 = vsel %vm511_vm2, %v10725_v26, -inf }
0x1323   :  { %v3357_v32 = vsel %vm511_vm2, %v3326_v11, -inf }
0x1324   :  { %3358 = vmax.xlane.f32.xlu1 %v3357_v32 }
0x1325   :  { %3355 = vmax.xlane.f32.xlu0 %v3354_v15 }
0x1327   :  { %v10728_v61 = vpop.f32.mrb[104].mxu0 }
0x1328   :  { %v3339_v13 = vpop.f32.mrb[105].mxu0  ;;  %v3372_v34 = vsel %vm511_vm2, %v10728_v61, -inf }
0x1329   :  { %3364 = vmax.xlane.f32.xlu0 %v3363_v1  ;;  %v13759_v18 = vpop.f32.mrb[106].mxu0  ;;  %v3366_v43 = vsel %vm511_vm2, %v3339_v13, -inf }
0x132a   :  { %v13761_v28 = vpop.f32.mrb[107].mxu0  ;;  %v3375_v27 = vsel %vm511_vm2, %v13759_v18, -inf }
0x132d   :  { %3367 = vmax.xlane.f32.xlu0 %v3366_v43 }
0x1331   :  { %3373 = vmax.xlane.f32.xlu0 %v3372_v34 }
0x1335   :  { %3448 = vrot.lane.b32.xlu1 %v13012_v21, %s12355_s19  ;;  %v3369_v21 = vsel %vm511_vm2, %v13761_v28, -inf }
0x1339   :  { %3450 = vrot.lane.b32.xlu1 %v13016_v59, %s12355_s19  ;;  %v17217_v59 = vpack.i.bf16 %v13242_v2, %v13238_v44 }
0x133d   :  { %3452 = vrot.lane.b32.xlu1 %v13020_v5, %s12355_s19 }
0x1347   :  { %3446 = vrot.lane.b32.xlu0 %v13008_v3, %s12355_s19 }
0x134b   :  { %11150 = vrot.lane.b32.xlu0 %v17216_v31, %s12354_s1 }
0x1361   :  { %3376 = vmax.xlane.f32.xlu1 %v3375_v27 }
0x1365   :  { %3370 = vmax.xlane.f32.xlu1 %v3369_v21 }
0x1376   :  { %11155 = vrot.lane.b32.xlu1 %v17217_v59, %s12354_s1 }
0x13ae   :  { %v3362_v5 = vpop.xlane.xlu0 %3361 }
0x13af   :  { %v3380_v3 = vsub.f32 %v10724_v41, %v3362_v5 }
0x13b1   :  { %v3390_v32 = vmul.f32 1.442695, %v3380_v3  ;;  %v3359_v15 = vpop.xlane.xlu1 %3358 }
0x13b2   :  { %v3356_v1 = vpop.xlane.xlu0 %3355  ;;  %v3379_v57 = vsub.f32 %v3326_v11, %v3359_v15 }
0x13b3   :  { %11794 = vpow2.f32 %v3390_v32  ;;  %v3378_v50 = vsub.f32 %v3323_v29, %v3356_v1 }
0x13b4   :  { %v3388_v27 = vmul.f32 1.442695, %v3379_v57 }
0x13b5   :  { %v3386_v43 = vmul.f32 1.442695, %v3378_v50  ;;  %v3449_v29 = vpop.permute.xlu1 %3448 }
0x13b6   :  { %v3365_v34 = vpop.xlane.xlu0 %3364 }
0x13b7   :  { %11796 = vpow2.f32 %v3386_v43  ;;  %v3381_v31 = vsub.f32 %v10725_v26, %v3365_v34 }
0x13b9   :  { %v3392_v16 = vmul.f32 1.442695, %v3381_v31 }
0x13ba   :  { %v3368_v21 = vpop.xlane.xlu0 %3367 }
0x13bb   :  { %11798 = vpow2.f32 %v3392_v16  ;;  %v3382_v44 = vsub.f32 %v3339_v13, %v3368_v21  ;;  %v3451_v13 = vpop.permute.xlu1 %3450  ;;  %v17219_v21 = vpack.i.bf16 %v13358_v30, %v13352_v37  ;;  %v17222_v30 = vpack.i.bf16 %v13370_v24, %v13364_v20 }
0x13bc   :  { %11800 = vpow2.f32 %v3388_v27  ;;  %v17218_v27 = vpack.i.bf16 %v13354_v38, %v13350_v45  ;;  %v17224_v20 = vpack.i.bf16 %v13450_v12, %v13446_v7  ;;  %v17225_v24 = vpack.i.bf16 %v13254_v49, %v13250_v23 }
0x13bd   :  { %v13785_v56 = vpop.eup %11794  ;;  %v3394_v5 = vmul.f32 1.442695, %v3382_v44  ;;  %v17220_v44 = vpack.i.bf16 %v13454_v22, %v13448_v6  ;;  %v17223_v6 = vpack.i.bf16 %v13466_v62, %v13460_v10  ;;  %v11442_v10 = vld [vmem:[%s17100_s10] sm:$0xff]   ;;  %v17226_v62 = vpack.i.bf16 %v13366_v48, %v13362_v40 }
0x13be   :  { %v3374_v2 = vpop.xlane.xlu0 %3373  ;;  %v3408_v41 = vsel %vm511_vm2, %v13785_v56, 0.0  ;;  %v17227_v7 = vpack.i.bf16 %v13462_v39, %v13458_v55 }
0x13bf   :  { %v3384_v59 = vsub.f32 %v10728_v61, %v3374_v2  ;;  %3409 = vadd.xlane.f32.xlu0 %v3408_v41  ;;  %v3453_v50 = vpop.permute.xlu1 %3452 }
0x13c1   :  { %v13789_v11 = vpop.eup %11796  ;;  %v3398_v3 = vmul.f32 1.442695, %v3384_v59 }
0x13c2   :  { %v3447_v26 = vpop.permute.xlu0 %3446  ;;  %v3402_v32 = vsel %vm511_vm2, %v13789_v11, 0.0 }
0x13c3   :  { %11802 = vpow2.f32 %v3398_v3  ;;  %3403 = vadd.xlane.f32.xlu0 %v3402_v32  ;;  %10730 = vmatprep.subr.bf16.mxu1 %v3447_v26 }
0x13c4   :  { %10731 = vmatpush3.bf16.msra.mxu1 %v3447_v26  ;;  %11804 = vpow2.f32 %v3394_v5 }
0x13c5   :  { %v13793_v16 = vpop.eup %11798  ;;  %10732 = vmatprep.subr.bf16.mxu1 %v3449_v29 }
0x13c6   :  { %v3411_v61 = vsel %vm511_vm2, %v13793_v16, 0.0  ;;  %v13797_v15 = vpop.eup %11800  ;;  %v11151_v12 = vpop.permute.xlu0 %11150 }
0x13c7   :  { %3412 = vadd.xlane.f32.xlu1 %v3411_v61  ;;  %v3405_v1 = vsel %vm511_vm2, %v13797_v15, 0.0  ;;  %v11153_v39 = vunpack.i.h.bf16 %v11151_v12 }
0x13c8   :  { %10733 = vmatpush3.bf16.msra.mxu1 %v3449_v29  ;;  %v17221_v29 = vpack.i.bf16 %v13258_v33, %v13252_v35 }
0x13c9   :  { %10734 = vmatprep.subr.bf16.mxu1 %v3451_v13 }
0x13cb   :  { %3406 = vadd.xlane.f32.xlu1 %v3405_v1 }
0x13cc   :  { %10735 = vmatpush3.bf16.msra.mxu1 %v3451_v13 }
0x13cd   :  { %v13801_v57 = vpop.eup %11802  ;;  %10736 = vmatprep.subr.bf16.mxu1 %v3453_v50 }
0x13ce   :  { %v3420_v43 = vsel %vm511_vm2, %v13801_v57, 0.0  ;;  %v13805_v34 = vpop.eup %11804 }
0x13cf   :  { %3421 = vadd.xlane.f32.xlu0 %v3420_v43  ;;  %v3414_v31 = vsel %vm511_vm2, %v13805_v34, 0.0 }
0x13d0   :  { %10737 = vmatpush3.bf16.msra.mxu1 %v3453_v50 }
0x13d1   :  { %10746 = vmatprep.subr.bf16.mxu1 %v11442_v10 }
0x13d3   :  { %3415 = vadd.xlane.f32.xlu0 %v3414_v31  ;;  %v11152_v31 = vunpack.i.l.bf16 %v11151_v12 }
0x13dc   :  { %11165 = vrot.lane.b32.xlu1 %v17218_v27, %s12352_s4 }
0x13e9   :  { %11160 = vrot.lane.b32.xlu0 %v17219_v21, %s12352_s4 }
0x13ed   :  { %11170 = vrot.lane.b32.xlu0 %v17220_v44, %s12350_s3 }
0x13ee   :  { %v3377_v2 = vpop.xlane.xlu1 %3376 }
0x13ef   :  { %v3385_v41 = vsub.f32 %v13759_v18, %v3377_v2 }
0x13f1   :  { %v3400_v59 = vmul.f32 1.442695, %v3385_v41  ;;  %11180 = vrot.lane.b32.xlu0 %v17221_v29, %s12354_s1 }
0x13f2   :  { %v3371_v45 = vpop.xlane.xlu1 %3370 }
0x13f3   :  { %11806 = vpow2.f32 %v3400_v59  ;;  %v3383_v38 = vsub.f32 %v13761_v28, %v3371_v45  ;;  %v11443_v59 = vld [vmem:[%s17100_s10 + $0x8] sm:$0xff]  }
0x13f5   :  { %v3396_v37 = vmul.f32 1.442695, %v3383_v38  ;;  %11190 = vrot.lane.b32.xlu0 %v17222_v30, %s12352_s4 }
0x13f6   :  { %v13862_v5 = vpop.permute.xlu1 %11155 }
0x13f7   :  { %11808 = vpow2.f32 %v3396_v37 }
0x13f9   :  { %11200 = vrot.lane.b32.xlu0 %v17223_v6, %s12350_s3 }
0x13fd   :  { %v13835_v22 = vpop.eup %11806 }
0x13fe   :  { %v3423_v35 = vsel %vm511_vm2, %v13835_v22, 0.0 }
0x1400   :  { %3424 = vadd.xlane.f32.xlu1 %v3423_v35  ;;  %v11445_v35 = vld [vmem:[%s17100_s10 + $0x18] sm:$0xff]  }
0x1401   :  { %v13839_v33 = vpop.eup %11808 }
0x1402   :  { %v3417_v18 = vsel %vm511_vm2, %v13839_v33, 0.0 }
0x1404   :  { %3418 = vadd.xlane.f32.xlu1 %v3417_v18 }
0x1415   :  { %11175 = vrot.lane.b32.xlu1 %v17224_v20, %s12350_s3 }
0x1419   :  { %11185 = vrot.lane.b32.xlu1 %v17225_v24, %s12354_s1 }
0x141d   :  { %11195 = vrot.lane.b32.xlu1 %v17226_v62, %s12352_s4 }
0x1421   :  { %11205 = vrot.lane.b32.xlu1 %v17227_v7, %s12350_s3 }
0x144c   :  { %v3410_v28 = vpop.xlane.xlu0 %3409 }
0x1450   :  { %v3404_v23 = vpop.xlane.xlu0 %3403 }
0x1454   :  { %v3413_v49 = vpop.xlane.xlu1 %3412 }
0x1455   :  { %11810 = vrcp.f32 %v3413_v49 }
0x1456   :  { %11812 = vrcp.f32 %v3404_v23 }
0x1457   :  { %11814 = vrcp.f32 %v3410_v28 }
0x1458   :  { %v3407_v3 = vpop.xlane.xlu1 %3406 }
0x1459   :  { %11816 = vrcp.f32 %v3407_v3 }
0x145c   :  { %v3422_v26 = vpop.xlane.xlu0 %3421 }
0x145f   :  { %v11811_v32 = vpop.eup %11810 }
0x1460   :  { %v3416_v40 = vpop.xlane.xlu0 %3415  ;;  %v11813_v48 = vpop.eup %11812  ;;  %v3437_v55 = vmul.f32 %v11811_v32, %v13793_v16  ;;  %v2374_v16 = vsel %vm123_vm0, %v13228_v47, %v11153_v39 }
0x1461   :  { %v11815_v13 = vpop.eup %11814  ;;  %v3434_v50 = vmul.f32 %v11813_v48, %v13789_v11  ;;  %v2373_v11 = vsel %vm123_vm0, %v13224_v0, %v11152_v31  ;;  %v11444_v0 = vld [vmem:[%s17100_s10 + $0x10] sm:$0xff]  }
0x1462   :  { %v3436_v27 = vmul.f32 %v11815_v13, %v13785_v56 }
0x1463   :  { %v11817_v61 = vpop.eup %11816 }
0x1464   :  { %v11161_v1 = vpop.permute.xlu0 %11160  ;;  %v3435_v43 = vmul.f32 %v11817_v61, %v13797_v15  ;;  %v3443_v41 = vpack.c.bf16 %v3437_v55, %v3436_v27  ;;  %v11166_v55 = vpop.permute.xlu1 %11165 }
0x1465   :  { %v11163_v21 = vunpack.i.h.bf16 %v11161_v1  ;;  %v11162_v44 = vunpack.i.l.bf16 %v11161_v1  ;;  %v11157_v1 = vunpack.i.l.bf16 %v13862_v5 }
0x1466   :  { %v3442_v2 = vpack.c.bf16 %v3435_v43, %v3434_v50  ;;  %v11168_v50 = vunpack.i.h.bf16 %v11166_v55  ;;  %v11167_v43 = vunpack.i.l.bf16 %v11166_v55 }
0x1467   :  { %v2382_v45 = vsel %vm2381_vm4, %v2373_v11, %v11162_v44  ;;  %v2383_v38 = vsel %vm2381_vm4, %v2374_v16, %v11163_v21  ;;  %v2375_v21 = vsel %vm123_vm0, %v13222_v46, %v11157_v1 }
0x1468   :  { %v11171_v29 = vpop.permute.xlu0 %11170  ;;  %10738 = vmatprep.mubr.msk.bf16.mxu1 %vm511_vm2, %v3442_v2 }
0x1469   :  { %v11173_v56 = vunpack.i.h.bf16 %v11171_v29  ;;  %v11172_v15 = vunpack.i.l.bf16 %v11171_v29  ;;  %10739 = vmatmul.mubr.msk.bf16.vlgmr.msra.gmra.mrb[72].mxu1 %vm511_vm2, %v3443_v41 }
0x146a   :  { %10747 = vmatpush3.bf16.msra.mxu1 %v11442_v10 }
0x146b   :  { %v13880_v37 = vsel %vm2390_vm3, %v2382_v45, %v11172_v15  ;;  %v13883_v47 = vsel %vm2390_vm3, %v2383_v38, %v11173_v56  ;;  %10748 = vmatprep.subr.bf16.mxu1 %v11443_v59 }
0x146c   :  { %v11181_v30 = vpop.permute.xlu0 %11180  ;;  %v2399_v6 = vpack.c.bf16 %v13883_v47, %v13880_v37 }
0x146d   :  { %v11183_v20 = vunpack.i.h.bf16 %v11181_v30  ;;  %v11182_v24 = vunpack.i.l.bf16 %v11181_v30 }
0x146e   :  { %10749 = vmatpush3.bf16.msra.mxu1 %v11443_v59 }
0x146f   :  { %10750 = vmatprep.subr.bf16.mxu1 %v11444_v0  ;;  %v2378_v12 = vsel %vm123_vm0, %v13236_v36, %v11183_v20  ;;  %v2377_v28 = vsel %vm123_vm0, %v13232_v17, %v11182_v24  ;;  %v11158_v17 = vunpack.i.h.bf16 %v13862_v5 }
0x1470   :  { %v11191_v18 = vpop.permute.xlu0 %11190 }
0x1471   :  { %v11193_v10 = vunpack.i.h.bf16 %v11191_v18  ;;  %v11192_v62 = vunpack.i.l.bf16 %v11191_v18  ;;  %v2376_v27 = vsel %vm123_vm0, %v13226_v19, %v11158_v17  ;;  %v17229_v17 = vld [vmem:[#allocation2_spill] sm:$0xff] }
0x1472   :  { %10751 = vmatpush3.bf16.msra.mxu1 %v11444_v0  ;;  %v13955_v1 = vsub.s32 4, %v17229_v17 }
0x1473   :  { %10752 = vmatprep.subr.bf16.mxu1 %v11445_v35  ;;  %v2386_v3 = vsel %vm2381_vm4, %v2377_v28, %v11192_v62  ;;  %v2387_v32 = vsel %vm2381_vm4, %v2378_v12, %v11193_v10 }
0x1474   :  { %v11201_v7 = vpop.permute.xlu0 %11200 }
0x1475   :  { %v11203_v23 = vunpack.i.h.bf16 %v11201_v7  ;;  %v11202_v49 = vunpack.i.l.bf16 %v11201_v7 }
0x1476   :  { %10753 = vmatpush3.bf16.msra.mxu1 %v11445_v35 }
0x1477   :  { %v2395_v48 = vsel %vm2390_vm3, %v2386_v3, %v11202_v49  ;;  %v2396_v13 = vsel %vm2390_vm3, %v2387_v32, %v11203_v23 }
0x1478   :  { %v2401_v61 = vpack.c.bf16 %v2396_v13, %v2395_v48 }
0x148d   :  { %v3425_v39 = vpop.xlane.xlu1 %3424 }
0x148e   :  { %11818 = vrcp.f32 %v3425_v39 }
0x148f   :  { %11820 = vrcp.f32 %v3416_v40  ;;  %v2384_v40 = vsel %vm2381_vm4, %v2375_v21, %v11167_v43  ;;  %v13962_v43 = vld [vmem:[%s17098_s13] sm:$0x3f] }
0x1490   :  { %11822 = vrcp.f32 %v3422_v26  ;;  %v2385_v26 = vsel %vm2381_vm4, %v2376_v27, %v11168_v50 }
0x1491   :  { %v3419_v36 = vpop.xlane.xlu1 %3418 }
0x1492   :  { %11824 = vrcp.f32 %v3419_v36 }
0x1495   :  { %v11176_v31 = vpop.permute.xlu1 %11175 }
0x1496   :  { %v11178_v44 = vunpack.i.h.bf16 %v11176_v31  ;;  %v11177_v2 = vunpack.i.l.bf16 %v11176_v31  ;;  %v13966_v31 = vrot.slane %v13962_v43, %v13955_v1 }
0x1498   :  { %v2393_v41 = vsel %vm2390_vm3, %v2384_v40, %v11177_v2  ;;  %v2394_v5 = vsel %vm2390_vm3, %v2385_v26, %v11178_v44  ;;  %v11819_v59 = vpop.eup %11818  ;;  %v17231_v44 = vld [vmem:[#allocation4_spill] sm:$0xff]  ;;  %v17232_v40 = vld [vmem:[#allocation5_spill] sm:$0xff] }
0x1499   :  { %v2400_v16 = vpack.c.bf16 %v2394_v5, %v2393_v41  ;;  %v11186_v29 = vpop.permute.xlu1 %11185  ;;  %v11821_v11 = vpop.eup %11820  ;;  %v3441_v19 = vmul.f32 %v11819_v59, %v13835_v22  ;;  %v17228_v22 = vld [vmem:[#allocation25_spill] sm:$0xff] }
0x149a   :  { %v11823_v56 = vpop.eup %11822  ;;  %v3438_v46 = vmul.f32 %v11821_v11, %v13805_v34  ;;  %v11188_v0 = vunpack.i.h.bf16 %v11186_v29  ;;  %v11187_v30 = vunpack.i.l.bf16 %v11186_v29  ;;  %17230 = vst [vmem:[#allocation25_spill] sm:$0xff] %v13955_v1 }
0x149b   :  { %v3440_v35 = vmul.f32 %v11823_v56, %v13801_v57  ;;  %v17234_v56 = vld [vmem:[#allocation6_spill] sm:$0xff] }
0x149c   :  { %v11825_v15 = vpop.eup %11824  ;;  %v2380_v7 = vsel %vm123_vm0, %v13234_v51, %v11188_v0  ;;  %v2379_v12 = vsel %vm123_vm0, %v17228_v22, %v11187_v30  ;;  %v17237_v22 = vld [vmem:[#allocation10_spill] sm:$0xff] }
0x149d   :  { %v11196_v45 = vpop.permute.xlu1 %11195  ;;  %v3439_v38 = vmul.f32 %v11825_v15, %v13839_v33  ;;  %v3445_v10 = vpack.c.bf16 %v3441_v19, %v3440_v35  ;;  %v17235_v35 = vld [vmem:[#allocation8_spill] sm:$0xff] }
0x149e   :  { %v11198_v18 = vunpack.i.h.bf16 %v11196_v45  ;;  %v11197_v20 = vunpack.i.l.bf16 %v11196_v45 }
0x149f   :  { %v3444_v24 = vpack.c.bf16 %v3439_v38, %v3438_v46 }
0x14a0   :  { %v2388_v33 = vsel %vm2381_vm4, %v2379_v12, %v11197_v20  ;;  %v2389_v57 = vsel %vm2381_vm4, %v2380_v7, %v11198_v18 }
0x14a1   :  { %10742 = vmatprep.mubr.msk.bf16.mxu1 %vm511_vm2, %v3444_v24  ;;  %v11206_v62 = vpop.permute.xlu1 %11205 }
0x14a2   :  { %v11208_v34 = vunpack.i.h.bf16 %v11206_v62  ;;  %v11207_v28 = vunpack.i.l.bf16 %v11206_v62  ;;  %10743 = vmatmul.mubr.msk.bf16.gmra.mrb[76].mxu1 %vm511_vm2, %v3445_v10  ;;  %v17236_v62 = vld [vmem:[#allocation11_spill] sm:$0xff] }
0x14a3   :  { %10754 = vmatprep.mubr.msk.bf16.mxu1 %vm511_vm2, %v2399_v6 }
0x14a4   :  { %v2397_v23 = vsel %vm2390_vm3, %v2388_v33, %v11207_v28  ;;  %v2398_v51 = vsel %vm2390_vm3, %v2389_v57, %v11208_v34  ;;  %v17238_v34 = vld [vmem:[#allocation9_spill] sm:$0xff] }
0x14a5   :  { %v2402_v49 = vpack.c.bf16 %v2398_v51, %v2397_v23 }
0x14aa   :  { %10755 = vmatmul.mubr.msk.bf16.vlgmr.msra.gmra.mrb[80].mxu1 %vm511_vm2, %v2400_v16  ;;  %v17233_v16 = vld [vmem:[#allocation7_spill] sm:$0xff] }
0x14ab   :  { %10758 = vmatprep.mubr.msk.bf16.mxu1 %vm511_vm2, %v2401_v61 }
0x14b2   :  { %10759 = vmatmul.mubr.msk.bf16.gmra.mrb[84].mxu1 %vm511_vm2, %v2402_v49 }
0x153c   :  { %v13932_v3 = vpop.f32.mrb[72].mxu1 }
0x153d   :  { %v13934_v32 = vpop.f32.mrb[73].mxu1 }
0x153e   :  { %v13936_v48 = vpop.f32.mrb[74].mxu1 }
0x153f   :  { %v11234_v37 = vpack.i.bf16 %v13936_v48, %v13932_v3  ;;  %v13940_v47 = vpop.f32.mrb[75].mxu1 }
0x1540   :  { %v11229_v6 = vpack.i.bf16 %v13940_v47, %v13934_v32 }
0x1575   :  { %v13944_v13 = vpop.f32.mrb[76].mxu1 }
0x1576   :  { %v13946_v55 = vpop.f32.mrb[77].mxu1 }
0x1577   :  { %v13948_v61 = vpop.f32.mrb[78].mxu1 }
0x1578   :  { %v11264_v39 = vpack.i.bf16 %v13948_v61, %v13944_v13  ;;  %v13952_v36 = vpop.f32.mrb[79].mxu1 }
0x1579   :  { %v11259_v50 = vpack.i.bf16 %v13952_v36, %v13946_v55 }
0x157d   :  { %v10756_v27 = vpop.f32.mrb[80].mxu1 }
0x157e   :  { %v3749_v21 = vpop.f32.mrb[81].mxu1  ;;  %v3814_v2 = vadd.f32 %v10756_v27, %v17231_v44 }
0x157f   :  { %v3812_v26 = vadd.f32 %v3749_v21, %v17232_v40  ;;  %v10757_v41 = vpop.f32.mrb[82].mxu1 }
0x1580   :  { %v3752_v5 = vpop.f32.mrb[83].mxu1  ;;  %v13975_v11 = vadd.f32 %v13966_v31, %v3814_v2  ;;  %v3815_v15 = vadd.f32 %v10757_v41, %v17234_v56 }
0x1581   :  { %v13971_v59 = vadd.f32 %v13966_v31, %v3812_v26  ;;  %v3813_v29 = vadd.f32 %v3752_v5, %v17233_v16 }
0x1582   :  { %v13986_v30 = vadd.f32 %v13966_v31, %v3815_v15  ;;  %v3854_v24 = vsel %vm511_vm2, %v13975_v11, 0.0 }
0x1583   :  { %v13979_v19 = vadd.f32 %v13966_v31, %v3813_v29  ;;  %v3848_v45 = vsel %vm511_vm2, %v13971_v59, 0.0 }
0x1584   :  { %3849 = vadd.xlane.f32.xlu0 %v3848_v45  ;;  %v3857_v23 = vsel %vm511_vm2, %v13986_v30, 0.0 }
0x1585   :  { %v10760_v46 = vpop.f32.mrb[84].mxu1  ;;  %v3851_v38 = vsel %vm511_vm2, %v13979_v19, 0.0 }
0x1586   :  { %3852 = vadd.xlane.f32.xlu1 %v3851_v38  ;;  %v3765_v0 = vpop.f32.mrb[85].mxu1  ;;  %v3818_v28 = vadd.f32 %v10760_v46, %v17238_v34 }
0x1587   :  { %v3816_v18 = vadd.f32 %v3765_v0, %v17235_v35  ;;  %v10761_v20 = vpop.f32.mrb[86].mxu1 }
0x1588   :  { %3855 = vadd.xlane.f32.xlu0 %v3854_v24  ;;  %v3768_v10 = vpop.f32.mrb[87].mxu1  ;;  %v3819_v7 = vadd.f32 %v10761_v20, %v17236_v62  ;;  %v14008_v27 = vadd.f32 %v13966_v31, %v3818_v28 }
0x1589   :  { %v3817_v12 = vadd.f32 %v3768_v10, %v17237_v22  ;;  %v13995_v33 = vadd.f32 %v13966_v31, %v3816_v18 }
0x158a   :  { %v14003_v51 = vadd.f32 %v13966_v31, %v3819_v7  ;;  %v3866_v2 = vsel %vm511_vm2, %v14008_v27, 0.0 }
0x158b   :  { %v13998_v57 = vadd.f32 %v13966_v31, %v3817_v12  ;;  %v3860_v21 = vsel %vm511_vm2, %v13995_v33, 0.0 }
0x158c   :  { %3858 = vadd.xlane.f32.xlu0 %v3857_v23  ;;  %v3869_v44 = vsel %vm511_vm2, %v14003_v51, 0.0 }
0x158d   :  { %v3863_v49 = vsel %vm511_vm2, %v13998_v57, 0.0 }
0x158e   :  { %3864 = vadd.xlane.f32.xlu1 %v3863_v49 }
0x1590   :  { %3861 = vadd.xlane.f32.xlu0 %v3860_v21 }
0x1592   :  { %3870 = vadd.xlane.f32.xlu1 %v3869_v44 }
0x1594   :  { %3867 = vadd.xlane.f32.xlu0 %v3866_v2 }
0x1611   :  { %v3850_v40 = vpop.xlane.xlu0 %3849 }
0x1612   :  { %v3896_v26 = vmul.f32 0.015625, %v3850_v40 }
0x1613   :  { %v3853_v41 = vpop.xlane.xlu1 %3852 }
0x1614   :  { %v14017_v5 = vsub.f32 %v13971_v59, %v3896_v26  ;;  %v3897_v16 = vmul.f32 0.015625, %v3853_v41 }
0x1615   :  { %v3856_v29 = vpop.xlane.xlu0 %3855 }
0x1616   :  { %v14020_v56 = vsub.f32 %v13979_v19, %v3897_v16  ;;  %v3898_v15 = vmul.f32 0.015625, %v3856_v29  ;;  %v3928_v45 = vmul.f32 %v14017_v5, %v14017_v5 }
0x1618   :  { %v14025_v46 = vsub.f32 %v13975_v11, %v3898_v15  ;;  %v3944_v38 = vsel %vm511_vm2, %v3928_v45, 0.0  ;;  %v3929_v0 = vmul.f32 %v14020_v56, %v14020_v56 }
0x1619   :  { %v3859_v35 = vpop.xlane.xlu0 %3858  ;;  %3945 = vadd.xlane.f32.xlu0 %v3944_v38 }
0x161a   :  { %v3899_v18 = vmul.f32 0.015625, %v3859_v35  ;;  %v3947_v20 = vsel %vm511_vm2, %v3929_v0, 0.0  ;;  %v3930_v24 = vmul.f32 %v14025_v46, %v14025_v46 }
0x161b   :  { %3948 = vadd.xlane.f32.xlu1 %v3947_v20  ;;  %v3865_v10 = vpop.xlane.xlu1 %3864 }
0x161c   :  { %v14034_v62 = vsub.f32 %v13986_v30, %v3899_v18  ;;  %v3901_v7 = vmul.f32 0.015625, %v3865_v10  ;;  %v3950_v22 = vsel %vm511_vm2, %v3930_v24, 0.0  ;;  %v11448_v24 = vld [vmem:[%s17101_s11 + $0x4] ss:$8 sps:$4 sm:$0xff]   ;;  %v11446_v10 = vld [vmem:[%s17101_s11] ss:$8 sps:$4 sm:$0xff]  }
0x161d   :  { %3951 = vadd.xlane.f32.xlu0 %v3950_v22  ;;  %v3862_v12 = vpop.xlane.xlu0 %3861  ;;  %4194 = vmatprep.subr.bf16.mxu0 %v11448_v24  ;;  %v11449_v22 = vld [vmem:[%s17101_s11 + $0x10] ss:$8 sps:$4 sm:$0xff]  }
0x161e   :  { %v14038_v34 = vsub.f32 %v13998_v57, %v3901_v7  ;;  %v3900_v28 = vmul.f32 0.015625, %v3862_v12  ;;  %v3931_v23 = vmul.f32 %v14034_v62, %v14034_v62  ;;  %4195 = vmatpush1.bf16.msra.mxu0 %v11446_v10  ;;  %v11451_v7 = vld [vmem:[%s17101_s11 + $0x14] ss:$8 sps:$4 sm:$0xff]   ;;  %v11454_v12 = vld [vmem:[%s17101_s11 + $0x24] ss:$8 sps:$4 sm:$0xff]  }
0x161f   :  { %v3871_v49 = vpop.xlane.xlu1 %3870  ;;  %4196 = vmatprep.subr.bf16.mxu0 %v11451_v7 }
0x1620   :  { %v14043_v21 = vsub.f32 %v13995_v33, %v3900_v28  ;;  %v3903_v44 = vmul.f32 0.015625, %v3871_v49  ;;  %v3953_v2 = vsel %vm511_vm2, %v3931_v23, 0.0  ;;  %v3933_v40 = vmul.f32 %v14038_v34, %v14038_v34  ;;  %v11452_v28 = vld [vmem:[%s17101_s11 + $0x20] ss:$8 sps:$4 sm:$0xff]  }
0x1621   :  { %v3868_v26 = vpop.xlane.xlu0 %3867  ;;  %3954 = vadd.xlane.f32.xlu1 %v3953_v2  ;;  %v17239_v23 = vld [vmem:[#allocation34_spill] sm:$0xff]  ;;  %v11455_v2 = vld [vmem:[%s17101_s11 + $0x30] ss:$8 sps:$4 sm:$0xff]  }
0x1622   :  { %v14049_v41 = vsub.f32 %v14003_v51, %v3903_v44  ;;  %v3902_v16 = vmul.f32 0.015625, %v3868_v26  ;;  %v3932_v29 = vmul.f32 %v14043_v21, %v14043_v21  ;;  %v3959_v38 = vsel %vm511_vm2, %v3933_v40, 0.0  ;;  %4197 = vmatpush1.bf16.msra.mxu0 %v11449_v22  ;;  %v11457_v44 = vld [vmem:[%s17101_s11 + $0x34] ss:$8 sps:$4 sm:$0xff]   ;;  %v17253_v22 = vld [vmem:[#allocation23_spill] sm:$0xff] }
0x1623   :  { %v17240_v49 = vpack.i.bf16 %v13630_v52, %v17239_v23  ;;  %4198 = vmatprep.subr.bf16.mxu0 %v11454_v12  ;;  %v17241_v40 = vld [vmem:[#allocation36_spill] sm:$0xff]  ;;  %v17242_v52 = vld [vmem:[#allocation35_spill] sm:$0xff]  ;;  %v14143_v12 = vrot.slane %v13962_v43, %v17253_v22 }
0x1624   :  { %v14054_v15 = vsub.f32 %v14008_v27, %v3902_v16  ;;  %v3956_v45 = vsel %vm511_vm2, %v3932_v29, 0.0  ;;  %v3935_v0 = vmul.f32 %v14049_v41, %v14049_v41  ;;  %v17243_v26 = vpack.i.bf16 %v17241_v40, %v17242_v52  ;;  %v17247_v16 = vld [vmem:[#allocation39_spill] sm:$0xff]  ;;  %v17248_v29 = vld [vmem:[#allocation37_spill] sm:$0xff] }
0x1625   :  { %3957 = vadd.xlane.f32.xlu0 %v3956_v45  ;;  %3960 = vadd.xlane.f32.xlu1 %v3959_v38  ;;  %v17249_v42 = vpack.i.bf16 %v17247_v16, %v17248_v29 }
0x1626   :  { %v3934_v35 = vmul.f32 %v14054_v15, %v14054_v15  ;;  %v3965_v20 = vsel %vm511_vm2, %v3935_v0, 0.0  ;;  %4199 = vmatpush1.bf16.msra.mxu0 %v11452_v28 }
0x1627   :  { %4200 = vmatprep.subr.bf16.mxu0 %v11457_v44 }
0x1628   :  { %v3962_v18 = vsel %vm511_vm2, %v3934_v35, 0.0 }
0x1629   :  { %3963 = vadd.xlane.f32.xlu0 %v3962_v18  ;;  %3966 = vadd.xlane.f32.xlu1 %v3965_v20 }
0x162a   :  { %4201 = vmatpush1.bf16.msra.mxu0 %v11455_v2 }
0x163a   :  { %11215 = vrot.lane.b32.xlu1 %v17240_v49, %s12354_s1 }
0x163e   :  { %11220 = vrot.lane.b32.xlu1 %v11219_v60, %s12352_s4  ;;  %v17246_v60 = vpack.i.bf16 %v17244_v63, %v17245_v25 }
0x163f   :  { %11210 = vrot.lane.b32.xlu0 %v17243_v26, %s12354_s1 }
0x1642   :  { %11225 = vrot.lane.b32.xlu1 %v11224_v8, %s12352_s4  ;;  %v17251_v8 = vpack.i.bf16 %v13747_v54, %v13743_v9 }
0x1643   :  { %11230 = vrot.lane.b32.xlu0 %v11229_v6, %s12350_s3 }
0x1646   :  { %11235 = vrot.lane.b32.xlu1 %v11234_v37, %s12350_s3 }
0x1647   :  { %11240 = vrot.lane.b32.xlu0 %v17246_v60, %s12354_s1 }
0x164a   :  { %11245 = vrot.lane.b32.xlu1 %v17249_v42, %s12354_s1 }
0x164b   :  { %11250 = vrot.lane.b32.xlu0 %v17250_v4, %s12352_s4 }
0x164e   :  { %11255 = vrot.lane.b32.xlu1 %v17251_v8, %s12352_s4 }
0x164f   :  { %11260 = vrot.lane.b32.xlu0 %v11259_v50, %s12350_s3 }
0x1652   :  { %11265 = vrot.lane.b32.xlu1 %v11264_v39, %s12350_s3  ;;  %v17252_v39 = vld [vmem:[#allocation21_spill] sm:$0xff] }
0x1653   :  { %v14138_v38 = vrot.slane %v13962_v43, %v17252_v39 }
0x16a6   :  { %v3946_v3 = vpop.xlane.xlu0 %3945 }
0x16a7   :  { %v3992_v32 = vmul.f32 0.015625, %v3946_v3 }
0x16a8   :  { %v3949_v48 = vpop.xlane.xlu1 %3948 }
0x16a9   :  { %v4008_v53 = vadd.f32 1e-05, %v3992_v32  ;;  %v3993_v58 = vmul.f32 0.015625, %v3949_v48 }
0x16aa   :  { %v3952_v37 = vpop.xlane.xlu0 %3951 }
0x16ab   :  { %11826 = vrsqrt.f32 %v4008_v53  ;;  %v4009_v47 = vadd.f32 1e-05, %v3993_v58  ;;  %v3994_v9 = vmul.f32 0.015625, %v3952_v37  ;;  %v17254_v37 = vld [vmem:[#allocation29_spill] sm:$0xff] }
0x16ad   :  { %11828 = vrsqrt.f32 %v4009_v47  ;;  %v4010_v54 = vadd.f32 1e-05, %v3994_v9  ;;  %v17255_v9 = vld [vmem:[#allocation27_spill] sm:$0xff] }
0x16ae   :  { %v3955_v6 = vpop.xlane.xlu1 %3954 }
0x16af   :  { %11830 = vrsqrt.f32 %v4010_v54  ;;  %v3995_v55 = vmul.f32 0.015625, %v3955_v6 }
0x16b1   :  { %v4011_v36 = vadd.f32 1e-05, %v3995_v55 }
0x16b2   :  { %v3958_v50 = vpop.xlane.xlu0 %3957  ;;  %v3961_v45 = vpop.xlane.xlu1 %3960 }
0x16b3   :  { %11832 = vrsqrt.f32 %v4011_v36  ;;  %v3996_v13 = vmul.f32 0.015625, %v3958_v50  ;;  %v3997_v61 = vmul.f32 0.015625, %v3961_v45 }
0x16b5   :  { %v11827_v0 = vpop.eup %11826  ;;  %v4012_v35 = vadd.f32 1e-05, %v3996_v13  ;;  %v4013_v18 = vadd.f32 1e-05, %v3997_v61 }
0x16b6   :  { %v4040_v20 = vmul.f32 %v11827_v0, %v14017_v5  ;;  %v3964_v24 = vpop.xlane.xlu0 %3963  ;;  %v3967_v10 = vpop.xlane.xlu1 %3966 }
0x16b7   :  { %v11829_v7 = vpop.eup %11828  ;;  %11834 = vrsqrt.f32 %v4012_v35  ;;  %v3998_v28 = vmul.f32 0.015625, %v3964_v24  ;;  %v3999_v23 = vmul.f32 0.015625, %v3967_v10 }
0x16b8   :  { %v4060_v49 = vmul.f32 %v14138_v38, %v4040_v20  ;;  %v4041_v44 = vmul.f32 %v11829_v7, %v14020_v56  ;;  %11836 = vrsqrt.f32 %v4013_v18 }
0x16b9   :  { %v11831_v2 = vpop.eup %11830  ;;  %v4014_v40 = vadd.f32 1e-05, %v3998_v28  ;;  %v4015_v52 = vadd.f32 1e-05, %v3999_v23 }
0x16ba   :  { %v4061_v5 = vmul.f32 %v14138_v38, %v4041_v44  ;;  %v11211_v26 = vpop.permute.xlu0 %11210  ;;  %v11216_v63 = vpop.permute.xlu1 %11215  ;;  %v4042_v25 = vmul.f32 %v11831_v2, %v14025_v46  ;;  %v4080_v43 = vadd.f32 %v14143_v12, %v4060_v49 }
0x16bb   :  { %11838 = vrsqrt.f32 %v4014_v40  ;;  %v11213_v16 = vunpack.i.h.bf16 %v11211_v26  ;;  %v11212_v29 = vunpack.i.l.bf16 %v11211_v26  ;;  %v11218_v36 = vunpack.i.h.bf16 %v11216_v63  ;;  %v17256_v40 = vld [vmem:[#allocation28_spill] sm:$0xff] }
0x16bc   :  { %v4081_v60 = vadd.f32 %v14143_v12, %v4061_v5  ;;  %11840 = vrsqrt.f32 %v4015_v52  ;;  %v4062_v32 = vmul.f32 %v14138_v38, %v4042_v25  ;;  %v11217_v50 = vunpack.i.l.bf16 %v11216_v63  ;;  %v17257_v5 = vld [vmem:[#allocation26_spill] sm:$0xff] }
0x16bd   :  { %v11833_v42 = vpop.eup %11832  ;;  %v3632_v47 = vsel %vm123_vm0, %v17254_v37, %v11213_v16  ;;  %v3631_v54 = vsel %vm123_vm0, %v17255_v9, %v11212_v29  ;;  %v3634_v52 = vsel %vm123_vm0, %v17256_v40, %v11218_v36  ;;  %v17259_v36 = vld [vmem:[#allocation31_spill] sm:$0xff]  ;;  %v17260_v40 = vld [vmem:[#allocation32_spill] sm:$0xff] }
0x16be   :  { %v11231_v56 = vpop.permute.xlu0 %11230  ;;  %v11221_v4 = vpop.permute.xlu1 %11220  ;;  %v4096_v8 = vpack.c.bf16 %v4081_v60, %v4080_v43  ;;  %v4043_v3 = vmul.f32 %v11833_v42, %v14034_v62  ;;  %v4082_v10 = vadd.f32 %v14143_v12, %v4062_v32  ;;  %v3633_v26 = vsel %vm123_vm0, %v17257_v5, %v11217_v50  ;;  %v17261_v5 = vld [vmem:[#allocation30_spill] sm:$0xff] }
0x16bf   :  { %v11233_v48 = vunpack.i.h.bf16 %v11231_v56  ;;  %v11232_v53 = vunpack.i.l.bf16 %v11231_v56  ;;  %v11223_v58 = vunpack.i.h.bf16 %v11221_v4  ;;  %v11222_v46 = vunpack.i.l.bf16 %v11221_v4 }
0x16c0   :  { %9769 = vmatmul.mubr.msk.bf16.vlgmr.msra.gmra.mrb[108].mxu0 %vm511_vm2, %v4096_v8  ;;  %v4063_v6 = vmul.f32 %v14138_v38, %v4043_v3 }
0x16c1   :  { %v11835_v55 = vpop.eup %11834  ;;  %v3640_v62 = vsel %vm2381_vm4, %v3632_v47, %v11223_v58  ;;  %v3639_v45 = vsel %vm2381_vm4, %v3631_v54, %v11222_v46  ;;  %4236 = vmatprep.mubr.bf16.mxu0 %v17215_v14 }
0x16c2   :  { %v11837_v13 = vpop.eup %11836  ;;  %v11241_v61 = vpop.permute.xlu0 %11240  ;;  %v3647_v35 = vsel %vm2390_vm3, %v3639_v45, %v11232_v53  ;;  %v3648_v18 = vsel %vm2390_vm3, %v3640_v62, %v11233_v48  ;;  %v4083_v20 = vadd.f32 %v14143_v12, %v4063_v6  ;;  %v4044_v24 = vmul.f32 %v11835_v55, %v14043_v21  ;;  %v17258_v6 = vld [vmem:[#allocation33_spill] sm:$0xff] }
0x16c3   :  { %v11226_v0 = vpop.permute.xlu1 %11225  ;;  %v3655_v23 = vpack.c.bf16 %v3648_v18, %v3647_v35  ;;  %v4045_v49 = vmul.f32 %v11837_v13, %v14038_v34  ;;  %v11243_v16 = vunpack.i.h.bf16 %v11241_v61  ;;  %v11242_v29 = vunpack.i.l.bf16 %v11241_v61 }
0x16c4   :  { %v11228_v7 = vunpack.i.h.bf16 %v11226_v0  ;;  %v11227_v28 = vunpack.i.l.bf16 %v11226_v0  ;;  %v4064_v44 = vmul.f32 %v14138_v38, %v4044_v24  ;;  %v4097_v25 = vpack.c.bf16 %v4083_v20, %v4082_v10 }
0x16c5   :  { %v11839_v2 = vpop.eup %11838  ;;  %10762 = vmatprep.mubr.msk.bf16.mxu1 %vm511_vm2, %v3655_v23  ;;  %v4065_v43 = vmul.f32 %v14138_v38, %v4045_v49  ;;  %v3636_v55 = vsel %vm123_vm0, %v17258_v6, %v11243_v16  ;;  %v3635_v50 = vsel %vm123_vm0, %v17259_v36, %v11242_v29  ;;  %v11472_v6 = vld [vmem:[%s17102_s12 + $0x78] sm:$0xff]   ;;  %v12339_v36 = vld [vmem:[%s17099_s14] sm:$0xf] }
0x16c6   :  { %v11251_v63 = vpop.permute.xlu0 %11250  ;;  %v11841_v60 = vpop.eup %11840  ;;  %v3641_v56 = vsel %vm2381_vm4, %v3633_v26, %v11227_v28  ;;  %v3642_v4 = vsel %vm2381_vm4, %v3634_v52, %v11228_v7  ;;  %v4084_v53 = vadd.f32 %v14143_v12, %v4064_v44  ;;  %v4046_v9 = vmul.f32 %v11839_v2, %v14054_v15 }
0x16c7   :  { %v11236_v21 = vpop.permute.xlu1 %11235  ;;  %v11253_v8 = vunpack.i.h.bf16 %v11251_v63  ;;  %v11252_v3 = vunpack.i.l.bf16 %v11251_v63  ;;  %v4085_v47 = vadd.f32 %v14143_v12, %v4065_v43  ;;  %v4047_v54 = vmul.f32 %v11841_v60, %v14049_v41 }
0x16c8   :  { %v11238_v34 = vunpack.i.h.bf16 %v11236_v21  ;;  %v11237_v42 = vunpack.i.l.bf16 %v11236_v21  ;;  %9770 = vmatmul.mubr.msk.bf16.gmra.mrb[112].mxu0 %vm511_vm2, %v4097_v25  ;;  %v4066_v20 = vmul.f32 %v14138_v38, %v4046_v9  ;;  %v11470_v9 = vld [vmem:[%s17102_s12 + $0x70] sm:$0xff]  }
0x16c9   :  { %4246 = vmatprep.mubr.bf16.mxu0 %v17215_v14  ;;  %v3643_v13 = vsel %vm2381_vm4, %v3635_v50, %v11252_v3  ;;  %v3644_v61 = vsel %vm2381_vm4, %v3636_v55, %v11253_v8  ;;  %v4098_v18 = vpack.c.bf16 %v4085_v47, %v4084_v53  ;;  %v4067_v24 = vmul.f32 %v14138_v38, %v4047_v54  ;;  %v11461_v8 = vld [vmem:[%s17102_s12 + $0x8] sm:$0xff]   ;;  %v11462_v3 = vld [vmem:[%s17102_s12 + $0x50] sm:$0xff]   ;;  %v11465_v53 = vld [vmem:[%s17102_s12 + $0x18] sm:$0xff]  }
0x16ca   :  { %v3649_v32 = vsel %vm2390_vm3, %v3641_v56, %v11237_v42  ;;  %v3650_v48 = vsel %vm2390_vm3, %v3642_v4, %v11238_v34  ;;  %v11261_v58 = vpop.permute.xlu0 %11260  ;;  %v4086_v44 = vadd.f32 %v14143_v12, %v4066_v20  ;;  %v11458_v42 = vld [vmem:[%s17102_s12 + $0x40] sm:$0xff]   ;;  %v11460_v4 = vld [vmem:[%s17102_s12 + $0x48] sm:$0xff]   ;;  %v11471_v54 = vld [vmem:[%s17102_s12 + $0x30] sm:$0xff]  }
0x16cb   :  { %v11246_v46 = vpop.permute.xlu1 %11245  ;;  %v3656_v37 = vpack.c.bf16 %v3650_v48, %v3649_v32  ;;  %v11263_v62 = vunpack.i.h.bf16 %v11261_v58  ;;  %v11262_v45 = vunpack.i.l.bf16 %v11261_v58  ;;  %v4087_v2 = vadd.f32 %v14143_v12, %v4067_v24  ;;  %v11459_v56 = vld [vmem:[%s17102_s12] sm:$0xff]   ;;  %10180 = vmatprep.subr.bf16.mxu1 %v11458_v42  ;;  %v11463_v32 = vld [vmem:[%s17102_s12 + $0x10] sm:$0xff]   ;;  %v11464_v48 = vld [vmem:[%s17102_s12 + $0x58] sm:$0xff]  }
0x16cc   :  { %v11248_v10 = vunpack.i.h.bf16 %v11246_v46  ;;  %v11247_v7 = vunpack.i.l.bf16 %v11246_v46  ;;  %10181 = vmatpush3.bf16.msra.mxu1 %v11459_v56  ;;  %v11466_v58 = vld [vmem:[%s17102_s12 + $0x60] sm:$0xff]   ;;  %v11469_v47 = vld [vmem:[%s17102_s12 + $0x28] sm:$0xff]   ;;  %v11473_v55 = vld [vmem:[%s17102_s12 + $0x38] sm:$0xff]  }
0x16cd   :  { %10763 = vmatmul.mubr.msk.bf16.gmra.mrb[88].mxu1 %vm511_vm2, %v3656_v37  ;;  %v3651_v0 = vsel %vm2390_vm3, %v3643_v13, %v11262_v45  ;;  %v3652_v15 = vsel %vm2390_vm3, %v3644_v61, %v11263_v62  ;;  %v4099_v34 = vpack.c.bf16 %v4087_v2, %v4086_v44  ;;  %10182 = vmatprep.subr.bf16.mxu1 %v11460_v4  ;;  %v11467_v46 = vld [vmem:[%s17102_s12 + $0x20] sm:$0xff]   ;;  %v11468_v37 = vld [vmem:[%s17102_s12 + $0x68] sm:$0xff]   ;;  %v17262_v50 = vld [vmem:[#allocation12_spill] sm:$0xff] }
0x16ce   :  { %v3657_v41 = vpack.c.bf16 %v3652_v15, %v3651_v0  ;;  %v3638_v52 = vsel %vm123_vm0, %v17260_v40, %v11248_v10  ;;  %v3637_v26 = vsel %vm123_vm0, %v17261_v5, %v11247_v7  ;;  %v4115_v62 = vrot.slane %v12339_v36, %v17262_v50  ;;  %v17263_v13 = vld [vmem:[#allocation24_spill] sm:$0xff] }
0x16cf   :  { %v11256_v35 = vpop.permute.xlu1 %11255  ;;  %v17264_v61 = vrot.slane %v17263_v13, %v17253_v22 }
0x16d0   :  { %v11258_v28 = vunpack.i.h.bf16 %v11256_v35  ;;  %v11257_v23 = vunpack.i.l.bf16 %v11256_v35  ;;  %10766 = vmatprep.mubr.msk.bf16.mxu1 %vm511_vm2, %v3657_v41  ;;  %9771 = vmatmul.mubr.msk.bf16.gmra.mrb[116].mxu0 %vm511_vm2, %v4098_v18  ;;  %v14265_v45 = vrot.slane %v4115_v62, %v17262_v50 }
0x16d1   :  { %4256 = vmatprep.mubr.bf16.mxu0 %v17215_v14  ;;  %10183 = vmatpush3.bf16.msra.mxu1 %v11461_v8  ;;  %v14271_v0 = vrot.slane %v17264_v61, %v17262_v50 }
0x16d2   :  { %v3645_v25 = vsel %vm2381_vm4, %v3637_v26, %v11257_v23  ;;  %v3646_v43 = vsel %vm2381_vm4, %v3638_v52, %v11258_v28  ;;  %10184 = vmatprep.subr.bf16.mxu1 %v11462_v3 }
0x16d3   :  { %v11266_v49 = vpop.permute.xlu1 %11265  ;;  %17265 = vst [vmem:[#allocation2_spill] sm:$0xff] %v14271_v0 }
0x16d4   :  { %v11268_v63 = vunpack.i.h.bf16 %v11266_v49  ;;  %v11267_v21 = vunpack.i.l.bf16 %v11266_v49 }
0x16d5   :  { %10185 = vmatpush3.bf16.msra.mxu1 %v11463_v32 }
0x16d6   :  { %v3653_v60 = vsel %vm2390_vm3, %v3645_v25, %v11267_v21  ;;  %v3654_v16 = vsel %vm2390_vm3, %v3646_v43, %v11268_v63  ;;  %10186 = vmatprep.subr.bf16.mxu1 %v11464_v48 }
0x16d7   :  { %v3658_v29 = vpack.c.bf16 %v3654_v16, %v3653_v60 }
0x16d8   :  { %9772 = vmatmul.mubr.msk.bf16.gmra.mrb[120].mxu0 %vm511_vm2, %v4099_v34 }
0x16d9   :  { %10767 = vmatmul.mubr.msk.bf16.gmra.mrb[92].mxu1 %vm511_vm2, %v3658_v29  ;;  %4266 = vmatprep.mubr.bf16.mxu0 %v17215_v14 }
0x16da   :  { %10187 = vmatpush3.bf16.msra.mxu1 %v11465_v53 }
0x16db   :  { %10188 = vmatprep.subr.bf16.mxu1 %v11466_v58 }
0x16de   :  { %10189 = vmatpush3.bf16.msra.mxu1 %v11467_v46 }
0x16df   :  { %10190 = vmatprep.subr.bf16.mxu1 %v11468_v37 }
0x16e2   :  { %10191 = vmatpush3.bf16.msra.mxu1 %v11469_v47 }
0x16e3   :  { %10192 = vmatprep.subr.bf16.mxu1 %v11470_v9 }
0x16e6   :  { %10193 = vmatpush3.bf16.msra.mxu1 %v11471_v54 }
0x16e7   :  { %10194 = vmatprep.subr.bf16.mxu1 %v11472_v6 }
0x16ea   :  { %10195 = vmatpush3.bf16.msra.mxu1 %v11473_v55 }
0x1793   :  { %v4228_v15 = vpop.f32.mrb[108].mxu0 }
0x1794   :  { %v14274_v35 = vadd.f32 %v4228_v15, %v14265_v45  ;;  %v4230_v41 = vpop.f32.mrb[109].mxu0 }
0x1795   :  { %v14277_v18 = vadd.f32 %v4230_v41, %v14271_v0  ;;  %v4232_v20 = vpop.f32.mrb[110].mxu0 }
0x1796   :  { %v4307_v24 = vmul.f32 %v14274_v35, %v14274_v35  ;;  %v14282_v10 = vadd.f32 %v4232_v20, %v14265_v45  ;;  %v4234_v7 = vpop.f32.mrb[111].mxu0  ;;  %v17266_v20 = vld [vmem:[#allocation15_spill] sm:$0xff] }
0x1797   :  { %v4308_v28 = vmul.f32 %v14277_v18, %v14277_v18  ;;  %v14287_v23 = vadd.f32 %v4234_v7, %v14271_v0 }
0x1798   :  { %v4339_v49 = vmul.f32 %v4307_v24, %v14274_v35  ;;  %v4309_v44 = vmul.f32 %v14282_v10, %v14282_v10 }
0x1799   :  { %v4340_v2 = vmul.f32 %v4308_v28, %v14277_v18  ;;  %v4310_v40 = vmul.f32 %v14287_v23, %v14287_v23 }
0x179a   :  { %v4371_v52 = vmul.f32 0.044715, %v4339_v49  ;;  %v4341_v5 = vmul.f32 %v4309_v44, %v14282_v10  ;;  %v17267_v44 = vld [vmem:[#allocation13_spill] sm:$0xff] }
0x179b   :  { %v4372_v26 = vmul.f32 0.044715, %v4340_v2  ;;  %v4342_v63 = vmul.f32 %v4310_v40, %v14287_v23  ;;  %v4238_v21 = vpop.f32.mrb[112].mxu0 }
0x179c   :  { %v4403_v25 = vadd.f32 %v4371_v52, %v14274_v35  ;;  %v4373_v43 = vmul.f32 0.044715, %v4341_v5  ;;  %v14299_v60 = vadd.f32 %v4238_v21, %v14265_v45  ;;  %v4240_v16 = vpop.f32.mrb[113].mxu0 }
0x179d   :  { %v4404_v29 = vadd.f32 %v4372_v26, %v14277_v18  ;;  %v4374_v34 = vmul.f32 0.044715, %v4342_v63  ;;  %v14303_v42 = vadd.f32 %v4240_v16, %v14271_v0  ;;  %v4242_v56 = vpop.f32.mrb[114].mxu0  ;;  %v17268_v63 = vld [vmem:[#allocation16_spill] sm:$0xff] }
0x179e   :  { %v4435_v4 = vmul.f32 0.7978846, %v4403_v25  ;;  %v4405_v8 = vadd.f32 %v4373_v43, %v14282_v10  ;;  %v4311_v3 = vmul.f32 %v14299_v60, %v14299_v60  ;;  %v14309_v32 = vadd.f32 %v4242_v56, %v14265_v45  ;;  %v4244_v48 = vpop.f32.mrb[115].mxu0 }
0x179f   :  { %v4436_v53 = vmul.f32 0.7978846, %v4404_v29  ;;  %v4406_v58 = vadd.f32 %v4374_v34, %v14287_v23  ;;  %v4312_v46 = vmul.f32 %v14303_v42, %v14303_v42  ;;  %v14315_v37 = vadd.f32 %v4244_v48, %v14271_v0  ;;  %v17269_v34 = vld [vmem:[#allocation14_spill] sm:$0xff] }
0x17a0   :  { %v10764_v47 = vpop.f32.mrb[88].mxu1  ;;  %11842 = vtanh.f32 %v4435_v4  ;;  %v4437_v9 = vmul.f32 0.7978846, %v4405_v8  ;;  %v4343_v54 = vmul.f32 %v4311_v3, %v14299_v60  ;;  %v4313_v6 = vmul.f32 %v14309_v32, %v14309_v32 }
0x17a1   :  { %v3781_v55 = vpop.f32.mrb[89].mxu1  ;;  %11844 = vtanh.f32 %v4436_v53  ;;  %v4438_v36 = vmul.f32 0.7978846, %v4406_v58  ;;  %v4344_v62 = vmul.f32 %v4312_v46, %v14303_v42  ;;  %v4314_v13 = vmul.f32 %v14315_v37, %v14315_v37 }
0x17a2   :  { %v10765_v61 = vpop.f32.mrb[90].mxu1  ;;  %11846 = vtanh.f32 %v4437_v9  ;;  %v4375_v15 = vmul.f32 0.044715, %v4343_v54  ;;  %v4345_v41 = vmul.f32 %v4313_v6, %v14309_v32  ;;  %v3822_v24 = vadd.f32 %v10764_v47, %v17266_v20 }
0x17a3   :  { %v3784_v7 = vpop.f32.mrb[91].mxu1  ;;  %11848 = vtanh.f32 %v4438_v36  ;;  %v4376_v28 = vmul.f32 0.044715, %v4344_v62  ;;  %v4346_v49 = vmul.f32 %v4314_v13, %v14315_v37  ;;  %v3820_v2 = vadd.f32 %v3781_v55, %v17267_v44  ;;  %v4248_v40 = vpop.f32.mrb[116].mxu0 }
0x17a4   :  { %v4407_v52 = vadd.f32 %v4375_v15, %v14299_v60  ;;  %v4377_v5 = vmul.f32 0.044715, %v4345_v41  ;;  %v14329_v26 = vadd.f32 %v13966_v31, %v3822_v24  ;;  %v3823_v21 = vadd.f32 %v10765_v61, %v17268_v63  ;;  %v4250_v25 = vpop.f32.mrb[117].mxu0 }
0x17a5   :  { %v4408_v43 = vadd.f32 %v4376_v28, %v14303_v42  ;;  %v4378_v16 = vmul.f32 0.044715, %v4346_v49  ;;  %v14334_v29 = vadd.f32 %v13966_v31, %v3820_v2  ;;  %v3821_v56 = vadd.f32 %v3784_v7, %v17269_v34  ;;  %v4252_v4 = vpop.f32.mrb[118].mxu0 }
0x17a6   :  { %v4439_v8 = vmul.f32 0.7978846, %v4407_v52  ;;  %v4409_v3 = vadd.f32 %v4377_v5, %v14309_v32  ;;  %v14339_v48 = vadd.f32 %v13966_v31, %v3823_v21  ;;  %v14342_v53 = vadd.f32 %v4248_v40, %v14265_v45  ;;  %v4254_v58 = vpop.f32.mrb[119].mxu0 }
0x17a7   :  { %v4440_v46 = vmul.f32 0.7978846, %v4408_v43  ;;  %v4410_v47 = vadd.f32 %v4378_v16, %v14315_v37  ;;  %v14346_v9 = vadd.f32 %v13966_v31, %v3821_v56  ;;  %v14349_v54 = vadd.f32 %v4250_v25, %v14271_v0 }
0x17a8   :  { %11850 = vtanh.f32 %v4439_v8  ;;  %v4441_v6 = vmul.f32 0.7978846, %v4409_v3  ;;  %v4315_v55 = vmul.f32 %v14342_v53, %v14342_v53  ;;  %v14354_v36 = vadd.f32 %v4252_v4, %v14265_v45 }
0x17a9   :  { %11852 = vtanh.f32 %v4440_v46  ;;  %v4442_v62 = vmul.f32 0.7978846, %v4410_v47  ;;  %v4316_v13 = vmul.f32 %v14349_v54, %v14349_v54  ;;  %v14359_v61 = vadd.f32 %v4254_v58, %v14271_v0 }
0x17aa   :  { %v11843_v15 = vpop.eup %11842  ;;  %11854 = vtanh.f32 %v4441_v6  ;;  %v4347_v41 = vmul.f32 %v4315_v55, %v14342_v53  ;;  %v4317_v20 = vmul.f32 %v14354_v36, %v14354_v36  ;;  %v3872_v24 = vsel %vm511_vm2, %v14334_v29, 0.0  ;;  %v17270_v55 = vld [vmem:[#allocation19_spill] sm:$0xff] }
0x17ab   :  { %v14366_v7 = vpop.eup %11844  ;;  %v4499_v28 = vadd.f32 1.0, %v11843_v15  ;;  %11856 = vtanh.f32 %v4442_v62  ;;  %v4348_v49 = vmul.f32 %v4316_v13, %v14349_v54  ;;  %v4318_v44 = vmul.f32 %v14359_v61, %v14359_v61  ;;  %3873 = vadd.xlane.f32.xlu0 %v3872_v24  ;;  %v4258_v40 = vpop.f32.mrb[120].mxu0 }
0x17ac   :  { %v10768_v2 = vpop.f32.mrb[92].mxu1  ;;  %v11847_v52 = vpop.eup %11846  ;;  %v4379_v5 = vmul.f32 0.044715, %v4347_v41  ;;  %v4349_v63 = vmul.f32 %v4317_v20, %v14354_v36  ;;  %v3875_v21 = vsel %vm511_vm2, %v14346_v9, 0.0  ;;  %v3878_v25 = vsel %vm511_vm2, %v14329_v26, 0.0 }
0x17ad   :  { %v3797_v43 = vpop.f32.mrb[93].mxu1  ;;  %v4260_v16 = vpop.f32.mrb[121].mxu0  ;;  %v4531_v56 = vmul.f32 0.5, %v4499_v28  ;;  %v4501_v4 = vadd.f32 1.0, %v11847_v52  ;;  %v4380_v8 = vmul.f32 0.044715, %v4348_v49  ;;  %v4350_v3 = vmul.f32 %v4318_v44, %v14359_v61  ;;  %3876 = vadd.xlane.f32.xlu1 %v3875_v21 }
0x17ae   :  { %v11849_v34 = vpop.eup %11848  ;;  %v10769_v58 = vpop.f32.mrb[94].mxu1  ;;  %v4411_v47 = vadd.f32 %v4379_v5, %v14342_v53  ;;  %v4381_v6 = vmul.f32 0.044715, %v4349_v63  ;;  %v3826_v62 = vadd.f32 %v10768_v2, %v17270_v55  ;;  %v14380_v13 = vadd.f32 %v4258_v40, %v14265_v45  ;;  %v17271_v21 = vld [vmem:[#allocation17_spill] sm:$0xff] }
0x17af   :  { %v4262_v46 = vpop.f32.mrb[122].mxu0  ;;  %v3800_v41 = vpop.f32.mrb[95].mxu1  ;;  %v14383_v20 = vmul.f32 %v4531_v56, %v14274_v35  ;;  %v4533_v24 = vmul.f32 0.5, %v4501_v4  ;;  %v4412_v28 = vadd.f32 %v4380_v8, %v14349_v54  ;;  %v4382_v49 = vmul.f32 0.044715, %v4350_v3  ;;  %3879 = vadd.xlane.f32.xlu0 %v3878_v25 }
0x17b0   :  { %v4264_v15 = vpop.f32.mrb[123].mxu0  ;;  %v4443_v44 = vmul.f32 0.7978846, %v4411_v47  ;;  %v4413_v52 = vadd.f32 %v4381_v6, %v14354_v36  ;;  %v14388_v5 = vadd.f32 %v13966_v31, %v3826_v62  ;;  %v4319_v2 = vmul.f32 %v14380_v13, %v14380_v13 }
0x17b1   :  { %v14393_v40 = vmul.f32 %v4533_v24, %v14282_v10  ;;  %v4444_v63 = vmul.f32 0.7978846, %v4412_v28  ;;  %v4414_v35 = vadd.f32 %v4382_v49, %v14359_v61  ;;  %v3824_v56 = vadd.f32 %v3797_v43, %v17271_v21  ;;  %v17272_v28 = vld [vmem:[#allocation20_spill] sm:$0xff] }
0x17b2   :  { %v11851_v4 = vpop.eup %11850  ;;  %11858 = vtanh.f32 %v4443_v44  ;;  %v4445_v25 = vmul.f32 0.7978846, %v4413_v52  ;;  %v4351_v8 = vmul.f32 %v4319_v2, %v14380_v13  ;;  %v14399_v3 = vadd.f32 %v4260_v16, %v14271_v0 }
0x17b3   :  { %v11853_v47 = vpop.eup %11852  ;;  %11860 = vtanh.f32 %v4444_v63  ;;  %v4446_v10 = vmul.f32 0.7978846, %v4414_v35  ;;  %v14404_v55 = vadd.f32 %v13966_v31, %v3824_v56  ;;  %v3827_v49 = vadd.f32 %v10769_v58, %v17272_v28  ;;  %v17273_v58 = vld [vmem:[#allocation18_spill] sm:$0xff] }
0x17b4   :  { %v11855_v62 = vpop.eup %11854  ;;  %11862 = vtanh.f32 %v4445_v25  ;;  %v4383_v43 = vmul.f32 0.044715, %v4351_v8  ;;  %v4320_v24 = vmul.f32 %v14399_v3, %v14399_v3  ;;  %v14410_v16 = vadd.f32 %v4262_v46, %v14265_v45 }
0x17b5   :  { %v11857_v44 = vpop.eup %11856  ;;  %11864 = vtanh.f32 %v4446_v10  ;;  %v14413_v52 = vadd.f32 %v4264_v15, %v14271_v0  ;;  %v3881_v2 = vsel %vm511_vm2, %v14339_v48, 0.0  ;;  %v14420_v21 = vadd.f32 %v13966_v31, %v3827_v49 }
0x17b6   :  { %v4415_v63 = vadd.f32 %v4383_v43, %v14380_v13  ;;  %v4352_v35 = vmul.f32 %v4320_v24, %v14399_v3  ;;  %3882 = vadd.xlane.f32.xlu0 %v3881_v2  ;;  %v3825_v56 = vadd.f32 %v3800_v41, %v17273_v58  ;;  %v4321_v46 = vmul.f32 %v14410_v16, %v14410_v16 }
0x17b7   :  { %v4322_v15 = vmul.f32 %v14413_v52, %v14413_v52  ;;  %v3884_v25 = vsel %vm511_vm2, %v14404_v55, 0.0  ;;  %v4500_v8 = vadd.f32 1.0, %v14366_v7  ;;  %v4502_v28 = vadd.f32 1.0, %v11849_v34 }
0x17b8   :  { %v4447_v10 = vmul.f32 0.7978846, %v4415_v63  ;;  %v4384_v43 = vmul.f32 0.044715, %v4352_v35  ;;  %v14431_v24 = vadd.f32 %v13966_v31, %v3825_v56  ;;  %v4353_v49 = vmul.f32 %v4321_v46, %v14410_v16 }
0x17b9   :  { %v4354_v41 = vmul.f32 %v4322_v15, %v14413_v52  ;;  %v4532_v2 = vmul.f32 0.5, %v4500_v8  ;;  %v3890_v58 = vsel %vm511_vm2, %v14388_v5, 0.0  ;;  %v4534_v63 = vmul.f32 0.5, %v4502_v28 }
0x17ba   :  { %11866 = vtanh.f32 %v4447_v10  ;;  %v4416_v6 = vadd.f32 %v4384_v43, %v14399_v3  ;;  %3885 = vadd.xlane.f32.xlu0 %v3884_v25  ;;  %v3887_v7 = vsel %vm511_vm2, %v14431_v24, 0.0  ;;  %v4385_v35 = vmul.f32 0.044715, %v4353_v49 }
0x17bb   :  { %v4386_v31 = vmul.f32 0.044715, %v4354_v41  ;;  %3888 = vadd.xlane.f32.xlu1 %v3887_v7  ;;  %v4564_v34 = vmul.f32 %v4532_v2, %v14277_v18  ;;  %v3893_v56 = vsel %vm511_vm2, %v14420_v21, 0.0  ;;  %v4566_v8 = vmul.f32 %v4534_v63, %v14287_v23 }
0x17bc   :  { %v11859_v46 = vpop.eup %11858  ;;  %v4448_v15 = vmul.f32 0.7978846, %v4416_v6  ;;  %v4504_v10 = vadd.f32 1.0, %v11853_v47  ;;  %v4506_v22 = vadd.f32 1.0, %v11857_v44  ;;  %v4417_v25 = vadd.f32 %v4385_v35, %v14410_v16 }
0x17bd   :  { %v11861_v43 = vpop.eup %11860  ;;  %v4418_v1 = vadd.f32 %v4386_v31, %v14413_v52  ;;  %v4503_v28 = vadd.f32 1.0, %v11851_v4  ;;  %v4505_v49 = vadd.f32 1.0, %v11855_v62  ;;  %v4596_v7 = vpack.c.bf16 %v4566_v8, %v4564_v34 }
0x17be   :  { %v11863_v41 = vpop.eup %11862  ;;  %11868 = vtanh.f32 %v4448_v15  ;;  %3891 = vadd.xlane.f32.xlu0 %v3890_v58  ;;  %v4536_v18 = vmul.f32 0.5, %v4504_v10  ;;  %v4538_v2 = vmul.f32 0.5, %v4506_v22  ;;  %v4449_v0 = vmul.f32 0.7978846, %v4417_v25 }
0x17bf   :  { %v11865_v39 = vpop.eup %11864  ;;  %v4450_v6 = vmul.f32 0.7978846, %v4418_v1  ;;  %3894 = vadd.xlane.f32.xlu1 %v3893_v56  ;;  %v4535_v23 = vmul.f32 0.5, %v4503_v28  ;;  %v4537_v47 = vmul.f32 0.5, %v4505_v49  ;;  %4771 = vmatprep.mubr.bf16.mxu1 %v4596_v7  ;;  %v4508_v35 = vadd.f32 1.0, %v11861_v43 }
0x17c0   :  { %v4568_v44 = vmul.f32 %v4536_v18, %v14303_v42  ;;  %v4570_v63 = vmul.f32 %v4538_v2, %v14315_v37  ;;  %v4510_v4 = vadd.f32 1.0, %v11865_v39  ;;  %11870 = vtanh.f32 %v4449_v0 }
0x17c1   :  { %v17274_v62 = vpack.c.bf16 %v14393_v40, %v14383_v20  ;;  %v4567_v22 = vmul.f32 %v4535_v23, %v14299_v60  ;;  %v4569_v58 = vmul.f32 %v4537_v47, %v14309_v32  ;;  %v4507_v1 = vadd.f32 1.0, %v11859_v46 }
0x17c2   :  { %11872 = vtanh.f32 %v4450_v6  ;;  %v4598_v31 = vpack.c.bf16 %v4570_v63, %v4568_v44  ;;  %v4540_v34 = vmul.f32 0.5, %v4508_v35  ;;  %v4542_v56 = vmul.f32 0.5, %v4510_v4 }
0x17c3   :  { %4772 = vmatmul.mubr.bf16.vlgmr.msra.gmra.mrb[96].mxu1 %v17274_v62  ;;  %v4597_v15 = vpack.c.bf16 %v4569_v58, %v4567_v22  ;;  %v4509_v42 = vadd.f32 1.0, %v11863_v41  ;;  %v4539_v8 = vmul.f32 0.5, %v4507_v1  ;;  %v14462_v63 = vsub.s32 5, %v17229_v17 }
0x17c4   :  { %v11867_v37 = vpop.eup %11866  ;;  %4779 = vmatprep.mubr.bf16.mxu1 %v4598_v31  ;;  %v4572_v39 = vmul.f32 %v4540_v34, %v14349_v54  ;;  %v4574_v0 = vmul.f32 %v4542_v56, %v14359_v61 }
0x17c5   :  { %v4541_v20 = vmul.f32 0.5, %v4509_v42  ;;  %v4571_v60 = vmul.f32 %v4539_v8, %v14342_v53  ;;  %v4511_v10 = vadd.f32 1.0, %v11867_v37  ;;  %17275 = vst [vmem:[#allocation4_spill] sm:$0xff] %v14462_v63 }
0x17c6   :  { %v4600_v40 = vpack.c.bf16 %v4574_v0, %v4572_v39 }
0x17c7   :  { %v4573_v32 = vmul.f32 %v4541_v20, %v14354_v36  ;;  %v4543_v7 = vmul.f32 0.5, %v4511_v10 }
0x17c8   :  { %v11869_v46 = vpop.eup %11868 }
0x17c9   :  { %v4599_v43 = vpack.c.bf16 %v4573_v32, %v4571_v60  ;;  %v4512_v25 = vadd.f32 1.0, %v11869_v46  ;;  %v4575_v6 = vmul.f32 %v4543_v7, %v14380_v13  ;;  %v12340_v13 = vld [vmem:[%s17098_s13] sm:$0x3f] }
0x17ca   :  { %v11871_v28 = vpop.eup %11870 }
0x17cb   :  { %4780 = vmatmul.mubr.bf16.gmra.mrb[100].mxu1 %v4597_v15  ;;  %v4513_v41 = vadd.f32 1.0, %v11871_v28  ;;  %v4544_v54 = vmul.f32 0.5, %v4512_v25 }
0x17cc   :  { %4787 = vmatprep.mubr.bf16.mxu1 %v4600_v40  ;;  %v11873_v49 = vpop.eup %11872 }
0x17cd   :  { %v4514_v18 = vadd.f32 1.0, %v11873_v49  ;;  %v4545_v2 = vmul.f32 0.5, %v4513_v41  ;;  %v4576_v36 = vmul.f32 %v4544_v54, %v14399_v3 }
0x17cf   :  { %v4546_v61 = vmul.f32 0.5, %v4514_v18  ;;  %v4577_v53 = vmul.f32 %v4545_v2, %v14410_v16  ;;  %v14468_v16 = vrot.slane %v12340_v13, %v14462_v63 }
0x17d1   :  { %v4578_v23 = vmul.f32 %v4546_v61, %v14413_v52  ;;  %v4601_v47 = vpack.c.bf16 %v4577_v53, %v4575_v6 }
0x17d3   :  { %4788 = vmatmul.mubr.bf16.gmra.mrb[104].mxu1 %v4599_v43  ;;  %v4602_v44 = vpack.c.bf16 %v4578_v23, %v4576_v36 }
0x17d5   :  { %4795 = vmatprep.mubr.bf16.mxu1 %v4602_v44 }
0x17db   :  { %4796 = vmatmul.mubr.bf16.gmra.mrb[108].mxu1 %v4601_v47 }
0x1838   :  { %v3874_v15 = vpop.xlane.xlu0 %3873 }
0x1839   :  { %v3904_v2 = vmul.f32 0.015625, %v3874_v15 }
0x183a   :  { %v3877_v61 = vpop.xlane.xlu1 %3876 }
0x183b   :  { %v3905_v47 = vmul.f32 0.015625, %v3877_v61 }
0x183c   :  { %v3880_v60 = vpop.xlane.xlu0 %3879 }
0x1843   :  { %v3883_v7 = vpop.xlane.xlu0 %3882 }
0x1896   :  { %v10196_v35 = vpop.f32.mrb[96].mxu1 }
0x1897   :  { %v10197_v4 = vpop.f32.mrb[97].mxu1 }
0x1898   :  { %v10198_v62 = vadd.f32 %v10197_v4, %v10196_v35  ;;  %v10199_v3 = vpop.f32.mrb[98].mxu1  ;;  %v14507_v4 = vsub.f32 %v14334_v29, %v3904_v2 }
0x1899   :  { %v10200_v22 = vpop.f32.mrb[99].mxu1 }
0x189a   :  { %v4836_v52 = vadd.f32 %v10198_v62, %v13971_v59  ;;  %v10201_v58 = vadd.f32 %v10200_v22, %v10199_v3  ;;  %v3906_v62 = vmul.f32 0.015625, %v3880_v60  ;;  %v3936_v15 = vmul.f32 %v14507_v4, %v14507_v4 }
0x189c   :  { %v14472_v1 = vadd.f32 %v14468_v16, %v4836_v52  ;;  %v4837_v17 = vadd.f32 %v10201_v58, %v13979_v19  ;;  %v3889_v52 = vpop.xlane.xlu1 %3888  ;;  %v14511_v58 = vsub.f32 %v14346_v9, %v3905_v47 }
0x189e   :  { %17276 = vst [vmem:[#allocation5_spill] sm:$0xff] %v14472_v1  ;;  %v14476_v31 = vadd.f32 %v14468_v16, %v4837_v17  ;;  %v10202_v34 = vpop.f32.mrb[100].mxu1  ;;  %v5001_v56 = vsel %vm511_vm2, %v14472_v1, 0.0  ;;  %v3907_v17 = vmul.f32 0.015625, %v3883_v7 }
0x189f   :  { %v10203_v42 = vpop.f32.mrb[101].mxu1  ;;  %5002 = vadd.xlane.f32.xlu0 %v5001_v56 }
0x18a0   :  { %17277 = vst [vmem:[#allocation7_spill] sm:$0xff] %v14476_v31  ;;  %v10204_v8 = vadd.f32 %v10203_v42, %v10202_v34  ;;  %v10205_v37 = vpop.f32.mrb[102].mxu1  ;;  %v5004_v59 = vsel %vm511_vm2, %v14476_v31, 0.0  ;;  %v14520_v42 = vsub.f32 %v14329_v26, %v3906_v62  ;;  %v11477_v62 = vld [vmem:[%s17095_s9 + $0x50] ss:$8 sps:$4 sm:$0xff]  }
0x18a1   :  { %v10206_v39 = vpop.f32.mrb[103].mxu1  ;;  %5005 = vadd.xlane.f32.xlu1 %v5004_v59 }
0x18a2   :  { %v4838_v0 = vadd.f32 %v10204_v8, %v13975_v11  ;;  %v10207_v19 = vadd.f32 %v10206_v39, %v10205_v37  ;;  %v14528_v39 = vsub.f32 %v14339_v48, %v3907_v17  ;;  %v11483_v17 = vld [vmem:[%s17095_s9 + $0x70] ss:$8 sps:$4 sm:$0xff]  }
0x18a4   :  { %v14484_v20 = vadd.f32 %v14468_v16, %v4838_v0  ;;  %v4839_v40 = vadd.f32 %v10207_v19, %v13986_v30  ;;  %v3909_v0 = vmul.f32 0.015625, %v3889_v52  ;;  %v3937_v19 = vmul.f32 %v14511_v58, %v14511_v58  ;;  %v11485_v52 = vld [vmem:[%s17095_s9 + $0x74] ss:$8 sps:$4 sm:$0xff]  }
0x18a6   :  { %17278 = vst [vmem:[#allocation6_spill] sm:$0xff] %v14484_v20  ;;  %v14488_v32 = vadd.f32 %v14468_v16, %v4839_v40  ;;  %v10208_v46 = vpop.f32.mrb[104].mxu1  ;;  %v5007_v10 = vsel %vm511_vm2, %v14484_v20, 0.0  ;;  %v3895_v40 = vpop.xlane.xlu1 %3894 }
0x18a7   :  { %v10209_v43 = vpop.f32.mrb[105].mxu1  ;;  %5008 = vadd.xlane.f32.xlu0 %v5007_v10  ;;  %v3968_v10 = vsel %vm511_vm2, %v3936_v15, 0.0 }
0x18a8   :  { %17279 = vst [vmem:[#allocation8_spill] sm:$0xff] %v14488_v32  ;;  %v10210_v25 = vadd.f32 %v10209_v43, %v10208_v46  ;;  %v10211_v28 = vpop.f32.mrb[106].mxu1  ;;  %v5010_v11 = vsel %vm511_vm2, %v14488_v32, 0.0  ;;  %v3938_v43 = vmul.f32 %v14520_v42, %v14520_v42 }
0x18a9   :  { %v10212_v49 = vpop.f32.mrb[107].mxu1  ;;  %5011 = vadd.xlane.f32.xlu1 %v5010_v11  ;;  %v3971_v11 = vsel %vm511_vm2, %v3937_v19, 0.0 }
0x18aa   :  { %v4840_v41 = vadd.f32 %v10210_v25, %v13995_v33  ;;  %v10213_v30 = vadd.f32 %v10212_v49, %v10211_v28  ;;  %v14541_v25 = vsub.f32 %v14431_v24, %v3909_v0  ;;  %v3911_v28 = vmul.f32 0.015625, %v3895_v40 }
0x18ab   :  { %v3939_v49 = vmul.f32 %v14528_v39, %v14528_v39 }
0x18ac   :  { %v14496_v18 = vadd.f32 %v14468_v16, %v4840_v41  ;;  %v4841_v54 = vadd.f32 %v10213_v30, %v13998_v57  ;;  %v3886_v57 = vpop.xlane.xlu0 %3885  ;;  %v3974_v30 = vsel %vm511_vm2, %v3938_v43, 0.0  ;;  %v3941_v61 = vmul.f32 %v14541_v25, %v14541_v25 }
0x18ad   :  { %v3908_v8 = vmul.f32 0.015625, %v3886_v57  ;;  %v3977_v2 = vsel %vm511_vm2, %v3939_v49, 0.0  ;;  %v11476_v57 = vld [vmem:[%s17095_s9 + $0x44] ss:$8 sps:$4 sm:$0xff]  }
0x18ae   :  { %17280 = vst [vmem:[#allocation11_spill] sm:$0xff] %v14496_v18  ;;  %v14500_v6 = vadd.f32 %v14468_v16, %v4841_v54  ;;  %v10214_v53 = vpop.f32.mrb[108].mxu1  ;;  %v5013_v36 = vsel %vm511_vm2, %v14496_v18, 0.0  ;;  %v14553_v54 = vsub.f32 %v14420_v21, %v3911_v28  ;;  %4944 = vmatprep.subr.bf16.mxu0 %v11476_v57 }
0x18af   :  { %v10215_v23 = vpop.f32.mrb[109].mxu1  ;;  %5014 = vadd.xlane.f32.xlu0 %v5013_v36  ;;  %v14535_v60 = vsub.f32 %v14404_v55, %v3908_v8 }
0x18b0   :  { %17281 = vst [vmem:[#allocation10_spill] sm:$0xff] %v14500_v6  ;;  %v10216_v33 = vadd.f32 %v10215_v23, %v10214_v53  ;;  %v10217_v44 = vpop.f32.mrb[110].mxu1  ;;  %v5016_v35 = vsel %vm511_vm2, %v14500_v6, 0.0  ;;  %v3892_v59 = vpop.xlane.xlu0 %3891  ;;  %v3983_v23 = vsel %vm511_vm2, %v3941_v61, 0.0  ;;  %v3943_v47 = vmul.f32 %v14553_v54, %v14553_v54 }
0x18b1   :  { %v10218_v13 = vpop.f32.mrb[111].mxu1  ;;  %5017 = vadd.xlane.f32.xlu1 %v5016_v35  ;;  %v3910_v46 = vmul.f32 0.015625, %v3892_v59  ;;  %v3940_v7 = vmul.f32 %v14535_v60, %v14535_v60  ;;  %v11474_v35 = vld [vmem:[%s17095_s9 + $0x40] ss:$8 sps:$4 sm:$0xff]  }
0x18b2   :  { %v4842_v3 = vadd.f32 %v10216_v33, %v14008_v27  ;;  %v10219_v22 = vadd.f32 %v10218_v13, %v10217_v44  ;;  %v3989_v44 = vsel %vm511_vm2, %v3943_v47, 0.0  ;;  %v11479_v13 = vld [vmem:[%s17095_s9 + $0x54] ss:$8 sps:$4 sm:$0xff]   ;;  %4945 = vmatpush1.bf16.msra.mxu0 %v11474_v35 }
0x18b3   :  { %v14547_v41 = vsub.f32 %v14388_v5, %v3910_v46  ;;  %v3980_v53 = vsel %vm511_vm2, %v3940_v7, 0.0  ;;  %4946 = vmatprep.subr.bf16.mxu0 %v11479_v13 }
0x18b4   :  { %v14514_v34 = vadd.f32 %v14468_v16, %v4842_v3  ;;  %v4843_v56 = vadd.f32 %v10219_v22, %v14003_v51  ;;  %v11480_v3 = vld [vmem:[%s17095_s9 + $0x60] ss:$8 sps:$4 sm:$0xff]   ;;  %v11482_v22 = vld [vmem:[%s17095_s9 + $0x64] ss:$8 sps:$4 sm:$0xff]  }
0x18b5   :  { %v3942_v36 = vmul.f32 %v14547_v41, %v14547_v41 }
0x18b6   :  { %17282 = vst [vmem:[#allocation9_spill] sm:$0xff] %v14514_v34  ;;  %v14523_v27 = vadd.f32 %v14468_v16, %v4843_v56  ;;  %v5019_v37 = vsel %vm511_vm2, %v14514_v34, 0.0  ;;  %4947 = vmatpush1.bf16.msra.mxu0 %v11477_v62 }
0x18b7   :  { %5020 = vadd.xlane.f32.xlu0 %v5019_v37  ;;  %v3986_v33 = vsel %vm511_vm2, %v3942_v36, 0.0  ;;  %4948 = vmatprep.subr.bf16.mxu0 %v11482_v22 }
0x18b8   :  { %17283 = vst [vmem:[#allocation34_spill] sm:$0xff] %v14523_v27  ;;  %v5022_v51 = vsel %vm511_vm2, %v14523_v27, 0.0 }
0x18b9   :  { %5023 = vadd.xlane.f32.xlu1 %v5022_v51 }
0x18ba   :  { %4949 = vmatpush1.bf16.msra.mxu0 %v11480_v3 }
0x18bb   :  { %3969 = vadd.xlane.f32.xlu0 %v3968_v10  ;;  %4950 = vmatprep.subr.bf16.mxu0 %v11485_v52 }
0x18bd   :  { %3972 = vadd.xlane.f32.xlu1 %v3971_v11 }
0x18be   :  { %4951 = vmatpush1.bf16.msra.mxu0 %v11483_v17 }
0x18bf   :  { %3975 = vadd.xlane.f32.xlu0 %v3974_v30 }
0x18c1   :  { %3978 = vadd.xlane.f32.xlu1 %v3977_v2 }
0x18c3   :  { %3981 = vadd.xlane.f32.xlu0 %v3980_v53 }
0x18c5   :  { %3984 = vadd.xlane.f32.xlu1 %v3983_v23 }
0x18c7   :  { %3987 = vadd.xlane.f32.xlu0 %v3986_v33 }
0x18c9   :  { %3990 = vadd.xlane.f32.xlu1 %v3989_v44 }
0x192c   :  { %v5003_v56 = vpop.xlane.xlu0 %5002 }
0x192d   :  { %v5049_v15 = vmul.f32 0.015625, %v5003_v56 }
0x192e   :  { %v5006_v8 = vpop.xlane.xlu1 %5005 }
0x192f   :  { %v14591_v37 = vsub.f32 %v14472_v1, %v5049_v15  ;;  %v5050_v59 = vmul.f32 0.015625, %v5006_v8 }
0x1931   :  { %v14594_v0 = vsub.f32 %v14476_v31, %v5050_v59  ;;  %v5081_v51 = vmul.f32 %v14591_v37, %v14591_v37 }
0x1933   :  { %v5097_v19 = vsel %vm511_vm2, %v5081_v51, 0.0  ;;  %v5082_v40 = vmul.f32 %v14594_v0, %v14594_v0 }
0x1934   :  { %5098 = vadd.xlane.f32.xlu0 %v5097_v19  ;;  %v5009_v46 = vpop.xlane.xlu0 %5008 }
0x1935   :  { %v5051_v10 = vmul.f32 0.015625, %v5009_v46  ;;  %v5100_v43 = vsel %vm511_vm2, %v5082_v40, 0.0 }
0x1936   :  { %5101 = vadd.xlane.f32.xlu1 %v5100_v43  ;;  %v5012_v28 = vpop.xlane.xlu1 %5011 }
0x1937   :  { %v14603_v11 = vsub.f32 %v14484_v20, %v5051_v10  ;;  %v5052_v49 = vmul.f32 0.015625, %v5012_v28 }
0x1939   :  { %v14606_v30 = vsub.f32 %v14488_v32, %v5052_v49  ;;  %v5083_v7 = vmul.f32 %v14603_v11, %v14603_v11 }
0x193b   :  { %v5103_v2 = vsel %vm511_vm2, %v5083_v7, 0.0  ;;  %v5084_v61 = vmul.f32 %v14606_v30, %v14606_v30 }
0x193c   :  { %5104 = vadd.xlane.f32.xlu0 %v5103_v2  ;;  %v5015_v53 = vpop.xlane.xlu0 %5014 }
0x193d   :  { %v5053_v36 = vmul.f32 0.015625, %v5015_v53  ;;  %v5106_v23 = vsel %vm511_vm2, %v5084_v61, 0.0 }
0x193e   :  { %5107 = vadd.xlane.f32.xlu1 %v5106_v23  ;;  %v5018_v47 = vpop.xlane.xlu1 %5017 }
0x193f   :  { %v14615_v33 = vsub.f32 %v14496_v18, %v5053_v36  ;;  %v5054_v44 = vmul.f32 0.015625, %v5018_v47  ;;  %v11488_v36 = vld [vmem:[%s17096_s8 + $0x44] ss:$8 sps:$4 sm:$0xff]  }
0x1940   :  { %5330 = vmatprep.subr.bf16.mxu0 %v11488_v36 }
0x1941   :  { %v14618_v35 = vsub.f32 %v14500_v6, %v5054_v44  ;;  %v5085_v57 = vmul.f32 %v14615_v33, %v14615_v33 }
0x1943   :  { %v5109_v13 = vsel %vm511_vm2, %v5085_v57, 0.0  ;;  %v5086_v62 = vmul.f32 %v14618_v35, %v14618_v35 }
0x1944   :  { %5110 = vadd.xlane.f32.xlu0 %v5109_v13  ;;  %v5021_v3 = vpop.xlane.xlu0 %5020 }
0x1945   :  { %v5055_v22 = vmul.f32 0.015625, %v5021_v3  ;;  %v5112_v52 = vsel %vm511_vm2, %v5086_v62, 0.0 }
0x1946   :  { %5113 = vadd.xlane.f32.xlu1 %v5112_v52  ;;  %v5024_v17 = vpop.xlane.xlu1 %5023 }
0x1947   :  { %v14627_v56 = vsub.f32 %v14514_v34, %v5055_v22  ;;  %v5056_v15 = vmul.f32 0.015625, %v5024_v17 }
0x1948   :  { %v3970_v8 = vpop.xlane.xlu0 %3969 }
0x1949   :  { %v14630_v59 = vsub.f32 %v14523_v27, %v5056_v15  ;;  %v4000_v51 = vmul.f32 0.015625, %v3970_v8  ;;  %v5087_v19 = vmul.f32 %v14627_v56, %v14627_v56 }
0x194a   :  { %v3973_v40 = vpop.xlane.xlu1 %3972 }
0x194b   :  { %v4016_v46 = vadd.f32 1e-05, %v4000_v51  ;;  %v4001_v10 = vmul.f32 0.015625, %v3973_v40  ;;  %v5115_v43 = vsel %vm511_vm2, %v5087_v19, 0.0  ;;  %v5088_v28 = vmul.f32 %v14630_v59, %v14630_v59 }
0x194c   :  { %5116 = vadd.xlane.f32.xlu0 %v5115_v43  ;;  %v3976_v49 = vpop.xlane.xlu0 %3975 }
0x194d   :  { %11874 = vrsqrt.f32 %v4016_v46  ;;  %v4017_v7 = vadd.f32 1e-05, %v4001_v10  ;;  %v4002_v2 = vmul.f32 0.015625, %v3976_v49  ;;  %v5118_v61 = vsel %vm511_vm2, %v5088_v28, 0.0 }
0x194e   :  { %5119 = vadd.xlane.f32.xlu1 %v5118_v61  ;;  %v3979_v53 = vpop.xlane.xlu1 %3978 }
0x194f   :  { %11876 = vrsqrt.f32 %v4017_v7  ;;  %v4018_v23 = vadd.f32 1e-05, %v4002_v2  ;;  %v4003_v47 = vmul.f32 0.015625, %v3979_v53 }
0x1950   :  { %v3982_v44 = vpop.xlane.xlu0 %3981 }
0x1951   :  { %11878 = vrsqrt.f32 %v4018_v23  ;;  %v4019_v57 = vadd.f32 1e-05, %v4003_v47  ;;  %v4004_v13 = vmul.f32 0.015625, %v3982_v44 }
0x1952   :  { %v3985_v62 = vpop.xlane.xlu1 %3984 }
0x1953   :  { %11880 = vrsqrt.f32 %v4019_v57  ;;  %v4005_v3 = vmul.f32 0.015625, %v3985_v62  ;;  %v4020_v22 = vadd.f32 1e-05, %v4004_v13 }
0x1954   :  { %v3988_v17 = vpop.xlane.xlu0 %3987 }
0x1955   :  { %v4021_v52 = vadd.f32 1e-05, %v4005_v3  ;;  %v4006_v46 = vmul.f32 0.015625, %v3988_v17 }
0x1956   :  { %v3991_v15 = vpop.xlane.xlu1 %3990 }
0x1957   :  { %v11875_v8 = vpop.eup %11874  ;;  %11882 = vrsqrt.f32 %v4021_v52  ;;  %v4007_v51 = vmul.f32 0.015625, %v3991_v15  ;;  %v4022_v61 = vadd.f32 1e-05, %v4006_v46 }
0x1958   :  { %v4048_v19 = vmul.f32 %v11875_v8, %v14507_v4  ;;  %11884 = vrsqrt.f32 %v4020_v22 }
0x1959   :  { %v11877_v40 = vpop.eup %11876  ;;  %v4023_v49 = vadd.f32 1e-05, %v4007_v51 }
0x195a   :  { %v4049_v10 = vmul.f32 %v11877_v40, %v14511_v58  ;;  %v4068_v43 = vmul.f32 %v14138_v38, %v4048_v19 }
0x195b   :  { %v11879_v28 = vpop.eup %11878  ;;  %11886 = vrsqrt.f32 %v4023_v49 }
0x195c   :  { %v4069_v7 = vmul.f32 %v14138_v38, %v4049_v10  ;;  %v4088_v53 = vadd.f32 %v14143_v12, %v4068_v43  ;;  %v4050_v23 = vmul.f32 %v11879_v28, %v14520_v42  ;;  %11888 = vrsqrt.f32 %v4022_v61  ;;  %v11497_v61 = vld [vmem:[%s17096_s8 + $0x74] ss:$8 sps:$4 sm:$0xff]  }
0x195d   :  { %v11881_v2 = vpop.eup %11880 }
0x195e   :  { %v4089_v36 = vadd.f32 %v14143_v12, %v4069_v7  ;;  %v4051_v4 = vmul.f32 %v11881_v2, %v14528_v39  ;;  %v4070_v57 = vmul.f32 %v14138_v38, %v4050_v23  ;;  %v11494_v7 = vld [vmem:[%s17096_s8 + $0x64] ss:$8 sps:$4 sm:$0xff]   ;;  %v11492_v2 = vld [vmem:[%s17096_s8 + $0x60] ss:$8 sps:$4 sm:$0xff]  }
0x1960   :  { %v4100_v47 = vpack.c.bf16 %v4089_v36, %v4088_v53  ;;  %v4071_v58 = vmul.f32 %v14138_v38, %v4051_v4  ;;  %v4090_v42 = vadd.f32 %v14143_v12, %v4070_v57  ;;  %v11495_v53 = vld [vmem:[%s17096_s8 + $0x70] ss:$8 sps:$4 sm:$0xff]  }
0x1961   :  { %v11883_v44 = vpop.eup %11882 }
0x1962   :  { %9773 = vmatmul.mubr.msk.bf16.gmra.mrb[124].mxu0 %vm511_vm2, %v4100_v47  ;;  %v11885_v13 = vpop.eup %11884  ;;  %v4091_v62 = vadd.f32 %v14143_v12, %v4071_v58  ;;  %v4053_v3 = vmul.f32 %v11883_v44, %v14541_v25 }
0x1963   :  { %4276 = vmatprep.mubr.bf16.mxu0 %v17215_v14  ;;  %v4052_v39 = vmul.f32 %v11885_v13, %v14535_v60 }
0x1964   :  { %v4101_v22 = vpack.c.bf16 %v4091_v62, %v4090_v42  ;;  %v4073_v52 = vmul.f32 %v14138_v38, %v4053_v3  ;;  %v9793_v3 = vld [vmem:[%s17098_s13 + $0x8] sm:$0x3f] }
0x1965   :  { %v11887_v17 = vpop.eup %11886  ;;  %v4072_v15 = vmul.f32 %v14138_v38, %v4052_v39 }
0x1966   :  { %v11889_v8 = vpop.eup %11888  ;;  %v4093_v51 = vadd.f32 %v14143_v12, %v4073_v52  ;;  %v4055_v19 = vmul.f32 %v11887_v17, %v14553_v54  ;;  %v11491_v54 = vld [vmem:[%s17096_s8 + $0x54] ss:$8 sps:$4 sm:$0xff]   ;;  %v17285_v52 = vld [vmem:[#allocation3_spill] sm:$0xff] }
0x1967   :  { %v4092_v25 = vadd.f32 %v14143_v12, %v4072_v15  ;;  %v4054_v40 = vmul.f32 %v11889_v8, %v14547_v41  ;;  %v11486_v41 = vld [vmem:[%s17096_s8 + $0x40] ss:$8 sps:$4 sm:$0xff]   ;;  %v14701_v17 = vrot.slane %v9793_v3, %v17285_v52 }
0x1968   :  { %v4075_v46 = vmul.f32 %v14138_v38, %v4055_v19 }
0x1969   :  { %v4102_v60 = vpack.c.bf16 %v4093_v51, %v4092_v25  ;;  %v4074_v10 = vmul.f32 %v14138_v38, %v4054_v40  ;;  %v17284_v38 = vld [vmem:[#allocation22_spill] sm:$0xff]  ;;  %v14705_v40 = vrot.slane %v9793_v3, %v17262_v50 }
0x196a   :  { %9774 = vmatmul.mubr.msk.bf16.gmra.mrb[128].mxu0 %vm511_vm2, %v4101_v22  ;;  %v4095_v43 = vadd.f32 %v14143_v12, %v4075_v46 }
0x196b   :  { %4286 = vmatprep.mubr.bf16.mxu0 %v17215_v14  ;;  %v4094_v28 = vadd.f32 %v14143_v12, %v4074_v10  ;;  %v11489_v12 = vld [vmem:[%s17096_s8 + $0x50] ss:$8 sps:$4 sm:$0xff]  }
0x196d   :  { %v4103_v49 = vpack.c.bf16 %v4095_v43, %v4094_v28 }
0x1972   :  { %9775 = vmatmul.mubr.msk.bf16.gmra.mrb[132].mxu0 %vm511_vm2, %v4102_v60 }
0x1973   :  { %4296 = vmatprep.mubr.bf16.mxu0 %v17215_v14 }
0x197a   :  { %9776 = vmatmul.mubr.msk.bf16.gmra.mrb[136].mxu0 %vm511_vm2, %v4103_v49 }
0x197b   :  { %4976 = vmatprep.mubr.bf16.mxu0 %v17215_v14 }
0x1982   :  { %9811 = vmatmul.mubr.msk.bf16.vlgmr.msra.gmra.mrb[140].mxu0 %vm511_vm2, %v17284_v38 }
0x1983   :  { %5331 = vmatpush1.bf16.msra.mxu0 %v11486_v41  ;;  %5362 = vmatprep.mubr.bf16.mxu0 %v17215_v14 }
0x1984   :  { %5332 = vmatprep.subr.bf16.mxu0 %v11491_v54 }
0x1987   :  { %5333 = vmatpush1.bf16.msra.mxu0 %v11489_v12 }
0x1988   :  { %5334 = vmatprep.subr.bf16.mxu0 %v11494_v7 }
0x198b   :  { %5335 = vmatpush1.bf16.msra.mxu0 %v11492_v2 }
0x198c   :  { %5336 = vmatprep.subr.bf16.mxu0 %v11497_v61 }
0x198f   :  { %5337 = vmatpush1.bf16.msra.mxu0 %v11495_v53 }
0x19c1   :  { %v5099_v36 = vpop.xlane.xlu0 %5098 }
0x19c2   :  { %v5145_v23 = vmul.f32 0.015625, %v5099_v36 }
0x19c3   :  { %v5102_v4 = vpop.xlane.xlu1 %5101 }
0x19c4   :  { %v5161_v47 = vadd.f32 1e-05, %v5145_v23  ;;  %v5146_v58 = vmul.f32 0.015625, %v5102_v4 }
0x19c6   :  { %11890 = vrsqrt.f32 %v5161_v47  ;;  %v5162_v44 = vadd.f32 1e-05, %v5146_v58 }
0x19c8   :  { %11892 = vrsqrt.f32 %v5162_v44 }
0x19c9   :  { %v5105_v57 = vpop.xlane.xlu0 %5104 }
0x19ca   :  { %v5147_v13 = vmul.f32 0.015625, %v5105_v57 }
0x19cb   :  { %v5108_v62 = vpop.xlane.xlu1 %5107 }
0x19cc   :  { %v5163_v42 = vadd.f32 1e-05, %v5147_v13  ;;  %v5148_v39 = vmul.f32 0.015625, %v5108_v62 }
0x19ce   :  { %11894 = vrsqrt.f32 %v5163_v42  ;;  %v5164_v22 = vadd.f32 1e-05, %v5148_v39 }
0x19d0   :  { %v11891_v15 = vpop.eup %11890  ;;  %11896 = vrsqrt.f32 %v5164_v22 }
0x19d1   :  { %v5193_v8 = vmul.f32 %v11891_v15, %v14591_v37  ;;  %v5111_v51 = vpop.xlane.xlu0 %5110 }
0x19d2   :  { %v11893_v19 = vpop.eup %11892  ;;  %v5149_v25 = vmul.f32 0.015625, %v5111_v51 }
0x19d3   :  { %v5213_v60 = vmul.f32 %v14701_v17, %v5193_v8  ;;  %v5194_v46 = vmul.f32 %v11893_v19, %v14594_v0  ;;  %v5114_v10 = vpop.xlane.xlu1 %5113 }
0x19d4   :  { %v5165_v43 = vadd.f32 1e-05, %v5149_v25  ;;  %v5150_v28 = vmul.f32 0.015625, %v5114_v10 }
0x19d5   :  { %v5214_v49 = vmul.f32 %v14701_v17, %v5194_v46  ;;  %v5233_v54 = vadd.f32 %v14705_v40, %v5213_v60 }
0x19d6   :  { %11898 = vrsqrt.f32 %v5165_v43  ;;  %v5166_v41 = vadd.f32 1e-05, %v5150_v28 }
0x19d7   :  { %v5234_v37 = vadd.f32 %v14705_v40, %v5214_v49 }
0x19d8   :  { %v11895_v38 = vpop.eup %11894  ;;  %11900 = vrsqrt.f32 %v5166_v41  ;;  %v17286_v41 = vld [vmem:[#allocation2_spill] sm:$0xff] }
0x19d9   :  { %v5117_v12 = vpop.xlane.xlu0 %5116  ;;  %v5249_v7 = vpack.c.bf16 %v5234_v37, %v5233_v54  ;;  %v5195_v2 = vmul.f32 %v11895_v38, %v14603_v11 }
0x19da   :  { %v11897_v61 = vpop.eup %11896  ;;  %v5151_v53 = vmul.f32 0.015625, %v5117_v12 }
0x19db   :  { %9828 = vmatmul.mubr.msk.bf16.vlgmr.msra.gmra.mrb[144].mxu0 %vm511_vm2, %v5249_v7  ;;  %v5120_v0 = vpop.xlane.xlu1 %5119  ;;  %v5196_v36 = vmul.f32 %v11897_v61, %v14606_v30  ;;  %v5215_v23 = vmul.f32 %v14701_v17, %v5195_v2 }
0x19dc   :  { %v5167_v4 = vadd.f32 1e-05, %v5151_v53  ;;  %v5152_v47 = vmul.f32 0.015625, %v5120_v0  ;;  %5372 = vmatprep.mubr.bf16.mxu0 %v17215_v14 }
0x19dd   :  { %v5216_v58 = vmul.f32 %v14701_v17, %v5196_v36  ;;  %v5235_v57 = vadd.f32 %v14705_v40, %v5215_v23 }
0x19de   :  { %11902 = vrsqrt.f32 %v5167_v4  ;;  %v5168_v44 = vadd.f32 1e-05, %v5152_v47 }
0x19df   :  { %v5236_v11 = vadd.f32 %v14705_v40, %v5216_v58 }
0x19e0   :  { %v11899_v13 = vpop.eup %11898  ;;  %11904 = vrsqrt.f32 %v5168_v44 }
0x19e1   :  { %v5250_v62 = vpack.c.bf16 %v5236_v11, %v5235_v57  ;;  %v5197_v3 = vmul.f32 %v11899_v13, %v14615_v33 }
0x19e2   :  { %v11901_v30 = vpop.eup %11900 }
0x19e3   :  { %9829 = vmatmul.mubr.msk.bf16.gmra.mrb[148].mxu0 %vm511_vm2, %v5250_v62  ;;  %v5198_v42 = vmul.f32 %v11901_v30, %v14618_v35  ;;  %v5217_v39 = vmul.f32 %v14701_v17, %v5197_v3 }
0x19e4   :  { %5382 = vmatprep.mubr.bf16.mxu0 %v17215_v14 }
0x19e5   :  { %v5218_v22 = vmul.f32 %v14701_v17, %v5198_v42  ;;  %v5237_v15 = vadd.f32 %v14705_v40, %v5217_v39 }
0x19e7   :  { %v5238_v8 = vadd.f32 %v14705_v40, %v5218_v22 }
0x19e8   :  { %v11903_v51 = vpop.eup %11902 }
0x19e9   :  { %v5251_v19 = vpack.c.bf16 %v5238_v8, %v5237_v15  ;;  %v5199_v25 = vmul.f32 %v11903_v51, %v14627_v56 }
0x19ea   :  { %v11905_v33 = vpop.eup %11904 }
0x19eb   :  { %9830 = vmatmul.mubr.msk.bf16.gmra.mrb[152].mxu0 %vm511_vm2, %v5251_v19  ;;  %v5200_v60 = vmul.f32 %v11905_v33, %v14630_v59  ;;  %v5219_v35 = vmul.f32 %v14701_v17, %v5199_v25 }
0x19ec   :  { %5392 = vmatprep.mubr.bf16.mxu0 %v17215_v14 }
0x19ed   :  { %v5220_v46 = vmul.f32 %v14701_v17, %v5200_v60  ;;  %v5239_v10 = vadd.f32 %v14705_v40, %v5219_v35 }
0x19ef   :  { %v5240_v43 = vadd.f32 %v14705_v40, %v5220_v46 }
0x19f1   :  { %v5252_v28 = vpack.c.bf16 %v5240_v43, %v5239_v10 }
0x19f3   :  { %9831 = vmatmul.mubr.msk.bf16.gmra.mrb[156].mxu0 %vm511_vm2, %v5252_v28 }
0x19f4   :  { %5402 = vmatprep.mubr.bf16.mxu0 %v17215_v14 }
0x1a35   :  { %v4268_v56 = vpop.f32.mrb[124].mxu0 }
0x1a36   :  { %v14739_v49 = vadd.f32 %v4268_v56, %v14265_v45  ;;  %v4270_v59 = vpop.f32.mrb[125].mxu0 }
0x1a37   :  { %v14742_v54 = vadd.f32 %v4270_v59, %v17286_v41  ;;  %v4272_v37 = vpop.f32.mrb[126].mxu0 }
0x1a38   :  { %v4323_v38 = vmul.f32 %v14739_v49, %v14739_v49  ;;  %v14747_v12 = vadd.f32 %v4272_v37, %v14265_v45  ;;  %v4274_v7 = vpop.f32.mrb[127].mxu0 }
0x1a39   :  { %v4324_v2 = vmul.f32 %v14742_v54, %v14742_v54  ;;  %v14752_v61 = vadd.f32 %v4274_v7, %v17286_v41 }
0x1a3a   :  { %v4355_v53 = vmul.f32 %v4323_v38, %v14739_v49  ;;  %v4325_v0 = vmul.f32 %v14747_v12, %v14747_v12 }
0x1a3b   :  { %v4356_v36 = vmul.f32 %v4324_v2, %v14742_v54  ;;  %v4326_v23 = vmul.f32 %v14752_v61, %v14752_v61 }
0x1a3c   :  { %v4387_v4 = vmul.f32 0.044715, %v4355_v53  ;;  %v4357_v47 = vmul.f32 %v4325_v0, %v14747_v12 }
0x1a3d   :  { %v4388_v58 = vmul.f32 0.044715, %v4356_v36  ;;  %v4358_v44 = vmul.f32 %v4326_v23, %v14752_v61  ;;  %v4278_v57 = vpop.f32.mrb[128].mxu0 }
0x1a3e   :  { %v4419_v11 = vadd.f32 %v4387_v4, %v14739_v49  ;;  %v4389_v13 = vmul.f32 0.044715, %v4357_v47  ;;  %v14764_v62 = vadd.f32 %v4278_v57, %v14265_v45  ;;  %v4280_v3 = vpop.f32.mrb[129].mxu0 }
0x1a3f   :  { %v4420_v30 = vadd.f32 %v4388_v58, %v14742_v54  ;;  %v4390_v42 = vmul.f32 0.044715, %v4358_v44  ;;  %v14768_v39 = vadd.f32 %v4280_v3, %v17286_v41  ;;  %v4282_v22 = vpop.f32.mrb[130].mxu0 }
0x1a40   :  { %v4451_v15 = vmul.f32 0.7978846, %v4419_v11  ;;  %v4327_v8 = vmul.f32 %v14764_v62, %v14764_v62  ;;  %v14773_v51 = vadd.f32 %v4282_v22, %v14265_v45  ;;  %v4284_v19 = vpop.f32.mrb[131].mxu0  ;;  %v4421_v46 = vadd.f32 %v4389_v13, %v14747_v12 }
0x1a41   :  { %v4452_v25 = vmul.f32 0.7978846, %v4420_v30  ;;  %v4422_v33 = vadd.f32 %v4390_v42, %v14752_v61  ;;  %v4328_v60 = vmul.f32 %v14768_v39, %v14768_v39  ;;  %v14779_v35 = vadd.f32 %v4284_v19, %v17286_v41 }
0x1a42   :  { %v4359_v10 = vmul.f32 %v4327_v8, %v14764_v62  ;;  %v4329_v43 = vmul.f32 %v14773_v51, %v14773_v51  ;;  %v4453_v0 = vmul.f32 0.7978846, %v4421_v46 }
0x1a43   :  { %11906 = vtanh.f32 %v4452_v25  ;;  %v4454_v28 = vmul.f32 0.7978846, %v4422_v33  ;;  %v4360_v56 = vmul.f32 %v4328_v60, %v14768_v39  ;;  %v4330_v59 = vmul.f32 %v14779_v35, %v14779_v35 }
0x1a44   :  { %v4391_v37 = vmul.f32 0.044715, %v4359_v10  ;;  %v4361_v38 = vmul.f32 %v4329_v43, %v14773_v51  ;;  %11908 = vtanh.f32 %v4451_v15 }
0x1a45   :  { %v4392_v7 = vmul.f32 0.044715, %v4360_v56  ;;  %v4362_v2 = vmul.f32 %v4330_v59, %v14779_v35  ;;  %v4288_v53 = vpop.f32.mrb[132].mxu0  ;;  %11910 = vtanh.f32 %v4454_v28 }
0x1a46   :  { %v4423_v36 = vadd.f32 %v4391_v37, %v14764_v62  ;;  %v4393_v23 = vmul.f32 0.044715, %v4361_v38  ;;  %v14792_v4 = vadd.f32 %v4288_v53, %v14265_v45  ;;  %v4290_v47 = vpop.f32.mrb[133].mxu0  ;;  %11912 = vtanh.f32 %v4453_v0 }
0x1a47   :  { %v4424_v58 = vadd.f32 %v4392_v7, %v14768_v39  ;;  %v4394_v44 = vmul.f32 0.044715, %v4362_v2  ;;  %v14796_v57 = vadd.f32 %v4290_v47, %v17286_v41  ;;  %v4292_v11 = vpop.f32.mrb[134].mxu0 }
0x1a48   :  { %v4455_v13 = vmul.f32 0.7978846, %v4423_v36  ;;  %v4425_v3 = vadd.f32 %v4393_v23, %v14773_v51  ;;  %v4331_v30 = vmul.f32 %v14792_v4, %v14792_v4  ;;  %v14802_v42 = vadd.f32 %v4292_v11, %v14265_v45  ;;  %v4294_v22 = vpop.f32.mrb[135].mxu0 }
0x1a49   :  { %v4456_v15 = vmul.f32 0.7978846, %v4424_v58  ;;  %v4426_v8 = vadd.f32 %v4394_v44, %v14779_v35  ;;  %v4332_v19 = vmul.f32 %v14796_v57, %v14796_v57  ;;  %v14808_v25 = vadd.f32 %v4294_v22, %v17286_v41 }
0x1a4a   :  { %v4457_v33 = vmul.f32 0.7978846, %v4425_v3  ;;  %v4363_v60 = vmul.f32 %v4331_v30, %v14792_v4  ;;  %v4333_v46 = vmul.f32 %v14802_v42, %v14802_v42  ;;  %11914 = vtanh.f32 %v4455_v13 }
0x1a4b   :  { %v4458_v10 = vmul.f32 0.7978846, %v4426_v8  ;;  %v4364_v43 = vmul.f32 %v4332_v19, %v14796_v57  ;;  %v4334_v28 = vmul.f32 %v14808_v25, %v14808_v25  ;;  %11916 = vtanh.f32 %v4456_v15 }
0x1a4c   :  { %v4395_v56 = vmul.f32 0.044715, %v4363_v60  ;;  %v4365_v59 = vmul.f32 %v4333_v46, %v14802_v42  ;;  %11918 = vtanh.f32 %v4457_v33 }
0x1a4d   :  { %v11907_v37 = vpop.eup %11906  ;;  %v4396_v38 = vmul.f32 0.044715, %v4364_v43  ;;  %v4366_v7 = vmul.f32 %v4334_v28, %v14808_v25  ;;  %v4298_v2 = vpop.f32.mrb[136].mxu0  ;;  %11920 = vtanh.f32 %v4458_v10 }
0x1a4e   :  { %v4427_v53 = vadd.f32 %v4395_v56, %v14792_v4  ;;  %v4397_v0 = vmul.f32 0.044715, %v4365_v59  ;;  %v14820_v36 = vadd.f32 %v4298_v2, %v14265_v45  ;;  %v4300_v23 = vpop.f32.mrb[137].mxu0  ;;  %v11909_v47 = vpop.eup %11908  ;;  %v4516_v3 = vadd.f32 1.0, %v11907_v37 }
0x1a4f   :  { %v4428_v58 = vadd.f32 %v4396_v38, %v14796_v57  ;;  %v4398_v44 = vmul.f32 0.044715, %v4366_v7  ;;  %v14824_v11 = vadd.f32 %v4300_v23, %v17286_v41  ;;  %v4302_v13 = vpop.f32.mrb[138].mxu0  ;;  %v11911_v33 = vpop.eup %11910 }
0x1a50   :  { %v4459_v30 = vmul.f32 0.7978846, %v4427_v53  ;;  %v4429_v22 = vadd.f32 %v4397_v0, %v14802_v42  ;;  %v4335_v15 = vmul.f32 %v14820_v36, %v14820_v36  ;;  %v14830_v8 = vadd.f32 %v4302_v13, %v14265_v45  ;;  %v4304_v19 = vpop.f32.mrb[139].mxu0  ;;  %v11913_v7 = vpop.eup %11912 }
0x1a51   :  { %v4460_v60 = vmul.f32 0.7978846, %v4428_v58  ;;  %v4430_v46 = vadd.f32 %v4398_v44, %v14808_v25  ;;  %v4336_v10 = vmul.f32 %v14824_v11, %v14824_v11  ;;  %v14836_v43 = vadd.f32 %v4304_v19, %v17286_v41 }
0x1a52   :  { %11922 = vtanh.f32 %v4459_v30  ;;  %v4461_v28 = vmul.f32 0.7978846, %v4429_v22  ;;  %v4367_v56 = vmul.f32 %v4335_v15, %v14820_v36  ;;  %v4337_v59 = vmul.f32 %v14830_v8, %v14830_v8 }
0x1a53   :  { %11924 = vtanh.f32 %v4460_v60  ;;  %v4462_v45 = vmul.f32 0.7978846, %v4430_v46  ;;  %v4368_v37 = vmul.f32 %v4336_v10, %v14824_v11  ;;  %v4338_v38 = vmul.f32 %v14836_v43, %v14836_v43 }
0x1a54   :  { %11926 = vtanh.f32 %v4461_v28  ;;  %v4399_v2 = vmul.f32 0.044715, %v4367_v56  ;;  %v4369_v41 = vmul.f32 %v4337_v59, %v14830_v8  ;;  %v4518_v53 = vadd.f32 1.0, %v11911_v33  ;;  %v11915_v0 = vpop.eup %11914 }
0x1a55   :  { %11928 = vtanh.f32 %v4462_v45  ;;  %v4400_v23 = vmul.f32 0.044715, %v4368_v37  ;;  %v4370_v58 = vmul.f32 %v4338_v38, %v14836_v43  ;;  %v14846_v44 = vpop.f32.mrb[140].mxu0  ;;  %v4548_v13 = vmul.f32 0.5, %v4516_v3  ;;  %v11917_v30 = vpop.eup %11916 }
0x1a56   :  { %v4431_v22 = vadd.f32 %v4399_v2, %v14820_v36  ;;  %v4401_v15 = vmul.f32 0.044715, %v4369_v41  ;;  %v14849_v19 = vpop.f32.mrb[141].mxu0  ;;  %v4550_v60 = vmul.f32 0.5, %v4518_v53  ;;  %v4515_v46 = vadd.f32 1.0, %v11909_v47  ;;  %v11919_v10 = vpop.eup %11918 }
0x1a57   :  { %v4432_v28 = vadd.f32 %v4400_v23, %v14824_v11  ;;  %v4402_v33 = vmul.f32 0.044715, %v4370_v58  ;;  %v4982_v56 = vpop.f32.mrb[142].mxu0  ;;  %v4517_v59 = vadd.f32 1.0, %v11913_v7  ;;  %v11921_v45 = vpop.eup %11920  ;;  %v4580_v2 = vmul.f32 %v4548_v13, %v14742_v54 }
0x1a58   :  { %v4463_v37 = vmul.f32 0.7978846, %v4431_v22  ;;  %v4433_v38 = vadd.f32 %v4401_v15, %v14830_v8  ;;  %v4983_v63 = vpop.f32.mrb[143].mxu0  ;;  %v4582_v47 = vmul.f32 %v4550_v60, %v14752_v61  ;;  %v4547_v53 = vmul.f32 0.5, %v4515_v46 }
0x1a59   :  { %v4464_v3 = vmul.f32 0.7978846, %v4432_v28  ;;  %v4434_v34 = vadd.f32 %v4402_v33, %v14836_v43  ;;  %v4549_v58 = vmul.f32 0.5, %v4517_v59  ;;  %v4520_v56 = vadd.f32 1.0, %v11917_v30 }
0x1a5a   :  { %11930 = vtanh.f32 %v4463_v37  ;;  %v4465_v41 = vmul.f32 0.7978846, %v4433_v38  ;;  %v4604_v22 = vpack.c.bf16 %v4582_v47, %v4580_v2  ;;  %v4579_v15 = vmul.f32 %v4547_v53, %v14739_v49 }
0x1a5b   :  { %11932 = vtanh.f32 %v4464_v3  ;;  %v4466_v23 = vmul.f32 0.7978846, %v4434_v34  ;;  %v4522_v63 = vadd.f32 1.0, %v11921_v45  ;;  %v4581_v33 = vmul.f32 %v4549_v58, %v14747_v12 }
0x1a5c   :  { %v11923_v7 = vpop.eup %11922  ;;  %11934 = vtanh.f32 %v4465_v41  ;;  %v4552_v54 = vmul.f32 0.5, %v4520_v56  ;;  %v4519_v13 = vadd.f32 1.0, %v11915_v0  ;;  %4803 = vmatprep.mubr.bf16.mxu1 %v4604_v22  ;;  %v4521_v60 = vadd.f32 1.0, %v11919_v10 }
0x1a5d   :  { %v11925_v28 = vpop.eup %11924  ;;  %11936 = vtanh.f32 %v4466_v23  ;;  %v4554_v61 = vmul.f32 0.5, %v4522_v63  ;;  %v4523_v34 = vadd.f32 1.0, %v11923_v7  ;;  %v4603_v30 = vpack.c.bf16 %v4581_v33, %v4579_v15 }
0x1a5e   :  { %v11927_v37 = vpop.eup %11926  ;;  %v4524_v46 = vadd.f32 1.0, %v11925_v28  ;;  %v4584_v38 = vmul.f32 %v4552_v54, %v14768_v39  ;;  %v4551_v3 = vmul.f32 0.5, %v4519_v13  ;;  %v4553_v45 = vmul.f32 0.5, %v4521_v60 }
0x1a5f   :  { %v11929_v59 = vpop.eup %11928  ;;  %v4525_v2 = vadd.f32 1.0, %v11927_v37  ;;  %v4586_v49 = vmul.f32 %v4554_v61, %v14779_v35  ;;  %4804 = vmatmul.mubr.bf16.gmra.mrb[112].mxu1 %v4603_v30  ;;  %v4555_v12 = vmul.f32 0.5, %v4523_v34 }
0x1a60   :  { %v4526_v41 = vadd.f32 1.0, %v11929_v59  ;;  %v4556_v47 = vmul.f32 0.5, %v4524_v46  ;;  %v4583_v23 = vmul.f32 %v4551_v3, %v14764_v62  ;;  %v4585_v10 = vmul.f32 %v4553_v45, %v14773_v51  ;;  %v9794_v3 = vld [vmem:[%s17099_s14 + $0x4] sm:$0xf] }
0x1a61   :  { %v4557_v0 = vmul.f32 0.5, %v4525_v2  ;;  %v4606_v53 = vpack.c.bf16 %v4586_v49, %v4584_v38  ;;  %v4587_v56 = vmul.f32 %v4555_v12, %v14792_v4  ;;  %v4889_v2 = vrot.slane %v9794_v3, %v17285_v52  ;;  %v17287_v49 = vld [vmem:[#allocation21_spill] sm:$0xff] }
0x1a62   :  { %v4558_v58 = vmul.f32 0.5, %v4526_v41  ;;  %v4605_v22 = vpack.c.bf16 %v4585_v10, %v4583_v23  ;;  %v4588_v35 = vmul.f32 %v4556_v47, %v14796_v57  ;;  %v4893_v45 = vrot.slane %v9794_v3, %v17287_v49 }
0x1a63   :  { %v4589_v39 = vmul.f32 %v4557_v0, %v14802_v42  ;;  %4811 = vmatprep.mubr.bf16.mxu1 %v4606_v53 }
0x1a64   :  { %v11931_v7 = vpop.eup %11930  ;;  %v4590_v15 = vmul.f32 %v4558_v58, %v14808_v25 }
0x1a65   :  { %v11933_v63 = vpop.eup %11932  ;;  %v4607_v28 = vpack.c.bf16 %v4589_v39, %v4587_v56  ;;  %v4527_v33 = vadd.f32 1.0, %v11931_v7 }
0x1a66   :  { %v11935_v54 = vpop.eup %11934  ;;  %v4608_v13 = vpack.c.bf16 %v4590_v15, %v4588_v35  ;;  %v4528_v62 = vadd.f32 1.0, %v11933_v63 }
0x1a67   :  { %v11937_v37 = vpop.eup %11936  ;;  %v4529_v51 = vadd.f32 1.0, %v11935_v54  ;;  %v4559_v61 = vmul.f32 0.5, %v4527_v33  ;;  %4812 = vmatmul.mubr.bf16.gmra.mrb[116].mxu1 %v4605_v22 }
0x1a68   :  { %v4530_v60 = vadd.f32 1.0, %v11937_v37  ;;  %v4560_v4 = vmul.f32 0.5, %v4528_v62  ;;  %4819 = vmatprep.mubr.bf16.mxu1 %v4608_v13 }
0x1a69   :  { %v4561_v42 = vmul.f32 0.5, %v4529_v51  ;;  %v4591_v34 = vmul.f32 %v4559_v61, %v14820_v36  ;;  %v4899_v36 = vrot.slane %v4889_v2, %v17285_v52 }
0x1a6a   :  { %v4562_v46 = vmul.f32 0.5, %v4530_v60  ;;  %v4592_v25 = vmul.f32 %v4560_v4, %v14824_v11 }
0x1a6b   :  { %v4593_v57 = vmul.f32 %v4561_v42, %v14830_v8  ;;  %v4903_v8 = vrot.slane %v4893_v45, %v17285_v52  ;;  %v14878_v11 = vadd.f32 %v14846_v44, %v4899_v36 }
0x1a6c   :  { %v4594_v59 = vmul.f32 %v4562_v46, %v14836_v43 }
0x1a6d   :  { %v4609_v30 = vpack.c.bf16 %v4593_v57, %v4591_v34  ;;  %v14881_v43 = vadd.f32 %v14849_v19, %v4903_v8  ;;  %v4988_v41 = vrot.slane %v14878_v11, %v17285_v52 }
0x1a6e   :  { %v4610_v38 = vpack.c.bf16 %v4594_v59, %v4592_v25 }
0x1a6f   :  { %4820 = vmatmul.mubr.bf16.gmra.mrb[120].mxu1 %v4607_v28  ;;  %v4992_v47 = vrot.slane %v14881_v43, %v17285_v52 }
0x1a70   :  { %4827 = vmatprep.mubr.bf16.mxu1 %v4610_v38 }
0x1a77   :  { %4828 = vmatmul.mubr.bf16.gmra.mrb[124].mxu1 %v4609_v30 }
0x1aae   :  { %v5364_v12 = vpop.f32.mrb[144].mxu0 }
0x1aaf   :  { %v5365_v0 = vadd.f32 %v5364_v12, %v4988_v41  ;;  %v5366_v53 = vpop.f32.mrb[145].mxu0 }
0x1ab0   :  { %v5367_v23 = vadd.f32 %v5366_v53, %v4992_v47  ;;  %v5368_v10 = vpop.f32.mrb[146].mxu0 }
0x1ab1   :  { %v5369_v58 = vadd.f32 %v5368_v10, %v4988_v41  ;;  %v5370_v56 = vpop.f32.mrb[147].mxu0 }
0x1ab2   :  { %v5371_v39 = vadd.f32 %v5370_v56, %v4992_v47 }
0x1ab3   :  { %v14887_v7 = vpack.c.bf16 %v5369_v58, %v5365_v0 }
0x1ab4   :  { %v14889_v44 = vpack.c.bf16 %v5371_v39, %v5367_v23 }
0x1ab5   :  { %5463 = vrot.lane.b32.xlu0 %v14887_v7, %s12349_s5  ;;  %10778 = vmatprep.mubr.msk.bf16.mxu1 %vm123_vm0, %v14887_v7 }
0x1ab6   :  { %v5374_v19 = vpop.f32.mrb[148].mxu0 }
0x1ab7   :  { %v5375_v52 = vadd.f32 %v5374_v19, %v4988_v41  ;;  %v5376_v22 = vpop.f32.mrb[149].mxu0 }
0x1ab8   :  { %v5377_v35 = vadd.f32 %v5376_v22, %v4992_v47  ;;  %v5378_v15 = vpop.f32.mrb[150].mxu0 }
0x1ab9   :  { %v5379_v63 = vadd.f32 %v5378_v15, %v4988_v41  ;;  %v5380_v28 = vpop.f32.mrb[151].mxu0 }
0x1aba   :  { %v5381_v33 = vadd.f32 %v5380_v28, %v4992_v47 }
0x1abb   :  { %v14895_v54 = vpack.c.bf16 %v5379_v63, %v5375_v52 }
0x1abc   :  { %v14897_v13 = vpack.c.bf16 %v5381_v33, %v5377_v35 }
0x1abd   :  { %5465 = vrot.lane.b32.xlu1 %v14895_v54, %s12349_s5 }
0x1abe   :  { %v5384_v62 = vpop.f32.mrb[152].mxu0 }
0x1abf   :  { %v5385_v37 = vadd.f32 %v5384_v62, %v4988_v41  ;;  %v5386_v51 = vpop.f32.mrb[153].mxu0 }
0x1ac0   :  { %v5387_v61 = vadd.f32 %v5386_v51, %v4992_v47  ;;  %v5388_v60 = vpop.f32.mrb[154].mxu0 }
0x1ac1   :  { %v5389_v4 = vadd.f32 %v5388_v60, %v4988_v41  ;;  %v5390_v42 = vpop.f32.mrb[155].mxu0 }
0x1ac2   :  { %v5391_v46 = vadd.f32 %v5390_v42, %v4992_v47 }
0x1ac3   :  { %v14901_v34 = vpack.c.bf16 %v5389_v4, %v5385_v37 }
0x1ac4   :  { %v14903_v57 = vpack.c.bf16 %v5391_v46, %v5387_v61 }
0x1ac5   :  { %5467 = vrot.lane.b32.xlu1 %v14901_v34, %s12349_s5 }
0x1ac6   :  { %v5394_v25 = vpop.f32.mrb[156].mxu0 }
0x1ac7   :  { %v5395_v59 = vadd.f32 %v5394_v25, %v4988_v41  ;;  %v5396_v30 = vpop.f32.mrb[157].mxu0 }
0x1ac8   :  { %v5397_v38 = vadd.f32 %v5396_v30, %v4992_v47  ;;  %v5398_v3 = vpop.f32.mrb[158].mxu0 }
0x1ac9   :  { %v5399_v2 = vadd.f32 %v5398_v3, %v4988_v41  ;;  %v5400_v45 = vpop.f32.mrb[159].mxu0 }
0x1aca   :  { %v5401_v36 = vadd.f32 %v5400_v45, %v4992_v47 }
0x1acb   :  { %v14907_v8 = vpack.c.bf16 %v5399_v2, %v5395_v59 }
0x1acc   :  { %v14909_v12 = vpack.c.bf16 %v5401_v36, %v5397_v38 }
0x1acd   :  { %5469 = vrot.lane.b32.xlu1 %v14907_v8, %s12349_s5 }
0x1b27   :  { %v5464_v0 = vpop.permute.xlu0 %5463 }
0x1b28   :  { %11106 = vmatprep.subr.msk.bf16.mxu1 %vm123_vm0, %v5464_v0  ;;  %v5484_v53 = vsel %vm123_vm0, %v5464_v0, 0 }
0x1b29   :  { %10771 = vmatpush3.bf16.xpose.msra.mxu1 %v5484_v53 }
0x1b2f   :  { %v5466_v23 = vpop.permute.xlu1 %5465 }
0x1b30   :  { %11107 = vmatprep.subr.msk.bf16.mxu1 %vm123_vm0, %v5466_v23  ;;  %v5487_v41 = vsel %vm123_vm0, %v5466_v23, 0 }
0x1b31   :  { %10773 = vmatpush3.bf16.xpose.msra.mxu1 %v5487_v41 }
0x1b32   :  { %v10220_v47 = vpop.f32.mrb[112].mxu1 }
0x1b33   :  { %v10221_v10 = vpop.f32.mrb[113].mxu1 }
0x1b34   :  { %v14917_v58 = vadd.f32 %v10221_v10, %v10220_v47  ;;  %v10223_v56 = vpop.f32.mrb[114].mxu1 }
0x1b35   :  { %v10224_v39 = vpop.f32.mrb[115].mxu1 }
0x1b36   :  { %v14919_v52 = vadd.f32 %v10224_v39, %v10223_v56 }
0x1b37   :  { %v5468_v19 = vpop.permute.xlu1 %5467 }
0x1b38   :  { %11108 = vmatprep.subr.msk.bf16.mxu1 %vm123_vm0, %v5468_v19  ;;  %v5490_v22 = vsel %vm123_vm0, %v5468_v19, 0 }
0x1b39   :  { %10775 = vmatpush3.bf16.xpose.msra.mxu1 %v5490_v22 }
0x1b3a   :  { %v10226_v35 = vpop.f32.mrb[116].mxu1 }
0x1b3b   :  { %v10227_v15 = vpop.f32.mrb[117].mxu1 }
0x1b3c   :  { %v14923_v63 = vadd.f32 %v10227_v15, %v10226_v35  ;;  %v10229_v28 = vpop.f32.mrb[118].mxu1 }
0x1b3d   :  { %v10230_v33 = vpop.f32.mrb[119].mxu1 }
0x1b3e   :  { %v14925_v37 = vadd.f32 %v10230_v33, %v10229_v28 }
0x1b3f   :  { %v5470_v62 = vpop.permute.xlu1 %5469 }
0x1b40   :  { %11109 = vmatprep.subr.msk.bf16.mxu1 %vm123_vm0, %v5470_v62  ;;  %v5493_v51 = vsel %vm123_vm0, %v5470_v62, 0 }
0x1b41   :  { %10777 = vmatpush3.bf16.xpose.msra.mxu1 %v5493_v51 }
0x1b42   :  { %10786 = vmatprep.subr.bf16.mxu1 %v14889_v44  ;;  %v10232_v61 = vpop.f32.mrb[120].mxu1 }
0x1b43   :  { %v10233_v60 = vpop.f32.mrb[121].mxu1 }
0x1b44   :  { %v14930_v4 = vadd.f32 %v10233_v60, %v10232_v61  ;;  %v10235_v42 = vpop.f32.mrb[122].mxu1 }
0x1b45   :  { %v10236_v46 = vpop.f32.mrb[123].mxu1 }
0x1b46   :  { %v14932_v25 = vadd.f32 %v10236_v46, %v10235_v42 }
0x1b48   :  { %10779 = vmatmul.mubr.msk.bf16.vlgmr.msra.gmra.mrb[128].mxu1 %vm123_vm0, %v14895_v54 }
0x1b49   :  { %10782 = vmatprep.mubr.msk.bf16.mxu1 %vm123_vm0, %v14901_v34  ;;  %10787 = vmatpush3.bf16.msra.mxu1 %v14889_v44 }
0x1b4a   :  { %10788 = vmatprep.subr.bf16.mxu1 %v14897_v13  ;;  %v10238_v59 = vpop.f32.mrb[124].mxu1 }
0x1b4b   :  { %v10239_v30 = vpop.f32.mrb[125].mxu1 }
0x1b4c   :  { %v14941_v38 = vadd.f32 %v10239_v30, %v10238_v59  ;;  %v10241_v3 = vpop.f32.mrb[126].mxu1 }
0x1b4d   :  { %10789 = vmatpush3.bf16.msra.mxu1 %v14897_v13  ;;  %v10242_v2 = vpop.f32.mrb[127].mxu1 }
0x1b4e   :  { %10790 = vmatprep.subr.bf16.mxu1 %v14903_v57  ;;  %v14944_v45 = vadd.f32 %v10242_v2, %v10241_v3 }
0x1b50   :  { %10783 = vmatmul.mubr.msk.bf16.gmra.mrb[132].mxu1 %vm123_vm0, %v14907_v8 }
0x1b51   :  { %10791 = vmatpush3.bf16.msra.mxu1 %v14903_v57 }
0x1b52   :  { %10792 = vmatprep.subr.bf16.mxu1 %v14909_v12 }
0x1b55   :  { %10793 = vmatpush3.bf16.msra.mxu1 %v14909_v12 }
0x1c1b   :  { %v10780_v36 = vpop.f32.mrb[128].mxu1 }
0x1c1c   :  { %v5529_v0 = vpop.f32.mrb[129].mxu1  ;;  %v5566_v10 = vsel %vm511_vm2, %v10780_v36, -inf }
0x1c1d   :  { %v10781_v53 = vpop.f32.mrb[130].mxu1  ;;  %v5560_v23 = vsel %vm511_vm2, %v5529_v0, -inf }
0x1c1e   :  { %5561 = vmax.xlane.f32.xlu0 %v5560_v23  ;;  %v5532_v41 = vpop.f32.mrb[131].mxu1  ;;  %v5569_v22 = vsel %vm511_vm2, %v10781_v53, -inf }
0x1c1f   :  { %v5563_v47 = vsel %vm511_vm2, %v5532_v41, -inf }
0x1c20   :  { %5564 = vmax.xlane.f32.xlu1 %v5563_v47 }
0x1c22   :  { %5567 = vmax.xlane.f32.xlu0 %v5566_v10 }
0x1c23   :  { %v10784_v56 = vpop.f32.mrb[132].mxu1 }
0x1c24   :  { %v5545_v39 = vpop.f32.mrb[133].mxu1  ;;  %v5578_v62 = vsel %vm511_vm2, %v10784_v56, -inf }
0x1c25   :  { %v14954_v19 = vpop.f32.mrb[134].mxu1  ;;  %v5572_v28 = vsel %vm511_vm2, %v5545_v39, -inf }
0x1c26   :  { %5570 = vmax.xlane.f32.xlu0 %v5569_v22  ;;  %v5548_v35 = vpop.f32.mrb[135].mxu1  ;;  %v5581_v33 = vsel %vm511_vm2, %v14954_v19, -inf }
0x1c27   :  { %v5575_v15 = vsel %vm511_vm2, %v5548_v35, -inf }
0x1c28   :  { %5576 = vmax.xlane.f32.xlu1 %v5575_v15 }
0x1c2a   :  { %5573 = vmax.xlane.f32.xlu0 %v5572_v28 }
0x1c2c   :  { %5582 = vmax.xlane.f32.xlu1 %v5581_v33 }
0x1c2e   :  { %5579 = vmax.xlane.f32.xlu0 %v5578_v62 }
0x1cab   :  { %v5562_v51 = vpop.xlane.xlu0 %5561 }
0x1cac   :  { %v5584_v61 = vsub.f32 %v5529_v0, %v5562_v51 }
0x1cad   :  { %v5565_v60 = vpop.xlane.xlu1 %5564 }
0x1cae   :  { %v5592_v59 = vmul.f32 1.442695, %v5584_v61  ;;  %v5585_v30 = vsub.f32 %v5532_v41, %v5565_v60 }
0x1caf   :  { %v5568_v42 = vpop.xlane.xlu0 %5567 }
0x1cb0   :  { %v5586_v46 = vsub.f32 %v10780_v36, %v5568_v42  ;;  %v5594_v47 = vmul.f32 1.442695, %v5585_v30 }
0x1cb2   :  { %v5596_v3 = vmul.f32 1.442695, %v5586_v46 }
0x1cb3   :  { %v5571_v2 = vpop.xlane.xlu0 %5570 }
0x1cb4   :  { %11938 = vpow2.f32 %v5596_v3  ;;  %v5587_v23 = vsub.f32 %v10781_v53, %v5571_v2 }
0x1cb5   :  { %11940 = vpow2.f32 %v5592_v59  ;;  %v5577_v3 = vpop.xlane.xlu1 %5576 }
0x1cb6   :  { %v5598_v10 = vmul.f32 1.442695, %v5587_v23 }
0x1cb7   :  { %v5574_v22 = vpop.xlane.xlu0 %5573 }
0x1cb8   :  { %11942 = vpow2.f32 %v5598_v10  ;;  %v5588_v15 = vsub.f32 %v5545_v39, %v5574_v22 }
0x1cb9   :  { %11944 = vpow2.f32 %v5594_v47  ;;  %v5583_v2 = vpop.xlane.xlu1 %5582  ;;  %v5589_v47 = vsub.f32 %v5548_v35, %v5577_v3 }
0x1cba   :  { %v5600_v0 = vmul.f32 1.442695, %v5588_v15  ;;  %v5591_v23 = vsub.f32 %v14954_v19, %v5583_v2  ;;  %v4851_v2 = vadd.f32 %v14944_v45, %v14420_v21 }
0x1cbb   :  { %v5580_v28 = vpop.xlane.xlu0 %5579  ;;  %v5602_v22 = vmul.f32 1.442695, %v5589_v47 }
0x1cbc   :  { %v5590_v33 = vsub.f32 %v10784_v56, %v5580_v28  ;;  %v5606_v10 = vmul.f32 1.442695, %v5591_v23 }
0x1cbe   :  { %v14962_v62 = vpop.eup %11938  ;;  %v5604_v51 = vmul.f32 1.442695, %v5590_v33  ;;  %v4844_v33 = vadd.f32 %v14917_v58, %v14334_v29 }
0x1cbf   :  { %v5614_v36 = vsel %vm511_vm2, %v14962_v62, 0.0  ;;  %v14966_v41 = vpop.eup %11940 }
0x1cc0   :  { %11946 = vpow2.f32 %v5604_v51  ;;  %5615 = vadd.xlane.f32.xlu0 %v5614_v36  ;;  %v5608_v61 = vsel %vm511_vm2, %v14966_v41, 0.0  ;;  %v4846_v51 = vadd.f32 %v14923_v63, %v14329_v26  ;;  %v4848_v26 = vadd.f32 %v14930_v4, %v14404_v55 }
0x1cc1   :  { %11948 = vpow2.f32 %v5600_v0  ;;  %v15018_v0 = vadd.f32 %v14468_v16, %v4844_v33 }
0x1cc2   :  { %v14968_v53 = vpop.eup %11942  ;;  %11950 = vpow2.f32 %v5606_v10  ;;  %v15025_v36 = vadd.f32 %v14468_v16, %v4846_v51 }
0x1cc3   :  { %v5617_v56 = vsel %vm511_vm2, %v14968_v53, 0.0  ;;  %v14974_v39 = vpop.eup %11944  ;;  %11952 = vpow2.f32 %v5602_v22  ;;  %17288 = vst [vmem:[#allocation36_spill] sm:$0xff] %v15018_v0  ;;  %v5025_v29 = vsel %vm511_vm2, %v15018_v0, 0.0 }
0x1cc4   :  { %5609 = vadd.xlane.f32.xlu0 %v5608_v61  ;;  %5618 = vadd.xlane.f32.xlu1 %v5617_v56  ;;  %v5611_v60 = vsel %vm511_vm2, %v14974_v39, 0.0  ;;  %17289 = vst [vmem:[#allocation35_spill] sm:$0xff] %v15025_v36  ;;  %v4847_v61 = vadd.f32 %v14925_v37, %v14339_v48  ;;  %v5031_v63 = vsel %vm511_vm2, %v15025_v36, 0.0  ;;  %v15043_v48 = vadd.f32 %v14468_v16, %v4848_v26 }
0x1cc5   :  { %v4850_v37 = vadd.f32 %v14941_v38, %v14388_v5  ;;  %v4845_v38 = vadd.f32 %v14919_v52, %v14346_v9  ;;  %v15077_v9 = vadd.f32 %v14468_v16, %v4851_v2 }
0x1cc6   :  { %v15034_v58 = vadd.f32 %v14468_v16, %v4847_v61  ;;  %17291 = vst [vmem:[#allocation38_spill] sm:$0xff] %v15043_v48  ;;  %v5037_v4 = vsel %vm511_vm2, %v15043_v48, 0.0 }
0x1cc7   :  { %v15052_v55 = vadd.f32 %v14468_v16, %v4850_v37  ;;  %17295 = vst [vmem:[#allocation27_spill] sm:$0xff] %v15077_v9  ;;  %v5046_v21 = vsel %vm511_vm2, %v15077_v9, 0.0 }
0x1cc8   :  { %5612 = vadd.xlane.f32.xlu1 %v5611_v60  ;;  %17290 = vst [vmem:[#allocation40_spill] sm:$0xff] %v15034_v58  ;;  %v5034_v56 = vsel %vm511_vm2, %v15034_v58, 0.0  ;;  %v15065_v60 = vadd.f32 %v14468_v16, %v4845_v38 }
0x1cc9   :  { %17292 = vst [vmem:[#allocation39_spill] sm:$0xff] %v15052_v55  ;;  %v5043_v5 = vsel %vm511_vm2, %v15052_v55, 0.0 }
0x1cca   :  { %v14978_v42 = vpop.eup %11946  ;;  %17293 = vst [vmem:[#allocation37_spill] sm:$0xff] %v15065_v60  ;;  %v5028_v10 = vsel %vm511_vm2, %v15065_v60, 0.0 }
0x1ccb   :  { %v5626_v46 = vsel %vm511_vm2, %v14978_v42, 0.0  ;;  %v14982_v59 = vpop.eup %11948 }
0x1ccc   :  { %5627 = vadd.xlane.f32.xlu0 %v5626_v46  ;;  %v5620_v30 = vsel %vm511_vm2, %v14982_v59, 0.0  ;;  %v15003_v15 = vpop.eup %11950  ;;  %v4849_v46 = vadd.f32 %v14932_v25, %v14431_v24 }
0x1ccd   :  { %v5629_v19 = vsel %vm511_vm2, %v15003_v15, 0.0  ;;  %v15009_v35 = vpop.eup %11952 }
0x1cce   :  { %v5623_v28 = vsel %vm511_vm2, %v15009_v35, 0.0  ;;  %v15070_v3 = vadd.f32 %v14468_v16, %v4849_v46 }
0x1cd0   :  { %5621 = vadd.xlane.f32.xlu0 %v5620_v30  ;;  %17294 = vst [vmem:[#allocation29_spill] sm:$0xff] %v15070_v3  ;;  %v5040_v52 = vsel %vm511_vm2, %v15070_v3, 0.0 }
0x1cd9   :  { %5739 = vrot.lane.b32.xlu1 %v14895_v54, %s12350_s3 }
0x1cdd   :  { %5741 = vrot.lane.b32.xlu1 %v14901_v34, %s12350_s3 }
0x1ce6   :  { %5737 = vrot.lane.b32.xlu0 %v14887_v7, %s12350_s3 }
0x1cea   :  { %5729 = vrot.lane.b32.xlu0 %v14887_v7, %s12351_s17 }
0x1cee   :  { %5731 = vrot.lane.b32.xlu0 %v14895_v54, %s12351_s17 }
0x1cf2   :  { %6031 = vrot.lane.b32.xlu0 %v14901_v34, %s12352_s4 }
0x1cf6   :  { %5735 = vrot.lane.b32.xlu0 %v14907_v8, %s12351_s17 }
0x1cfa   :  { %6019 = vrot.lane.b32.xlu0 %v14887_v7, %s12353_s18 }
0x1cfe   :  { %6023 = vrot.lane.b32.xlu0 %v14901_v34, %s12353_s18 }
0x1d01   :  { %5630 = vadd.xlane.f32.xlu1 %v5629_v19 }
0x1d05   :  { %5624 = vadd.xlane.f32.xlu1 %v5623_v28 }
0x1d16   :  { %5743 = vrot.lane.b32.xlu1 %v14907_v8, %s12350_s3 }
0x1d1a   :  { %6027 = vrot.lane.b32.xlu1 %v14887_v7, %s12352_s4 }
0x1d1d   :  { %5026 = vadd.xlane.f32.xlu0 %v5025_v29 }
0x1d1e   :  { %6029 = vrot.lane.b32.xlu1 %v14895_v54, %s12352_s4 }
0x1d21   :  { %5032 = vadd.xlane.f32.xlu0 %v5031_v63 }
0x1d22   :  { %5733 = vrot.lane.b32.xlu1 %v14901_v34, %s12351_s17 }
0x1d25   :  { %5035 = vadd.xlane.f32.xlu0 %v5034_v56 }
0x1d26   :  { %6033 = vrot.lane.b32.xlu1 %v14907_v8, %s12352_s4 }
0x1d29   :  { %5038 = vadd.xlane.f32.xlu0 %v5037_v4 }
0x1d2a   :  { %6021 = vrot.lane.b32.xlu1 %v14895_v54, %s12353_s18 }
0x1d2d   :  { %5044 = vadd.xlane.f32.xlu0 %v5043_v5 }
0x1d2e   :  { %6025 = vrot.lane.b32.xlu1 %v14907_v8, %s12353_s18 }
0x1d4d   :  { %v5616_v30 = vpop.xlane.xlu0 %5615 }
0x1d51   :  { %v5610_v23 = vpop.xlane.xlu0 %5609  ;;  %v5619_v47 = vpop.xlane.xlu1 %5618 }
0x1d52   :  { %5029 = vadd.xlane.f32.xlu1 %v5028_v10  ;;  %11954 = vrcp.f32 %v5619_v47 }
0x1d53   :  { %11956 = vrcp.f32 %v5610_v23 }
0x1d54   :  { %11958 = vrcp.f32 %v5616_v30 }
0x1d55   :  { %v5613_v24 = vpop.xlane.xlu1 %5612 }
0x1d56   :  { %11960 = vrcp.f32 %v5613_v24  ;;  %5041 = vadd.xlane.f32.xlu1 %v5040_v52 }
0x1d59   :  { %v5628_v25 = vpop.xlane.xlu0 %5627  ;;  %v5740_v4 = vpop.permute.xlu1 %5739 }
0x1d5a   :  { %5047 = vadd.xlane.f32.xlu1 %v5046_v21 }
0x1d5c   :  { %v11955_v45 = vpop.eup %11954 }
0x1d5d   :  { %v5622_v22 = vpop.xlane.xlu0 %5621  ;;  %v11957_v19 = vpop.eup %11956  ;;  %v5643_v16 = vmul.f32 %v11955_v45, %v14968_v53 }
0x1d5e   :  { %v11959_v28 = vpop.eup %11958  ;;  %v5640_v61 = vmul.f32 %v11957_v19, %v14966_v41  ;;  %v5761_v41 = vsel %vm123_vm0, %v5740_v4, 0  ;;  %v5742_v53 = vpop.permute.xlu1 %5741 }
0x1d5f   :  { %v5642_v26 = vmul.f32 %v11959_v28, %v14962_v62  ;;  %v5764_v62 = vsel %vm123_vm0, %v5742_v53, 0 }
0x1d60   :  { %v11961_v33 = vpop.eup %11960 }
0x1d61   :  { %v5738_v51 = vpop.permute.xlu0 %5737  ;;  %v5641_v29 = vmul.f32 %v11961_v33, %v14974_v39  ;;  %v5649_v37 = vpack.c.bf16 %v5643_v16, %v5642_v26 }
0x1d62   :  { %11110 = vmatprep.subr.msk.bf16.mxu1 %vm123_vm0, %v5738_v51  ;;  %v5758_v56 = vsel %vm123_vm0, %v5738_v51, 0 }
0x1d63   :  { %v5648_v63 = vpack.c.bf16 %v5641_v29, %v5640_v61 }
0x1d65   :  { %10794 = vmatprep.mubr.msk.bf16.mxu1 %vm511_vm2, %v5648_v63  ;;  %v5730_v39 = vpop.permute.xlu0 %5729 }
0x1d66   :  { %10795 = vmatmul.mubr.msk.bf16.vlgmr.msra.gmra.mrb[136].mxu1 %vm511_vm2, %v5649_v37 }
0x1d67   :  { %10803 = vmatpush3.bf16.xpose.msra.mxu1 %v5758_v56 }
0x1d68   :  { %11111 = vmatprep.subr.msk.bf16.mxu1 %vm123_vm0, %v5740_v4 }
0x1d69   :  { %v5732_v5 = vpop.permute.xlu0 %5731 }
0x1d6d   :  { %v6032_v30 = vpop.permute.xlu0 %6031 }
0x1d6f   :  { %10805 = vmatpush3.bf16.xpose.msra.mxu1 %v5761_v41 }
0x1d70   :  { %11112 = vmatprep.subr.msk.bf16.mxu1 %vm123_vm0, %v5742_v53 }
0x1d71   :  { %v5736_v10 = vpop.permute.xlu0 %5735 }
0x1d75   :  { %v6020_v33 = vpop.permute.xlu0 %6019 }
0x1d77   :  { %10807 = vmatpush3.bf16.xpose.msra.mxu1 %v5764_v62 }
0x1d79   :  { %v6024_v29 = vpop.permute.xlu0 %6023 }
0x1d8e   :  { %v5631_v38 = vpop.xlane.xlu1 %5630 }
0x1d8f   :  { %11962 = vrcp.f32 %v5631_v38 }
0x1d90   :  { %11964 = vrcp.f32 %v5622_v22 }
0x1d91   :  { %11966 = vrcp.f32 %v5628_v25 }
0x1d92   :  { %v5625_v46 = vpop.xlane.xlu1 %5624 }
0x1d93   :  { %11968 = vrcp.f32 %v5625_v46 }
0x1d96   :  { %v5744_v2 = vpop.permute.xlu1 %5743 }
0x1d97   :  { %11113 = vmatprep.subr.msk.bf16.mxu1 %vm123_vm0, %v5744_v2  ;;  %v5767_v23 = vsel %vm123_vm0, %v5744_v2, 0 }
0x1d98   :  { %10809 = vmatpush3.bf16.xpose.msra.mxu1 %v5767_v23 }
0x1d99   :  { %v11963_v47 = vpop.eup %11962 }
0x1d9a   :  { %v6028_v24 = vpop.permute.xlu1 %6027  ;;  %v11965_v52 = vpop.eup %11964  ;;  %v5647_v22 = vmul.f32 %v11963_v47, %v15003_v15 }
0x1d9b   :  { %11114 = vmatprep.subr.msk.bf16.mxu1 %vm123_vm0, %v6028_v24  ;;  %v11967_v21 = vpop.eup %11966  ;;  %v5644_v25 = vmul.f32 %v11965_v52, %v14982_v59  ;;  %v6048_v59 = vsel %vm123_vm0, %v6028_v24, 0 }
0x1d9c   :  { %v5646_v28 = vmul.f32 %v11967_v21, %v14978_v42 }
0x1d9d   :  { %v11969_v45 = vpop.eup %11968 }
0x1d9e   :  { %v5645_v19 = vmul.f32 %v11969_v45, %v15009_v35  ;;  %v5651_v51 = vpack.c.bf16 %v5647_v22, %v5646_v28  ;;  %v6030_v61 = vpop.permute.xlu1 %6029 }
0x1d9f   :  { %v6051_v62 = vsel %vm123_vm0, %v6030_v61, 0 }
0x1da0   :  { %v5650_v16 = vpack.c.bf16 %v5645_v19, %v5644_v25 }
0x1da2   :  { %10798 = vmatprep.mubr.msk.bf16.mxu1 %vm511_vm2, %v5650_v16  ;;  %v5734_v63 = vpop.permute.xlu1 %5733 }
0x1da3   :  { %10799 = vmatmul.mubr.msk.bf16.gmra.mrb[140].mxu1 %vm511_vm2, %v5651_v51 }
0x1da4   :  { %10810 = vmatprep.mubr.msk.bf16.mxu1 %vm123_vm0, %v5730_v39 }
0x1da6   :  { %v6034_v52 = vpop.permute.xlu1 %6033 }
0x1daa   :  { %v5027_v26 = vpop.xlane.xlu0 %5026  ;;  %v6022_v19 = vpop.permute.xlu1 %6021 }
0x1dab   :  { %v5057_v15 = vmul.f32 0.015625, %v5027_v26  ;;  %10811 = vmatmul.mubr.msk.bf16.vlgmr.msra.gmra.mrb[144].mxu1 %vm123_vm0, %v5732_v5 }
0x1dac   :  { %10835 = vmatpush3.bf16.xpose.msra.mxu1 %v6048_v59  ;;  %10814 = vmatprep.mubr.msk.bf16.mxu1 %vm123_vm0, %v5734_v63 }
0x1dad   :  { %v15109_v42 = vsub.f32 %v15018_v0, %v5057_v15  ;;  %11115 = vmatprep.subr.msk.bf16.mxu1 %vm123_vm0, %v6030_v61 }
0x1dae   :  { %v5033_v35 = vpop.xlane.xlu0 %5032  ;;  %v6026_v28 = vpop.permute.xlu1 %6025 }
0x1daf   :  { %v5059_v37 = vmul.f32 0.015625, %v5033_v35  ;;  %v5089_v56 = vmul.f32 %v15109_v42, %v15109_v42 }
0x1db1   :  { %v15115_v4 = vsub.f32 %v15025_v36, %v5059_v37  ;;  %v5121_v41 = vsel %vm511_vm2, %v5089_v56, 0.0 }
0x1db2   :  { %5122 = vadd.xlane.f32.xlu0 %v5121_v41  ;;  %v5036_v53 = vpop.xlane.xlu0 %5035 }
0x1db3   :  { %10815 = vmatmul.mubr.msk.bf16.gmra.mrb[148].mxu1 %vm123_vm0, %v5736_v10  ;;  %v5091_v39 = vmul.f32 %v15115_v4, %v15115_v4  ;;  %v6054_v10 = vsel %vm123_vm0, %v6032_v30, 0 }
0x1db4   :  { %10837 = vmatpush3.bf16.xpose.msra.mxu1 %v6051_v62  ;;  %10842 = vmatprep.mubr.msk.bf16.mxu1 %vm123_vm0, %v6020_v33  ;;  %v5060_v33 = vmul.f32 0.015625, %v5036_v53 }
0x1db5   :  { %11116 = vmatprep.subr.msk.bf16.mxu1 %vm123_vm0, %v6032_v30  ;;  %v5127_v5 = vsel %vm511_vm2, %v5091_v39, 0.0  ;;  %v6057_v30 = vsel %vm123_vm0, %v6034_v52, 0 }
0x1db6   :  { %5128 = vadd.xlane.f32.xlu0 %v5127_v5  ;;  %v5039_v38 = vpop.xlane.xlu0 %5038  ;;  %v15148_v61 = vsub.f32 %v15034_v58, %v5060_v33 }
0x1db7   :  { %v5061_v46 = vmul.f32 0.015625, %v5039_v38 }
0x1db8   :  { %v5092_v37 = vmul.f32 %v15148_v61, %v15148_v61 }
0x1db9   :  { %v15126_v2 = vsub.f32 %v15043_v48, %v5061_v46 }
0x1dba   :  { %v5045_v23 = vpop.xlane.xlu0 %5044  ;;  %v5130_v62 = vsel %vm511_vm2, %v5092_v37, 0.0 }
0x1dbb   :  { %v5063_v47 = vmul.f32 0.015625, %v5045_v23  ;;  %v5093_v24 = vmul.f32 %v15126_v2, %v15126_v2 }
0x1dbc   :  { %10839 = vmatpush3.bf16.xpose.msra.mxu1 %v6054_v10 }
0x1dbd   :  { %v15132_v21 = vsub.f32 %v15052_v55, %v5063_v47  ;;  %11117 = vmatprep.subr.msk.bf16.mxu1 %vm123_vm0, %v6034_v52  ;;  %v5133_v45 = vsel %vm511_vm2, %v5093_v24, 0.0 }
0x1dbe   :  { %5134 = vadd.xlane.f32.xlu0 %v5133_v45 }
0x1dbf   :  { %v5095_v22 = vmul.f32 %v15132_v21, %v15132_v21 }
0x1dc1   :  { %v5139_v25 = vsel %vm511_vm2, %v5095_v22, 0.0 }
0x1dc2   :  { %5140 = vadd.xlane.f32.xlu0 %v5139_v25 }
0x1dc4   :  { %10841 = vmatpush3.bf16.xpose.msra.mxu1 %v6057_v30 }
0x1dcb   :  { %10843 = vmatmul.mubr.msk.bf16.vlgmr.msra.gmra.mrb[152].mxu1 %vm123_vm0, %v6022_v19 }
0x1dcc   :  { %10846 = vmatprep.mubr.msk.bf16.mxu1 %vm123_vm0, %v6024_v29 }
0x1dd3   :  { %10847 = vmatmul.mubr.msk.bf16.gmra.mrb[156].mxu1 %vm123_vm0, %v6026_v28 }
0x1dd8   :  { %5930 = vrot.lane.b32.xlu0 %v14889_v44, %s12351_s17 }
0x1ddc   :  { %5934 = vrot.lane.b32.xlu0 %v14903_v57, %s12351_s17 }
0x1ddf   :  { %v5030_v16 = vpop.xlane.xlu1 %5029 }
0x1de0   :  { %v5058_v51 = vmul.f32 0.015625, %v5030_v16 }
0x1de2   :  { %v15151_v26 = vsub.f32 %v15065_v60, %v5058_v51 }
0x1de3   :  { %v5042_v63 = vpop.xlane.xlu1 %5041 }
0x1de4   :  { %v5062_v29 = vmul.f32 0.015625, %v5042_v63  ;;  %v5090_v15 = vmul.f32 %v15151_v26, %v15151_v26 }
0x1de6   :  { %v15156_v59 = vsub.f32 %v15070_v3, %v5062_v29  ;;  %v5124_v35 = vsel %vm511_vm2, %v5090_v15, 0.0 }
0x1de7   :  { %5125 = vadd.xlane.f32.xlu1 %v5124_v35  ;;  %v5048_v56 = vpop.xlane.xlu1 %5047 }
0x1de8   :  { %v5064_v41 = vmul.f32 0.015625, %v5048_v56  ;;  %v5094_v39 = vmul.f32 %v15156_v59, %v15156_v59 }
0x1dea   :  { %v15162_v53 = vsub.f32 %v15077_v9, %v5064_v41  ;;  %v5136_v5 = vsel %vm511_vm2, %v5094_v39, 0.0 }
0x1deb   :  { %5131 = vadd.xlane.f32.xlu1 %v5130_v62 }
0x1dec   :  { %v5096_v38 = vmul.f32 %v15162_v53, %v15162_v53 }
0x1dee   :  { %v5142_v46 = vsel %vm511_vm2, %v5096_v38, 0.0 }
0x1def   :  { %5137 = vadd.xlane.f32.xlu1 %v5136_v5 }
0x1df3   :  { %5143 = vadd.xlane.f32.xlu1 %v5142_v46 }
0x1e04   :  { %5932 = vrot.lane.b32.xlu1 %v14897_v13, %s12351_s17 }
0x1e08   :  { %5936 = vrot.lane.b32.xlu1 %v14909_v12, %s12351_s17 }
0x1e39   :  { %v15175_v23 = vpop.f32.mrb[136].mxu1 }
0x1e3a   :  { %17296 = vst [vmem:[#allocation28_spill] sm:$0xff] %v15175_v23  ;;  %v15177_v47 = vpop.f32.mrb[137].mxu1 }
0x1e3b   :  { %v15179_v10 = vpop.f32.mrb[138].mxu1 }
0x1e3c   :  { %17297 = vst [vmem:[#allocation26_spill] sm:$0xff] %v15179_v10  ;;  %v15181_v24 = vpop.f32.mrb[139].mxu1 }
0x1e3f   :  { %v5123_v52 = vpop.xlane.xlu0 %5122 }
0x1e40   :  { %v5153_v19 = vmul.f32 0.015625, %v5123_v52 }
0x1e42   :  { %v5169_v28 = vadd.f32 1e-05, %v5153_v19 }
0x1e43   :  { %v5129_v45 = vpop.xlane.xlu0 %5128 }
0x1e44   :  { %11970 = vrsqrt.f32 %v5169_v28  ;;  %v5155_v33 = vmul.f32 0.015625, %v5129_v45 }
0x1e46   :  { %v5171_v29 = vadd.f32 1e-05, %v5155_v33 }
0x1e4b   :  { %v5135_v22 = vpop.xlane.xlu0 %5134 }
0x1e4c   :  { %v5157_v39 = vmul.f32 0.015625, %v5135_v22 }
0x1e4e   :  { %v11971_v46 = vpop.eup %11970 }
0x1e4f   :  { %v5141_v25 = vpop.xlane.xlu0 %5140  ;;  %v5201_v22 = vmul.f32 %v11971_v46, %v15109_v42 }
0x1e51   :  { %v5221_v42 = vmul.f32 %v14701_v17, %v5201_v22 }
0x1e53   :  { %v5931_v30 = vpop.permute.xlu0 %5930 }
0x1e54   :  { %10818 = vmatprep.subr.bf16.mxu0 %v5931_v30 }
0x1e55   :  { %10819 = vmatpush3.bf16.msra.mxu0 %v5931_v30  ;;  %v5173_v30 = vadd.f32 1e-05, %v5157_v39  ;;  %v5159_v39 = vmul.f32 0.015625, %v5141_v25 }
0x1e74   :  { %v5126_v16 = vpop.xlane.xlu1 %5125 }
0x1e75   :  { %v5154_v51 = vmul.f32 0.015625, %v5126_v16 }
0x1e76   :  { %v15183_v63 = vpop.f32.mrb[140].mxu1 }
0x1e77   :  { %17298 = vst [vmem:[#allocation33_spill] sm:$0xff] %v15183_v63  ;;  %v5170_v15 = vadd.f32 1e-05, %v5154_v51  ;;  %v15185_v35 = vpop.f32.mrb[141].mxu1 }
0x1e78   :  { %17299 = vst [vmem:[#allocation31_spill] sm:$0xff] %v15185_v35  ;;  %v15187_v37 = vpop.f32.mrb[142].mxu1  ;;  %v5132_v56 = vpop.xlane.xlu1 %5131 }
0x1e79   :  { %17300 = vst [vmem:[#allocation32_spill] sm:$0xff] %v15187_v37  ;;  %11972 = vrsqrt.f32 %v5170_v15  ;;  %v5156_v41 = vmul.f32 0.015625, %v5132_v56  ;;  %v15189_v62 = vpop.f32.mrb[143].mxu1 }
0x1e7a   :  { %11974 = vrsqrt.f32 %v5171_v29 }
0x1e7b   :  { %v5172_v5 = vadd.f32 1e-05, %v5156_v41 }
0x1e7c   :  { %v5138_v38 = vpop.xlane.xlu1 %5137 }
0x1e7d   :  { %11976 = vrsqrt.f32 %v5172_v5  ;;  %v5158_v52 = vmul.f32 0.015625, %v5138_v38 }
0x1e7e   :  { %v15191_v45 = vpop.f32.mrb[144].mxu1 }
0x1e7f   :  { %v5174_v19 = vadd.f32 1e-05, %v5158_v52  ;;  %v15193_v28 = vpop.f32.mrb[145].mxu1  ;;  %v5840_v33 = vsel %vm511_vm2, %v15191_v45, -inf }
0x1e80   :  { %5841 = vmax.xlane.f32.xlu0 %v5840_v33  ;;  %v15197_v16 = vpop.f32.mrb[146].mxu1  ;;  %v5144_v51 = vpop.xlane.xlu1 %5143  ;;  %v5834_v5 = vsel %vm511_vm2, %v15193_v28, -inf }
0x1e81   :  { %11978 = vrsqrt.f32 %v5174_v19  ;;  %v5160_v29 = vmul.f32 0.015625, %v5144_v51  ;;  %v15200_v15 = vpop.f32.mrb[147].mxu1  ;;  %v5843_v56 = vsel %vm511_vm2, %v15197_v16, -inf  ;;  %v5935_v51 = vpop.permute.xlu0 %5934 }
0x1e82   :  { %5844 = vmax.xlane.f32.xlu1 %v5843_v56  ;;  %11980 = vrsqrt.f32 %v5173_v30  ;;  %v5837_v33 = vsel %vm511_vm2, %v15200_v15, -inf }
0x1e83   :  { %v11973_v41 = vpop.eup %11972  ;;  %v5176_v19 = vadd.f32 1e-05, %v5160_v29  ;;  %v5241_v29 = vadd.f32 %v14705_v40, %v5221_v42 }
0x1e84   :  { %5835 = vmax.xlane.f32.xlu0 %v5834_v5  ;;  %v5933_v38 = vpop.permute.xlu1 %5932  ;;  %v5202_v52 = vmul.f32 %v11973_v41, %v15151_v26  ;;  %v11975_v46 = vpop.eup %11974  ;;  %v5175_v5 = vadd.f32 1e-05, %v5159_v39 }
0x1e85   :  { %10820 = vmatprep.subr.bf16.mxu0 %v5933_v38  ;;  %11982 = vrsqrt.f32 %v5176_v19 }
0x1e86   :  { %v15210_v56 = vpop.f32.mrb[148].mxu1  ;;  %5838 = vmax.xlane.f32.xlu1 %v5837_v33  ;;  %10821 = vmatpush3.bf16.msra.mxu0 %v5933_v38  ;;  %v5222_v25 = vmul.f32 %v14701_v17, %v5202_v52  ;;  %v5203_v33 = vmul.f32 %v11975_v46, %v15115_v4  ;;  %11984 = vrsqrt.f32 %v5175_v5 }
0x1e87   :  { %v11977_v30 = vpop.eup %11976  ;;  %v15213_v49 = vpop.f32.mrb[149].mxu1  ;;  %10822 = vmatprep.subr.bf16.mxu0 %v5935_v51  ;;  %v5852_v26 = vsel %vm511_vm2, %v15210_v56, -inf }
0x1e88   :  { %5853 = vmax.xlane.f32.xlu0 %v5852_v26  ;;  %v15217_v22 = vpop.f32.mrb[150].mxu1  ;;  %v5242_v41 = vadd.f32 %v14705_v40, %v5222_v25  ;;  %v5204_v38 = vmul.f32 %v11977_v30, %v15148_v61  ;;  %v5937_v3 = vpop.permute.xlu1 %5936  ;;  %v5846_v4 = vsel %vm511_vm2, %v15213_v49, -inf  ;;  %v5223_v61 = vmul.f32 %v14701_v17, %v5203_v33 }
0x1e89   :  { %v15223_v52 = vpop.f32.mrb[151].mxu1  ;;  %v5855_v39 = vsel %vm511_vm2, %v15217_v22, -inf }
0x1e8a   :  { %5856 = vmax.xlane.f32.xlu1 %v5855_v39  ;;  %10823 = vmatpush3.bf16.msra.mxu0 %v5935_v51  ;;  %v5253_v26 = vpack.c.bf16 %v5242_v41, %v5241_v29  ;;  %v5224_v9 = vmul.f32 %v14701_v17, %v5204_v38  ;;  %v5849_v46 = vsel %vm511_vm2, %v15223_v52, -inf  ;;  %v5243_v25 = vadd.f32 %v14705_v40, %v5223_v61 }
0x1e8b   :  { %v11979_v48 = vpop.eup %11978  ;;  %10824 = vmatprep.subr.bf16.mxu0 %v5937_v3 }
0x1e8c   :  { %5847 = vmax.xlane.f32.xlu0 %v5846_v4  ;;  %9832 = vmatmul.mubr.msk.bf16.gmra.mrb[160].mxu0 %vm511_vm2, %v5253_v26  ;;  %v11981_v42 = vpop.eup %11980  ;;  %v5244_v19 = vadd.f32 %v14705_v40, %v5224_v9  ;;  %v5206_v51 = vmul.f32 %v11979_v48, %v15156_v59 }
0x1e8d   :  { %5412 = vmatprep.mubr.bf16.mxu0 %v17215_v14  ;;  %v5205_v30 = vmul.f32 %v11981_v42, %v15126_v2 }
0x1e8e   :  { %5850 = vmax.xlane.f32.xlu1 %v5849_v46  ;;  %10825 = vmatpush3.bf16.msra.mxu0 %v5937_v3  ;;  %v5254_v5 = vpack.c.bf16 %v5244_v19, %v5243_v25  ;;  %v5226_v29 = vmul.f32 %v14701_v17, %v5206_v51 }
0x1e8f   :  { %v11983_v41 = vpop.eup %11982  ;;  %v5225_v33 = vmul.f32 %v14701_v17, %v5205_v30 }
0x1e90   :  { %v11985_v38 = vpop.eup %11984  ;;  %v5246_v3 = vadd.f32 %v14705_v40, %v5226_v29  ;;  %v5208_v9 = vmul.f32 %v11983_v41, %v15162_v53 }
0x1e91   :  { %v5245_v48 = vadd.f32 %v14705_v40, %v5225_v33  ;;  %v5207_v59 = vmul.f32 %v11985_v38, %v15132_v21 }
0x1e92   :  { %v5228_v39 = vmul.f32 %v14701_v17, %v5208_v9 }
0x1e93   :  { %v5255_v2 = vpack.c.bf16 %v5246_v3, %v5245_v48  ;;  %v5227_v26 = vmul.f32 %v14701_v17, %v5207_v59 }
0x1e94   :  { %9833 = vmatmul.mubr.msk.bf16.gmra.mrb[164].mxu0 %vm511_vm2, %v5254_v5  ;;  %v5248_v61 = vadd.f32 %v14705_v40, %v5228_v39 }
0x1e95   :  { %5422 = vmatprep.mubr.bf16.mxu0 %v17215_v14  ;;  %v5247_v46 = vadd.f32 %v14705_v40, %v5227_v26 }
0x1e97   :  { %v5256_v51 = vpack.c.bf16 %v5248_v61, %v5247_v46 }
0x1e9c   :  { %9834 = vmatmul.mubr.msk.bf16.gmra.mrb[168].mxu0 %vm511_vm2, %v5255_v2 }
0x1e9d   :  { %5432 = vmatprep.mubr.bf16.mxu0 %v17215_v14 }
0x1e9e   :  { %v15251_v4 = vpop.f32.mrb[152].mxu1 }
0x1e9f   :  { %v15254_v42 = vpop.f32.mrb[153].mxu1  ;;  %v6130_v53 = vsel %vm511_vm2, %v15251_v4, -inf }
0x1ea0   :  { %6131 = vmax.xlane.f32.xlu0 %v6130_v53  ;;  %v15258_v21 = vpop.f32.mrb[154].mxu1  ;;  %v6124_v25 = vsel %vm511_vm2, %v15254_v42, -inf }
0x1ea1   :  { %v15261_v19 = vpop.f32.mrb[155].mxu1  ;;  %v6133_v17 = vsel %vm511_vm2, %v15258_v21, -inf }
0x1ea2   :  { %6134 = vmax.xlane.f32.xlu1 %v6133_v17  ;;  %v6127_v30 = vsel %vm511_vm2, %v15261_v19, -inf }
0x1ea4   :  { %6125 = vmax.xlane.f32.xlu0 %v6124_v25  ;;  %9835 = vmatmul.mubr.msk.bf16.gmra.mrb[172].mxu0 %vm511_vm2, %v5256_v51 }
0x1ea6   :  { %v15270_v5 = vpop.f32.mrb[156].mxu1  ;;  %6128 = vmax.xlane.f32.xlu1 %v6127_v30 }
0x1ea7   :  { %v15272_v40 = vpop.f32.mrb[157].mxu1  ;;  %v6142_v29 = vsel %vm511_vm2, %v15270_v5, -inf }
0x1ea8   :  { %6143 = vmax.xlane.f32.xlu0 %v6142_v29  ;;  %v15276_v41 = vpop.f32.mrb[158].mxu1  ;;  %v6136_v38 = vsel %vm511_vm2, %v15272_v40, -inf }
0x1ea9   :  { %v15278_v33 = vpop.f32.mrb[159].mxu1  ;;  %v6145_v3 = vsel %vm511_vm2, %v15276_v41, -inf }
0x1eaa   :  { %v6139_v9 = vsel %vm511_vm2, %v15278_v33, -inf }
0x1eac   :  { %6137 = vmax.xlane.f32.xlu0 %v6136_v38 }
0x1eb7   :  { %6218 = vrot.lane.b32.xlu1 %v14897_v13, %s12353_s18 }
0x1ebb   :  { %6220 = vrot.lane.b32.xlu1 %v14903_v57, %s12353_s18 }
0x1ec2   :  { %6216 = vrot.lane.b32.xlu0 %v14889_v44, %s12353_s18 }
0x1edf   :  { %6146 = vmax.xlane.f32.xlu1 %v6145_v3 }
0x1ee3   :  { %6140 = vmax.xlane.f32.xlu1 %v6139_v9 }
0x1ef4   :  { %6222 = vrot.lane.b32.xlu1 %v14909_v12, %s12353_s18 }
0x1f0d   :  { %v5842_v48 = vpop.xlane.xlu0 %5841 }
0x1f0e   :  { %v5860_v59 = vsub.f32 %v15191_v45, %v5842_v48 }
0x1f0f   :  { %v5845_v2 = vpop.xlane.xlu1 %5844 }
0x1f10   :  { %v5870_v39 = vmul.f32 1.442695, %v5860_v59  ;;  %v5861_v26 = vsub.f32 %v15197_v16, %v5845_v2 }
0x1f11   :  { %v5836_v61 = vpop.xlane.xlu0 %5835 }
0x1f12   :  { %11986 = vpow2.f32 %v5870_v39  ;;  %v5872_v53 = vmul.f32 1.442695, %v5861_v26  ;;  %v5858_v46 = vsub.f32 %v15193_v28, %v5836_v61 }
0x1f13   :  { %v5839_v17 = vpop.xlane.xlu1 %5838 }
0x1f14   :  { %11988 = vpow2.f32 %v5872_v53  ;;  %v5866_v51 = vmul.f32 1.442695, %v5858_v46  ;;  %v5859_v25 = vsub.f32 %v15200_v15, %v5839_v17 }
0x1f15   :  { %v5854_v30 = vpop.xlane.xlu0 %5853 }
0x1f16   :  { %11990 = vpow2.f32 %v5866_v51  ;;  %v5868_v29 = vmul.f32 1.442695, %v5859_v25  ;;  %v5864_v38 = vsub.f32 %v15210_v56, %v5854_v30 }
0x1f17   :  { %v5857_v45 = vpop.xlane.xlu1 %5856 }
0x1f18   :  { %11992 = vpow2.f32 %v5868_v29  ;;  %v5878_v3 = vmul.f32 1.442695, %v5864_v38  ;;  %v5865_v16 = vsub.f32 %v15217_v22, %v5857_v45 }
0x1f19   :  { %v5848_v9 = vpop.xlane.xlu0 %5847 }
0x1f1a   :  { %11994 = vpow2.f32 %v5878_v3  ;;  %v5880_v48 = vmul.f32 1.442695, %v5865_v16  ;;  %v5862_v28 = vsub.f32 %v15213_v49, %v5848_v9 }
0x1f1b   :  { %v5851_v59 = vpop.xlane.xlu1 %5850 }
0x1f1c   :  { %v15301_v2 = vpop.eup %11986  ;;  %v5874_v39 = vmul.f32 1.442695, %v5862_v28  ;;  %v5863_v15 = vsub.f32 %v15223_v52, %v5851_v59  ;;  %11996 = vpow2.f32 %v5880_v48 }
0x1f1d   :  { %v5888_v56 = vsel %vm511_vm2, %v15301_v2, 0.0 }
0x1f1e   :  { %v15306_v26 = vpop.eup %11988  ;;  %11998 = vpow2.f32 %v5874_v39  ;;  %v5876_v61 = vmul.f32 1.442695, %v5863_v15  ;;  %5889 = vadd.xlane.f32.xlu0 %v5888_v56 }
0x1f1f   :  { %v5891_v22 = vsel %vm511_vm2, %v15306_v26, 0.0 }
0x1f20   :  { %v15310_v53 = vpop.eup %11990  ;;  %5892 = vadd.xlane.f32.xlu1 %v5891_v22  ;;  %12000 = vpow2.f32 %v5876_v61 }
0x1f21   :  { %v5882_v49 = vsel %vm511_vm2, %v15310_v53, 0.0 }
0x1f22   :  { %v15314_v46 = vpop.eup %11992  ;;  %5883 = vadd.xlane.f32.xlu0 %v5882_v49 }
0x1f23   :  { %v5885_v52 = vsel %vm511_vm2, %v15314_v46, 0.0 }
0x1f24   :  { %v15318_v17 = vpop.eup %11994  ;;  %5886 = vadd.xlane.f32.xlu1 %v5885_v52 }
0x1f25   :  { %v5900_v25 = vsel %vm511_vm2, %v15318_v17, 0.0 }
0x1f26   :  { %v15320_v51 = vpop.eup %11996 }
0x1f27   :  { %v5903_v38 = vsel %vm511_vm2, %v15320_v51, 0.0 }
0x1f28   :  { %v15324_v30 = vpop.eup %11998  ;;  %5901 = vadd.xlane.f32.xlu1 %v5900_v25 }
0x1f29   :  { %v5894_v29 = vsel %vm511_vm2, %v15324_v30, 0.0 }
0x1f2a   :  { %5895 = vadd.xlane.f32.xlu0 %v5894_v29  ;;  %v15330_v45 = vpop.eup %12000 }
0x1f2b   :  { %v5897_v48 = vsel %vm511_vm2, %v15330_v45, 0.0 }
0x1f2c   :  { %5904 = vadd.xlane.f32.xlu1 %v5903_v38 }
0x1f2d   :  { %v6132_v3 = vpop.xlane.xlu0 %6131 }
0x1f2e   :  { %v6150_v16 = vsub.f32 %v15251_v4, %v6132_v3 }
0x1f2f   :  { %v6135_v9 = vpop.xlane.xlu1 %6134 }
0x1f30   :  { %v6160_v28 = vmul.f32 1.442695, %v6150_v16  ;;  %v6151_v59 = vsub.f32 %v15258_v21, %v6135_v9  ;;  %5898 = vadd.xlane.f32.xlu1 %v5897_v48 }
0x1f31   :  { %v6126_v39 = vpop.xlane.xlu0 %6125 }
0x1f32   :  { %12002 = vpow2.f32 %v6160_v28  ;;  %v6162_v15 = vmul.f32 1.442695, %v6151_v59  ;;  %v6148_v56 = vsub.f32 %v15254_v42, %v6126_v39 }
0x1f33   :  { %v6129_v61 = vpop.xlane.xlu1 %6128 }
0x1f34   :  { %12004 = vpow2.f32 %v6162_v15  ;;  %v6156_v22 = vmul.f32 1.442695, %v6148_v56  ;;  %v6149_v49 = vsub.f32 %v15261_v19, %v6129_v61 }
0x1f35   :  { %v6144_v52 = vpop.xlane.xlu0 %6143 }
0x1f36   :  { %12006 = vpow2.f32 %v6156_v22  ;;  %v6158_v4 = vmul.f32 1.442695, %v6149_v49  ;;  %v6154_v25 = vsub.f32 %v15270_v5, %v6144_v52  ;;  %v4996_v22 = vrot.slane %v14878_v11, %v17262_v50 }
0x1f37   :  { %v5000_v49 = vrot.slane %v14881_v43, %v17262_v50 }
0x1f38   :  { %12008 = vpow2.f32 %v6158_v4  ;;  %v6168_v29 = vmul.f32 1.442695, %v6154_v25 }
0x1f39   :  { %v6138_v38 = vpop.xlane.xlu0 %6137 }
0x1f3a   :  { %v6152_v21 = vsub.f32 %v15272_v40, %v6138_v38  ;;  %12010 = vpow2.f32 %v6168_v29 }
0x1f3c   :  { %v15340_v3 = vpop.eup %12002  ;;  %v6164_v16 = vmul.f32 1.442695, %v6152_v21  ;;  %v15375_v21 = vpop.permute.xlu1 %6218 }
0x1f3d   :  { %v15342_v42 = vpop.permute.xlu0 %6216  ;;  %v6178_v9 = vsel %vm511_vm2, %v15340_v3, 0.0 }
0x1f3e   :  { %v15346_v19 = vpop.eup %12004  ;;  %6179 = vadd.xlane.f32.xlu0 %v6178_v9  ;;  %10850 = vmatprep.subr.bf16.mxu0 %v15342_v42  ;;  %12012 = vpow2.f32 %v6164_v16 }
0x1f3f   :  { %v6181_v48 = vsel %vm511_vm2, %v15346_v19, 0.0 }
0x1f40   :  { %v15349_v5 = vpop.eup %12006 }
0x1f41   :  { %v6172_v40 = vsel %vm511_vm2, %v15349_v5, 0.0 }
0x1f42   :  { %v15355_v28 = vpop.eup %12008  ;;  %6173 = vadd.xlane.f32.xlu1 %v6172_v40  ;;  %6182 = vadd.xlane.f32.xlu0 %v6181_v48 }
0x1f43   :  { %v6175_v59 = vsel %vm511_vm2, %v15355_v28, 0.0 }
0x1f44   :  { %v15359_v39 = vpop.eup %12010 }
0x1f45   :  { %v6190_v15 = vsel %vm511_vm2, %v15359_v39, 0.0 }
0x1f46   :  { %6176 = vadd.xlane.f32.xlu0 %v6175_v59 }
0x1f48   :  { %v15363_v56 = vpop.eup %12012 }
0x1f49   :  { %v6184_v61 = vsel %vm511_vm2, %v15363_v56, 0.0 }
0x1f4a   :  { %6191 = vadd.xlane.f32.xlu0 %v6190_v15 }
0x1f4e   :  { %6185 = vadd.xlane.f32.xlu0 %v6184_v61  ;;  %v15381_v61 = vpop.permute.xlu1 %6220 }
0x1f53   :  { %6315 = vrot.lane.b32.xlu1 %v14895_v54, %s12354_s1 }
0x1f57   :  { %6317 = vrot.lane.b32.xlu1 %v14901_v34, %s12354_s1 }
0x1f5f   :  { %v5404_v52 = vpop.f32.mrb[160].mxu0 }
0x1f60   :  { %v5405_v4 = vadd.f32 %v5404_v52, %v4996_v22  ;;  %v5406_v25 = vpop.f32.mrb[161].mxu0 }
0x1f61   :  { %v5407_v29 = vadd.f32 %v5406_v25, %v5000_v49  ;;  %v5408_v38 = vpop.f32.mrb[162].mxu0 }
0x1f62   :  { %v5409_v16 = vadd.f32 %v5408_v38, %v4996_v22  ;;  %v5410_v9 = vpop.f32.mrb[163].mxu0 }
0x1f63   :  { %v5411_v40 = vadd.f32 %v5410_v9, %v5000_v49 }
0x1f64   :  { %v15377_v48 = vpack.c.bf16 %v5409_v16, %v5405_v4 }
0x1f65   :  { %v15379_v59 = vpack.c.bf16 %v5411_v40, %v5407_v29 }
0x1f67   :  { %v5414_v15 = vpop.f32.mrb[164].mxu0 }
0x1f68   :  { %v5415_v11 = vadd.f32 %v5414_v15, %v4996_v22  ;;  %v5416_v55 = vpop.f32.mrb[165].mxu0 }
0x1f69   :  { %v5417_v43 = vadd.f32 %v5416_v55, %v5000_v49  ;;  %v5418_v50 = vpop.f32.mrb[166].mxu0 }
0x1f6a   :  { %v5419_v52 = vadd.f32 %v5418_v50, %v4996_v22  ;;  %v5420_v60 = vpop.f32.mrb[167].mxu0 }
0x1f6b   :  { %v5421_v25 = vadd.f32 %v5420_v60, %v5000_v49 }
0x1f6c   :  { %v15383_v58 = vpack.c.bf16 %v5419_v52, %v5415_v11  ;;  %v6147_v0 = vpop.xlane.xlu1 %6146 }
0x1f6d   :  { %v15385_v38 = vpack.c.bf16 %v5421_v25, %v5417_v43  ;;  %v6155_v4 = vsub.f32 %v15276_v41, %v6147_v0 }
0x1f6f   :  { %v6170_v16 = vmul.f32 1.442695, %v6155_v4  ;;  %v5424_v29 = vpop.f32.mrb[168].mxu0 }
0x1f70   :  { %v5425_v9 = vadd.f32 %v5424_v29, %v4996_v22  ;;  %v6141_v40 = vpop.xlane.xlu1 %6140  ;;  %v5426_v36 = vpop.f32.mrb[169].mxu0 }
0x1f71   :  { %12014 = vpow2.f32 %v6170_v16  ;;  %v6153_v15 = vsub.f32 %v15278_v33, %v6141_v40  ;;  %v5427_v55 = vadd.f32 %v5426_v36, %v5000_v49  ;;  %v5428_v27 = vpop.f32.mrb[170].mxu0 }
0x1f72   :  { %v5429_v50 = vadd.f32 %v5428_v27, %v4996_v22  ;;  %v5430_v18 = vpop.f32.mrb[171].mxu0 }
0x1f73   :  { %v6166_v60 = vmul.f32 1.442695, %v6153_v15  ;;  %v5431_v11 = vadd.f32 %v5430_v18, %v5000_v49 }
0x1f74   :  { %v15389_v52 = vpack.c.bf16 %v5429_v50, %v5425_v9 }
0x1f75   :  { %12016 = vpow2.f32 %v6166_v60  ;;  %v15391_v43 = vpack.c.bf16 %v5431_v11, %v5427_v55 }
0x1f77   :  { %v5434_v0 = vpop.f32.mrb[172].mxu0 }
0x1f78   :  { %v5435_v41 = vadd.f32 %v5434_v0, %v4996_v22  ;;  %v5436_v25 = vpop.f32.mrb[173].mxu0 }
0x1f79   :  { %v5437_v4 = vadd.f32 %v5436_v25, %v5000_v49  ;;  %v5438_v29 = vpop.f32.mrb[174].mxu0 }
0x1f7a   :  { %v5439_v6 = vadd.f32 %v5438_v29, %v4996_v22  ;;  %v5440_v16 = vpop.f32.mrb[175].mxu0 }
0x1f7b   :  { %v15393_v32 = vpop.eup %12014  ;;  %v5441_v36 = vadd.f32 %v5440_v16, %v5000_v49 }
0x1f7c   :  { %v15395_v33 = vpack.c.bf16 %v5439_v6, %v5435_v41  ;;  %v6193_v18 = vsel %vm511_vm2, %v15393_v32, 0.0  ;;  %v6223_v6 = vpop.permute.xlu1 %6222 }
0x1f7d   :  { %v15399_v27 = vpack.c.bf16 %v5441_v36, %v5437_v4  ;;  %6194 = vadd.xlane.f32.xlu0 %v6193_v18 }
0x1f7f   :  { %v15401_v9 = vpop.eup %12016 }
0x1f80   :  { %v6187_v40 = vsel %vm511_vm2, %v15401_v9, 0.0 }
0x1f81   :  { %6188 = vadd.xlane.f32.xlu1 %v6187_v40 }
0x1f92   :  { %6319 = vrot.lane.b32.xlu1 %v14907_v8, %s12354_s1 }
0x1f93   :  { %6313 = vrot.lane.b32.xlu0 %v14887_v7, %s12354_s1 }
0x1f96   :  { %6307 = vrot.lane.b32.xlu1 %v14895_v54, %s12355_s19 }
0x1f97   :  { %6305 = vrot.lane.b32.xlu0 %v14887_v7, %s12355_s19 }
0x1f9a   :  { %6311 = vrot.lane.b32.xlu1 %v14907_v8, %s12355_s19 }
0x1f9b   :  { %6309 = vrot.lane.b32.xlu0 %v14901_v34, %s12355_s19 }
0x1fab   :  { %v5890_v22 = vpop.xlane.xlu0 %5889 }
0x1fad   :  { %v5893_v49 = vpop.xlane.xlu1 %5892 }
0x1fae   :  { %12018 = vrcp.f32 %v5893_v49 }
0x1faf   :  { %v5884_v15 = vpop.xlane.xlu0 %5883 }
0x1fb0   :  { %12020 = vrcp.f32 %v5884_v15 }
0x1fb1   :  { %12022 = vrcp.f32 %v5890_v22  ;;  %v5887_v55 = vpop.xlane.xlu1 %5886 }
0x1fb2   :  { %12024 = vrcp.f32 %v5887_v55 }
0x1fb5   :  { %v5902_v50 = vpop.xlane.xlu1 %5901 }
0x1fb7   :  { %v5896_v60 = vpop.xlane.xlu0 %5895 }
0x1fb8   :  { %v12019_v54 = vpop.eup %12018 }
0x1fb9   :  { %v5905_v11 = vpop.xlane.xlu1 %5904  ;;  %v5917_v41 = vmul.f32 %v12019_v54, %v15306_v26 }
0x1fba   :  { %v12021_v7 = vpop.eup %12020  ;;  %12026 = vrcp.f32 %v5905_v11 }
0x1fbb   :  { %v12023_v0 = vpop.eup %12022  ;;  %12028 = vrcp.f32 %v5896_v60  ;;  %v5914_v25 = vmul.f32 %v12021_v7, %v15310_v53 }
0x1fbc   :  { %v12025_v8 = vpop.eup %12024  ;;  %12030 = vrcp.f32 %v5902_v50  ;;  %v5916_v29 = vmul.f32 %v12023_v0, %v15301_v2 }
0x1fbd   :  { %v5899_v34 = vpop.xlane.xlu1 %5898  ;;  %v5915_v4 = vmul.f32 %v12025_v8, %v15314_v46 }
0x1fbe   :  { %12032 = vrcp.f32 %v5899_v34  ;;  %v5923_v36 = vpack.c.bf16 %v5917_v41, %v5916_v29 }
0x1fbf   :  { %v5922_v16 = vpack.c.bf16 %v5915_v4, %v5914_v25 }
0x1fc1   :  { %10826 = vmatprep.mubr.msk.bf16.mxu0 %vm511_vm2, %v5922_v16 }
0x1fc2   :  { %10827 = vmatmul.mubr.msk.bf16.vlgmr.msra.gmra.mrb[176].mxu0 %vm511_vm2, %v5923_v36 }
0x1fc3   :  { %10851 = vmatpush3.bf16.msra.mxu0 %v15342_v42 }
0x1fc4   :  { %10852 = vmatprep.subr.bf16.mxu0 %v15375_v21  ;;  %v12027_v26 = vpop.eup %12026 }
0x1fc5   :  { %v12029_v18 = vpop.eup %12028  ;;  %v5921_v2 = vmul.f32 %v12027_v26, %v15320_v51 }
0x1fc6   :  { %v12031_v40 = vpop.eup %12030  ;;  %v5918_v46 = vmul.f32 %v12029_v18, %v15324_v30 }
0x1fc7   :  { %10853 = vmatpush3.bf16.msra.mxu0 %v15375_v21  ;;  %v5920_v49 = vmul.f32 %v12031_v40, %v15318_v17 }
0x1fc8   :  { %v12033_v53 = vpop.eup %12032  ;;  %10854 = vmatprep.subr.bf16.mxu0 %v15381_v61 }
0x1fc9   :  { %v5919_v22 = vmul.f32 %v12033_v53, %v15330_v45  ;;  %v5925_v55 = vpack.c.bf16 %v5921_v2, %v5920_v49 }
0x1fcb   :  { %v6180_v15 = vpop.xlane.xlu0 %6179  ;;  %10855 = vmatpush3.bf16.msra.mxu0 %v15381_v61  ;;  %v5924_v42 = vpack.c.bf16 %v5919_v22, %v5918_v46 }
0x1fcc   :  { %10856 = vmatprep.subr.bf16.mxu0 %v6223_v6 }
0x1fcd   :  { %10830 = vmatprep.mubr.msk.bf16.mxu0 %vm511_vm2, %v5924_v42 }
0x1fce   :  { %10831 = vmatmul.mubr.msk.bf16.gmra.mrb[180].mxu0 %vm511_vm2, %v5925_v55 }
0x1fcf   :  { %v6183_v21 = vpop.xlane.xlu0 %6182  ;;  %10857 = vmatpush3.bf16.msra.mxu0 %v6223_v6  ;;  %v6174_v50 = vpop.xlane.xlu1 %6173 }
0x1fd0   :  { %12034 = vrcp.f32 %v6183_v21 }
0x1fd1   :  { %12036 = vrcp.f32 %v6174_v50 }
0x1fd2   :  { %12038 = vrcp.f32 %v6180_v15 }
0x1fd3   :  { %v6177_v51 = vpop.xlane.xlu0 %6176  ;;  %v6316_v41 = vpop.permute.xlu1 %6315 }
0x1fd4   :  { %12040 = vrcp.f32 %v6177_v51  ;;  %v6337_v16 = vsel %vm123_vm0, %v6316_v41, 0 }
0x1fd7   :  { %v6192_v8 = vpop.xlane.xlu0 %6191  ;;  %v6318_v25 = vpop.permute.xlu1 %6317 }
0x1fd8   :  { %v6340_v15 = vsel %vm123_vm0, %v6318_v25, 0 }
0x1fda   :  { %v12035_v30 = vpop.eup %12034 }
0x1fdb   :  { %v12037_v17 = vpop.eup %12036  ;;  %v6207_v61 = vmul.f32 %v12035_v30, %v15346_v19  ;;  %v6186_v34 = vpop.xlane.xlu0 %6185 }
0x1fdc   :  { %v12039_v45 = vpop.eup %12038  ;;  %v6204_v60 = vmul.f32 %v12037_v17, %v15349_v5 }
0x1fdd   :  { %v6206_v7 = vmul.f32 %v12039_v45, %v15340_v3 }
0x1fde   :  { %v12041_v54 = vpop.eup %12040 }
0x1fdf   :  { %v6205_v11 = vmul.f32 %v12041_v54, %v15355_v28  ;;  %v6213_v6 = vpack.c.bf16 %v6207_v61, %v6206_v7 }
0x1fe1   :  { %v6212_v0 = vpack.c.bf16 %v6205_v11, %v6204_v60 }
0x1fe3   :  { %10858 = vmatprep.mubr.msk.bf16.mxu0 %vm511_vm2, %v6212_v0 }
0x1fe4   :  { %10859 = vmatmul.mubr.msk.bf16.vlgmr.msra.gmra.mrb[184].mxu0 %vm511_vm2, %v6213_v6 }
0x200a   :  { %v6195_v4 = vpop.xlane.xlu0 %6194 }
0x200b   :  { %12042 = vrcp.f32 %v6195_v4 }
0x200c   :  { %12044 = vrcp.f32 %v6186_v34 }
0x200d   :  { %12046 = vrcp.f32 %v6192_v8 }
0x200e   :  { %v6314_v19 = vpop.permute.xlu0 %6313  ;;  %v6189_v5 = vpop.xlane.xlu1 %6188 }
0x200f   :  { %12048 = vrcp.f32 %v6189_v5  ;;  %11118 = vmatprep.subr.msk.bf16.mxu0 %vm123_vm0, %v6314_v19  ;;  %v6334_v3 = vsel %vm123_vm0, %v6314_v19, 0 }
0x2010   :  { %10867 = vmatpush3.bf16.xpose.msra.mxu0 %v6334_v3 }
0x2011   :  { %11119 = vmatprep.subr.msk.bf16.mxu0 %vm123_vm0, %v6316_v41 }
0x2012   :  { %v6306_v49 = vpop.permute.xlu0 %6305  ;;  %v6320_v42 = vpop.permute.xlu1 %6319 }
0x2015   :  { %v12043_v28 = vpop.eup %12042 }
0x2016   :  { %v12045_v29 = vpop.eup %12044  ;;  %v6211_v18 = vmul.f32 %v12043_v28, %v15393_v32  ;;  %v6343_v32 = vsel %vm123_vm0, %v6320_v42, 0 }
0x2017   :  { %v12047_v36 = vpop.eup %12046  ;;  %v6208_v40 = vmul.f32 %v12045_v29, %v15363_v56  ;;  %v6310_v56 = vpop.permute.xlu0 %6309 }
0x2018   :  { %10869 = vmatpush3.bf16.xpose.msra.mxu0 %v6337_v16  ;;  %v6210_v2 = vmul.f32 %v12047_v36, %v15359_v39  ;;  %v6308_v39 = vpop.permute.xlu1 %6307 }
0x2019   :  { %v12049_v26 = vpop.eup %12048  ;;  %11120 = vmatprep.subr.msk.bf16.mxu0 %vm123_vm0, %v6318_v25 }
0x201a   :  { %v6209_v53 = vmul.f32 %v12049_v26, %v15401_v9  ;;  %v6215_v22 = vpack.c.bf16 %v6211_v18, %v6210_v2 }
0x201c   :  { %v6214_v46 = vpack.c.bf16 %v6209_v53, %v6208_v40  ;;  %v6312_v9 = vpop.permute.xlu1 %6311 }
0x201e   :  { %10862 = vmatprep.mubr.msk.bf16.mxu0 %vm511_vm2, %v6214_v46 }
0x201f   :  { %10863 = vmatmul.mubr.msk.bf16.gmra.mrb[188].mxu0 %vm511_vm2, %v6215_v22 }
0x2020   :  { %10871 = vmatpush3.bf16.xpose.msra.mxu0 %v6340_v15  ;;  %10874 = vmatprep.mubr.msk.bf16.mxu0 %vm123_vm0, %v6306_v49 }
0x2021   :  { %11121 = vmatprep.subr.msk.bf16.mxu0 %vm123_vm0, %v6320_v42 }
0x2028   :  { %10873 = vmatpush3.bf16.xpose.msra.mxu0 %v6343_v32 }
0x2029   :  { %10914 = vmatprep.subr.bf16.mxu0 %v15379_v59 }
0x202f   :  { %10875 = vmatmul.mubr.msk.bf16.vlgmr.msra.gmra.mrb[192].mxu0 %vm123_vm0, %v6308_v39 }
0x2030   :  { %10878 = vmatprep.mubr.msk.bf16.mxu0 %vm123_vm0, %v6310_v56  ;;  %10915 = vmatpush3.bf16.msra.mxu0 %v15379_v59 }
0x2031   :  { %10916 = vmatprep.subr.bf16.mxu0 %v15385_v38 }
0x2034   :  { %10917 = vmatpush3.bf16.msra.mxu0 %v15385_v38 }
0x2035   :  { %10918 = vmatprep.subr.bf16.mxu0 %v15391_v43 }
0x2037   :  { %10879 = vmatmul.mubr.msk.bf16.gmra.mrb[196].mxu0 %vm123_vm0, %v6312_v9 }
0x2038   :  { %10919 = vmatpush3.bf16.msra.mxu0 %v15391_v43 }
0x2039   :  { %10920 = vmatprep.subr.bf16.mxu0 %v15399_v27 }
0x203c   :  { %10921 = vmatpush3.bf16.msra.mxu0 %v15399_v27 }
0x2095   :  { %v15466_v55 = vpop.f32.mrb[176].mxu0 }
0x2096   :  { %v15468_v21 = vpop.f32.mrb[177].mxu0 }
0x2097   :  { %v15470_v50 = vpop.f32.mrb[178].mxu0 }
0x2098   :  { %v15474_v30 = vpop.f32.mrb[179].mxu0 }
0x20a1   :  { %v15478_v45 = vpop.f32.mrb[180].mxu0 }
0x20a2   :  { %v15480_v54 = vpop.f32.mrb[181].mxu0 }
0x20a3   :  { %v15482_v61 = vpop.f32.mrb[182].mxu0 }
0x20a4   :  { %v15486_v11 = vpop.f32.mrb[183].mxu0 }
0x20b7   :  { %v15490_v0 = vpop.f32.mrb[184].mxu0 }
0x20b8   :  { %v15492_v6 = vpop.f32.mrb[185].mxu0 }
0x20b9   :  { %v15494_v8 = vpop.f32.mrb[186].mxu0 }
0x20ba   :  { %v15498_v34 = vpop.f32.mrb[187].mxu0 }
0x20f2   :  { %v15502_v4 = vpop.f32.mrb[188].mxu0 }
0x20f3   :  { %v15504_v19 = vpop.f32.mrb[189].mxu0 }
0x20f4   :  { %v15506_v5 = vpop.f32.mrb[190].mxu0 }
0x20f5   :  { %v15510_v28 = vpop.f32.mrb[191].mxu0 }
0x2102   :  { %v10876_v16 = vpop.f32.mrb[192].mxu0 }
0x2103   :  { %v6379_v36 = vpop.f32.mrb[193].mxu0  ;;  %v6416_v26 = vsel %vm511_vm2, %v10876_v16, -inf }
0x2104   :  { %6417 = vmax.xlane.f32.xlu0 %v6416_v26  ;;  %v10877_v18 = vpop.f32.mrb[194].mxu0  ;;  %v6410_v2 = vsel %vm511_vm2, %v6379_v36, -inf }
0x2105   :  { %v6382_v40 = vpop.f32.mrb[195].mxu0  ;;  %v6419_v49 = vsel %vm511_vm2, %v10877_v18, -inf }
0x2106   :  { %v6413_v53 = vsel %vm511_vm2, %v6382_v40, -inf }
0x2107   :  { %6414 = vmax.xlane.f32.xlu1 %v6413_v53 }
0x2108   :  { %6411 = vmax.xlane.f32.xlu0 %v6410_v2 }
0x210a   :  { %v10880_v46 = vpop.f32.mrb[196].mxu0 }
0x210b   :  { %v6395_v22 = vpop.f32.mrb[197].mxu0  ;;  %v6428_v32 = vsel %vm511_vm2, %v10880_v46, -inf }
0x210c   :  { %6420 = vmax.xlane.f32.xlu0 %v6419_v49  ;;  %v15518_v15 = vpop.f32.mrb[198].mxu0  ;;  %v6422_v39 = vsel %vm511_vm2, %v6395_v22, -inf }
0x210d   :  { %v15520_v42 = vpop.f32.mrb[199].mxu0  ;;  %v6431_v56 = vsel %vm511_vm2, %v15518_v15, -inf }
0x210e   :  { %v6425_v9 = vsel %vm511_vm2, %v15520_v42, -inf }
0x2110   :  { %6429 = vmax.xlane.f32.xlu0 %v6428_v32 }
0x2114   :  { %6423 = vmax.xlane.f32.xlu0 %v6422_v39 }
0x2118   :  { %6504 = vrot.lane.b32.xlu1 %v14897_v13, %s12355_s19 }
0x211c   :  { %6506 = vrot.lane.b32.xlu1 %v14903_v57, %s12355_s19 }
0x212a   :  { %6502 = vrot.lane.b32.xlu0 %v14889_v44, %s12355_s19 }
0x2140   :  { %6432 = vmax.xlane.f32.xlu1 %v6431_v56 }
0x2144   :  { %6426 = vmax.xlane.f32.xlu1 %v6425_v9 }
0x2155   :  { %6508 = vrot.lane.b32.xlu1 %v14909_v12, %s12355_s19 }
0x2191   :  { %v6418_v26 = vpop.xlane.xlu0 %6417 }
0x2192   :  { %v6436_v53 = vsub.f32 %v10876_v16, %v6418_v26 }
0x2194   :  { %v6446_v13 = vmul.f32 1.442695, %v6436_v53  ;;  %v6415_v2 = vpop.xlane.xlu1 %6414 }
0x2195   :  { %v6412_v49 = vpop.xlane.xlu0 %6411  ;;  %v6435_v32 = vsub.f32 %v6382_v40, %v6415_v2 }
0x2196   :  { %12050 = vpow2.f32 %v6446_v13  ;;  %v6434_v57 = vsub.f32 %v6379_v36, %v6412_v49 }
0x2197   :  { %v6444_v56 = vmul.f32 1.442695, %v6435_v32 }
0x2198   :  { %v6442_v44 = vmul.f32 1.442695, %v6434_v57  ;;  %v6505_v13 = vpop.permute.xlu1 %6504 }
0x2199   :  { %v6421_v39 = vpop.xlane.xlu0 %6420 }
0x219a   :  { %12052 = vpow2.f32 %v6442_v44  ;;  %v6437_v3 = vsub.f32 %v10877_v18, %v6421_v39 }
0x219c   :  { %v6448_v60 = vmul.f32 1.442695, %v6437_v3  ;;  %v6507_v2 = vpop.permute.xlu1 %6506 }
0x219d   :  { %v6430_v29 = vpop.xlane.xlu0 %6429 }
0x219e   :  { %12054 = vpow2.f32 %v6448_v60  ;;  %v6440_v9 = vsub.f32 %v10880_v46, %v6430_v29 }
0x219f   :  { %12056 = vpow2.f32 %v6444_v56 }
0x21a0   :  { %v15536_v41 = vpop.eup %12050  ;;  %v6454_v12 = vmul.f32 1.442695, %v6440_v9 }
0x21a1   :  { %v6424_v16 = vpop.xlane.xlu0 %6423  ;;  %v6464_v26 = vsel %vm511_vm2, %v15536_v41, 0.0 }
0x21a2   :  { %12058 = vpow2.f32 %v6454_v12  ;;  %v6438_v36 = vsub.f32 %v6395_v22, %v6424_v16  ;;  %6465 = vadd.xlane.f32.xlu0 %v6464_v26 }
0x21a4   :  { %v12053_v40 = vpop.eup %12052  ;;  %v6450_v53 = vmul.f32 1.442695, %v6438_v36 }
0x21a5   :  { %v6503_v18 = vpop.permute.xlu0 %6502  ;;  %v6458_v3 = vsel %vm511_vm2, %v12053_v40, 0.0 }
0x21a6   :  { %12060 = vpow2.f32 %v6450_v53  ;;  %6459 = vadd.xlane.f32.xlu0 %v6458_v3  ;;  %10882 = vmatprep.subr.bf16.mxu1 %v6503_v18 }
0x21a7   :  { %10883 = vmatpush3.bf16.msra.mxu1 %v6503_v18 }
0x21a8   :  { %v12055_v60 = vpop.eup %12054  ;;  %10884 = vmatprep.subr.bf16.mxu1 %v6505_v13 }
0x21a9   :  { %v6467_v29 = vsel %vm511_vm2, %v12055_v60, 0.0  ;;  %v12057_v46 = vpop.eup %12056 }
0x21aa   :  { %6468 = vadd.xlane.f32.xlu1 %v6467_v29  ;;  %v6461_v57 = vsel %vm511_vm2, %v12057_v46, 0.0 }
0x21ab   :  { %10885 = vmatpush3.bf16.msra.mxu1 %v6505_v13 }
0x21ac   :  { %v15542_v22 = vpop.eup %12058  ;;  %10886 = vmatprep.subr.bf16.mxu1 %v6507_v2 }
0x21ad   :  { %v6476_v49 = vsel %vm511_vm2, %v15542_v22, 0.0 }
0x21ae   :  { %6477 = vadd.xlane.f32.xlu0 %v6476_v49  ;;  %6462 = vadd.xlane.f32.xlu1 %v6461_v57 }
0x21af   :  { %10887 = vmatpush3.bf16.msra.mxu1 %v6507_v2 }
0x21b0   :  { %v15547_v32 = vpop.eup %12060 }
0x21b1   :  { %v6470_v44 = vsel %vm511_vm2, %v15547_v32, 0.0 }
0x21b2   :  { %6471 = vadd.xlane.f32.xlu0 %v6470_v44 }
0x21bf   :  { %6721 = vrot.lane.b32.xlu1 %v15383_v58, %s12349_s5 }
0x21c3   :  { %6723 = vrot.lane.b32.xlu1 %v15389_v52, %s12349_s5 }
0x21cd   :  { %v6433_v39 = vpop.xlane.xlu1 %6432 }
0x21ce   :  { %v6441_v56 = vsub.f32 %v15518_v15, %v6433_v39 }
0x21d0   :  { %v6456_v9 = vmul.f32 1.442695, %v6441_v56 }
0x21d1   :  { %v6427_v12 = vpop.xlane.xlu1 %6426 }
0x21d2   :  { %12062 = vpow2.f32 %v6456_v9  ;;  %v6439_v16 = vsub.f32 %v15520_v42, %v6427_v12 }
0x21d4   :  { %v6452_v26 = vmul.f32 1.442695, %v6439_v16 }
0x21d5   :  { %v6509_v36 = vpop.permute.xlu1 %6508 }
0x21d6   :  { %10888 = vmatprep.subr.bf16.mxu1 %v6509_v36  ;;  %12064 = vpow2.f32 %v6452_v26 }
0x21d7   :  { %10889 = vmatpush3.bf16.msra.mxu1 %v6509_v36 }
0x21dc   :  { %v12063_v53 = vpop.eup %12062 }
0x21dd   :  { %v6479_v13 = vsel %vm511_vm2, %v12063_v53, 0.0 }
0x21de   :  { %6480 = vadd.xlane.f32.xlu0 %v6479_v13 }
0x21e0   :  { %v12065_v18 = vpop.eup %12064 }
0x21e1   :  { %v6473_v3 = vsel %vm511_vm2, %v12065_v18, 0.0 }
0x21e7   :  { %6474 = vadd.xlane.f32.xlu1 %v6473_v3 }
0x21f4   :  { %6719 = vrot.lane.b32.xlu0 %v15377_v48, %s12349_s5 }
0x21f8   :  { %6725 = vrot.lane.b32.xlu1 %v15395_v33, %s12349_s5 }
0x222f   :  { %v6466_v15 = vpop.xlane.xlu0 %6465 }
0x2233   :  { %v6460_v29 = vpop.xlane.xlu0 %6459 }
0x2237   :  { %v6469_v42 = vpop.xlane.xlu1 %6468 }
0x2238   :  { %12066 = vrcp.f32 %v6469_v42 }
0x2239   :  { %12068 = vrcp.f32 %v6460_v29 }
0x223a   :  { %12070 = vrcp.f32 %v6466_v15 }
0x223b   :  { %v6463_v2 = vpop.xlane.xlu1 %6462  ;;  %v6478_v13 = vpop.xlane.xlu0 %6477 }
0x223c   :  { %12072 = vrcp.f32 %v6463_v2 }
0x223f   :  { %v6472_v3 = vpop.xlane.xlu0 %6471  ;;  %v6722_v42 = vpop.permute.xlu1 %6721 }
0x2242   :  { %v12067_v49 = vpop.eup %12066 }
0x2243   :  { %v12069_v57 = vpop.eup %12068  ;;  %v6493_v56 = vmul.f32 %v12067_v49, %v12055_v60  ;;  %v6724_v2 = vpop.permute.xlu1 %6723 }
0x2244   :  { %v12071_v44 = vpop.eup %12070  ;;  %v6490_v9 = vmul.f32 %v12069_v57, %v12053_v40  ;;  %v6743_v40 = vsel %vm123_vm0, %v6722_v42, 0 }
0x2245   :  { %v6492_v16 = vmul.f32 %v12071_v44, %v15536_v41 }
0x2246   :  { %v12073_v39 = vpop.eup %12072 }
0x2247   :  { %v6491_v12 = vmul.f32 %v12073_v39, %v12057_v46  ;;  %v6499_v36 = vpack.c.bf16 %v6493_v56, %v6492_v16  ;;  %v6746_v56 = vsel %vm123_vm0, %v6724_v2, 0 }
0x2249   :  { %v6498_v26 = vpack.c.bf16 %v6491_v12, %v6490_v9 }
0x224b   :  { %10890 = vmatprep.mubr.msk.bf16.mxu1 %vm511_vm2, %v6498_v26 }
0x224c   :  { %10891 = vmatmul.mubr.msk.bf16.vlgmr.msra.gmra.mrb[160].mxu1 %vm511_vm2, %v6499_v36 }
0x226b   :  { %v6481_v15 = vpop.xlane.xlu0 %6480 }
0x226c   :  { %12074 = vrcp.f32 %v6481_v15 }
0x226d   :  { %12076 = vrcp.f32 %v6472_v3 }
0x226e   :  { %12078 = vrcp.f32 %v6478_v13 }
0x226f   :  { %v6720_v29 = vpop.permute.xlu0 %6719 }
0x2270   :  { %11122 = vmatprep.subr.msk.bf16.mxu1 %vm123_vm0, %v6720_v29  ;;  %v6740_v60 = vsel %vm123_vm0, %v6720_v29, 0 }
0x2271   :  { %10899 = vmatpush3.bf16.xpose.msra.mxu1 %v6740_v60 }
0x2272   :  { %11123 = vmatprep.subr.msk.bf16.mxu1 %vm123_vm0, %v6722_v42 }
0x2274   :  { %v6475_v41 = vpop.xlane.xlu1 %6474 }
0x2275   :  { %12080 = vrcp.f32 %v6475_v41 }
0x2276   :  { %v12075_v46 = vpop.eup %12074 }
0x2277   :  { %v12077_v49 = vpop.eup %12076  ;;  %v6497_v39 = vmul.f32 %v12075_v46, %v12063_v53 }
0x2278   :  { %v12079_v57 = vpop.eup %12078  ;;  %v6494_v9 = vmul.f32 %v12077_v49, %v15547_v32  ;;  %v6726_v16 = vpop.permute.xlu1 %6725 }
0x2279   :  { %10901 = vmatpush3.bf16.xpose.msra.mxu1 %v6743_v40  ;;  %v6496_v26 = vmul.f32 %v12079_v57, %v15542_v22  ;;  %v6749_v53 = vsel %vm123_vm0, %v6726_v16, 0 }
0x227a   :  { %11124 = vmatprep.subr.msk.bf16.mxu1 %vm123_vm0, %v6724_v2 }
0x227b   :  { %v6501_v13 = vpack.c.bf16 %v6497_v39, %v6496_v26 }
0x227f   :  { %v12081_v44 = vpop.eup %12080 }
0x2280   :  { %v6495_v12 = vmul.f32 %v12081_v44, %v12065_v18 }
0x2281   :  { %10903 = vmatpush3.bf16.xpose.msra.mxu1 %v6746_v56 }
0x2282   :  { %11125 = vmatprep.subr.msk.bf16.mxu1 %vm123_vm0, %v6726_v16  ;;  %v6500_v36 = vpack.c.bf16 %v6495_v12, %v6494_v9 }
0x2284   :  { %10894 = vmatprep.mubr.msk.bf16.mxu1 %vm511_vm2, %v6500_v36 }
0x2285   :  { %10895 = vmatmul.mubr.msk.bf16.gmra.mrb[164].mxu1 %vm511_vm2, %v6501_v13 }
0x2286   :  { %10906 = vmatprep.mubr.msk.bf16.mxu1 %vm123_vm0, %v15377_v48 }
0x2289   :  { %10905 = vmatpush3.bf16.xpose.msra.mxu1 %v6749_v53 }
0x2290   :  { %10907 = vmatmul.mubr.msk.bf16.vlgmr.msra.gmra.mrb[168].mxu1 %vm123_vm0, %v15383_v58 }
0x2291   :  { %10910 = vmatprep.mubr.msk.bf16.mxu1 %vm123_vm0, %v15389_v52 }
0x2298   :  { %10911 = vmatmul.mubr.msk.bf16.gmra.mrb[172].mxu1 %vm123_vm0, %v15395_v33 }
0x231f   :  { %v15586_v22 = vpop.f32.mrb[160].mxu1 }
0x2320   :  { %v15588_v32 = vpop.f32.mrb[161].mxu1 }
0x2321   :  { %v15590_v18 = vpop.f32.mrb[162].mxu1 }
0x2322   :  { %v15594_v42 = vpop.f32.mrb[163].mxu1 }
0x2358   :  { %v15598_v29 = vpop.f32.mrb[164].mxu1 }
0x2359   :  { %v15600_v2 = vpop.f32.mrb[165].mxu1 }
0x235a   :  { %v15602_v60 = vpop.f32.mrb[166].mxu1 }
0x235b   :  { %v15606_v40 = vpop.f32.mrb[167].mxu1 }
0x2363   :  { %v10908_v49 = vpop.f32.mrb[168].mxu1 }
0x2364   :  { %v6785_v57 = vpop.f32.mrb[169].mxu1  ;;  %v6822_v12 = vsel %vm511_vm2, %v10908_v49, -inf }
0x2365   :  { %v10909_v44 = vpop.f32.mrb[170].mxu1  ;;  %v6816_v39 = vsel %vm511_vm2, %v6785_v57, -inf }
0x2366   :  { %6817 = vmax.xlane.f32.xlu0 %v6816_v39  ;;  %v6788_v56 = vpop.f32.mrb[171].mxu1  ;;  %v6825_v13 = vsel %vm511_vm2, %v10909_v44, -inf }
0x2367   :  { %v6819_v9 = vsel %vm511_vm2, %v6788_v56, -inf }
0x2368   :  { %6820 = vmax.xlane.f32.xlu1 %v6819_v9 }
0x236a   :  { %6823 = vmax.xlane.f32.xlu0 %v6822_v12 }
0x236b   :  { %v10912_v16 = vpop.f32.mrb[172].mxu1 }
0x236c   :  { %v6801_v26 = vpop.f32.mrb[173].mxu1  ;;  %v6834_v12 = vsel %vm511_vm2, %v10912_v16, -inf }
0x236d   :  { %v15613_v36 = vpop.f32.mrb[174].mxu1  ;;  %v6828_v39 = vsel %vm511_vm2, %v6801_v26, -inf }
0x236e   :  { %6826 = vmax.xlane.f32.xlu0 %v6825_v13  ;;  %v6804_v53 = vpop.f32.mrb[175].mxu1  ;;  %v6837_v9 = vsel %vm511_vm2, %v15613_v36, -inf }
0x236f   :  { %v6831_v41 = vsel %vm511_vm2, %v6804_v53, -inf }
0x2370   :  { %6832 = vmax.xlane.f32.xlu1 %v6831_v41 }
0x2372   :  { %6829 = vmax.xlane.f32.xlu0 %v6828_v39 }
0x2374   :  { %6838 = vmax.xlane.f32.xlu1 %v6837_v9 }
0x2376   :  { %6835 = vmax.xlane.f32.xlu0 %v6834_v12 }
0x23f3   :  { %v6818_v46 = vpop.xlane.xlu0 %6817 }
0x23f4   :  { %v6840_v3 = vsub.f32 %v6785_v57, %v6818_v46 }
0x23f5   :  { %v6821_v7 = vpop.xlane.xlu1 %6820 }
0x23f6   :  { %v6848_v13 = vmul.f32 1.442695, %v6840_v3  ;;  %v6841_v25 = vsub.f32 %v6788_v56, %v6821_v7 }
0x23f7   :  { %v6824_v51 = vpop.xlane.xlu0 %6823 }
0x23f8   :  { %v6842_v15 = vsub.f32 %v10908_v49, %v6824_v51  ;;  %v6850_v39 = vmul.f32 1.442695, %v6841_v25 }
0x23fa   :  { %v6852_v17 = vmul.f32 1.442695, %v6842_v15 }
0x23fb   :  { %v6827_v31 = vpop.xlane.xlu0 %6826 }
0x23fc   :  { %12082 = vpow2.f32 %v6852_v17  ;;  %v6843_v41 = vsub.f32 %v10909_v44, %v6827_v31 }
0x23fd   :  { %12084 = vpow2.f32 %v6848_v13  ;;  %v6833_v44 = vpop.xlane.xlu1 %6832 }
0x23fe   :  { %v6854_v20 = vmul.f32 1.442695, %v6843_v41 }
0x23ff   :  { %v6830_v1 = vpop.xlane.xlu0 %6829 }
0x2400   :  { %12086 = vpow2.f32 %v6854_v20  ;;  %v6844_v9 = vsub.f32 %v6801_v26, %v6830_v1  ;;  %v6845_v26 = vsub.f32 %v6804_v53, %v6833_v44 }
0x2401   :  { %12088 = vpow2.f32 %v6850_v39  ;;  %v6839_v56 = vpop.xlane.xlu1 %6838 }
0x2402   :  { %v6856_v46 = vmul.f32 1.442695, %v6844_v9  ;;  %v6858_v41 = vmul.f32 1.442695, %v6845_v26 }
0x2403   :  { %v6836_v63 = vpop.xlane.xlu0 %6835 }
0x2404   :  { %v6846_v12 = vsub.f32 %v10912_v16, %v6836_v63  ;;  %v6847_v16 = vsub.f32 %v15613_v36, %v6839_v56 }
0x2406   :  { %v12083_v37 = vpop.eup %12082  ;;  %v6860_v57 = vmul.f32 1.442695, %v6846_v12  ;;  %v6862_v13 = vmul.f32 1.442695, %v6847_v16 }
0x2407   :  { %v6870_v51 = vsel %vm511_vm2, %v12083_v37, 0.0  ;;  %v12085_v3 = vpop.eup %12084 }
0x2408   :  { %12090 = vpow2.f32 %v6860_v57  ;;  %6871 = vadd.xlane.f32.xlu0 %v6870_v51  ;;  %v6864_v31 = vsel %vm511_vm2, %v12085_v3, 0.0 }
0x2409   :  { %12092 = vpow2.f32 %v6856_v46 }
0x240a   :  { %v12087_v7 = vpop.eup %12086  ;;  %12094 = vpow2.f32 %v6862_v13 }
0x240b   :  { %v6873_v17 = vsel %vm511_vm2, %v12087_v7, 0.0  ;;  %v12089_v25 = vpop.eup %12088  ;;  %12096 = vpow2.f32 %v6858_v41 }
0x240c   :  { %6865 = vadd.xlane.f32.xlu0 %v6864_v31  ;;  %6874 = vadd.xlane.f32.xlu1 %v6873_v17  ;;  %v6867_v1 = vsel %vm511_vm2, %v12089_v25, 0.0 }
0x2410   :  { %6868 = vadd.xlane.f32.xlu1 %v6867_v1 }
0x2412   :  { %v15625_v20 = vpop.eup %12090 }
0x2413   :  { %v6882_v63 = vsel %vm511_vm2, %v15625_v20, 0.0  ;;  %v15629_v15 = vpop.eup %12092 }
0x2414   :  { %6883 = vadd.xlane.f32.xlu0 %v6882_v63  ;;  %v6876_v49 = vsel %vm511_vm2, %v15629_v15, 0.0  ;;  %v12095_v39 = vpop.eup %12094 }
0x2415   :  { %v6885_v9 = vsel %vm511_vm2, %v12095_v39, 0.0  ;;  %v12097_v12 = vpop.eup %12096 }
0x2416   :  { %v6879_v46 = vsel %vm511_vm2, %v12097_v12, 0.0 }
0x2418   :  { %6877 = vadd.xlane.f32.xlu0 %v6876_v49 }
0x2421   :  { %6995 = vrot.lane.b32.xlu1 %v15383_v58, %s12350_s3 }
0x2425   :  { %6997 = vrot.lane.b32.xlu1 %v15389_v52, %s12350_s3 }
0x242e   :  { %6993 = vrot.lane.b32.xlu0 %v15377_v48, %s12350_s3 }
0x2432   :  { %6985 = vrot.lane.b32.xlu0 %v15377_v48, %s12351_s17 }
0x2436   :  { %6989 = vrot.lane.b32.xlu0 %v15389_v52, %s12351_s17 }
0x2449   :  { %6886 = vadd.xlane.f32.xlu1 %v6885_v9 }
0x244d   :  { %6880 = vadd.xlane.f32.xlu1 %v6879_v46 }
0x245e   :  { %6999 = vrot.lane.b32.xlu1 %v15395_v33, %s12350_s3 }
0x2462   :  { %6987 = vrot.lane.b32.xlu1 %v15383_v58, %s12351_s17 }
0x2466   :  { %6991 = vrot.lane.b32.xlu1 %v15395_v33, %s12351_s17 }
0x2495   :  { %v6872_v36 = vpop.xlane.xlu0 %6871 }
0x2499   :  { %v6866_v53 = vpop.xlane.xlu0 %6865  ;;  %v6875_v57 = vpop.xlane.xlu1 %6874 }
0x249a   :  { %12098 = vrcp.f32 %v6875_v57 }
0x249b   :  { %12100 = vrcp.f32 %v6866_v53 }
0x249c   :  { %12102 = vrcp.f32 %v6872_v36 }
0x249d   :  { %v6869_v51 = vpop.xlane.xlu1 %6868 }
0x249e   :  { %12104 = vrcp.f32 %v6869_v51 }
0x24a1   :  { %v6884_v31 = vpop.xlane.xlu0 %6883  ;;  %v6996_v53 = vpop.permute.xlu1 %6995 }
0x24a4   :  { %v12099_v17 = vpop.eup %12098 }
0x24a5   :  { %v6878_v1 = vpop.xlane.xlu0 %6877  ;;  %v12101_v63 = vpop.eup %12100  ;;  %v6899_v56 = vmul.f32 %v12099_v17, %v12087_v7  ;;  %v7017_v7 = vsel %vm123_vm0, %v6996_v53, 0 }
0x24a6   :  { %v12103_v49 = vpop.eup %12102  ;;  %v6896_v26 = vmul.f32 %v12101_v63, %v12085_v3  ;;  %v6998_v57 = vpop.permute.xlu1 %6997 }
0x24a7   :  { %v6898_v41 = vmul.f32 %v12103_v49, %v12083_v37  ;;  %v7020_v37 = vsel %vm123_vm0, %v6998_v57, 0 }
0x24a8   :  { %v12105_v44 = vpop.eup %12104 }
0x24a9   :  { %v6994_v16 = vpop.permute.xlu0 %6993  ;;  %v6897_v13 = vmul.f32 %v12105_v44, %v12089_v25  ;;  %v6905_v46 = vpack.c.bf16 %v6899_v56, %v6898_v41 }
0x24aa   :  { %11126 = vmatprep.subr.msk.bf16.mxu0 %vm123_vm0, %v6994_v16  ;;  %v7014_v36 = vsel %vm123_vm0, %v6994_v16, 0 }
0x24ab   :  { %v6904_v9 = vpack.c.bf16 %v6897_v13, %v6896_v26 }
0x24ad   :  { %10922 = vmatprep.mubr.msk.bf16.mxu0 %vm511_vm2, %v6904_v9  ;;  %v6986_v9 = vpop.permute.xlu0 %6985 }
0x24ae   :  { %10923 = vmatmul.mubr.msk.bf16.vlgmr.msra.gmra.mrb[200].mxu0 %vm511_vm2, %v6905_v46 }
0x24af   :  { %10931 = vmatpush3.bf16.xpose.msra.mxu0 %v7014_v36 }
0x24b0   :  { %11127 = vmatprep.subr.msk.bf16.mxu0 %vm123_vm0, %v6996_v53 }
0x24b1   :  { %v6990_v36 = vpop.permute.xlu0 %6989 }
0x24b7   :  { %10933 = vmatpush3.bf16.xpose.msra.mxu0 %v7017_v7 }
0x24b8   :  { %11128 = vmatprep.subr.msk.bf16.mxu0 %vm123_vm0, %v6998_v57 }
0x24bf   :  { %10935 = vmatpush3.bf16.xpose.msra.mxu0 %v7020_v37 }
0x24d6   :  { %v6887_v3 = vpop.xlane.xlu1 %6886 }
0x24d7   :  { %12106 = vrcp.f32 %v6887_v3 }
0x24d8   :  { %12108 = vrcp.f32 %v6878_v1 }
0x24d9   :  { %12110 = vrcp.f32 %v6884_v31 }
0x24da   :  { %v6881_v25 = vpop.xlane.xlu1 %6880 }
0x24db   :  { %12112 = vrcp.f32 %v6881_v25 }
0x24de   :  { %v7000_v51 = vpop.permute.xlu1 %6999 }
0x24df   :  { %11129 = vmatprep.subr.msk.bf16.mxu0 %vm123_vm0, %v7000_v51  ;;  %v7023_v17 = vsel %vm123_vm0, %v7000_v51, 0 }
0x24e0   :  { %10937 = vmatpush3.bf16.xpose.msra.mxu0 %v7023_v17 }
0x24e1   :  { %v12107_v63 = vpop.eup %12106 }
0x24e2   :  { %v12109_v49 = vpop.eup %12108  ;;  %v6903_v16 = vmul.f32 %v12107_v63, %v12095_v39  ;;  %v6988_v46 = vpop.permute.xlu1 %6987 }
0x24e3   :  { %v12111_v44 = vpop.eup %12110  ;;  %v6900_v26 = vmul.f32 %v12109_v49, %v15629_v15 }
0x24e4   :  { %v6902_v41 = vmul.f32 %v12111_v44, %v15625_v20 }
0x24e5   :  { %v12113_v56 = vpop.eup %12112 }
0x24e6   :  { %v6901_v13 = vmul.f32 %v12113_v56, %v12097_v12  ;;  %v6907_v31 = vpack.c.bf16 %v6903_v16, %v6902_v41  ;;  %v6992_v39 = vpop.permute.xlu1 %6991 }
0x24e8   :  { %v6906_v1 = vpack.c.bf16 %v6901_v13, %v6900_v26 }
0x24ea   :  { %10926 = vmatprep.mubr.msk.bf16.mxu0 %vm511_vm2, %v6906_v1 }
0x24eb   :  { %10927 = vmatmul.mubr.msk.bf16.gmra.mrb[204].mxu0 %vm511_vm2, %v6907_v31 }
0x24ec   :  { %10938 = vmatprep.mubr.msk.bf16.mxu0 %vm123_vm0, %v6986_v9 }
0x24f3   :  { %10939 = vmatmul.mubr.msk.bf16.vlgmr.msra.gmra.mrb[208].mxu0 %vm123_vm0, %v6988_v46 }
0x24f4   :  { %10942 = vmatprep.mubr.msk.bf16.mxu0 %vm123_vm0, %v6990_v36 }
0x24fb   :  { %10943 = vmatmul.mubr.msk.bf16.gmra.mrb[212].mxu0 %vm123_vm0, %v6992_v39 }
0x2581   :  { %v15670_v15 = vpop.f32.mrb[200].mxu0 }
0x2582   :  { %17301 = vst [vmem:[#allocation30_spill] sm:$0xff] %v15670_v15  ;;  %v15672_v20 = vpop.f32.mrb[201].mxu0 }
0x2583   :  { %17302 = vst [vmem:[#allocation24_spill] sm:$0xff] %v15672_v20  ;;  %v15674_v12 = vpop.f32.mrb[202].mxu0 }
0x2584   :  { %17303 = vst [vmem:[#allocation15_spill] sm:$0xff] %v15674_v12  ;;  %v15676_v53 = vpop.f32.mrb[203].mxu0 }
0x2585   :  { %17304 = vst [vmem:[#allocation13_spill] sm:$0xff] %v15676_v53 }
0x25be   :  { %v15678_v7 = vpop.f32.mrb[204].mxu0 }
0x25bf   :  { %17305 = vst [vmem:[#allocation16_spill] sm:$0xff] %v15678_v7  ;;  %v15680_v57 = vpop.f32.mrb[205].mxu0 }
0x25c0   :  { %17306 = vst [vmem:[#allocation14_spill] sm:$0xff] %v15680_v57  ;;  %v15682_v37 = vpop.f32.mrb[206].mxu0 }
0x25c1   :  { %17307 = vst [vmem:[#allocation19_spill] sm:$0xff] %v15682_v37  ;;  %v15684_v3 = vpop.f32.mrb[207].mxu0 }
0x25c2   :  { %17308 = vst [vmem:[#allocation17_spill] sm:$0xff] %v15684_v3 }
0x25c6   :  { %v10940_v25 = vpop.f32.mrb[208].mxu0 }
0x25c7   :  { %v7059_v51 = vpop.f32.mrb[209].mxu0  ;;  %v7096_v17 = vsel %vm511_vm2, %v10940_v25, -inf }
0x25c8   :  { %7097 = vmax.xlane.f32.xlu0 %v7096_v17  ;;  %v10941_v63 = vpop.f32.mrb[210].mxu0  ;;  %v7090_v56 = vsel %vm511_vm2, %v7059_v51, -inf }
0x25c9   :  { %v7062_v49 = vpop.f32.mrb[211].mxu0  ;;  %v7099_v13 = vsel %vm511_vm2, %v10941_v63, -inf }
0x25ca   :  { %v7093_v44 = vsel %vm511_vm2, %v7062_v49, -inf }
0x25cb   :  { %7094 = vmax.xlane.f32.xlu1 %v7093_v44 }
0x25cc   :  { %7091 = vmax.xlane.f32.xlu0 %v7090_v56 }
0x25ce   :  { %v10944_v16 = vpop.f32.mrb[212].mxu0 }
0x25cf   :  { %v7075_v26 = vpop.f32.mrb[213].mxu0  ;;  %v7108_v31 = vsel %vm511_vm2, %v10944_v16, -inf }
0x25d0   :  { %7100 = vmax.xlane.f32.xlu0 %v7099_v13  ;;  %v15690_v41 = vpop.f32.mrb[214].mxu0  ;;  %v7102_v9 = vsel %vm511_vm2, %v7075_v26, -inf }
0x25d1   :  { %v15692_v1 = vpop.f32.mrb[215].mxu0  ;;  %v7111_v46 = vsel %vm511_vm2, %v15690_v41, -inf }
0x25d2   :  { %v7105_v36 = vsel %vm511_vm2, %v15692_v1, -inf }
0x25d4   :  { %7109 = vmax.xlane.f32.xlu0 %v7108_v31 }
0x25d8   :  { %7103 = vmax.xlane.f32.xlu0 %v7102_v9 }
0x25dc   :  { %7188 = vrot.lane.b32.xlu1 %v15385_v38, %s12351_s17 }
0x25e0   :  { %7190 = vrot.lane.b32.xlu1 %v15391_v43, %s12351_s17 }
0x25ee   :  { %7186 = vrot.lane.b32.xlu0 %v15379_v59, %s12351_s17 }
0x2604   :  { %7112 = vmax.xlane.f32.xlu1 %v7111_v46 }
0x2608   :  { %7106 = vmax.xlane.f32.xlu1 %v7105_v36 }
0x2619   :  { %7192 = vrot.lane.b32.xlu1 %v15399_v27, %s12351_s17 }
0x2655   :  { %v7098_v39 = vpop.xlane.xlu0 %7097 }
0x2656   :  { %v7116_v17 = vsub.f32 %v10940_v25, %v7098_v39 }
0x2658   :  { %v7126_v44 = vmul.f32 1.442695, %v7116_v17  ;;  %v7095_v56 = vpop.xlane.xlu1 %7094 }
0x2659   :  { %v7092_v13 = vpop.xlane.xlu0 %7091  ;;  %v7115_v9 = vsub.f32 %v7062_v49, %v7095_v56 }
0x265a   :  { %12114 = vpow2.f32 %v7126_v44  ;;  %v7114_v31 = vsub.f32 %v7059_v51, %v7092_v13 }
0x265b   :  { %v7124_v46 = vmul.f32 1.442695, %v7115_v9 }
0x265c   :  { %v7122_v57 = vmul.f32 1.442695, %v7114_v31 }
0x265d   :  { %v7101_v3 = vpop.xlane.xlu0 %7100 }
0x265e   :  { %12116 = vpow2.f32 %v7122_v57  ;;  %v7117_v7 = vsub.f32 %v10941_v63, %v7101_v3  ;;  %v7189_v3 = vpop.permute.xlu1 %7188 }
0x2660   :  { %v7128_v37 = vmul.f32 1.442695, %v7117_v7 }
0x2661   :  { %v7110_v15 = vpop.xlane.xlu0 %7109 }
0x2662   :  { %12118 = vpow2.f32 %v7128_v37  ;;  %v7120_v36 = vsub.f32 %v10944_v16, %v7110_v15 }
0x2663   :  { %12120 = vpow2.f32 %v7124_v46 }
0x2664   :  { %v15708_v12 = vpop.eup %12114  ;;  %v7134_v20 = vmul.f32 1.442695, %v7120_v36 }
0x2665   :  { %v7104_v25 = vpop.xlane.xlu0 %7103  ;;  %v7144_v39 = vsel %vm511_vm2, %v15708_v12, 0.0 }
0x2666   :  { %12122 = vpow2.f32 %v7134_v20  ;;  %v7118_v51 = vsub.f32 %v7075_v26, %v7104_v25  ;;  %7145 = vadd.xlane.f32.xlu0 %v7144_v39  ;;  %v7191_v20 = vpop.permute.xlu1 %7190 }
0x2668   :  { %v15712_v49 = vpop.eup %12116  ;;  %v7130_v57 = vmul.f32 1.442695, %v7118_v51 }
0x2669   :  { %v7187_v63 = vpop.permute.xlu0 %7186  ;;  %v7138_v7 = vsel %vm511_vm2, %v15712_v49, 0.0 }
0x266a   :  { %12124 = vpow2.f32 %v7130_v57  ;;  %7139 = vadd.xlane.f32.xlu0 %v7138_v7  ;;  %10946 = vmatprep.subr.bf16.mxu1 %v7187_v63 }
0x266b   :  { %10947 = vmatpush3.bf16.msra.mxu1 %v7187_v63 }
0x266c   :  { %v12119_v15 = vpop.eup %12118  ;;  %10948 = vmatprep.subr.bf16.mxu1 %v7189_v3 }
0x266d   :  { %v7147_v37 = vsel %vm511_vm2, %v12119_v15, 0.0  ;;  %v12121_v16 = vpop.eup %12120 }
0x266e   :  { %7148 = vadd.xlane.f32.xlu1 %v7147_v37  ;;  %v7141_v44 = vsel %vm511_vm2, %v12121_v16, 0.0 }
0x266f   :  { %10949 = vmatpush3.bf16.msra.mxu1 %v7189_v3 }
0x2670   :  { %v15717_v26 = vpop.eup %12122  ;;  %10950 = vmatprep.subr.bf16.mxu1 %v7191_v20 }
0x2671   :  { %v7156_v17 = vsel %vm511_vm2, %v15717_v26, 0.0 }
0x2672   :  { %7157 = vadd.xlane.f32.xlu0 %v7156_v17  ;;  %7142 = vadd.xlane.f32.xlu1 %v7141_v44 }
0x2673   :  { %10951 = vmatpush3.bf16.msra.mxu1 %v7191_v20 }
0x2674   :  { %v15722_v56 = vpop.eup %12124 }
0x2675   :  { %v7150_v13 = vsel %vm511_vm2, %v15722_v56, 0.0 }
0x2676   :  { %7151 = vadd.xlane.f32.xlu0 %v7150_v13 }
0x2683   :  { %7285 = vrot.lane.b32.xlu1 %v15383_v58, %s12352_s4 }
0x2687   :  { %7287 = vrot.lane.b32.xlu1 %v15389_v52, %s12352_s4 }
0x2691   :  { %v7113_v31 = vpop.xlane.xlu1 %7112 }
0x2692   :  { %v7121_v9 = vsub.f32 %v15690_v41, %v7113_v31 }
0x2694   :  { %v7136_v46 = vmul.f32 1.442695, %v7121_v9 }
0x2695   :  { %v7107_v36 = vpop.xlane.xlu1 %7106 }
0x2696   :  { %12126 = vpow2.f32 %v7136_v46  ;;  %v7119_v25 = vsub.f32 %v15692_v1, %v7107_v36 }
0x2698   :  { %v7132_v39 = vmul.f32 1.442695, %v7119_v25 }
0x2699   :  { %v7193_v51 = vpop.permute.xlu1 %7192 }
0x269a   :  { %10952 = vmatprep.subr.bf16.mxu1 %v7193_v51  ;;  %12128 = vpow2.f32 %v7132_v39 }
0x269b   :  { %10953 = vmatpush3.bf16.msra.mxu1 %v7193_v51 }
0x26a0   :  { %v12127_v57 = vpop.eup %12126 }
0x26a1   :  { %v7159_v3 = vsel %vm511_vm2, %v12127_v57, 0.0 }
0x26a2   :  { %7160 = vadd.xlane.f32.xlu0 %v7159_v3 }
0x26a4   :  { %v12129_v63 = vpop.eup %12128 }
0x26a5   :  { %v7153_v7 = vsel %vm511_vm2, %v12129_v63, 0.0 }
0x26ab   :  { %7154 = vadd.xlane.f32.xlu1 %v7153_v7 }
0x26b8   :  { %7283 = vrot.lane.b32.xlu0 %v15377_v48, %s12352_s4 }
0x26bc   :  { %7275 = vrot.lane.b32.xlu0 %v15377_v48, %s12353_s18  ;;  %7289 = vrot.lane.b32.xlu1 %v15395_v33, %s12352_s4 }
0x26c0   :  { %7279 = vrot.lane.b32.xlu0 %v15389_v52, %s12353_s18  ;;  %7277 = vrot.lane.b32.xlu1 %v15383_v58, %s12353_s18 }
0x26c4   :  { %7281 = vrot.lane.b32.xlu1 %v15395_v33, %s12353_s18 }
0x26f3   :  { %v7146_v41 = vpop.xlane.xlu0 %7145 }
0x26f7   :  { %v7140_v37 = vpop.xlane.xlu0 %7139 }
0x26fb   :  { %v7149_v1 = vpop.xlane.xlu1 %7148 }
0x26fc   :  { %12130 = vrcp.f32 %v7149_v1 }
0x26fd   :  { %12132 = vrcp.f32 %v7140_v37 }
0x26fe   :  { %12134 = vrcp.f32 %v7146_v41 }
0x26ff   :  { %v7143_v20 = vpop.xlane.xlu1 %7142  ;;  %v7158_v3 = vpop.xlane.xlu0 %7157 }
0x2700   :  { %12136 = vrcp.f32 %v7143_v20 }
0x2703   :  { %v7152_v7 = vpop.xlane.xlu0 %7151  ;;  %v7286_v41 = vpop.permute.xlu1 %7285 }
0x2706   :  { %v12131_v17 = vpop.eup %12130 }
0x2707   :  { %v12133_v44 = vpop.eup %12132  ;;  %v7173_v9 = vmul.f32 %v12131_v17, %v12119_v15  ;;  %v7288_v20 = vpop.permute.xlu1 %7287 }
0x2708   :  { %v12135_v13 = vpop.eup %12134  ;;  %v7170_v46 = vmul.f32 %v12133_v44, %v15712_v49  ;;  %v7307_v49 = vsel %vm123_vm0, %v7286_v41, 0 }
0x2709   :  { %v7172_v25 = vmul.f32 %v12135_v13, %v15708_v12 }
0x270a   :  { %v12137_v31 = vpop.eup %12136 }
0x270b   :  { %v7171_v36 = vmul.f32 %v12137_v31, %v12121_v16  ;;  %v7179_v51 = vpack.c.bf16 %v7173_v9, %v7172_v25  ;;  %v7310_v9 = vsel %vm123_vm0, %v7288_v20, 0 }
0x270d   :  { %v7178_v39 = vpack.c.bf16 %v7171_v36, %v7170_v46 }
0x270f   :  { %10954 = vmatprep.mubr.msk.bf16.mxu1 %vm511_vm2, %v7178_v39 }
0x2710   :  { %10955 = vmatmul.mubr.msk.bf16.vlgmr.msra.gmra.mrb[176].mxu1 %vm511_vm2, %v7179_v51 }
0x272f   :  { %v7161_v1 = vpop.xlane.xlu0 %7160 }
0x2730   :  { %12138 = vrcp.f32 %v7161_v1 }
0x2731   :  { %12140 = vrcp.f32 %v7152_v7 }
0x2732   :  { %12142 = vrcp.f32 %v7158_v3 }
0x2733   :  { %v7284_v37 = vpop.permute.xlu0 %7283 }
0x2734   :  { %11130 = vmatprep.subr.msk.bf16.mxu1 %vm123_vm0, %v7284_v37  ;;  %v7304_v15 = vsel %vm123_vm0, %v7284_v37, 0 }
0x2735   :  { %10963 = vmatpush3.bf16.xpose.msra.mxu1 %v7304_v15 }
0x2736   :  { %11131 = vmatprep.subr.msk.bf16.mxu1 %vm123_vm0, %v7286_v41 }
0x2737   :  { %v7276_v7 = vpop.permute.xlu0 %7275 }
0x2738   :  { %v7155_v12 = vpop.xlane.xlu1 %7154 }
0x2739   :  { %12144 = vrcp.f32 %v7155_v12 }
0x273a   :  { %v12139_v16 = vpop.eup %12138 }
0x273b   :  { %v12141_v17 = vpop.eup %12140  ;;  %v7177_v31 = vmul.f32 %v12139_v16, %v12127_v57 }
0x273c   :  { %v12143_v44 = vpop.eup %12142  ;;  %v7174_v46 = vmul.f32 %v12141_v17, %v15722_v56  ;;  %v7290_v25 = vpop.permute.xlu1 %7289 }
0x273d   :  { %10965 = vmatpush3.bf16.xpose.msra.mxu1 %v7307_v49  ;;  %v7176_v39 = vmul.f32 %v12143_v44, %v15717_v26  ;;  %v7313_v57 = vsel %vm123_vm0, %v7290_v25, 0 }
0x273e   :  { %11132 = vmatprep.subr.msk.bf16.mxu1 %vm123_vm0, %v7288_v20 }
0x273f   :  { %v7181_v3 = vpack.c.bf16 %v7177_v31, %v7176_v39 }
0x2740   :  { %v7278_v56 = vpop.permute.xlu1 %7277 }
0x2743   :  { %v12145_v13 = vpop.eup %12144 }
0x2744   :  { %v7175_v36 = vmul.f32 %v12145_v13, %v12129_v63  ;;  %v7280_v63 = vpop.permute.xlu0 %7279  ;;  %v7282_v26 = vpop.permute.xlu1 %7281 }
0x2745   :  { %10967 = vmatpush3.bf16.xpose.msra.mxu1 %v7310_v9 }
0x2746   :  { %11133 = vmatprep.subr.msk.bf16.mxu1 %vm123_vm0, %v7290_v25  ;;  %v7180_v51 = vpack.c.bf16 %v7175_v36, %v7174_v46 }
0x2748   :  { %10958 = vmatprep.mubr.msk.bf16.mxu1 %vm511_vm2, %v7180_v51 }
0x2749   :  { %10959 = vmatmul.mubr.msk.bf16.gmra.mrb[180].mxu1 %vm511_vm2, %v7181_v3 }
0x274a   :  { %10970 = vmatprep.mubr.msk.bf16.mxu1 %vm123_vm0, %v7276_v7 }
0x274d   :  { %10969 = vmatpush3.bf16.xpose.msra.mxu1 %v7313_v57 }
0x2754   :  { %10971 = vmatmul.mubr.msk.bf16.vlgmr.msra.gmra.mrb[184].mxu1 %vm123_vm0, %v7278_v56 }
0x2755   :  { %10974 = vmatprep.mubr.msk.bf16.mxu1 %vm123_vm0, %v7280_v63 }
0x275c   :  { %10975 = vmatmul.mubr.msk.bf16.gmra.mrb[188].mxu1 %vm123_vm0, %v7282_v26 }
0x27e3   :  { %v15766_v41 = vpop.f32.mrb[176].mxu1 }
0x27e4   :  { %v15768_v1 = vpop.f32.mrb[177].mxu1 }
0x27e5   :  { %v15770_v37 = vpop.f32.mrb[178].mxu1 }
0x27e6   :  { %v15774_v15 = vpop.f32.mrb[179].mxu1 }
0x281c   :  { %v15778_v49 = vpop.f32.mrb[180].mxu1 }
0x281d   :  { %17309 = vst [vmem:[#allocation20_spill] sm:$0xff] %v15778_v49  ;;  %v15780_v16 = vpop.f32.mrb[181].mxu1 }
0x281e   :  { %17310 = vst [vmem:[#allocation18_spill] sm:$0xff] %v15780_v16  ;;  %v15782_v17 = vpop.f32.mrb[182].mxu1 }
0x281f   :  { %17311 = vst [vmem:[#allocation22_spill] sm:$0xff] %v15782_v17  ;;  %v15786_v13 = vpop.f32.mrb[183].mxu1 }
0x2820   :  { %17312 = vst [vmem:[#allocation3_spill] sm:$0xff] %v15786_v13 }
0x2827   :  { %v10972_v9 = vpop.f32.mrb[184].mxu1 }
0x2828   :  { %v7349_v46 = vpop.f32.mrb[185].mxu1  ;;  %v7386_v36 = vsel %vm511_vm2, %v10972_v9, -inf }
0x2829   :  { %7387 = vmax.xlane.f32.xlu0 %v7386_v36  ;;  %v10973_v25 = vpop.f32.mrb[186].mxu1  ;;  %v7380_v3 = vsel %vm511_vm2, %v7349_v46, -inf }
0x282a   :  { %v7352_v39 = vpop.f32.mrb[187].mxu1  ;;  %v7389_v56 = vsel %vm511_vm2, %v10973_v25, -inf }
0x282b   :  { %v7383_v51 = vsel %vm511_vm2, %v7352_v39, -inf }
0x282c   :  { %7384 = vmax.xlane.f32.xlu1 %v7383_v51 }
0x282d   :  { %7381 = vmax.xlane.f32.xlu0 %v7380_v3 }
0x282f   :  { %v10976_v7 = vpop.f32.mrb[188].mxu1 }
0x2830   :  { %v7365_v57 = vpop.f32.mrb[189].mxu1  ;;  %v7398_v31 = vsel %vm511_vm2, %v10976_v7, -inf }
0x2831   :  { %7390 = vmax.xlane.f32.xlu0 %v7389_v56  ;;  %v15794_v63 = vpop.f32.mrb[190].mxu1  ;;  %v7392_v36 = vsel %vm511_vm2, %v7365_v57, -inf }
0x2832   :  { %v15796_v26 = vpop.f32.mrb[191].mxu1  ;;  %v7401_v51 = vsel %vm511_vm2, %v15794_v63, -inf }
0x2833   :  { %v7395_v3 = vsel %vm511_vm2, %v15796_v26, -inf }
0x2835   :  { %7399 = vmax.xlane.f32.xlu0 %v7398_v31 }
0x2839   :  { %7393 = vmax.xlane.f32.xlu0 %v7392_v36 }
0x283d   :  { %7474 = vrot.lane.b32.xlu1 %v15385_v38, %s12353_s18 }
0x2841   :  { %7476 = vrot.lane.b32.xlu1 %v15391_v43, %s12353_s18 }
0x284f   :  { %7472 = vrot.lane.b32.xlu0 %v15379_v59, %s12353_s18 }
0x2865   :  { %7402 = vmax.xlane.f32.xlu1 %v7401_v51 }
0x2869   :  { %7396 = vmax.xlane.f32.xlu1 %v7395_v3 }
0x287a   :  { %7478 = vrot.lane.b32.xlu1 %v15399_v27, %s12353_s18 }
0x28b6   :  { %v7388_v31 = vpop.xlane.xlu0 %7387 }
0x28b7   :  { %v7406_v56 = vsub.f32 %v10972_v9, %v7388_v31 }
0x28b9   :  { %v7416_v36 = vmul.f32 1.442695, %v7406_v56  ;;  %v7385_v44 = vpop.xlane.xlu1 %7384 }
0x28ba   :  { %v7382_v20 = vpop.xlane.xlu0 %7381  ;;  %v7405_v53 = vsub.f32 %v7352_v39, %v7385_v44 }
0x28bb   :  { %12146 = vpow2.f32 %v7416_v36  ;;  %v7404_v12 = vsub.f32 %v7349_v46, %v7382_v20 }
0x28bc   :  { %v7414_v51 = vmul.f32 1.442695, %v7405_v53 }
0x28bd   :  { %v7412_v16 = vmul.f32 1.442695, %v7404_v12  ;;  %v7475_v44 = vpop.permute.xlu1 %7474 }
0x28be   :  { %v7391_v13 = vpop.xlane.xlu0 %7390 }
0x28bf   :  { %12148 = vpow2.f32 %v7412_v16  ;;  %v7407_v49 = vsub.f32 %v10973_v25, %v7391_v13 }
0x28c1   :  { %v7418_v17 = vmul.f32 1.442695, %v7407_v49 }
0x28c2   :  { %v7400_v23 = vpop.xlane.xlu0 %7399 }
0x28c3   :  { %12150 = vpow2.f32 %v7418_v17  ;;  %v7410_v3 = vsub.f32 %v10976_v7, %v7400_v23 }
0x28c4   :  { %12152 = vpow2.f32 %v7414_v51 }
0x28c5   :  { %v15812_v10 = vpop.eup %12146  ;;  %v7424_v35 = vmul.f32 1.442695, %v7410_v3 }
0x28c6   :  { %v7394_v9 = vpop.xlane.xlu0 %7393  ;;  %v7434_v31 = vsel %vm511_vm2, %v15812_v10, 0.0 }
0x28c7   :  { %12154 = vpow2.f32 %v7424_v35  ;;  %v7408_v20 = vsub.f32 %v7365_v57, %v7394_v9  ;;  %7435 = vadd.xlane.f32.xlu0 %v7434_v31  ;;  %v7477_v35 = vpop.permute.xlu1 %7476 }
0x28c9   :  { %v15816_v12 = vpop.eup %12148  ;;  %v7420_v16 = vmul.f32 1.442695, %v7408_v20 }
0x28ca   :  { %v7473_v53 = vpop.permute.xlu0 %7472  ;;  %v7428_v49 = vsel %vm511_vm2, %v15816_v12, 0.0 }
0x28cb   :  { %12156 = vpow2.f32 %v7420_v16  ;;  %7429 = vadd.xlane.f32.xlu0 %v7428_v49  ;;  %10978 = vmatprep.subr.bf16.mxu0 %v7473_v53 }
0x28cc   :  { %10979 = vmatpush3.bf16.msra.mxu0 %v7473_v53 }
0x28cd   :  { %v12151_v23 = vpop.eup %12150  ;;  %10980 = vmatprep.subr.bf16.mxu0 %v7475_v44 }
0x28ce   :  { %v7437_v17 = vsel %vm511_vm2, %v12151_v23, 0.0  ;;  %v12153_v13 = vpop.eup %12152 }
0x28cf   :  { %7438 = vadd.xlane.f32.xlu1 %v7437_v17  ;;  %v7431_v39 = vsel %vm511_vm2, %v12153_v13, 0.0 }
0x28d0   :  { %10981 = vmatpush3.bf16.msra.mxu0 %v7475_v44 }
0x28d1   :  { %v15821_v46 = vpop.eup %12154  ;;  %10982 = vmatprep.subr.bf16.mxu0 %v7477_v35 }
0x28d2   :  { %v7446_v25 = vsel %vm511_vm2, %v15821_v46, 0.0 }
0x28d3   :  { %7447 = vadd.xlane.f32.xlu0 %v7446_v25  ;;  %7432 = vadd.xlane.f32.xlu1 %v7431_v39 }
0x28d4   :  { %10983 = vmatpush3.bf16.msra.mxu0 %v7477_v35 }
0x28d5   :  { %v15826_v7 = vpop.eup %12156 }
0x28d6   :  { %v7440_v57 = vsel %vm511_vm2, %v15826_v7, 0.0 }
0x28d7   :  { %7441 = vadd.xlane.f32.xlu0 %v7440_v57 }
0x28e4   :  { %7571 = vrot.lane.b32.xlu1 %v15383_v58, %s12354_s1 }
0x28e8   :  { %7573 = vrot.lane.b32.xlu1 %v15389_v52, %s12354_s1 }
0x28f2   :  { %v7403_v56 = vpop.xlane.xlu1 %7402 }
0x28f3   :  { %v7411_v36 = vsub.f32 %v15794_v63, %v7403_v56 }
0x28f5   :  { %v7426_v51 = vmul.f32 1.442695, %v7411_v36 }
0x28f6   :  { %v7397_v3 = vpop.xlane.xlu1 %7396 }
0x28f7   :  { %12158 = vpow2.f32 %v7426_v51  ;;  %v7409_v9 = vsub.f32 %v15796_v26, %v7397_v3 }
0x28f9   :  { %v7422_v31 = vmul.f32 1.442695, %v7409_v9 }
0x28fa   :  { %v7479_v20 = vpop.permute.xlu1 %7478 }
0x28fb   :  { %10984 = vmatprep.subr.bf16.mxu0 %v7479_v20  ;;  %12160 = vpow2.f32 %v7422_v31 }
0x28fc   :  { %10985 = vmatpush3.bf16.msra.mxu0 %v7479_v20 }
0x2901   :  { %v12159_v16 = vpop.eup %12158 }
0x2902   :  { %v7449_v44 = vsel %vm511_vm2, %v12159_v16, 0.0 }
0x2903   :  { %7450 = vadd.xlane.f32.xlu0 %v7449_v44 }
0x2905   :  { %v12161_v53 = vpop.eup %12160 }
0x2906   :  { %v7443_v49 = vsel %vm511_vm2, %v12161_v53, 0.0 }
0x290c   :  { %7444 = vadd.xlane.f32.xlu1 %v7443_v49 }
0x2919   :  { %7569 = vrot.lane.b32.xlu0 %v15377_v48, %s12354_s1 }
0x291d   :  { %7561 = vrot.lane.b32.xlu0 %v15377_v48, %s12355_s19  ;;  %7575 = vrot.lane.b32.xlu1 %v15395_v33, %s12354_s1 }
0x2921   :  { %7565 = vrot.lane.b32.xlu0 %v15389_v52, %s12355_s19  ;;  %7563 = vrot.lane.b32.xlu1 %v15383_v58, %s12355_s19 }
0x2925   :  { %7567 = vrot.lane.b32.xlu1 %v15395_v33, %s12355_s19 }
0x2954   :  { %v7436_v63 = vpop.xlane.xlu0 %7435 }
0x2958   :  { %v7430_v17 = vpop.xlane.xlu0 %7429 }
0x295c   :  { %v7439_v26 = vpop.xlane.xlu1 %7438 }
0x295d   :  { %12162 = vrcp.f32 %v7439_v26 }
0x295e   :  { %12164 = vrcp.f32 %v7430_v17 }
0x295f   :  { %12166 = vrcp.f32 %v7436_v63 }
0x2960   :  { %v7433_v35 = vpop.xlane.xlu1 %7432  ;;  %v7448_v3 = vpop.xlane.xlu0 %7447 }
0x2961   :  { %12168 = vrcp.f32 %v7433_v35 }
0x2964   :  { %v7442_v9 = vpop.xlane.xlu0 %7441  ;;  %v7572_v31 = vpop.permute.xlu1 %7571 }
0x2967   :  { %v12163_v48 = vpop.eup %12162 }
0x2968   :  { %v12165_v25 = vpop.eup %12164  ;;  %v7463_v56 = vmul.f32 %v12163_v48, %v12151_v23  ;;  %v7574_v49 = vpop.permute.xlu1 %7573 }
0x2969   :  { %v12167_v39 = vpop.eup %12166  ;;  %v7460_v52 = vmul.f32 %v12165_v25, %v15816_v12  ;;  %v7593_v12 = vsel %vm123_vm0, %v7572_v31, 0  ;;  %v7596_v48 = vsel %vm123_vm0, %v7574_v49, 0 }
0x296a   :  { %v7462_v58 = vmul.f32 %v12167_v39, %v15812_v10 }
0x296b   :  { %v12169_v57 = vpop.eup %12168 }
0x296c   :  { %v7461_v36 = vmul.f32 %v12169_v57, %v12153_v13  ;;  %v7469_v33 = vpack.c.bf16 %v7463_v56, %v7462_v58 }
0x296e   :  { %v7468_v51 = vpack.c.bf16 %v7461_v36, %v7460_v52 }
0x2970   :  { %10986 = vmatprep.mubr.msk.bf16.mxu0 %vm511_vm2, %v7468_v51 }
0x2971   :  { %10987 = vmatmul.mubr.msk.bf16.vlgmr.msra.gmra.mrb[216].mxu0 %vm511_vm2, %v7469_v33 }
0x2990   :  { %v7451_v20 = vpop.xlane.xlu0 %7450 }
0x2991   :  { %12170 = vrcp.f32 %v7451_v20 }
0x2992   :  { %12172 = vrcp.f32 %v7442_v9 }
0x2993   :  { %12174 = vrcp.f32 %v7448_v3 }
0x2994   :  { %v7570_v44 = vpop.permute.xlu0 %7569 }
0x2995   :  { %11134 = vmatprep.subr.msk.bf16.mxu0 %vm123_vm0, %v7570_v44  ;;  %v7590_v23 = vsel %vm123_vm0, %v7570_v44, 0 }
0x2996   :  { %10995 = vmatpush3.bf16.xpose.msra.mxu0 %v7590_v23 }
0x2997   :  { %11135 = vmatprep.subr.msk.bf16.mxu0 %vm123_vm0, %v7572_v31 }
0x2998   :  { %v7562_v58 = vpop.permute.xlu0 %7561 }
0x2999   :  { %v7445_v10 = vpop.xlane.xlu1 %7444 }
0x299a   :  { %12176 = vrcp.f32 %v7445_v10 }
0x299b   :  { %v12171_v13 = vpop.eup %12170 }
0x299c   :  { %v12173_v63 = vpop.eup %12172  ;;  %v7467_v35 = vmul.f32 %v12171_v13, %v12159_v16 }
0x299d   :  { %v12175_v26 = vpop.eup %12174  ;;  %v7464_v25 = vmul.f32 %v12173_v63, %v15826_v7  ;;  %v7576_v57 = vpop.permute.xlu1 %7575 }
0x299e   :  { %10997 = vmatpush3.bf16.xpose.msra.mxu0 %v7593_v12  ;;  %v7466_v56 = vmul.f32 %v12175_v26, %v15821_v46  ;;  %v7599_v16 = vsel %vm123_vm0, %v7576_v57, 0 }
0x299f   :  { %11136 = vmatprep.subr.msk.bf16.mxu0 %vm123_vm0, %v7574_v49 }
0x29a0   :  { %v7471_v36 = vpack.c.bf16 %v7467_v35, %v7466_v56 }
0x29a1   :  { %v7564_v7 = vpop.permute.xlu1 %7563 }
0x29a4   :  { %v12177_v17 = vpop.eup %12176 }
0x29a5   :  { %v7465_v39 = vmul.f32 %v12177_v17, %v12161_v53  ;;  %v7566_v53 = vpop.permute.xlu0 %7565  ;;  %v7568_v46 = vpop.permute.xlu1 %7567 }
0x29a6   :  { %10999 = vmatpush3.bf16.xpose.msra.mxu0 %v7596_v48 }
0x29a7   :  { %11137 = vmatprep.subr.msk.bf16.mxu0 %vm123_vm0, %v7576_v57  ;;  %v7470_v52 = vpack.c.bf16 %v7465_v39, %v7464_v25 }
0x29a9   :  { %10990 = vmatprep.mubr.msk.bf16.mxu0 %vm511_vm2, %v7470_v52 }
0x29aa   :  { %10991 = vmatmul.mubr.msk.bf16.gmra.mrb[220].mxu0 %vm511_vm2, %v7471_v36 }
0x29ab   :  { %11002 = vmatprep.mubr.msk.bf16.mxu0 %vm123_vm0, %v7562_v58 }
0x29ae   :  { %11001 = vmatpush3.bf16.xpose.msra.mxu0 %v7599_v16 }
0x29b5   :  { %11003 = vmatmul.mubr.msk.bf16.vlgmr.msra.gmra.mrb[224].mxu0 %vm123_vm0, %v7564_v7 }
0x29b6   :  { %11006 = vmatprep.mubr.msk.bf16.mxu0 %vm123_vm0, %v7566_v53 }
0x29bd   :  { %11007 = vmatmul.mubr.msk.bf16.gmra.mrb[228].mxu0 %vm123_vm0, %v7568_v46 }
0x29be   :  { %8540 = vmatprep.mubr.bf16.mxu0 %v17215_v14 }
0x2a44   :  { %v15871_v51 = vpop.f32.mrb[216].mxu0 }
0x2a45   :  { %v15873_v33 = vpop.f32.mrb[217].mxu0 }
0x2a46   :  { %v15875_v3 = vpop.f32.mrb[218].mxu0 }
0x2a47   :  { %v15879_v31 = vpop.f32.mrb[219].mxu0 }
0x2a7d   :  { %v15883_v44 = vpop.f32.mrb[220].mxu0 }
0x2a7e   :  { %17313 = vst [vmem:[#allocation2_spill] sm:$0xff] %v15883_v44  ;;  %v15885_v49 = vpop.f32.mrb[221].mxu0 }
0x2a7f   :  { %17314 = vst [vmem:[#allocation41_spill] sm:$0xff] %v15885_v49  ;;  %v15887_v23 = vpop.f32.mrb[222].mxu0 }
0x2a80   :  { %v15891_v12 = vpop.f32.mrb[223].mxu0 }
0x2a81   :  { %17315 = vst [vmem:[#allocation42_spill] sm:$0xff] %v15891_v12 }
0x2a88   :  { %v11004_v63 = vpop.f32.mrb[224].mxu0 }
0x2a89   :  { %v7635_v26 = vpop.f32.mrb[225].mxu0  ;;  %v7672_v39 = vsel %vm511_vm2, %v11004_v63, -inf }
0x2a8a   :  { %v11005_v17 = vpop.f32.mrb[226].mxu0  ;;  %v7666_v35 = vsel %vm511_vm2, %v7635_v26, -inf }
0x2a8b   :  { %7667 = vmax.xlane.f32.xlu0 %v7666_v35  ;;  %v7638_v48 = vpop.f32.mrb[227].mxu0  ;;  %v7675_v36 = vsel %vm511_vm2, %v11005_v17, -inf }
0x2a8c   :  { %v7669_v25 = vsel %vm511_vm2, %v7638_v48, -inf }
0x2a8d   :  { %7670 = vmax.xlane.f32.xlu1 %v7669_v25 }
0x2a8f   :  { %7673 = vmax.xlane.f32.xlu0 %v7672_v39 }
0x2a90   :  { %v11008_v57 = vpop.f32.mrb[228].mxu0 }
0x2a91   :  { %v7651_v56 = vpop.f32.mrb[229].mxu0  ;;  %v7684_v46 = vsel %vm511_vm2, %v11008_v57, -inf }
0x2a92   :  { %v11009_v52 = vpop.f32.mrb[230].mxu0  ;;  %v7678_v7 = vsel %vm511_vm2, %v7651_v56, -inf }
0x2a93   :  { %7676 = vmax.xlane.f32.xlu0 %v7675_v36  ;;  %v7654_v58 = vpop.f32.mrb[231].mxu0  ;;  %v7687_v53 = vsel %vm511_vm2, %v11009_v52, -inf }
0x2a94   :  { %v7681_v16 = vsel %vm511_vm2, %v7654_v58, -inf }
0x2a95   :  { %7682 = vmax.xlane.f32.xlu1 %v7681_v16 }
0x2a97   :  { %7679 = vmax.xlane.f32.xlu0 %v7678_v7 }
0x2a99   :  { %7688 = vmax.xlane.f32.xlu1 %v7687_v53 }
0x2a9b   :  { %7685 = vmax.xlane.f32.xlu0 %v7684_v46 }
0x2ab1   :  { %7758 = vrot.lane.b32.xlu0 %v15379_v59, %s12355_s19 }
0x2b18   :  { %v7668_v35 = vpop.xlane.xlu0 %7667 }
0x2b19   :  { %v7690_v25 = vsub.f32 %v7635_v26, %v7668_v35 }
0x2b1a   :  { %v7671_v39 = vpop.xlane.xlu1 %7670 }
0x2b1b   :  { %v7698_v10 = vmul.f32 1.442695, %v7690_v25  ;;  %v7691_v9 = vsub.f32 %v7638_v48, %v7671_v39 }
0x2b1c   :  { %v7674_v36 = vpop.xlane.xlu0 %7673 }
0x2b1d   :  { %v7692_v13 = vsub.f32 %v11004_v63, %v7674_v36  ;;  %v7700_v53 = vmul.f32 1.442695, %v7691_v9 }
0x2b1f   :  { %v7702_v16 = vmul.f32 1.442695, %v7692_v13 }
0x2b20   :  { %v7677_v20 = vpop.xlane.xlu0 %7676 }
0x2b21   :  { %12178 = vpow2.f32 %v7702_v16  ;;  %v7693_v7 = vsub.f32 %v11005_v17, %v7677_v20 }
0x2b22   :  { %v7683_v14 = vpop.xlane.xlu1 %7682  ;;  %12180 = vpow2.f32 %v7698_v10 }
0x2b23   :  { %v7704_v49 = vmul.f32 1.442695, %v7693_v7 }
0x2b24   :  { %v7680_v12 = vpop.xlane.xlu0 %7679 }
0x2b25   :  { %12182 = vpow2.f32 %v7704_v49  ;;  %v7694_v46 = vsub.f32 %v7651_v56, %v7680_v12  ;;  %v7695_v49 = vsub.f32 %v7654_v58, %v7683_v14 }
0x2b26   :  { %12184 = vpow2.f32 %v7700_v53  ;;  %v7689_v59 = vpop.xlane.xlu1 %7688 }
0x2b27   :  { %v7706_v63 = vmul.f32 1.442695, %v7694_v46  ;;  %v7697_v25 = vsub.f32 %v11009_v52, %v7689_v59  ;;  %v7708_v56 = vmul.f32 1.442695, %v7695_v49  ;;  %v17316_v59 = vpack.i.bf16 %v15474_v30, %v15468_v21 }
0x2b28   :  { %v7686_v44 = vpop.xlane.xlu0 %7685  ;;  %v17320_v21 = vpack.i.bf16 %v15486_v11, %v15480_v54  ;;  %v17321_v30 = vpack.i.bf16 %v15494_v8, %v15490_v0  ;;  %v17325_v54 = vpack.i.bf16 %v15482_v61, %v15478_v45  ;;  %v17326_v11 = vpack.i.bf16 %v15774_v15, %v15768_v1 }
0x2b29   :  { %v7696_v26 = vsub.f32 %v11008_v57, %v7686_v44  ;;  %v7712_v44 = vmul.f32 1.442695, %v7697_v25  ;;  %v17327_v0 = vpack.i.bf16 %v15506_v5, %v15502_v4  ;;  %v17329_v45 = vpack.i.bf16 %v15602_v60, %v15598_v29 }
0x2b2a   :  { %v17330_v61 = vpack.i.bf16 %v15770_v37, %v15766_v41  ;;  %v17331_v8 = vpack.i.bf16 %v15875_v3, %v15871_v51 }
0x2b2b   :  { %v15905_v35 = vpop.eup %12178  ;;  %v7710_v48 = vmul.f32 1.442695, %v7696_v26  ;;  %v17317_v26 = vpack.i.bf16 %v15498_v34, %v15492_v6  ;;  %v17328_v6 = vpack.i.bf16 %v15879_v31, %v15873_v33 }
0x2b2c   :  { %v7759_v13 = vpop.permute.xlu0 %7758  ;;  %v7720_v20 = vsel %vm511_vm2, %v15905_v35, 0.0  ;;  %v15909_v17 = vpop.eup %12180 }
0x2b2d   :  { %12186 = vpow2.f32 %v7710_v48  ;;  %7721 = vadd.xlane.f32.xlu0 %v7720_v20  ;;  %11010 = vmatprep.subr.bf16.mxu1 %v7759_v13  ;;  %v7714_v10 = vsel %vm511_vm2, %v15909_v17, 0.0 }
0x2b2e   :  { %11011 = vmatpush3.bf16.msra.mxu1 %v7759_v13  ;;  %12188 = vpow2.f32 %v7706_v63 }
0x2b2f   :  { %v15911_v9 = vpop.eup %12182  ;;  %12190 = vpow2.f32 %v7712_v44 }
0x2b30   :  { %v7723_v12 = vsel %vm511_vm2, %v15911_v9, 0.0  ;;  %v12185_v57 = vpop.eup %12184  ;;  %12192 = vpow2.f32 %v7708_v56 }
0x2b31   :  { %7715 = vadd.xlane.f32.xlu0 %v7714_v10  ;;  %7724 = vadd.xlane.f32.xlu1 %v7723_v12  ;;  %v7717_v52 = vsel %vm511_vm2, %v12185_v57, 0.0 }
0x2b35   :  { %7718 = vadd.xlane.f32.xlu1 %v7717_v52 }
0x2b37   :  { %v15918_v39 = vpop.eup %12186 }
0x2b38   :  { %v7732_v14 = vsel %vm511_vm2, %v15918_v39, 0.0  ;;  %v15922_v58 = vpop.eup %12188 }
0x2b39   :  { %7733 = vadd.xlane.f32.xlu1 %v7732_v14  ;;  %v7726_v36 = vsel %vm511_vm2, %v15922_v58, 0.0  ;;  %v15926_v16 = vpop.eup %12190 }
0x2b3a   :  { %v7735_v7 = vsel %vm511_vm2, %v15926_v16, 0.0  ;;  %v15930_v53 = vpop.eup %12192 }
0x2b3b   :  { %v7729_v46 = vsel %vm511_vm2, %v15930_v53, 0.0 }
0x2b3d   :  { %7727 = vadd.xlane.f32.xlu1 %v7726_v36 }
0x2b41   :  { %7736 = vadd.xlane.f32.xlu1 %v7735_v7 }
0x2b45   :  { %7730 = vadd.xlane.f32.xlu1 %v7729_v46 }
0x2b47   :  { %7762 = vrot.lane.b32.xlu0 %v15391_v43, %s12355_s19  ;;  %v17318_v43 = vpack.i.bf16 %v15594_v42, %v15588_v32 }
0x2b4b   :  { %7764 = vrot.lane.b32.xlu0 %v15399_v27, %s12355_s19  ;;  %v17319_v27 = vpack.i.bf16 %v15470_v50, %v15466_v55  ;;  %v17323_v55 = vpack.i.bf16 %v15590_v18, %v15586_v22  ;;  %v17324_v50 = vpack.i.bf16 %v15606_v40, %v15600_v2 }
0x2b4f   :  { %11270 = vrot.lane.b32.xlu0 %v17316_v59, %s12354_s1 }
0x2b53   :  { %11280 = vrot.lane.b32.xlu0 %v17317_v26, %s12352_s4 }
0x2b56   :  { %7760 = vrot.lane.b32.xlu1 %v15385_v38, %s12355_s19  ;;  %v17322_v38 = vpack.i.bf16 %v15510_v28, %v15504_v19 }
0x2b57   :  { %11290 = vrot.lane.b32.xlu0 %v17318_v43, %s12350_s3 }
0x2b5a   :  { %11275 = vrot.lane.b32.xlu1 %v17319_v27, %s12354_s1 }
0x2b5b   :  { %11300 = vrot.lane.b32.xlu0 %v17320_v21, %s12354_s1 }
0x2b5e   :  { %11285 = vrot.lane.b32.xlu1 %v17321_v30, %s12352_s4  ;;  %v11498_v30 = vld [vmem:[%s17100_s10 + $0x20] sm:$0xff]  }
0x2b5f   :  { %11310 = vrot.lane.b32.xlu0 %v17322_v38, %s12352_s4 }
0x2b62   :  { %11295 = vrot.lane.b32.xlu1 %v17323_v55, %s12350_s3  ;;  %v17332_v55 = vld [vmem:[#allocation31_spill] sm:$0xff] }
0x2b63   :  { %11320 = vrot.lane.b32.xlu0 %v17324_v50, %s12350_s3 }
0x2b66   :  { %11305 = vrot.lane.b32.xlu1 %v17325_v54, %s12354_s1 }
0x2b67   :  { %11330 = vrot.lane.b32.xlu0 %v17326_v11, %s12354_s1 }
0x2b6a   :  { %11315 = vrot.lane.b32.xlu1 %v17327_v0, %s12352_s4 }
0x2b6b   :  { %11340 = vrot.lane.b32.xlu0 %v17328_v6, %s12352_s4 }
0x2b6e   :  { %11325 = vrot.lane.b32.xlu1 %v17329_v45, %s12350_s3 }
0x2b72   :  { %11335 = vrot.lane.b32.xlu1 %v17330_v61, %s12354_s1 }
0x2b76   :  { %11345 = vrot.lane.b32.xlu1 %v17331_v8, %s12352_s4 }
0x2bba   :  { %v7722_v34 = vpop.xlane.xlu0 %7721 }
0x2bbe   :  { %v7716_v4 = vpop.xlane.xlu0 %7715  ;;  %v7725_v19 = vpop.xlane.xlu1 %7724 }
0x2bbf   :  { %12194 = vrcp.f32 %v7716_v4 }
0x2bc2   :  { %v7763_v5 = vpop.permute.xlu0 %7762  ;;  %v7719_v28 = vpop.xlane.xlu1 %7718 }
0x2bc3   :  { %12196 = vrcp.f32 %v7719_v28 }
0x2bc4   :  { %12198 = vrcp.f32 %v7722_v34 }
0x2bc5   :  { %12200 = vrcp.f32 %v7725_v19 }
0x2bc6   :  { %v16004_v22 = vpop.permute.xlu0 %7764  ;;  %v7734_v32 = vpop.xlane.xlu1 %7733 }
0x2bc9   :  { %v12195_v29 = vpop.eup %12194 }
0x2bca   :  { %v11271_v18 = vpop.permute.xlu0 %11270  ;;  %v7728_v42 = vpop.xlane.xlu1 %7727  ;;  %v7746_v1 = vmul.f32 %v12195_v29, %v15909_v17  ;;  %v17333_v29 = vld [vmem:[#allocation26_spill] sm:$0xff] }
0x2bcb   :  { %v11273_v60 = vunpack.i.h.bf16 %v11271_v18  ;;  %v11272_v15 = vunpack.i.l.bf16 %v11271_v18  ;;  %12202 = vrcp.f32 %v7728_v42 }
0x2bcd   :  { %v12197_v2 = vpop.eup %12196  ;;  %v6688_v31 = vsel %vm123_vm0, %v15181_v24, %v11273_v60  ;;  %v6687_v48 = vsel %vm123_vm0, %v15177_v47, %v11272_v15  ;;  %v17334_v60 = vld [vmem:[#allocation28_spill] sm:$0xff] }
0x2bce   :  { %v11281_v40 = vpop.permute.xlu0 %11280  ;;  %v7737_v41 = vpop.xlane.xlu1 %7736  ;;  %v7747_v37 = vmul.f32 %v12197_v2, %v12185_v57 }
0x2bcf   :  { %v11283_v51 = vunpack.i.h.bf16 %v11281_v40  ;;  %v11282_v33 = vunpack.i.l.bf16 %v11281_v40  ;;  %v12199_v47 = vpop.eup %12198 }
0x2bd0   :  { %v7754_v3 = vpack.c.bf16 %v7747_v37, %v7746_v1  ;;  %v12201_v56 = vpop.eup %12200  ;;  %v7748_v27 = vmul.f32 %v12199_v47, %v15905_v35  ;;  %v17335_v47 = vld [vmem:[#allocation32_spill] sm:$0xff] }
0x2bd1   :  { %v6695_v17 = vsel %vm2381_vm4, %v6687_v48, %v11282_v33  ;;  %v6696_v49 = vsel %vm2381_vm4, %v6688_v31, %v11283_v51  ;;  %v7749_v21 = vmul.f32 %v12201_v56, %v15911_v9  ;;  %v11500_v31 = vld [vmem:[%s17100_s10 + $0x30] sm:$0xff]  }
0x2bd2   :  { %v11291_v63 = vpop.permute.xlu0 %11290  ;;  %11018 = vmatprep.mubr.msk.bf16.mxu1 %vm511_vm2, %v7754_v3  ;;  %v7731_v25 = vpop.xlane.xlu1 %7730 }
0x2bd3   :  { %v11293_v13 = vunpack.i.h.bf16 %v11291_v63  ;;  %v11292_v20 = vunpack.i.l.bf16 %v11291_v63  ;;  %12204 = vrcp.f32 %v7731_v25 }
0x2bd4   :  { %12206 = vrcp.f32 %v7737_v41 }
0x2bd5   :  { %v16015_v44 = vsel %vm2390_vm3, %v6695_v17, %v11292_v20  ;;  %v16018_v10 = vsel %vm2390_vm3, %v6696_v49, %v11293_v13  ;;  %12208 = vrcp.f32 %v7734_v32  ;;  %v12203_v46 = vpop.eup %12202  ;;  %v11501_v20 = vld [vmem:[%s17100_s10 + $0x38] sm:$0xff]  }
0x2bd6   :  { %v6711_v24 = vpack.c.bf16 %v16018_v10, %v16015_v44  ;;  %v11301_v12 = vpop.permute.xlu0 %11300  ;;  %v7761_v57 = vpop.permute.xlu1 %7760  ;;  %v7750_v0 = vmul.f32 %v12203_v46, %v15922_v58  ;;  %v11499_v58 = vld [vmem:[%s17100_s10 + $0x28] sm:$0xff]  }
0x2bd7   :  { %11012 = vmatprep.subr.bf16.mxu1 %v7761_v57  ;;  %v11303_v52 = vunpack.i.h.bf16 %v11301_v12  ;;  %v11302_v14 = vunpack.i.l.bf16 %v11301_v12 }
0x2bd8   :  { %11013 = vmatpush3.bf16.msra.mxu1 %v7761_v57 }
0x2bd9   :  { %11014 = vmatprep.subr.bf16.mxu1 %v7763_v5  ;;  %v6692_v38 = vsel %vm123_vm0, %v15189_v62, %v11303_v52  ;;  %v6691_v50 = vsel %vm123_vm0, %v17332_v55, %v11302_v14  ;;  %v7755_v62 = vpack.c.bf16 %v7749_v21, %v7748_v27  ;;  %v17336_v52 = vld [vmem:[#allocation33_spill] sm:$0xff] }
0x2bda   :  { %v11311_v36 = vpop.permute.xlu0 %11310  ;;  %v11276_v7 = vpop.permute.xlu1 %11275 }
0x2bdb   :  { %v11313_v59 = vunpack.i.h.bf16 %v11311_v36  ;;  %v11312_v26 = vunpack.i.l.bf16 %v11311_v36  ;;  %v11278_v6 = vunpack.i.h.bf16 %v11276_v7  ;;  %v11277_v9 = vunpack.i.l.bf16 %v11276_v7 }
0x2bdc   :  { %11015 = vmatpush3.bf16.msra.mxu1 %v7763_v5 }
0x2bdd   :  { %v12205_v43 = vpop.eup %12204  ;;  %11016 = vmatprep.subr.bf16.mxu1 %v16004_v22  ;;  %v6699_v8 = vsel %vm2381_vm4, %v6691_v50, %v11312_v26  ;;  %v6700_v34 = vsel %vm2381_vm4, %v6692_v38, %v11313_v59  ;;  %v6690_v2 = vsel %vm123_vm0, %v17333_v29, %v11278_v6  ;;  %v17337_v50 = vld [vmem:[#allocation22_spill] sm:$0xff] }
0x2bde   :  { %v11321_v54 = vpop.permute.xlu0 %11320  ;;  %v11286_v11 = vpop.permute.xlu1 %11285  ;;  %v7751_v35 = vmul.f32 %v12205_v43, %v15930_v53  ;;  %v17341_v6 = vld [vmem:[#allocation18_spill] sm:$0xff] }
0x2bdf   :  { %v11323_v45 = vunpack.i.h.bf16 %v11321_v54  ;;  %v11322_v61 = vunpack.i.l.bf16 %v11321_v54  ;;  %v11288_v4 = vunpack.i.h.bf16 %v11286_v11  ;;  %v11287_v19 = vunpack.i.l.bf16 %v11286_v11  ;;  %v12207_v53 = vpop.eup %12206  ;;  %v17338_v54 = vld [vmem:[#allocation20_spill] sm:$0xff] }
0x2be0   :  { %11017 = vmatpush3.bf16.msra.mxu1 %v16004_v22  ;;  %v7756_v42 = vpack.c.bf16 %v7751_v35, %v7750_v0  ;;  %v6689_v22 = vsel %vm123_vm0, %v17334_v60, %v11277_v9  ;;  %v12209_v1 = vpop.eup %12208  ;;  %v7753_v3 = vmul.f32 %v12207_v53, %v15926_v16  ;;  %v17339_v11 = vpack.i.bf16 %v17337_v50, %v17338_v54  ;;  %v17340_v35 = vld [vmem:[#allocation3_spill] sm:$0xff] }
0x2be1   :  { %v6707_v5 = vsel %vm2390_vm3, %v6699_v8, %v11322_v61  ;;  %v6708_v28 = vsel %vm2390_vm3, %v6700_v34, %v11323_v45  ;;  %11026 = vmatprep.subr.bf16.mxu1 %v11498_v30  ;;  %v6697_v37 = vsel %vm2381_vm4, %v6689_v22, %v11287_v19  ;;  %v6698_v15 = vsel %vm2381_vm4, %v6690_v2, %v11288_v4  ;;  %v17343_v4 = vld [vmem:[#allocation2_spill] sm:$0xff]  ;;  %v17348_v22 = vld [vmem:[#allocation25_spill] sm:$0xff] }
0x2be2   :  { %v6713_v32 = vpack.c.bf16 %v6708_v28, %v6707_v5  ;;  %v11296_v18 = vpop.permute.xlu1 %11295  ;;  %v7752_v48 = vmul.f32 %v12209_v1, %v15918_v39  ;;  %v17342_v9 = vpack.i.bf16 %v17340_v35, %v17341_v6  ;;  %v17344_v19 = vpack.i.bf16 %v15887_v23, %v17343_v4  ;;  %v17346_v5 = vld [vmem:[#allocation41_spill] sm:$0xff]  ;;  %v16099_v23 = vld [vmem:[%s17098_s13 + $0x8] sm:$0x3f] }
0x2be3   :  { %v11298_v40 = vunpack.i.h.bf16 %v11296_v18  ;;  %v11297_v41 = vunpack.i.l.bf16 %v11296_v18  ;;  %11019 = vmatmul.mubr.msk.bf16.vlgmr.msra.gmra.mrb[192].mxu1 %vm511_vm2, %v7755_v62  ;;  %v17345_v62 = vld [vmem:[#allocation42_spill] sm:$0xff] }
0x2be4   :  { %11022 = vmatprep.mubr.msk.bf16.mxu1 %vm511_vm2, %v7756_v42  ;;  %11027 = vmatpush3.bf16.msra.mxu1 %v11498_v30  ;;  %v7757_v13 = vpack.c.bf16 %v7753_v3, %v7752_v48  ;;  %v17347_v28 = vpack.i.bf16 %v17345_v62, %v17346_v5  ;;  %v17360_v5 = vld [vmem:[#allocation30_spill] sm:$0xff] }
0x2be5   :  { %v6705_v51 = vsel %vm2390_vm3, %v6697_v37, %v11297_v41  ;;  %v6706_v33 = vsel %vm2390_vm3, %v6698_v15, %v11298_v40  ;;  %11028 = vmatprep.subr.bf16.mxu1 %v11499_v58  ;;  %v16103_v40 = vrot.slane %v16099_v23, %v17348_v22  ;;  %v17349_v41 = vld [vmem:[#allocation5_spill] sm:$0xff]  ;;  %v17350_v37 = vld [vmem:[#allocation6_spill] sm:$0xff] }
0x2be6   :  { %v6712_v63 = vpack.c.bf16 %v6706_v33, %v6705_v51  ;;  %v11306_v25 = vpop.permute.xlu1 %11305  ;;  %v17351_v33 = vld [vmem:[#allocation7_spill] sm:$0xff] }
0x2be7   :  { %v11308_v49 = vunpack.i.h.bf16 %v11306_v25  ;;  %v11307_v12 = vunpack.i.l.bf16 %v11306_v25 }
0x2be8   :  { %11029 = vmatpush3.bf16.msra.mxu1 %v11499_v58 }
0x2be9   :  { %11030 = vmatprep.subr.bf16.mxu1 %v11500_v31  ;;  %v6694_v56 = vsel %vm123_vm0, %v17335_v47, %v11308_v49  ;;  %v6693_v14 = vsel %vm123_vm0, %v17336_v52, %v11307_v12 }
0x2bea   :  { %v11316_v17 = vpop.permute.xlu1 %11315 }
0x2beb   :  { %11023 = vmatmul.mubr.msk.bf16.gmra.mrb[196].mxu1 %vm511_vm2, %v7757_v13  ;;  %v11318_v16 = vunpack.i.h.bf16 %v11316_v17  ;;  %v11317_v57 = vunpack.i.l.bf16 %v11316_v17  ;;  %v17353_v13 = vld [vmem:[#allocation10_spill] sm:$0xff] }
0x2bec   :  { %11031 = vmatpush3.bf16.msra.mxu1 %v11500_v31  ;;  %11034 = vmatprep.mubr.msk.bf16.mxu1 %vm511_vm2, %v6711_v24 }
0x2bed   :  { %11032 = vmatprep.subr.bf16.mxu1 %v11501_v20  ;;  %v6701_v46 = vsel %vm2381_vm4, %v6693_v14, %v11317_v57  ;;  %v6702_v59 = vsel %vm2381_vm4, %v6694_v56, %v11318_v16  ;;  %v17354_v16 = vld [vmem:[#allocation11_spill] sm:$0xff] }
0x2bee   :  { %v11326_v39 = vpop.permute.xlu1 %11325 }
0x2bef   :  { %v11328_v36 = vunpack.i.h.bf16 %v11326_v39  ;;  %v11327_v7 = vunpack.i.l.bf16 %v11326_v39  ;;  %v17355_v39 = vld [vmem:[#allocation34_spill] sm:$0xff] }
0x2bf0   :  { %11033 = vmatpush3.bf16.msra.mxu1 %v11501_v20 }
0x2bf1   :  { %v6709_v26 = vsel %vm2390_vm3, %v6701_v46, %v11327_v7  ;;  %v6710_v44 = vsel %vm2390_vm3, %v6702_v59, %v11328_v36  ;;  %v17356_v36 = vld [vmem:[#allocation9_spill] sm:$0xff] }
0x2bf2   :  { %v6714_v10 = vpack.c.bf16 %v6710_v44, %v6709_v26 }
0x2bf3   :  { %11035 = vmatmul.mubr.msk.bf16.vlgmr.msra.gmra.mrb[200].mxu1 %vm511_vm2, %v6712_v63  ;;  %v17352_v63 = vld [vmem:[#allocation8_spill] sm:$0xff] }
0x2bf4   :  { %11038 = vmatprep.mubr.msk.bf16.mxu1 %vm511_vm2, %v6713_v32 }
0x2bfb   :  { %11039 = vmatmul.mubr.msk.bf16.gmra.mrb[204].mxu1 %vm511_vm2, %v6714_v10 }
0x2cb6   :  { %v11020_v24 = vpop.f32.mrb[192].mxu1 }
0x2cb7   :  { %v7816_v43 = vpop.f32.mrb[193].mxu1 }
0x2cb8   :  { %v11021_v27 = vpop.f32.mrb[194].mxu1 }
0x2cb9   :  { %v11354_v21 = vpack.i.bf16 %v11021_v27, %v11020_v24  ;;  %v7819_v30 = vpop.f32.mrb[195].mxu1  ;;  %v11336_v27 = vpop.permute.xlu1 %11335 }
0x2cba   :  { %v11349_v38 = vpack.i.bf16 %v7819_v30, %v7816_v43  ;;  %v11338_v54 = vunpack.i.h.bf16 %v11336_v27 }
0x2cbb   :  { %11355 = vrot.lane.b32.xlu1 %v11354_v21, %s12350_s3  ;;  %v11331_v21 = vpop.permute.xlu0 %11330 }
0x2cbc   :  { %11350 = vrot.lane.b32.xlu0 %v11349_v38, %s12350_s3  ;;  %v11333_v38 = vunpack.i.h.bf16 %v11331_v21 }
0x2cbd   :  { %v11346_v30 = vpop.permute.xlu1 %11345 }
0x2cbe   :  { %v11024_v55 = vpop.f32.mrb[196].mxu1  ;;  %v11347_v35 = vunpack.i.l.bf16 %v11346_v30 }
0x2cbf   :  { %11365 = vrot.lane.b32.xlu1 %v17339_v11, %s12354_s1  ;;  %v7832_v0 = vpop.f32.mrb[197].mxu1  ;;  %v11341_v50 = vpop.permute.xlu0 %11340  ;;  %v11337_v11 = vunpack.i.l.bf16 %v11336_v27  ;;  %v17363_v27 = vld [vmem:[#allocation17_spill] sm:$0xff] }
0x2cc0   :  { %11360 = vrot.lane.b32.xlu0 %v17342_v9, %s12354_s1  ;;  %v11025_v45 = vpop.f32.mrb[198].mxu1  ;;  %v11343_v6 = vunpack.i.h.bf16 %v11341_v50  ;;  %v11342_v9 = vunpack.i.l.bf16 %v11341_v50 }
0x2cc1   :  { %v11384_v61 = vpack.i.bf16 %v11025_v45, %v11024_v55  ;;  %v7835_v8 = vpop.f32.mrb[199].mxu1  ;;  %v11332_v55 = vunpack.i.l.bf16 %v11331_v21  ;;  %v17357_v45 = vld [vmem:[#allocation13_spill] sm:$0xff] }
0x2cc2   :  { %v11379_v34 = vpack.i.bf16 %v7835_v8, %v7832_v0  ;;  %v11348_v0 = vunpack.i.h.bf16 %v11346_v30  ;;  %v17358_v8 = vld [vmem:[#allocation24_spill] sm:$0xff]  ;;  %v17364_v30 = vld [vmem:[#allocation14_spill] sm:$0xff] }
0x2cc3   :  { %11375 = vrot.lane.b32.xlu1 %v17344_v19, %s12352_s4  ;;  %v17359_v19 = vld [vmem:[#allocation15_spill] sm:$0xff] }
0x2cc4   :  { %11370 = vrot.lane.b32.xlu0 %v17347_v28, %s12352_s4  ;;  %v7946_v62 = vsel %vm123_vm0, %v17359_v19, %v11338_v54  ;;  %v7945_v28 = vsel %vm123_vm0, %v17360_v5, %v11337_v11 }
0x2cc6   :  { %v11036_v58 = vpop.f32.mrb[200].mxu1 }
0x2cc7   :  { %11385 = vrot.lane.b32.xlu1 %v11384_v61, %s12350_s3  ;;  %v8062_v53 = vpop.f32.mrb[201].mxu1  ;;  %v8127_v15 = vadd.f32 %v11036_v58, %v17350_v37  ;;  %v7944_v61 = vsel %vm123_vm0, %v17357_v45, %v11333_v38 }
0x2cc8   :  { %11380 = vrot.lane.b32.xlu0 %v11379_v34, %s12350_s3  ;;  %v11037_v32 = vpop.f32.mrb[202].mxu1  ;;  %v8125_v1 = vadd.f32 %v8062_v53, %v17349_v41  ;;  %v7943_v34 = vsel %vm123_vm0, %v17358_v8, %v11332_v55  ;;  %v7952_v41 = vsel %vm2381_vm4, %v7944_v61, %v11343_v6 }
0x2cc9   :  { %v8065_v18 = vpop.f32.mrb[203].mxu1  ;;  %v16112_v31 = vadd.f32 %v16103_v40, %v8127_v15  ;;  %v8128_v25 = vadd.f32 %v11037_v32, %v17352_v63 }
0x2cca   :  { %v16108_v51 = vadd.f32 %v16103_v40, %v8125_v1  ;;  %v8126_v3 = vadd.f32 %v8065_v18, %v17351_v33  ;;  %v7953_v18 = vsel %vm2381_vm4, %v7945_v28, %v11347_v35 }
0x2ccb   :  { %v16122_v49 = vadd.f32 %v16103_v40, %v8128_v25  ;;  %v8167_v12 = vsel %vm511_vm2, %v16112_v31, 0.0 }
0x2ccc   :  { %v16116_v48 = vadd.f32 %v16103_v40, %v8126_v3  ;;  %v8161_v17 = vsel %vm511_vm2, %v16108_v51, 0.0 }
0x2ccd   :  { %v8170_v14 = vsel %vm511_vm2, %v16122_v49, 0.0 }
0x2cce   :  { %v11040_v42 = vpop.f32.mrb[204].mxu1  ;;  %v8164_v52 = vsel %vm511_vm2, %v16116_v48, 0.0 }
0x2ccf   :  { %v8078_v29 = vpop.f32.mrb[205].mxu1  ;;  %v8131_v7 = vadd.f32 %v11040_v42, %v17356_v36  ;;  %v7954_v42 = vsel %vm2381_vm4, %v7946_v62, %v11348_v0 }
0x2cd0   :  { %v11041_v2 = vpop.f32.mrb[206].mxu1  ;;  %v8129_v57 = vadd.f32 %v8078_v29, %v17354_v16 }
0x2cd1   :  { %v8081_v60 = vpop.f32.mrb[207].mxu1  ;;  %v8132_v47 = vadd.f32 %v11041_v2, %v17355_v39  ;;  %v16145_v44 = vadd.f32 %v16103_v40, %v8131_v7  ;;  %v17361_v7 = vld [vmem:[#allocation19_spill] sm:$0xff] }
0x2cd2   :  { %v8130_v20 = vadd.f32 %v8081_v60, %v17353_v13  ;;  %v16137_v46 = vadd.f32 %v16103_v40, %v8129_v57  ;;  %v7951_v60 = vsel %vm2381_vm4, %v7943_v34, %v11342_v9 }
0x2cd3   :  { %v16140_v59 = vadd.f32 %v16103_v40, %v8132_v47  ;;  %v8179_v43 = vsel %vm511_vm2, %v16145_v44, 0.0 }
0x2cd4   :  { %v16129_v56 = vadd.f32 %v16103_v40, %v8130_v20  ;;  %v8173_v10 = vsel %vm511_vm2, %v16137_v46, 0.0 }
0x2cd5   :  { %v8182_v24 = vsel %vm511_vm2, %v16140_v59, 0.0 }
0x2cd6   :  { %v8176_v26 = vsel %vm511_vm2, %v16129_v56, 0.0 }
0x2ce7   :  { %8162 = vadd.xlane.f32.xlu0 %v8161_v17 }
0x2ceb   :  { %8168 = vadd.xlane.f32.xlu0 %v8167_v12  ;;  %8165 = vadd.xlane.f32.xlu1 %v8164_v52 }
0x2cef   :  { %8171 = vadd.xlane.f32.xlu0 %v8170_v14  ;;  %8177 = vadd.xlane.f32.xlu1 %v8176_v26 }
0x2cf3   :  { %8174 = vadd.xlane.f32.xlu0 %v8173_v10  ;;  %8183 = vadd.xlane.f32.xlu1 %v8182_v24  ;;  %v17362_v10 = vld [vmem:[#allocation16_spill] sm:$0xff] }
0x2cf7   :  { %8180 = vadd.xlane.f32.xlu0 %v8179_v43 }
0x2d2d   :  { %v11356_v4 = vpop.permute.xlu1 %11355 }
0x2d2e   :  { %v11358_v58 = vunpack.i.h.bf16 %v11356_v4  ;;  %v11357_v53 = vunpack.i.l.bf16 %v11356_v4  ;;  %v11351_v32 = vpop.permute.xlu0 %11350 }
0x2d2f   :  { %v11353_v29 = vunpack.i.h.bf16 %v11351_v32  ;;  %v11352_v2 = vunpack.i.l.bf16 %v11351_v32 }
0x2d30   :  { %v7961_v1 = vsel %vm2390_vm3, %v7953_v18, %v11357_v53  ;;  %v7962_v37 = vsel %vm2390_vm3, %v7954_v42, %v11358_v58  ;;  %v17365_v53 = vld [vmem:[#allocation35_spill] sm:$0xff]  ;;  %v17366_v18 = vld [vmem:[#allocation36_spill] sm:$0xff] }
0x2d31   :  { %v7968_v15 = vpack.c.bf16 %v7962_v37, %v7961_v1  ;;  %v7960_v33 = vsel %vm2390_vm3, %v7952_v41, %v11353_v29  ;;  %v7959_v3 = vsel %vm2390_vm3, %v7951_v60, %v11352_v2  ;;  %v11366_v63 = vpop.permute.xlu1 %11365  ;;  %v17367_v41 = vld [vmem:[#allocation40_spill] sm:$0xff]  ;;  %v17368_v37 = vld [vmem:[#allocation37_spill] sm:$0xff] }
0x2d32   :  { %v7967_v25 = vpack.c.bf16 %v7960_v33, %v7959_v3  ;;  %v11361_v13 = vpop.permute.xlu0 %11360  ;;  %v11368_v20 = vunpack.i.h.bf16 %v11366_v63  ;;  %v11367_v17 = vunpack.i.l.bf16 %v11366_v63 }
0x2d33   :  { %v11363_v16 = vunpack.i.h.bf16 %v11361_v13  ;;  %v11362_v57 = vunpack.i.l.bf16 %v11361_v13 }
0x2d34   :  { %11042 = vmatprep.mubr.msk.bf16.mxu1 %vm511_vm2, %v7967_v25  ;;  %v7950_v26 = vsel %vm123_vm0, %v17361_v7, %v11368_v20  ;;  %v7949_v24 = vsel %vm123_vm0, %v17362_v10, %v11367_v17  ;;  %v17370_v7 = vld [vmem:[#allocation38_spill] sm:$0xff] }
0x2d35   :  { %v11376_v12 = vpop.permute.xlu1 %11375  ;;  %11043 = vmatmul.mubr.msk.bf16.gmra.mrb[208].mxu1 %vm511_vm2, %v7968_v15  ;;  %v7948_v21 = vsel %vm123_vm0, %v17363_v27, %v11363_v16  ;;  %v7947_v38 = vsel %vm123_vm0, %v17364_v30, %v11362_v57 }
0x2d36   :  { %v11371_v39 = vpop.permute.xlu0 %11370  ;;  %v11378_v47 = vunpack.i.h.bf16 %v11376_v12  ;;  %v11377_v52 = vunpack.i.l.bf16 %v11376_v12 }
0x2d37   :  { %v11373_v14 = vunpack.i.h.bf16 %v11371_v39  ;;  %v11372_v36 = vunpack.i.l.bf16 %v11371_v39 }
0x2d38   :  { %v7957_v11 = vsel %vm2381_vm4, %v7949_v24, %v11377_v52  ;;  %v7958_v0 = vsel %vm2381_vm4, %v7950_v26, %v11378_v47 }
0x2d39   :  { %v11386_v43 = vpop.permute.xlu1 %11385  ;;  %v7955_v9 = vsel %vm2381_vm4, %v7947_v38, %v11372_v36  ;;  %v7956_v45 = vsel %vm2381_vm4, %v7948_v21, %v11373_v14  ;;  %v17369_v14 = vld [vmem:[#allocation39_spill] sm:$0xff]  ;;  %v17372_v38 = vld [vmem:[#allocation29_spill] sm:$0xff] }
0x2d3a   :  { %v11388_v55 = vunpack.i.h.bf16 %v11386_v43  ;;  %v11387_v50 = vunpack.i.l.bf16 %v11386_v43  ;;  %v11381_v54 = vpop.permute.xlu0 %11380  ;;  %v17371_v21 = vld [vmem:[#allocation27_spill] sm:$0xff] }
0x2d3b   :  { %v11383_v35 = vunpack.i.h.bf16 %v11381_v54  ;;  %v11382_v6 = vunpack.i.l.bf16 %v11381_v54 }
0x2d3c   :  { %v7965_v61 = vsel %vm2390_vm3, %v7957_v11, %v11387_v50  ;;  %v7966_v8 = vsel %vm2390_vm3, %v7958_v0, %v11388_v55 }
0x2d3d   :  { %v7970_v34 = vpack.c.bf16 %v7966_v8, %v7965_v61  ;;  %v7964_v4 = vsel %vm2390_vm3, %v7956_v45, %v11383_v35  ;;  %v7963_v19 = vsel %vm2390_vm3, %v7955_v9, %v11382_v6 }
0x2d3e   :  { %v7969_v62 = vpack.c.bf16 %v7964_v4, %v7963_v19 }
0x2d40   :  { %11046 = vmatprep.mubr.msk.bf16.mxu1 %vm511_vm2, %v7969_v62 }
0x2d41   :  { %11047 = vmatmul.mubr.msk.bf16.gmra.mrb[212].mxu1 %vm511_vm2, %v7970_v34 }
0x2d74   :  { %v8163_v5 = vpop.xlane.xlu0 %8162 }
0x2d75   :  { %v8209_v39 = vmul.f32 0.015625, %v8163_v5 }
0x2d77   :  { %v16221_v50 = vsub.f32 %v16108_v51, %v8209_v39 }
0x2d78   :  { %v8169_v33 = vpop.xlane.xlu0 %8168  ;;  %v8166_v47 = vpop.xlane.xlu1 %8165 }
0x2d79   :  { %v8210_v43 = vmul.f32 0.015625, %v8166_v47  ;;  %v8211_v11 = vmul.f32 0.015625, %v8169_v33  ;;  %v8241_v5 = vmul.f32 %v16221_v50, %v16221_v50 }
0x2d7b   :  { %v16232_v45 = vsub.f32 %v16116_v48, %v8210_v43  ;;  %v16240_v4 = vsub.f32 %v16112_v31, %v8211_v11  ;;  %v11505_v43 = vld [vmem:[%s17101_s11 + $0x50] ss:$8 sps:$4 sm:$0xff]  }
0x2d7c   :  { %v8172_v12 = vpop.xlane.xlu0 %8171  ;;  %v8178_v9 = vpop.xlane.xlu1 %8177 }
0x2d7d   :  { %v8212_v61 = vmul.f32 0.015625, %v8172_v12 }
0x2d80   :  { %v8175_v54 = vpop.xlane.xlu0 %8174 }
0x2d81   :  { %v8213_v19 = vmul.f32 0.015625, %v8175_v54 }
0x2e08   :  { %v11044_v28 = vpop.f32.mrb[208].mxu1 }
0x2e09   :  { %v8094_v58 = vpop.f32.mrb[209].mxu1  ;;  %v8135_v32 = vadd.f32 %v11044_v28, %v17365_v53  ;;  %v8181_v28 = vpop.xlane.xlu0 %8180 }
0x2e0a   :  { %v8133_v42 = vadd.f32 %v8094_v58, %v17366_v18  ;;  %v11045_v29 = vpop.f32.mrb[210].mxu1  ;;  %v16247_v58 = vsub.f32 %v16122_v49, %v8212_v61  ;;  %v8184_v18 = vpop.xlane.xlu1 %8183 }
0x2e0b   :  { %v8097_v2 = vpop.f32.mrb[211].mxu1  ;;  %v8136_v1 = vadd.f32 %v11045_v29, %v17367_v41  ;;  %v16197_v3 = vadd.f32 %v16103_v40, %v8135_v32  ;;  %v8242_v32 = vmul.f32 %v16232_v45, %v16232_v45  ;;  %v8215_v29 = vmul.f32 0.015625, %v8181_v28 }
0x2e0c   :  { %v16192_v60 = vadd.f32 %v16103_v40, %v8133_v42  ;;  %v8134_v15 = vadd.f32 %v8097_v2, %v17368_v37  ;;  %v16254_v42 = vsub.f32 %v16137_v46, %v8213_v19  ;;  %v8257_v2 = vsel %vm511_vm2, %v8241_v5, 0.0 }
0x2e0d   :  { %v16205_v13 = vadd.f32 %v16103_v40, %v8136_v1  ;;  %v8191_v17 = vsel %vm511_vm2, %v16197_v3, 0.0  ;;  %v8243_v41 = vmul.f32 %v16240_v4, %v16240_v4  ;;  %v8216_v37 = vmul.f32 0.015625, %v8184_v18 }
0x2e0e   :  { %v16200_v63 = vadd.f32 %v16103_v40, %v8134_v15  ;;  %v8185_v25 = vsel %vm511_vm2, %v16192_v60, 0.0  ;;  %v8260_v15 = vsel %vm511_vm2, %v8242_v32, 0.0  ;;  %v8244_v33 = vmul.f32 %v16247_v58, %v16247_v58 }
0x2e0f   :  { %8186 = vadd.xlane.f32.xlu0 %v8185_v25  ;;  %v8194_v57 = vsel %vm511_vm2, %v16205_v13, 0.0  ;;  %v16266_v25 = vsub.f32 %v16145_v44, %v8215_v29  ;;  %v16272_v12 = vsub.f32 %v16140_v59, %v8216_v37 }
0x2e10   :  { %v8188_v20 = vsel %vm511_vm2, %v16200_v63, 0.0 }
0x2e11   :  { %8189 = vadd.xlane.f32.xlu1 %v8188_v20  ;;  %v8263_v20 = vsel %vm511_vm2, %v8243_v41, 0.0  ;;  %v8247_v47 = vmul.f32 %v16266_v25, %v16266_v25 }
0x2e13   :  { %8192 = vadd.xlane.f32.xlu0 %v8191_v17  ;;  %v8245_v17 = vmul.f32 %v16254_v42, %v16254_v42 }
0x2e14   :  { %v11048_v16 = vpop.f32.mrb[212].mxu1 }
0x2e15   :  { %8195 = vadd.xlane.f32.xlu1 %v8194_v57  ;;  %v8110_v52 = vpop.f32.mrb[213].mxu1  ;;  %v8139_v36 = vadd.f32 %v11048_v16, %v17369_v14  ;;  %v8266_v16 = vsel %vm511_vm2, %v8244_v33, 0.0  ;;  %v8269_v39 = vsel %vm511_vm2, %v8245_v17, 0.0  ;;  %v8248_v14 = vmul.f32 %v16272_v12, %v16272_v12 }
0x2e16   :  { %v8137_v26 = vadd.f32 %v8110_v52, %v17370_v7  ;;  %v11049_v10 = vpop.f32.mrb[214].mxu1 }
0x2e17   :  { %v8113_v24 = vpop.f32.mrb[215].mxu1  ;;  %v8140_v30 = vadd.f32 %v11049_v10, %v17371_v21  ;;  %v16224_v0 = vadd.f32 %v16103_v40, %v8139_v36  ;;  %v8275_v36 = vsel %vm511_vm2, %v8247_v47, 0.0  ;;  %v8278_v7 = vsel %vm511_vm2, %v8248_v14, 0.0  ;;  %v11502_v10 = vld [vmem:[%s17101_s11 + $0x40] ss:$8 sps:$4 sm:$0xff]  }
0x2e18   :  { %v16216_v27 = vadd.f32 %v16103_v40, %v8137_v26  ;;  %v8138_v55 = vadd.f32 %v8113_v24, %v17372_v38  ;;  %v11504_v26 = vld [vmem:[%s17101_s11 + $0x44] ss:$8 sps:$4 sm:$0xff]   ;;  %v11507_v24 = vld [vmem:[%s17101_s11 + $0x54] ss:$8 sps:$4 sm:$0xff]   ;;  %v11511_v38 = vld [vmem:[%s17101_s11 + $0x70] ss:$8 sps:$4 sm:$0xff]  }
0x2e19   :  { %v16235_v8 = vadd.f32 %v16103_v40, %v8140_v30  ;;  %v8203_v62 = vsel %vm511_vm2, %v16224_v0, 0.0  ;;  %8508 = vmatprep.subr.bf16.mxu0 %v11504_v26  ;;  %v11510_v21 = vld [vmem:[%s17101_s11 + $0x64] ss:$8 sps:$4 sm:$0xff]   ;;  %v11508_v30 = vld [vmem:[%s17101_s11 + $0x60] ss:$8 sps:$4 sm:$0xff]  }
0x2e1a   :  { %v16227_v35 = vadd.f32 %v16103_v40, %v8138_v55  ;;  %v8197_v6 = vsel %vm511_vm2, %v16216_v27, 0.0  ;;  %v8214_v40 = vmul.f32 0.015625, %v8178_v9  ;;  %8509 = vmatpush1.bf16.msra.mxu0 %v11502_v10  ;;  %v11513_v55 = vld [vmem:[%s17101_s11 + $0x74] ss:$8 sps:$4 sm:$0xff]  }
0x2e1b   :  { %8198 = vadd.xlane.f32.xlu0 %v8197_v6  ;;  %v8206_v53 = vsel %vm511_vm2, %v16235_v8, 0.0  ;;  %8510 = vmatprep.subr.bf16.mxu0 %v11507_v24 }
0x2e1c   :  { %v8200_v34 = vsel %vm511_vm2, %v16227_v35, 0.0  ;;  %v16260_v1 = vsub.f32 %v16129_v56, %v8214_v40 }
0x2e1d   :  { %8201 = vadd.xlane.f32.xlu1 %v8200_v34 }
0x2e1e   :  { %v8246_v57 = vmul.f32 %v16260_v1, %v16260_v1  ;;  %8511 = vmatpush1.bf16.msra.mxu0 %v11505_v43 }
0x2e1f   :  { %8204 = vadd.xlane.f32.xlu0 %v8203_v62  ;;  %8512 = vmatprep.subr.bf16.mxu0 %v11510_v21 }
0x2e20   :  { %v8272_v52 = vsel %vm511_vm2, %v8246_v57, 0.0 }
0x2e21   :  { %8207 = vadd.xlane.f32.xlu1 %v8206_v53 }
0x2e22   :  { %8513 = vmatpush1.bf16.msra.mxu0 %v11508_v30 }
0x2e23   :  { %8258 = vadd.xlane.f32.xlu0 %v8257_v2  ;;  %8514 = vmatprep.subr.bf16.mxu0 %v11513_v55 }
0x2e25   :  { %8261 = vadd.xlane.f32.xlu1 %v8260_v15 }
0x2e26   :  { %8515 = vmatpush1.bf16.msra.mxu0 %v11511_v38 }
0x2e27   :  { %8264 = vadd.xlane.f32.xlu0 %v8263_v20 }
0x2e29   :  { %8267 = vadd.xlane.f32.xlu1 %v8266_v16 }
0x2e2b   :  { %8270 = vadd.xlane.f32.xlu0 %v8269_v39 }
0x2e2d   :  { %8273 = vadd.xlane.f32.xlu1 %v8272_v52 }
0x2e2f   :  { %8276 = vadd.xlane.f32.xlu0 %v8275_v36 }
0x2e31   :  { %8279 = vadd.xlane.f32.xlu1 %v8278_v7 }
0x2e9c   :  { %v8187_v54 = vpop.xlane.xlu0 %8186 }
0x2e9d   :  { %v8217_v11 = vmul.f32 0.015625, %v8187_v54 }
0x2e9e   :  { %v8190_v6 = vpop.xlane.xlu1 %8189 }
0x2e9f   :  { %v16310_v9 = vsub.f32 %v16192_v60, %v8217_v11  ;;  %v8218_v61 = vmul.f32 0.015625, %v8190_v6 }
0x2ea0   :  { %v8193_v34 = vpop.xlane.xlu0 %8192 }
0x2ea1   :  { %v16313_v19 = vsub.f32 %v16200_v63, %v8218_v61  ;;  %v8219_v62 = vmul.f32 0.015625, %v8193_v34  ;;  %v8249_v5 = vmul.f32 %v16310_v9, %v16310_v9 }
0x2ea2   :  { %v8196_v28 = vpop.xlane.xlu1 %8195 }
0x2ea3   :  { %v16318_v40 = vsub.f32 %v16197_v3, %v8219_v62  ;;  %v8220_v53 = vmul.f32 0.015625, %v8196_v28  ;;  %v8281_v32 = vsel %vm511_vm2, %v8249_v5, 0.0  ;;  %v8250_v18 = vmul.f32 %v16313_v19, %v16313_v19 }
0x2ea4   :  { %8282 = vadd.xlane.f32.xlu0 %v8281_v32 }
0x2ea5   :  { %v16324_v29 = vsub.f32 %v16205_v13, %v8220_v53  ;;  %v8284_v2 = vsel %vm511_vm2, %v8250_v18, 0.0  ;;  %v8251_v41 = vmul.f32 %v16318_v40, %v16318_v40 }
0x2ea6   :  { %8285 = vadd.xlane.f32.xlu1 %v8284_v2 }
0x2ea7   :  { %v8287_v37 = vsel %vm511_vm2, %v8251_v41, 0.0  ;;  %v8252_v15 = vmul.f32 %v16324_v29, %v16324_v29 }
0x2ea8   :  { %8288 = vadd.xlane.f32.xlu0 %v8287_v37  ;;  %v8199_v33 = vpop.xlane.xlu0 %8198 }
0x2ea9   :  { %v8221_v20 = vmul.f32 0.015625, %v8199_v33  ;;  %v8290_v17 = vsel %vm511_vm2, %v8252_v15, 0.0 }
0x2eaa   :  { %8291 = vadd.xlane.f32.xlu1 %v8290_v17  ;;  %v8202_v16 = vpop.xlane.xlu1 %8201 }
0x2eab   :  { %v16334_v57 = vsub.f32 %v16216_v27, %v8221_v20  ;;  %v8222_v39 = vmul.f32 0.015625, %v8202_v16 }
0x2eac   :  { %v8205_v47 = vpop.xlane.xlu0 %8204 }
0x2ead   :  { %v16337_v52 = vsub.f32 %v16227_v35, %v8222_v39  ;;  %v8223_v14 = vmul.f32 0.015625, %v8205_v47  ;;  %v8253_v36 = vmul.f32 %v16334_v57, %v16334_v57  ;;  %v17373_v47 = vld [vmem:[#allocation21_spill] sm:$0xff] }
0x2eae   :  { %v8208_v7 = vpop.xlane.xlu1 %8207 }
0x2eaf   :  { %v16342_v26 = vsub.f32 %v16224_v0, %v8223_v14  ;;  %v8224_v10 = vmul.f32 0.015625, %v8208_v7  ;;  %v8293_v24 = vsel %vm511_vm2, %v8253_v36, 0.0  ;;  %v8254_v43 = vmul.f32 %v16337_v52, %v16337_v52 }
0x2eb0   :  { %8294 = vadd.xlane.f32.xlu0 %v8293_v24  ;;  %v8259_v21 = vpop.xlane.xlu0 %8258  ;;  %v16359_v14 = vrot.slane %v16099_v23, %v17373_v47 }
0x2eb1   :  { %v16348_v30 = vsub.f32 %v16235_v8, %v8224_v10  ;;  %v8305_v38 = vmul.f32 0.015625, %v8259_v21  ;;  %v8296_v55 = vsel %vm511_vm2, %v8254_v43, 0.0  ;;  %v8255_v54 = vmul.f32 %v16342_v26, %v16342_v26 }
0x2eb2   :  { %8297 = vadd.xlane.f32.xlu1 %v8296_v55  ;;  %v8262_v11 = vpop.xlane.xlu1 %8261  ;;  %v17374_v55 = vld [vmem:[#allocation23_spill] sm:$0xff] }
0x2eb3   :  { %v8321_v6 = vadd.f32 1e-05, %v8305_v38  ;;  %v8306_v61 = vmul.f32 0.015625, %v8262_v11  ;;  %v8299_v34 = vsel %vm511_vm2, %v8255_v54, 0.0  ;;  %v8256_v62 = vmul.f32 %v16348_v30, %v16348_v30 }
0x2eb4   :  { %8300 = vadd.xlane.f32.xlu0 %v8299_v34  ;;  %v8265_v5 = vpop.xlane.xlu0 %8264  ;;  %v16364_v54 = vrot.slane %v16099_v23, %v17374_v55 }
0x2eb5   :  { %12210 = vrsqrt.f32 %v8321_v6  ;;  %v8322_v28 = vadd.f32 1e-05, %v8306_v61  ;;  %v8307_v53 = vmul.f32 0.015625, %v8265_v5  ;;  %v8302_v32 = vsel %vm511_vm2, %v8256_v62, 0.0 }
0x2eb6   :  { %8303 = vadd.xlane.f32.xlu1 %v8302_v32  ;;  %v8268_v18 = vpop.xlane.xlu1 %8267 }
0x2eb7   :  { %12212 = vrsqrt.f32 %v8322_v28  ;;  %v8323_v2 = vadd.f32 1e-05, %v8307_v53  ;;  %v8308_v41 = vmul.f32 0.015625, %v8268_v18 }
0x2eb8   :  { %v8271_v37 = vpop.xlane.xlu0 %8270 }
0x2eb9   :  { %12214 = vrsqrt.f32 %v8323_v2  ;;  %v8324_v15 = vadd.f32 1e-05, %v8308_v41  ;;  %v8309_v33 = vmul.f32 0.015625, %v8271_v37 }
0x2eba   :  { %v8274_v20 = vpop.xlane.xlu1 %8273 }
0x2ebb   :  { %12216 = vrsqrt.f32 %v8324_v15  ;;  %v8310_v17 = vmul.f32 0.015625, %v8274_v20  ;;  %v8325_v16 = vadd.f32 1e-05, %v8309_v33  ;;  %v17375_v15 = vmov 0  }
0x2ebc   :  { %v8277_v36 = vpop.xlane.xlu0 %8276 }
0x2ebd   :  { %v8326_v39 = vadd.f32 1e-05, %v8310_v17  ;;  %v8311_v38 = vmul.f32 0.015625, %v8277_v36 }
0x2ebe   :  { %v8280_v7 = vpop.xlane.xlu1 %8279 }
0x2ebf   :  { %v12211_v10 = vpop.eup %12210  ;;  %12218 = vrsqrt.f32 %v8326_v39  ;;  %v8312_v24 = vmul.f32 0.015625, %v8280_v7  ;;  %v8327_v28 = vadd.f32 1e-05, %v8311_v38 }
0x2ec0   :  { %v8353_v43 = vmul.f32 %v12211_v10, %v16221_v50  ;;  %12220 = vrsqrt.f32 %v8325_v16 }
0x2ec1   :  { %v12213_v21 = vpop.eup %12212  ;;  %v8328_v34 = vadd.f32 1e-05, %v8312_v24 }
0x2ec2   :  { %v8373_v11 = vmul.f32 %v16359_v14, %v8353_v43  ;;  %v8354_v6 = vmul.f32 %v12213_v21, %v16232_v45 }
0x2ec3   :  { %v12215_v61 = vpop.eup %12214  ;;  %12222 = vrsqrt.f32 %v8328_v34  ;;  %v11517_v34 = vld [vmem:[%s17102_s12 + $0x88] sm:$0xff]  }
0x2ec4   :  { %v8374_v62 = vmul.f32 %v16359_v14, %v8354_v6  ;;  %v8393_v53 = vadd.f32 %v16364_v54, %v8373_v11  ;;  %v8355_v32 = vmul.f32 %v12215_v61, %v16240_v4  ;;  %12224 = vrsqrt.f32 %v8327_v28  ;;  %v11515_v6 = vld [vmem:[%s17102_s12 + $0x80] sm:$0xff]   ;;  %v11516_v61 = vld [vmem:[%s17102_s12 + $0xc8] sm:$0xff]  }
0x2ec5   :  { %v12217_v5 = vpop.eup %12216 }
0x2ec6   :  { %v8394_v50 = vadd.f32 %v16364_v54, %v8374_v62  ;;  %v8356_v18 = vmul.f32 %v12217_v5, %v16247_v58  ;;  %v8375_v45 = vmul.f32 %v16359_v14, %v8355_v32  ;;  %v11518_v5 = vld [vmem:[%s17102_s12 + $0xd0] sm:$0xff]  }
0x2ec8   :  { %v8409_v23 = vpack.c.bf16 %v8394_v50, %v8393_v53  ;;  %v8376_v2 = vmul.f32 %v16359_v14, %v8356_v18  ;;  %v8395_v58 = vadd.f32 %v16364_v54, %v8375_v45  ;;  %v11519_v53 = vld [vmem:[%s17102_s12 + $0x90] sm:$0xff]  }
0x2ec9   :  { %v12219_v41 = vpop.eup %12218 }
0x2eca   :  { %9936 = vmatmul.mubr.msk.bf16.vlgmr.msra.gmra.mrb[232].mxu0 %vm511_vm2, %v8409_v23  ;;  %v12221_v37 = vpop.eup %12220  ;;  %v8358_v33 = vmul.f32 %v12219_v41, %v16260_v1  ;;  %v8396_v20 = vadd.f32 %v16364_v54, %v8376_v2  ;;  %v11520_v2 = vld [vmem:[%s17102_s12 + $0xd8] sm:$0xff]  }
0x2ecb   :  { %8550 = vmatprep.mubr.bf16.mxu0 %v17375_v15  ;;  %v8357_v4 = vmul.f32 %v12221_v37, %v16254_v42  ;;  %v11521_v37 = vld [vmem:[%s17102_s12 + $0x98] sm:$0xff]  }
0x2ecc   :  { %v8410_v17 = vpack.c.bf16 %v8396_v20, %v8395_v58  ;;  %v8378_v16 = vmul.f32 %v16359_v14, %v8358_v33  ;;  %v11522_v58 = vld [vmem:[%s17102_s12 + $0xe0] sm:$0xff]  }
0x2ecd   :  { %v12223_v39 = vpop.eup %12222  ;;  %v8377_v47 = vmul.f32 %v16359_v14, %v8357_v4 }
0x2ece   :  { %v12225_v36 = vpop.eup %12224  ;;  %v8360_v7 = vmul.f32 %v12223_v39, %v16272_v12  ;;  %v8398_v1 = vadd.f32 %v16364_v54, %v8378_v16  ;;  %v11523_v16 = vld [vmem:[%s17102_s12 + $0xa0] sm:$0xff]  }
0x2ecf   :  { %v8359_v10 = vmul.f32 %v12225_v36, %v16266_v25  ;;  %v8397_v42 = vadd.f32 %v16364_v54, %v8377_v47  ;;  %v11514_v25 = vld [vmem:[%s17102_s12 + $0xc0] sm:$0xff]   ;;  %v11524_v47 = vld [vmem:[%s17102_s12 + $0xe8] sm:$0xff]  }
0x2ed0   :  { %v8380_v43 = vmul.f32 %v16359_v14, %v8360_v7  ;;  %10384 = vmatprep.subr.bf16.mxu1 %v11514_v25  ;;  %v11525_v7 = vld [vmem:[%s17102_s12 + $0xa8] sm:$0xff]  }
0x2ed1   :  { %v8411_v24 = vpack.c.bf16 %v8398_v1, %v8397_v42  ;;  %v8379_v21 = vmul.f32 %v16359_v14, %v8359_v10  ;;  %10385 = vmatpush3.bf16.msra.mxu1 %v11515_v6  ;;  %v11527_v6 = vld [vmem:[%s17102_s12 + $0xb0] sm:$0xff]  }
0x2ed2   :  { %9937 = vmatmul.mubr.msk.bf16.gmra.mrb[236].mxu0 %vm511_vm2, %v8410_v17  ;;  %v8400_v38 = vadd.f32 %v16364_v54, %v8380_v43  ;;  %10386 = vmatprep.subr.bf16.mxu1 %v11516_v61 }
0x2ed3   :  { %8560 = vmatprep.mubr.bf16.mxu0 %v17375_v15  ;;  %v8399_v11 = vadd.f32 %v16364_v54, %v8379_v21 }
0x2ed5   :  { %v8412_v12 = vpack.c.bf16 %v8400_v38, %v8399_v11  ;;  %10387 = vmatpush3.bf16.msra.mxu1 %v11517_v34  ;;  %v11526_v38 = vld [vmem:[%s17102_s12 + $0xf0] sm:$0xff]  }
0x2ed6   :  { %10388 = vmatprep.subr.bf16.mxu1 %v11518_v5 }
0x2ed9   :  { %10389 = vmatpush3.bf16.msra.mxu1 %v11519_v53  ;;  %v11528_v53 = vld [vmem:[%s17102_s12 + $0xf8] sm:$0xff]  }
0x2eda   :  { %9938 = vmatmul.mubr.msk.bf16.gmra.mrb[240].mxu0 %vm511_vm2, %v8411_v24  ;;  %10390 = vmatprep.subr.bf16.mxu1 %v11520_v2 }
0x2edb   :  { %8570 = vmatprep.mubr.bf16.mxu0 %v17375_v15 }
0x2edd   :  { %10391 = vmatpush3.bf16.msra.mxu1 %v11521_v37 }
0x2ede   :  { %10392 = vmatprep.subr.bf16.mxu1 %v11522_v58 }
0x2ee1   :  { %10393 = vmatpush3.bf16.msra.mxu1 %v11523_v16 }
0x2ee2   :  { %9939 = vmatmul.mubr.msk.bf16.gmra.mrb[244].mxu0 %vm511_vm2, %v8412_v12  ;;  %10394 = vmatprep.subr.bf16.mxu1 %v11524_v47 }
0x2ee3   :  { %8580 = vmatprep.mubr.bf16.mxu0 %v17375_v15 }
0x2ee5   :  { %10395 = vmatpush3.bf16.msra.mxu1 %v11525_v7 }
0x2ee6   :  { %10396 = vmatprep.subr.bf16.mxu1 %v11526_v38 }
0x2ee9   :  { %10397 = vmatpush3.bf16.msra.mxu1 %v11527_v6 }
0x2eea   :  { %10398 = vmatprep.subr.bf16.mxu1 %v11528_v53 }
0x2f31   :  { %v8283_v62 = vpop.xlane.xlu0 %8282 }
0x2f32   :  { %v8313_v28 = vmul.f32 0.015625, %v8283_v62 }
0x2f33   :  { %v8286_v50 = vpop.xlane.xlu1 %8285 }
0x2f34   :  { %v8329_v32 = vadd.f32 1e-05, %v8313_v28  ;;  %v8314_v18 = vmul.f32 0.015625, %v8286_v50 }
0x2f35   :  { %v8289_v23 = vpop.xlane.xlu0 %8288 }
0x2f36   :  { %12226 = vrsqrt.f32 %v8329_v32  ;;  %v8330_v41 = vadd.f32 1e-05, %v8314_v18  ;;  %v8315_v45 = vmul.f32 0.015625, %v8289_v23 }
0x2f37   :  { %v8292_v33 = vpop.xlane.xlu1 %8291 }
0x2f38   :  { %12228 = vrsqrt.f32 %v8330_v41  ;;  %v8331_v20 = vadd.f32 1e-05, %v8315_v45  ;;  %v8316_v4 = vmul.f32 0.015625, %v8292_v33 }
0x2f3a   :  { %12230 = vrsqrt.f32 %v8331_v20  ;;  %v8332_v17 = vadd.f32 1e-05, %v8316_v4 }
0x2f3c   :  { %12232 = vrsqrt.f32 %v8332_v17 }
0x2f3d   :  { %v8295_v39 = vpop.xlane.xlu0 %8294 }
0x2f3e   :  { %v8317_v36 = vmul.f32 0.015625, %v8295_v39 }
0x2f3f   :  { %v8298_v1 = vpop.xlane.xlu1 %8297 }
0x2f40   :  { %v12227_v10 = vpop.eup %12226  ;;  %v8333_v42 = vadd.f32 1e-05, %v8317_v36  ;;  %v8318_v24 = vmul.f32 0.015625, %v8298_v1 }
0x2f41   :  { %v8361_v43 = vmul.f32 %v12227_v10, %v16310_v9  ;;  %v8301_v21 = vpop.xlane.xlu0 %8300 }
0x2f42   :  { %v12229_v11 = vpop.eup %12228  ;;  %12234 = vrsqrt.f32 %v8333_v42  ;;  %v8334_v12 = vadd.f32 1e-05, %v8318_v24  ;;  %v8319_v25 = vmul.f32 0.015625, %v8301_v21 }
0x2f43   :  { %v8362_v61 = vmul.f32 %v12229_v11, %v16313_v19  ;;  %v8304_v34 = vpop.xlane.xlu1 %8303  ;;  %v8381_v62 = vmul.f32 %v16359_v14, %v8361_v43  ;;  %v11529_v19 = vld [vmem:[%s17102_s12 + $0xb8] sm:$0xff]  }
0x2f44   :  { %v12231_v9 = vpop.eup %12230  ;;  %12236 = vrsqrt.f32 %v8334_v12  ;;  %v8320_v5 = vmul.f32 0.015625, %v8304_v34  ;;  %v8335_v32 = vadd.f32 1e-05, %v8319_v25  ;;  %10399 = vmatpush3.bf16.msra.mxu1 %v11529_v19 }
0x2f45   :  { %v8382_v28 = vmul.f32 %v16359_v14, %v8362_v61  ;;  %v8363_v23 = vmul.f32 %v12231_v9, %v16318_v40  ;;  %v8401_v41 = vadd.f32 %v16364_v54, %v8381_v62 }
0x2f46   :  { %v12233_v50 = vpop.eup %12232  ;;  %v8336_v18 = vadd.f32 1e-05, %v8320_v5 }
0x2f47   :  { %v8364_v2 = vmul.f32 %v12233_v50, %v16324_v29  ;;  %v8402_v45 = vadd.f32 %v16364_v54, %v8382_v28  ;;  %v8383_v20 = vmul.f32 %v16359_v14, %v8363_v23 }
0x2f48   :  { %12238 = vrsqrt.f32 %v8336_v18 }
0x2f49   :  { %v8413_v37 = vpack.c.bf16 %v8402_v45, %v8401_v41  ;;  %v8384_v33 = vmul.f32 %v16359_v14, %v8364_v2  ;;  %12240 = vrsqrt.f32 %v8335_v32  ;;  %v8403_v16 = vadd.f32 %v16364_v54, %v8383_v20 }
0x2f4b   :  { %9940 = vmatmul.mubr.msk.bf16.gmra.mrb[248].mxu0 %vm511_vm2, %v8413_v37  ;;  %v8404_v40 = vadd.f32 %v16364_v54, %v8384_v33 }
0x2f4c   :  { %v12235_v4 = vpop.eup %12234  ;;  %8590 = vmatprep.mubr.bf16.mxu0 %v17375_v15 }
0x2f4d   :  { %v8365_v58 = vmul.f32 %v12235_v4, %v16334_v57  ;;  %v8414_v47 = vpack.c.bf16 %v8404_v40, %v8403_v16 }
0x2f4e   :  { %v12237_v29 = vpop.eup %12236 }
0x2f4f   :  { %v8366_v17 = vmul.f32 %v12237_v29, %v16337_v52  ;;  %v8385_v7 = vmul.f32 %v16359_v14, %v8365_v58 }
0x2f51   :  { %v8386_v39 = vmul.f32 %v16359_v14, %v8366_v17  ;;  %v8405_v57 = vadd.f32 %v16364_v54, %v8385_v7 }
0x2f52   :  { %v12239_v36 = vpop.eup %12238 }
0x2f53   :  { %9941 = vmatmul.mubr.msk.bf16.gmra.mrb[252].mxu0 %vm511_vm2, %v8414_v47  ;;  %v12241_v1 = vpop.eup %12240  ;;  %v8406_v10 = vadd.f32 %v16364_v54, %v8386_v39  ;;  %v8368_v42 = vmul.f32 %v12239_v36, %v16348_v30  ;;  %v17376_v30 = vld [vmem:[#allocation12_spill] sm:$0xff] }
0x2f54   :  { %8600 = vmatprep.mubr.bf16.mxu0 %v17375_v15  ;;  %v8367_v52 = vmul.f32 %v12241_v1, %v16342_v26  ;;  %v12342_v26 = vld [vmem:[%s17099_s14 + $0x4] sm:$0xf] }
0x2f55   :  { %v8415_v24 = vpack.c.bf16 %v8406_v10, %v8405_v57  ;;  %v8388_v43 = vmul.f32 %v16359_v14, %v8368_v42  ;;  %v8429_v25 = vrot.slane %v12342_v26, %v17376_v30  ;;  %v8433_v6 = vrot.slane %v12342_v26, %v17374_v55 }
0x2f56   :  { %v8387_v21 = vmul.f32 %v16359_v14, %v8367_v52 }
0x2f57   :  { %v8408_v38 = vadd.f32 %v16364_v54, %v8388_v43  ;;  %v16482_v14 = vrot.slane %v8429_v25, %v17376_v30 }
0x2f58   :  { %v8407_v11 = vadd.f32 %v16364_v54, %v8387_v21 }
0x2f5a   :  { %v8416_v12 = vpack.c.bf16 %v8408_v38, %v8407_v11 }
0x2f5b   :  { %9942 = vmatmul.mubr.msk.bf16.gmra.mrb[0].mxu0 %vm511_vm2, %v8415_v24 }
0x2f5c   :  { %8610 = vmatprep.mubr.bf16.mxu0 %v17375_v15  ;;  %v16485_v15 = vrot.slane %v8433_v6, %v17376_v30 }
0x2f63   :  { %9943 = vmatmul.mubr.msk.bf16.gmra.mrb[4].mxu0 %vm511_vm2, %v8416_v12 }
0x2f9d   :  { %v8542_v61 = vpop.f32.mrb[232].mxu0 }
0x2f9e   :  { %v16488_v54 = vadd.f32 %v8542_v61, %v16482_v14  ;;  %v8544_v34 = vpop.f32.mrb[233].mxu0 }
0x2f9f   :  { %v16491_v62 = vadd.f32 %v8544_v34, %v16485_v15  ;;  %v8546_v9 = vpop.f32.mrb[234].mxu0 }
0x2fa0   :  { %v8621_v5 = vmul.f32 %v16488_v54, %v16488_v54  ;;  %v16496_v28 = vadd.f32 %v8546_v9, %v16482_v14  ;;  %v8548_v53 = vpop.f32.mrb[235].mxu0 }
0x2fa1   :  { %v8622_v50 = vmul.f32 %v16491_v62, %v16491_v62  ;;  %v16501_v32 = vadd.f32 %v8548_v53, %v16485_v15 }
0x2fa2   :  { %v8653_v18 = vmul.f32 %v8621_v5, %v16488_v54  ;;  %v8623_v19 = vmul.f32 %v16496_v28, %v16496_v28 }
0x2fa3   :  { %v8654_v23 = vmul.f32 %v8622_v50, %v16491_v62  ;;  %v8624_v2 = vmul.f32 %v16501_v32, %v16501_v32 }
0x2fa4   :  { %v8685_v41 = vmul.f32 0.044715, %v8653_v18  ;;  %v8655_v45 = vmul.f32 %v8623_v19, %v16496_v28 }
0x2fa5   :  { %v8686_v37 = vmul.f32 0.044715, %v8654_v23  ;;  %v8656_v33 = vmul.f32 %v8624_v2, %v16501_v32  ;;  %v8552_v20 = vpop.f32.mrb[236].mxu0 }
0x2fa6   :  { %v8717_v4 = vadd.f32 %v8685_v41, %v16488_v54  ;;  %v8687_v40 = vmul.f32 0.044715, %v8655_v45  ;;  %v16513_v29 = vadd.f32 %v8552_v20, %v16482_v14  ;;  %v8554_v58 = vpop.f32.mrb[237].mxu0 }
0x2fa7   :  { %v8718_v17 = vadd.f32 %v8686_v37, %v16491_v62  ;;  %v8688_v16 = vmul.f32 0.044715, %v8656_v33  ;;  %v16517_v39 = vadd.f32 %v8554_v58, %v16485_v15  ;;  %v8556_v47 = vpop.f32.mrb[238].mxu0 }
0x2fa8   :  { %v8749_v36 = vmul.f32 0.7978846, %v8717_v4  ;;  %v8719_v7 = vadd.f32 %v8687_v40, %v16496_v28  ;;  %v8625_v1 = vmul.f32 %v16513_v29, %v16513_v29  ;;  %v16523_v10 = vadd.f32 %v8556_v47, %v16482_v14  ;;  %v8558_v42 = vpop.f32.mrb[239].mxu0 }
0x2fa9   :  { %v8750_v57 = vmul.f32 0.7978846, %v8718_v17  ;;  %v8720_v52 = vadd.f32 %v8688_v16, %v16501_v32  ;;  %v8626_v24 = vmul.f32 %v16517_v39, %v16517_v39  ;;  %v16529_v43 = vadd.f32 %v8558_v42, %v16485_v15 }
0x2faa   :  { %12242 = vtanh.f32 %v8749_v36  ;;  %v8751_v21 = vmul.f32 0.7978846, %v8719_v7  ;;  %v8657_v38 = vmul.f32 %v8625_v1, %v16513_v29  ;;  %v8627_v11 = vmul.f32 %v16523_v10, %v16523_v10 }
0x2fab   :  { %12244 = vtanh.f32 %v8750_v57  ;;  %v8752_v12 = vmul.f32 0.7978846, %v8720_v52  ;;  %v8658_v26 = vmul.f32 %v8626_v24, %v16517_v39  ;;  %v8628_v30 = vmul.f32 %v16529_v43, %v16529_v43 }
0x2fac   :  { %12246 = vtanh.f32 %v8751_v21  ;;  %v8689_v25 = vmul.f32 0.044715, %v8657_v38  ;;  %v8659_v6 = vmul.f32 %v8627_v11, %v16523_v10 }
0x2fad   :  { %v8690_v61 = vmul.f32 0.044715, %v8658_v26  ;;  %v8660_v34 = vmul.f32 %v8628_v30, %v16529_v43  ;;  %v8562_v9 = vpop.f32.mrb[240].mxu0  ;;  %12248 = vtanh.f32 %v8752_v12 }
0x2fae   :  { %v8721_v5 = vadd.f32 %v8689_v25, %v16513_v29  ;;  %v8691_v53 = vmul.f32 0.044715, %v8659_v6  ;;  %v16541_v50 = vadd.f32 %v8562_v9, %v16482_v14  ;;  %v8564_v18 = vpop.f32.mrb[241].mxu0 }
0x2faf   :  { %v8722_v19 = vadd.f32 %v8690_v61, %v16517_v39  ;;  %v8692_v23 = vmul.f32 0.044715, %v8660_v34  ;;  %v16545_v2 = vadd.f32 %v8564_v18, %v16485_v15  ;;  %v8566_v41 = vpop.f32.mrb[242].mxu0 }
0x2fb0   :  { %v8753_v45 = vmul.f32 0.7978846, %v8721_v5  ;;  %v8723_v37 = vadd.f32 %v8691_v53, %v16523_v10  ;;  %v8629_v33 = vmul.f32 %v16541_v50, %v16541_v50  ;;  %v16551_v20 = vadd.f32 %v8566_v41, %v16482_v14  ;;  %v8568_v4 = vpop.f32.mrb[243].mxu0 }
0x2fb1   :  { %v8754_v40 = vmul.f32 0.7978846, %v8722_v19  ;;  %v8724_v58 = vadd.f32 %v8692_v23, %v16529_v43  ;;  %v8630_v17 = vmul.f32 %v16545_v2, %v16545_v2  ;;  %v16557_v16 = vadd.f32 %v8568_v4, %v16485_v15 }
0x2fb2   :  { %12250 = vtanh.f32 %v8753_v45  ;;  %v8755_v47 = vmul.f32 0.7978846, %v8723_v37  ;;  %v8661_v36 = vmul.f32 %v8629_v33, %v16541_v50  ;;  %v8631_v7 = vmul.f32 %v16551_v20, %v16551_v20 }
0x2fb3   :  { %12252 = vtanh.f32 %v8754_v40  ;;  %v8756_v1 = vmul.f32 0.7978846, %v8724_v58  ;;  %v8662_v42 = vmul.f32 %v8630_v17, %v16545_v2  ;;  %v8632_v57 = vmul.f32 %v16557_v16, %v16557_v16 }
0x2fb4   :  { %v12243_v52 = vpop.eup %12242  ;;  %12254 = vtanh.f32 %v8755_v47  ;;  %v8693_v24 = vmul.f32 0.044715, %v8661_v36  ;;  %v8663_v21 = vmul.f32 %v8631_v7, %v16551_v20 }
0x2fb5   :  { %v12245_v38 = vpop.eup %12244  ;;  %v8813_v11 = vadd.f32 1.0, %v12243_v52  ;;  %12256 = vtanh.f32 %v8756_v1  ;;  %v8694_v12 = vmul.f32 0.044715, %v8662_v42  ;;  %v8664_v26 = vmul.f32 %v8632_v57, %v16557_v16  ;;  %v8572_v30 = vpop.f32.mrb[244].mxu0 }
0x2fb6   :  { %v12247_v25 = vpop.eup %12246  ;;  %v8725_v6 = vadd.f32 %v8693_v24, %v16541_v50  ;;  %v8695_v61 = vmul.f32 0.044715, %v8663_v21  ;;  %v16569_v34 = vadd.f32 %v8572_v30, %v16482_v14  ;;  %v8574_v9 = vpop.f32.mrb[245].mxu0  ;;  %v8814_v5 = vadd.f32 1.0, %v12245_v38 }
0x2fb7   :  { %v8845_v53 = vmul.f32 0.5, %v8813_v11  ;;  %v8815_v18 = vadd.f32 1.0, %v12247_v25  ;;  %v8726_v19 = vadd.f32 %v8694_v12, %v16545_v2  ;;  %v8696_v23 = vmul.f32 0.044715, %v8664_v26  ;;  %v8576_v41 = vpop.f32.mrb[246].mxu0  ;;  %v12249_v58 = vpop.eup %12248 }
0x2fb8   :  { %v8757_v45 = vmul.f32 0.7978846, %v8725_v6  ;;  %v8727_v37 = vadd.f32 %v8695_v61, %v16551_v20  ;;  %v8633_v33 = vmul.f32 %v16569_v34, %v16569_v34  ;;  %v16576_v4 = vadd.f32 %v8574_v9, %v16485_v15  ;;  %v8578_v40 = vpop.f32.mrb[247].mxu0 }
0x2fb9   :  { %v8877_v17 = vmul.f32 %v8845_v53, %v16488_v54  ;;  %v8847_v47 = vmul.f32 0.5, %v8815_v18  ;;  %v8758_v36 = vmul.f32 0.7978846, %v8726_v19  ;;  %v8728_v7 = vadd.f32 %v8696_v23, %v16557_v16 }
0x2fba   :  { %12258 = vtanh.f32 %v8757_v45  ;;  %v8759_v1 = vmul.f32 0.7978846, %v8727_v37  ;;  %v8665_v42 = vmul.f32 %v8633_v33, %v16569_v34  ;;  %v8634_v57 = vmul.f32 %v16576_v4, %v16576_v4 }
0x2fbb   :  { %v8879_v52 = vmul.f32 %v8847_v47, %v16496_v28  ;;  %12260 = vtanh.f32 %v8758_v36  ;;  %v8760_v24 = vmul.f32 0.7978846, %v8728_v7  ;;  %v16585_v21 = vadd.f32 %v8576_v41, %v16482_v14 }
0x2fbc   :  { %v12251_v38 = vpop.eup %12250  ;;  %12262 = vtanh.f32 %v8759_v1  ;;  %v8697_v54 = vmul.f32 0.044715, %v8665_v42  ;;  %v8666_v11 = vmul.f32 %v8634_v57, %v16576_v4  ;;  %v16589_v12 = vadd.f32 %v8578_v40, %v16485_v15 }
0x2fbd   :  { %v12253_v26 = vpop.eup %12252  ;;  %v8909_v30 = vpack.c.bf16 %v8879_v52, %v8877_v17  ;;  %12264 = vtanh.f32 %v8760_v24  ;;  %v8635_v25 = vmul.f32 %v16585_v21, %v16585_v21  ;;  %v8816_v28 = vadd.f32 1.0, %v12249_v58 }
0x2fbe   :  { %v12255_v6 = vpop.eup %12254  ;;  %v8729_v61 = vadd.f32 %v8697_v54, %v16569_v34  ;;  %v8698_v9 = vmul.f32 0.044715, %v8666_v11  ;;  %v8636_v53 = vmul.f32 %v16589_v12, %v16589_v12  ;;  %v8846_v18 = vmul.f32 0.5, %v8814_v5 }
0x2fbf   :  { %v12257_v19 = vpop.eup %12256  ;;  %v8667_v23 = vmul.f32 %v8635_v25, %v16585_v21  ;;  %v8848_v41 = vmul.f32 0.5, %v8816_v28  ;;  %v8818_v45 = vadd.f32 1.0, %v12253_v26  ;;  %v8817_v37 = vadd.f32 1.0, %v12251_v38 }
0x2fc0   :  { %v8761_v33 = vmul.f32 0.7978846, %v8729_v61  ;;  %v8730_v40 = vadd.f32 %v8698_v9, %v16576_v4  ;;  %v8668_v17 = vmul.f32 %v8636_v53, %v16589_v12  ;;  %v8878_v58 = vmul.f32 %v8846_v18, %v16491_v62 }
0x2fc1   :  { %v8699_v47 = vmul.f32 0.044715, %v8667_v23  ;;  %v8880_v36 = vmul.f32 %v8848_v41, %v16501_v32  ;;  %v8820_v7 = vadd.f32 1.0, %v12257_v19  ;;  %v8850_v1 = vmul.f32 0.5, %v8818_v45 }
0x2fc2   :  { %12266 = vtanh.f32 %v8761_v33  ;;  %v8762_v5 = vmul.f32 0.7978846, %v8730_v40  ;;  %v8700_v42 = vmul.f32 0.044715, %v8668_v17  ;;  %v8819_v57 = vadd.f32 1.0, %v12255_v6 }
0x2fc3   :  { %v8731_v52 = vadd.f32 %v8699_v47, %v16585_v21  ;;  %v8910_v24 = vpack.c.bf16 %v8880_v36, %v8878_v58  ;;  %v8852_v38 = vmul.f32 0.5, %v8820_v7  ;;  %v8849_v26 = vmul.f32 0.5, %v8817_v37 }
0x2fc4   :  { %v12259_v54 = vpop.eup %12258  ;;  %12268 = vtanh.f32 %v8762_v5  ;;  %v8732_v11 = vadd.f32 %v8700_v42, %v16589_v12  ;;  %v8851_v25 = vmul.f32 0.5, %v8819_v57  ;;  %v8882_v32 = vmul.f32 %v8850_v1, %v16517_v39 }
0x2fc5   :  { %v12261_v62 = vpop.eup %12260  ;;  %v8763_v28 = vmul.f32 0.7978846, %v8731_v52  ;;  %9086 = vmatprep.mubr.bf16.mxu1 %v8910_v24  ;;  %v8884_v61 = vmul.f32 %v8852_v38, %v16529_v43  ;;  %v8821_v9 = vadd.f32 1.0, %v12259_v54  ;;  %v8881_v18 = vmul.f32 %v8849_v26, %v16513_v29 }
0x2fc6   :  { %v12263_v53 = vpop.eup %12262  ;;  %v8764_v6 = vmul.f32 0.7978846, %v8732_v11  ;;  %9087 = vmatmul.mubr.bf16.vlgmr.msra.gmra.mrb[216].mxu1 %v8909_v30  ;;  %v8883_v19 = vmul.f32 %v8851_v25, %v16523_v10  ;;  %v8822_v23 = vadd.f32 1.0, %v12261_v62 }
0x2fc7   :  { %v12265_v41 = vpop.eup %12264  ;;  %12270 = vtanh.f32 %v8763_v28  ;;  %v8912_v45 = vpack.c.bf16 %v8884_v61, %v8882_v32  ;;  %v8823_v37 = vadd.f32 1.0, %v12263_v53  ;;  %v8853_v33 = vmul.f32 0.5, %v8821_v9 }
0x2fc8   :  { %12272 = vtanh.f32 %v8764_v6  ;;  %v8911_v40 = vpack.c.bf16 %v8883_v19, %v8881_v18  ;;  %v8824_v17 = vadd.f32 1.0, %v12265_v41  ;;  %v8854_v39 = vmul.f32 0.5, %v8822_v23 }
0x2fc9   :  { %9094 = vmatprep.mubr.bf16.mxu1 %v8912_v45  ;;  %v8855_v43 = vmul.f32 0.5, %v8823_v37  ;;  %v8885_v47 = vmul.f32 %v8853_v33, %v16541_v50 }
0x2fca   :  { %v8856_v58 = vmul.f32 0.5, %v8824_v17  ;;  %v8886_v10 = vmul.f32 %v8854_v39, %v16545_v2 }
0x2fcb   :  { %v8887_v30 = vmul.f32 %v8855_v43, %v16551_v20 }
0x2fcc   :  { %v12267_v29 = vpop.eup %12266  ;;  %v8888_v36 = vmul.f32 %v8856_v58, %v16557_v16 }
0x2fcd   :  { %v8913_v7 = vpack.c.bf16 %v8887_v30, %v8885_v47  ;;  %v8825_v42 = vadd.f32 1.0, %v12267_v29 }
0x2fce   :  { %v12269_v1 = vpop.eup %12268  ;;  %9095 = vmatmul.mubr.bf16.gmra.mrb[220].mxu1 %v8911_v40  ;;  %v8914_v5 = vpack.c.bf16 %v8888_v36, %v8886_v10 }
0x2fcf   :  { %v8826_v57 = vadd.f32 1.0, %v12269_v1  ;;  %v8857_v54 = vmul.f32 0.5, %v8825_v42 }
0x2fd0   :  { %9102 = vmatprep.mubr.bf16.mxu1 %v8914_v5 }
0x2fd1   :  { %v12271_v52 = vpop.eup %12270  ;;  %v8858_v50 = vmul.f32 0.5, %v8826_v57  ;;  %v8889_v2 = vmul.f32 %v8857_v54, %v16569_v34 }
0x2fd2   :  { %v12273_v24 = vpop.eup %12272  ;;  %v8827_v38 = vadd.f32 1.0, %v12271_v52 }
0x2fd3   :  { %v8828_v11 = vadd.f32 1.0, %v12273_v24  ;;  %v8890_v25 = vmul.f32 %v8858_v50, %v16576_v4 }
0x2fd4   :  { %v8859_v26 = vmul.f32 0.5, %v8827_v38 }
0x2fd5   :  { %v8860_v20 = vmul.f32 0.5, %v8828_v11 }
0x2fd6   :  { %9103 = vmatmul.mubr.bf16.gmra.mrb[224].mxu1 %v8913_v7  ;;  %v8891_v16 = vmul.f32 %v8859_v26, %v16585_v21 }
0x2fd7   :  { %v8892_v62 = vmul.f32 %v8860_v20, %v16589_v12 }
0x2fd8   :  { %v8915_v28 = vpack.c.bf16 %v8891_v16, %v8889_v2 }
0x2fd9   :  { %v8916_v32 = vpack.c.bf16 %v8892_v62, %v8890_v25 }
0x2fdb   :  { %9110 = vmatprep.mubr.bf16.mxu1 %v8916_v32 }
0x2fde   :  { %9111 = vmatmul.mubr.bf16.gmra.mrb[228].mxu1 %v8915_v28 }
0x301e   :  { %v8582_v61 = vpop.f32.mrb[248].mxu0 }
0x301f   :  { %v16616_v9 = vadd.f32 %v8582_v61, %v16482_v14  ;;  %v8584_v53 = vpop.f32.mrb[249].mxu0 }
0x3020   :  { %v16619_v6 = vadd.f32 %v8584_v53, %v16485_v15  ;;  %v8586_v18 = vpop.f32.mrb[250].mxu0 }
0x3021   :  { %v8637_v34 = vmul.f32 %v16616_v9, %v16616_v9  ;;  %v16624_v4 = vadd.f32 %v8586_v18, %v16482_v14  ;;  %v8588_v21 = vpop.f32.mrb[251].mxu0 }
0x3022   :  { %v8638_v12 = vmul.f32 %v16619_v6, %v16619_v6  ;;  %v16629_v19 = vadd.f32 %v8588_v21, %v16485_v15 }
0x3023   :  { %v8669_v23 = vmul.f32 %v8637_v34, %v16616_v9  ;;  %v8639_v41 = vmul.f32 %v16624_v4, %v16624_v4 }
0x3024   :  { %v8670_v45 = vmul.f32 %v8638_v12, %v16619_v6  ;;  %v8640_v37 = vmul.f32 %v16629_v19, %v16629_v19 }
0x3025   :  { %v8701_v33 = vmul.f32 0.044715, %v8669_v23  ;;  %v8671_v40 = vmul.f32 %v8639_v41, %v16624_v4 }
0x3026   :  { %v8702_v17 = vmul.f32 0.044715, %v8670_v45  ;;  %v8672_v39 = vmul.f32 %v8640_v37, %v16629_v19  ;;  %v8592_v43 = vpop.f32.mrb[252].mxu0 }
0x3027   :  { %v8733_v58 = vadd.f32 %v8701_v33, %v16616_v9  ;;  %v8703_v47 = vmul.f32 0.044715, %v8671_v40  ;;  %v16641_v30 = vadd.f32 %v8592_v43, %v16482_v14  ;;  %v8594_v29 = vpop.f32.mrb[253].mxu0 }
0x3028   :  { %v8734_v10 = vadd.f32 %v8702_v17, %v16619_v6  ;;  %v8704_v36 = vmul.f32 0.044715, %v8672_v39  ;;  %v16645_v7 = vadd.f32 %v8594_v29, %v16485_v15  ;;  %v8596_v1 = vpop.f32.mrb[254].mxu0 }
0x3029   :  { %v8765_v5 = vmul.f32 0.7978846, %v8733_v58  ;;  %v8735_v42 = vadd.f32 %v8703_v47, %v16624_v4  ;;  %v8641_v57 = vmul.f32 %v16641_v30, %v16641_v30  ;;  %v16651_v52 = vadd.f32 %v8596_v1, %v16482_v14  ;;  %v8598_v24 = vpop.f32.mrb[255].mxu0 }
0x302a   :  { %v8766_v38 = vmul.f32 0.7978846, %v8734_v10  ;;  %v8736_v54 = vadd.f32 %v8704_v36, %v16629_v19  ;;  %v8642_v11 = vmul.f32 %v16645_v7, %v16645_v7  ;;  %v16657_v50 = vadd.f32 %v8598_v24, %v16485_v15 }
0x302b   :  { %12274 = vtanh.f32 %v8765_v5  ;;  %v8767_v26 = vmul.f32 0.7978846, %v8735_v42  ;;  %v8673_v20 = vmul.f32 %v8641_v57, %v16641_v30  ;;  %v8643_v2 = vmul.f32 %v16651_v52, %v16651_v52 }
0x302c   :  { %12276 = vtanh.f32 %v8766_v38  ;;  %v8768_v16 = vmul.f32 0.7978846, %v8736_v54  ;;  %v8674_v25 = vmul.f32 %v8642_v11, %v16645_v7  ;;  %v8644_v62 = vmul.f32 %v16657_v50, %v16657_v50 }
0x302d   :  { %12278 = vtanh.f32 %v8767_v26  ;;  %v8705_v28 = vmul.f32 0.044715, %v8673_v20  ;;  %v8675_v32 = vmul.f32 %v8643_v2, %v16651_v52 }
0x302e   :  { %v8706_v61 = vmul.f32 0.044715, %v8674_v25  ;;  %v8676_v53 = vmul.f32 %v8644_v62, %v16657_v50  ;;  %v8602_v18 = vpop.f32.mrb[0].mxu0  ;;  %12280 = vtanh.f32 %v8768_v16 }
0x302f   :  { %v8737_v34 = vadd.f32 %v8705_v28, %v16641_v30  ;;  %v8707_v21 = vmul.f32 0.044715, %v8675_v32  ;;  %v16669_v12 = vadd.f32 %v8602_v18, %v16482_v14  ;;  %v8604_v23 = vpop.f32.mrb[1].mxu0 }
0x3030   :  { %v8738_v41 = vadd.f32 %v8706_v61, %v16645_v7  ;;  %v8708_v45 = vmul.f32 0.044715, %v8676_v53  ;;  %v16673_v37 = vadd.f32 %v8604_v23, %v16485_v15  ;;  %v8606_v33 = vpop.f32.mrb[2].mxu0 }
0x3031   :  { %v8769_v40 = vmul.f32 0.7978846, %v8737_v34  ;;  %v8739_v17 = vadd.f32 %v8707_v21, %v16651_v52  ;;  %v8645_v39 = vmul.f32 %v16669_v12, %v16669_v12  ;;  %v16679_v43 = vadd.f32 %v8606_v33, %v16482_v14  ;;  %v8608_v58 = vpop.f32.mrb[3].mxu0 }
0x3032   :  { %v8770_v47 = vmul.f32 0.7978846, %v8738_v41  ;;  %v8740_v29 = vadd.f32 %v8708_v45, %v16657_v50  ;;  %v8646_v10 = vmul.f32 %v16673_v37, %v16673_v37  ;;  %v16685_v36 = vadd.f32 %v8608_v58, %v16485_v15 }
0x3033   :  { %12282 = vtanh.f32 %v8769_v40  ;;  %v8771_v1 = vmul.f32 0.7978846, %v8739_v17  ;;  %v8677_v5 = vmul.f32 %v8645_v39, %v16669_v12  ;;  %v8647_v42 = vmul.f32 %v16679_v43, %v16679_v43 }
0x3034   :  { %12284 = vtanh.f32 %v8770_v47  ;;  %v8772_v57 = vmul.f32 0.7978846, %v8740_v29  ;;  %v8678_v24 = vmul.f32 %v8646_v10, %v16673_v37  ;;  %v8648_v38 = vmul.f32 %v16685_v36, %v16685_v36 }
0x3035   :  { %v12275_v54 = vpop.eup %12274  ;;  %12286 = vtanh.f32 %v8771_v1  ;;  %v8709_v11 = vmul.f32 0.044715, %v8677_v5  ;;  %v8679_v26 = vmul.f32 %v8647_v42, %v16679_v43 }
0x3036   :  { %v12277_v20 = vpop.eup %12276  ;;  %12288 = vtanh.f32 %v8772_v57  ;;  %v8710_v2 = vmul.f32 0.044715, %v8678_v24  ;;  %v8680_v16 = vmul.f32 %v8648_v38, %v16685_v36  ;;  %v8612_v25 = vpop.f32.mrb[4].mxu0  ;;  %v8829_v62 = vadd.f32 1.0, %v12275_v54 }
0x3037   :  { %v12279_v28 = vpop.eup %12278  ;;  %v8741_v32 = vadd.f32 %v8709_v11, %v16669_v12  ;;  %v8711_v61 = vmul.f32 0.044715, %v8679_v26  ;;  %v16697_v53 = vadd.f32 %v8612_v25, %v16482_v14  ;;  %v8614_v18 = vpop.f32.mrb[5].mxu0  ;;  %v8830_v34 = vadd.f32 1.0, %v12277_v20 }
0x3038   :  { %v8742_v21 = vadd.f32 %v8710_v2, %v16673_v37  ;;  %v8712_v23 = vmul.f32 0.044715, %v8680_v16  ;;  %v16701_v41 = vadd.f32 %v8614_v18, %v16485_v15  ;;  %v8616_v45 = vpop.f32.mrb[6].mxu0  ;;  %v8831_v33 = vadd.f32 1.0, %v12279_v28  ;;  %v12281_v29 = vpop.eup %12280 }
0x3039   :  { %v8773_v40 = vmul.f32 0.7978846, %v8741_v32  ;;  %v8743_v17 = vadd.f32 %v8711_v61, %v16679_v43  ;;  %v8649_v39 = vmul.f32 %v16697_v53, %v16697_v53  ;;  %v16707_v58 = vadd.f32 %v8616_v45, %v16482_v14  ;;  %v8618_v47 = vpop.f32.mrb[7].mxu0 }
0x303a   :  { %v8774_v10 = vmul.f32 0.7978846, %v8742_v21  ;;  %v8744_v1 = vadd.f32 %v8712_v23, %v16685_v36  ;;  %v8650_v5 = vmul.f32 %v16701_v41, %v16701_v41  ;;  %v16713_v42 = vadd.f32 %v8618_v47, %v16485_v15 }
0x303b   :  { %12290 = vtanh.f32 %v8773_v40  ;;  %v8775_v57 = vmul.f32 0.7978846, %v8743_v17  ;;  %v8681_v24 = vmul.f32 %v8649_v39, %v16697_v53  ;;  %v8651_v38 = vmul.f32 %v16707_v58, %v16707_v58 }
0x303c   :  { %12292 = vtanh.f32 %v8774_v10  ;;  %v8776_v14 = vmul.f32 0.7978846, %v8744_v1  ;;  %v8682_v54 = vmul.f32 %v8650_v5, %v16701_v41  ;;  %v8652_v11 = vmul.f32 %v16713_v42, %v16713_v42 }
0x303d   :  { %v12283_v26 = vpop.eup %12282  ;;  %12294 = vtanh.f32 %v8775_v57  ;;  %v8713_v20 = vmul.f32 0.044715, %v8681_v24  ;;  %v8683_v15 = vmul.f32 %v8651_v38, %v16707_v58  ;;  %v8832_v2 = vadd.f32 1.0, %v12281_v29 }
0x303e   :  { %v12285_v16 = vpop.eup %12284  ;;  %12296 = vtanh.f32 %v8776_v14  ;;  %v8714_v25 = vmul.f32 0.044715, %v8682_v54  ;;  %v8684_v28 = vmul.f32 %v8652_v11, %v16713_v42  ;;  %v8862_v32 = vmul.f32 0.5, %v8830_v34 }
0x303f   :  { %v12287_v61 = vpop.eup %12286  ;;  %v8745_v18 = vadd.f32 %v8713_v20, %v16697_v53  ;;  %v8715_v21 = vmul.f32 0.044715, %v8683_v15  ;;  %v8864_v23 = vmul.f32 0.5, %v8832_v2  ;;  %v8861_v45 = vmul.f32 0.5, %v8829_v62 }
0x3040   :  { %v12289_v40 = vpop.eup %12288  ;;  %v8746_v17 = vadd.f32 %v8714_v25, %v16701_v41  ;;  %v8716_v39 = vmul.f32 0.044715, %v8684_v28  ;;  %v8894_v47 = vmul.f32 %v8862_v32, %v16619_v6  ;;  %v8863_v10 = vmul.f32 0.5, %v8831_v33 }
0x3041   :  { %v8777_v29 = vmul.f32 0.7978846, %v8745_v18  ;;  %v8747_v1 = vadd.f32 %v8715_v21, %v16707_v58  ;;  %v8896_v5 = vmul.f32 %v8864_v23, %v16629_v19  ;;  %v8893_v34 = vmul.f32 %v8861_v45, %v16616_v9 }
0x3042   :  { %v8778_v57 = vmul.f32 0.7978846, %v8746_v17  ;;  %v8748_v24 = vadd.f32 %v8716_v39, %v16713_v42  ;;  %v8895_v38 = vmul.f32 %v8863_v10, %v16624_v4  ;;  %v8834_v62 = vadd.f32 1.0, %v12285_v16 }
0x3043   :  { %12298 = vtanh.f32 %v8777_v29  ;;  %v8779_v14 = vmul.f32 0.7978846, %v8747_v1  ;;  %v8918_v54 = vpack.c.bf16 %v8896_v5, %v8894_v47  ;;  %v8836_v11 = vadd.f32 1.0, %v12289_v40 }
0x3044   :  { %12300 = vtanh.f32 %v8778_v57  ;;  %v8780_v6 = vmul.f32 0.7978846, %v8748_v24  ;;  %v8917_v33 = vpack.c.bf16 %v8895_v38, %v8893_v34  ;;  %v8866_v20 = vmul.f32 0.5, %v8834_v62 }
0x3045   :  { %v12291_v15 = vpop.eup %12290  ;;  %12302 = vtanh.f32 %v8779_v14  ;;  %9118 = vmatprep.mubr.bf16.mxu1 %v8918_v54  ;;  %v8868_v19 = vmul.f32 0.5, %v8836_v11  ;;  %v8833_v2 = vadd.f32 1.0, %v12283_v26  ;;  %v8835_v9 = vadd.f32 1.0, %v12287_v61 }
0x3046   :  { %v12293_v25 = vpop.eup %12292  ;;  %12304 = vtanh.f32 %v8780_v6  ;;  %9119 = vmatmul.mubr.bf16.gmra.mrb[232].mxu1 %v8917_v33  ;;  %v8898_v4 = vmul.f32 %v8866_v20, %v16645_v7  ;;  %v8837_v16 = vadd.f32 1.0, %v12291_v15 }
0x3047   :  { %v12295_v28 = vpop.eup %12294  ;;  %v8900_v32 = vmul.f32 %v8868_v19, %v16657_v50  ;;  %v8865_v18 = vmul.f32 0.5, %v8833_v2  ;;  %v8867_v21 = vmul.f32 0.5, %v8835_v9  ;;  %v8838_v23 = vadd.f32 1.0, %v12293_v25 }
0x3048   :  { %v12297_v45 = vpop.eup %12296  ;;  %v8839_v40 = vadd.f32 1.0, %v12295_v28  ;;  %v8869_v17 = vmul.f32 0.5, %v8837_v16  ;;  %v12343_v28 = vld [vmem:[%s17098_s13 + $0x8] sm:$0x3f] }
0x3049   :  { %v8920_v39 = vpack.c.bf16 %v8900_v32, %v8898_v4  ;;  %v8897_v47 = vmul.f32 %v8865_v18, %v16641_v30  ;;  %v8899_v26 = vmul.f32 %v8867_v21, %v16651_v52  ;;  %v8840_v61 = vadd.f32 1.0, %v12297_v45  ;;  %v17377_v32 = vld [vmem:[#allocation4_spill] sm:$0xff] }
0x304a   :  { %v8870_v10 = vmul.f32 0.5, %v8838_v23  ;;  %v8871_v29 = vmul.f32 0.5, %v8839_v40  ;;  %v8901_v5 = vmul.f32 %v8869_v17, %v16669_v12  ;;  %v16747_v18 = vrot.slane %v12343_v28, %v17377_v32 }
0x304b   :  { %9126 = vmatprep.mubr.bf16.mxu1 %v8920_v39  ;;  %v8919_v7 = vpack.c.bf16 %v8899_v26, %v8897_v47  ;;  %v8872_v1 = vmul.f32 0.5, %v8840_v61 }
0x304c   :  { %v8903_v50 = vmul.f32 %v8871_v29, %v16679_v43  ;;  %v8902_v57 = vmul.f32 %v8870_v10, %v16673_v37 }
0x304d   :  { %v12299_v34 = vpop.eup %12298  ;;  %v8904_v24 = vmul.f32 %v8872_v1, %v16685_v36 }
0x304e   :  { %v12301_v38 = vpop.eup %12300  ;;  %9127 = vmatmul.mubr.bf16.gmra.mrb[236].mxu1 %v8919_v7  ;;  %v8921_v30 = vpack.c.bf16 %v8903_v50, %v8901_v5  ;;  %v8841_v62 = vadd.f32 1.0, %v12299_v34 }
0x304f   :  { %v12303_v52 = vpop.eup %12302  ;;  %v8922_v14 = vpack.c.bf16 %v8904_v24, %v8902_v57  ;;  %v8842_v54 = vadd.f32 1.0, %v12301_v38 }
0x3050   :  { %v12305_v11 = vpop.eup %12304  ;;  %v8843_v6 = vadd.f32 1.0, %v12303_v52  ;;  %v8873_v33 = vmul.f32 0.5, %v8841_v62 }
0x3051   :  { %9134 = vmatprep.mubr.bf16.mxu1 %v8922_v14  ;;  %v8844_v20 = vadd.f32 1.0, %v12305_v11  ;;  %v8874_v12 = vmul.f32 0.5, %v8842_v54 }
0x3052   :  { %v8875_v15 = vmul.f32 0.5, %v8843_v6  ;;  %v8905_v19 = vmul.f32 %v8873_v33, %v16697_v53 }
0x3053   :  { %v8876_v43 = vmul.f32 0.5, %v8844_v20  ;;  %v8906_v36 = vmul.f32 %v8874_v12, %v16701_v41 }
0x3054   :  { %v8907_v37 = vmul.f32 %v8875_v15, %v16707_v58 }
0x3055   :  { %v8908_v2 = vmul.f32 %v8876_v43, %v16713_v42 }
0x3056   :  { %9135 = vmatmul.mubr.bf16.gmra.mrb[240].mxu1 %v8921_v30  ;;  %v8923_v9 = vpack.c.bf16 %v8907_v37, %v8905_v19 }
0x3057   :  { %v8924_v25 = vpack.c.bf16 %v8908_v2, %v8906_v36 }
0x3059   :  { %9142 = vmatprep.mubr.bf16.mxu1 %v8924_v25 }
0x305e   :  { %9143 = vmatmul.mubr.bf16.gmra.mrb[244].mxu1 %v8923_v9 }
0x3099   :  { %v10400_v4 = vpop.f32.mrb[216].mxu1 }
0x309a   :  { %v10401_v16 = vpop.f32.mrb[217].mxu1 }
0x309b   :  { %v10402_v53 = vadd.f32 %v10401_v16, %v10400_v4  ;;  %v10403_v58 = vpop.f32.mrb[218].mxu1 }
0x309c   :  { %v10404_v21 = vpop.f32.mrb[219].mxu1 }
0x309d   :  { %v9151_v41 = vadd.f32 %v10402_v53, %v16108_v51  ;;  %v10405_v42 = vadd.f32 %v10404_v21, %v10403_v58 }
0x309f   :  { %v9152_v23 = vadd.f32 %v10405_v42, %v16116_v48  ;;  %v16752_v45 = vadd.f32 %v16747_v18, %v9151_v41 }
0x30a1   :  { %v10406_v40 = vpop.f32.mrb[220].mxu1  ;;  %v9187_v17 = vsel %vm511_vm2, %v16752_v45, 0.0  ;;  %v16757_v39 = vadd.f32 %v16747_v18, %v9152_v23 }
0x30a2   :  { %9188 = vadd.xlane.f32.xlu0 %v9187_v17  ;;  %v10407_v47 = vpop.f32.mrb[221].mxu1 }
0x30a3   :  { %v10408_v26 = vadd.f32 %v10407_v47, %v10406_v40  ;;  %v10409_v61 = vpop.f32.mrb[222].mxu1  ;;  %v9190_v51 = vsel %vm511_vm2, %v16757_v39, 0.0 }
0x30a4   :  { %9191 = vadd.xlane.f32.xlu1 %v9190_v51  ;;  %v10410_v10 = vpop.f32.mrb[223].mxu1 }
0x30a5   :  { %v9153_v48 = vadd.f32 %v10408_v26, %v16112_v31  ;;  %v10411_v29 = vadd.f32 %v10410_v10, %v10409_v61 }
0x30a7   :  { %v9154_v7 = vadd.f32 %v10411_v29, %v16122_v49  ;;  %v16764_v1 = vadd.f32 %v16747_v18, %v9153_v48 }
0x30a9   :  { %v10412_v5 = vpop.f32.mrb[224].mxu1  ;;  %v9193_v50 = vsel %vm511_vm2, %v16764_v1, 0.0  ;;  %v16769_v34 = vadd.f32 %v16747_v18, %v9154_v7 }
0x30aa   :  { %9194 = vadd.xlane.f32.xlu0 %v9193_v50  ;;  %v10413_v57 = vpop.f32.mrb[225].mxu1 }
0x30ab   :  { %v10414_v24 = vadd.f32 %v10413_v57, %v10412_v5  ;;  %v10415_v38 = vpop.f32.mrb[226].mxu1  ;;  %v9196_v31 = vsel %vm511_vm2, %v16769_v34, 0.0 }
0x30ac   :  { %9197 = vadd.xlane.f32.xlu1 %v9196_v31  ;;  %v10416_v30 = vpop.f32.mrb[227].mxu1 }
0x30ad   :  { %v9155_v49 = vadd.f32 %v10414_v24, %v16137_v46  ;;  %v10417_v62 = vadd.f32 %v10416_v30, %v10415_v38 }
0x30af   :  { %v9156_v52 = vadd.f32 %v10417_v62, %v16129_v56  ;;  %v16776_v14 = vadd.f32 %v16747_v18, %v9155_v49 }
0x30b1   :  { %v10418_v54 = vpop.f32.mrb[228].mxu1  ;;  %v9199_v11 = vsel %vm511_vm2, %v16776_v14, 0.0  ;;  %v16781_v6 = vadd.f32 %v16747_v18, %v9156_v52 }
0x30b2   :  { %9200 = vadd.xlane.f32.xlu0 %v9199_v11  ;;  %v10419_v33 = vpop.f32.mrb[229].mxu1 }
0x30b3   :  { %v10420_v20 = vadd.f32 %v10419_v33, %v10418_v54  ;;  %v10421_v12 = vpop.f32.mrb[230].mxu1  ;;  %v9202_v46 = vsel %vm511_vm2, %v16781_v6, 0.0 }
0x30b4   :  { %9203 = vadd.xlane.f32.xlu1 %v9202_v46  ;;  %v10422_v15 = vpop.f32.mrb[231].mxu1 }
0x30b5   :  { %v9157_v56 = vadd.f32 %v10420_v20, %v16145_v44  ;;  %v10423_v43 = vadd.f32 %v10422_v15, %v10421_v12 }
0x30b7   :  { %v9158_v19 = vadd.f32 %v10423_v43, %v16140_v59  ;;  %v16788_v37 = vadd.f32 %v16747_v18, %v9157_v56 }
0x30b9   :  { %v9205_v36 = vsel %vm511_vm2, %v16788_v37, 0.0  ;;  %v16793_v2 = vadd.f32 %v16747_v18, %v9158_v19 }
0x30ba   :  { %9206 = vadd.xlane.f32.xlu0 %v9205_v36 }
0x30bb   :  { %v9208_v9 = vsel %vm511_vm2, %v16793_v2, 0.0 }
0x30bc   :  { %9209 = vadd.xlane.f32.xlu1 %v9208_v9 }
0x3119   :  { %v10424_v25 = vpop.f32.mrb[232].mxu1 }
0x311a   :  { %v10425_v4 = vpop.f32.mrb[233].mxu1 }
0x311b   :  { %v10426_v44 = vadd.f32 %v10425_v4, %v10424_v25  ;;  %v10427_v16 = vpop.f32.mrb[234].mxu1 }
0x311c   :  { %v10428_v28 = vpop.f32.mrb[235].mxu1 }
0x311d   :  { %v9159_v59 = vadd.f32 %v10426_v44, %v16192_v60  ;;  %v10429_v53 = vadd.f32 %v10428_v28, %v10427_v16 }
0x311f   :  { %v9160_v58 = vadd.f32 %v10429_v53, %v16200_v63  ;;  %v16800_v21 = vadd.f32 %v16747_v18, %v9159_v59 }
0x3121   :  { %v10430_v41 = vpop.f32.mrb[236].mxu1  ;;  %v9211_v42 = vsel %vm511_vm2, %v16800_v21, 0.0  ;;  %v16805_v23 = vadd.f32 %v16747_v18, %v9160_v58 }
0x3122   :  { %9212 = vadd.xlane.f32.xlu0 %v9211_v42  ;;  %v10431_v40 = vpop.f32.mrb[237].mxu1 }
0x3123   :  { %v10432_v17 = vadd.f32 %v10431_v40, %v10430_v41  ;;  %v10433_v47 = vpop.f32.mrb[238].mxu1  ;;  %v9214_v60 = vsel %vm511_vm2, %v16805_v23, 0.0 }
0x3124   :  { %9215 = vadd.xlane.f32.xlu1 %v9214_v60  ;;  %v10434_v26 = vpop.f32.mrb[239].mxu1 }
0x3125   :  { %v9161_v63 = vadd.f32 %v10432_v17, %v16197_v3  ;;  %v10435_v61 = vadd.f32 %v10434_v26, %v10433_v47 }
0x3127   :  { %v9162_v51 = vadd.f32 %v10435_v61, %v16205_v13  ;;  %v16812_v10 = vadd.f32 %v16747_v18, %v9161_v63 }
0x3129   :  { %v10436_v48 = vpop.f32.mrb[240].mxu1  ;;  %v9217_v29 = vsel %vm511_vm2, %v16812_v10, 0.0  ;;  %v16817_v7 = vadd.f32 %v16747_v18, %v9162_v51 }
0x312a   :  { %9218 = vadd.xlane.f32.xlu0 %v9217_v29  ;;  %v10437_v5 = vpop.f32.mrb[241].mxu1 }
0x312b   :  { %v10438_v50 = vadd.f32 %v10437_v5, %v10436_v48  ;;  %v10439_v57 = vpop.f32.mrb[242].mxu1  ;;  %v9220_v3 = vsel %vm511_vm2, %v16817_v7, 0.0 }
0x312c   :  { %9221 = vadd.xlane.f32.xlu1 %v9220_v3  ;;  %v10440_v24 = vpop.f32.mrb[243].mxu1 }
0x312d   :  { %v9163_v13 = vadd.f32 %v10438_v50, %v16216_v27  ;;  %v10441_v38 = vadd.f32 %v10440_v24, %v10439_v57 }
0x312f   :  { %v9164_v31 = vadd.f32 %v10441_v38, %v16227_v35  ;;  %v9189_v30 = vpop.xlane.xlu0 %9188  ;;  %v16824_v49 = vadd.f32 %v16747_v18, %v9163_v13 }
0x3130   :  { %v9235_v62 = vmul.f32 0.015625, %v9189_v30 }
0x3131   :  { %v9192_v52 = vpop.xlane.xlu1 %9191  ;;  %v10442_v54 = vpop.f32.mrb[244].mxu1  ;;  %v9223_v11 = vsel %vm511_vm2, %v16824_v49, 0.0  ;;  %v16829_v33 = vadd.f32 %v16747_v18, %v9164_v31 }
0x3132   :  { %9224 = vadd.xlane.f32.xlu0 %v9223_v11  ;;  %v10443_v20 = vpop.f32.mrb[245].mxu1  ;;  %v9236_v12 = vmul.f32 0.015625, %v9192_v52  ;;  %v16834_v56 = vsub.f32 %v16752_v45, %v9235_v62  ;;  %v11532_v62 = vld [vmem:[%s17103_s15 + $0x10] sm:$0xff]   ;;  %v11533_v52 = vld [vmem:[%s17103_s15 + $0x18] sm:$0xff]  }
0x3133   :  { %v10444_v27 = vadd.f32 %v10443_v20, %v10442_v54  ;;  %v10445_v46 = vpop.f32.mrb[246].mxu1  ;;  %v9226_v35 = vsel %vm511_vm2, %v16829_v33, 0.0 }
0x3134   :  { %9227 = vadd.xlane.f32.xlu1 %v9226_v35  ;;  %v10446_v15 = vpop.f32.mrb[247].mxu1  ;;  %v16838_v36 = vsub.f32 %v16757_v39, %v9236_v12 }
0x3135   :  { %v9165_v43 = vadd.f32 %v10444_v27, %v16224_v0  ;;  %v10447_v19 = vadd.f32 %v10446_v15, %v10445_v46  ;;  %v9267_v0 = vmul.f32 %v16834_v56, %v16834_v56 }
0x3136   :  { %v9268_v53 = vmul.f32 %v16838_v36, %v16838_v36 }
0x3137   :  { %v9166_v9 = vadd.f32 %v10447_v19, %v16235_v8  ;;  %v9195_v25 = vpop.xlane.xlu0 %9194  ;;  %v16842_v4 = vadd.f32 %v16747_v18, %v9165_v43 }
0x3138   :  { %v9237_v44 = vmul.f32 0.015625, %v9195_v25  ;;  %v9286_v42 = vsel %vm511_vm2, %v9268_v53, 0.0 }
0x3139   :  { %v9198_v16 = vpop.xlane.xlu1 %9197  ;;  %v9229_v28 = vsel %vm511_vm2, %v16842_v4, 0.0  ;;  %v16847_v45 = vadd.f32 %v16747_v18, %v9166_v9  ;;  %v9283_v18 = vsel %vm511_vm2, %v9267_v0, 0.0 }
0x313a   :  { %v16852_v39 = vsub.f32 %v16764_v1, %v9237_v44  ;;  %v9238_v59 = vmul.f32 0.015625, %v9198_v16  ;;  %9230 = vadd.xlane.f32.xlu0 %v9229_v28 }
0x313b   :  { %v9232_v8 = vsel %vm511_vm2, %v16847_v45, 0.0 }
0x313c   :  { %v16859_v58 = vsub.f32 %v16769_v34, %v9238_v59  ;;  %9233 = vadd.xlane.f32.xlu1 %v9232_v8  ;;  %v9269_v41 = vmul.f32 %v16852_v39, %v16852_v39 }
0x313e   :  { %9284 = vadd.xlane.f32.xlu0 %v9283_v18  ;;  %v9270_v40 = vmul.f32 %v16859_v58, %v16859_v58  ;;  %v9289_v60 = vsel %vm511_vm2, %v9269_v41, 0.0 }
0x313f   :  { %v9201_v1 = vpop.xlane.xlu0 %9200 }
0x3140   :  { %v9239_v17 = vmul.f32 0.015625, %v9201_v1  ;;  %9287 = vadd.xlane.f32.xlu1 %v9286_v42  ;;  %v9292_v63 = vsel %vm511_vm2, %v9270_v40, 0.0 }
0x3141   :  { %v9204_v47 = vpop.xlane.xlu1 %9203 }
0x3142   :  { %v16869_v34 = vsub.f32 %v16776_v14, %v9239_v17  ;;  %v9240_v26 = vmul.f32 0.015625, %v9204_v47  ;;  %9290 = vadd.xlane.f32.xlu0 %v9289_v60 }
0x3144   :  { %v16873_v61 = vsub.f32 %v16781_v6, %v9240_v26  ;;  %9293 = vadd.xlane.f32.xlu1 %v9292_v63  ;;  %v9271_v51 = vmul.f32 %v16869_v34, %v16869_v34 }
0x3146   :  { %v9295_v48 = vsel %vm511_vm2, %v9271_v51, 0.0  ;;  %v9272_v29 = vmul.f32 %v16873_v61, %v16873_v61 }
0x3147   :  { %v9207_v5 = vpop.xlane.xlu0 %9206  ;;  %9296 = vadd.xlane.f32.xlu0 %v9295_v48 }
0x3148   :  { %v9241_v14 = vmul.f32 0.015625, %v9207_v5  ;;  %v9298_v50 = vsel %vm511_vm2, %v9272_v29, 0.0 }
0x3149   :  { %9299 = vadd.xlane.f32.xlu1 %v9298_v50  ;;  %v9210_v57 = vpop.xlane.xlu1 %9209 }
0x314a   :  { %v16882_v3 = vsub.f32 %v16788_v37, %v9241_v14  ;;  %v9242_v6 = vmul.f32 0.015625, %v9210_v57  ;;  %v11530_v37 = vld [vmem:[%s17103_s15] sm:$0xff]  }
0x314b   :  { %11050 = vmatprep.subr.bf16.mxu0 %v11530_v37 }
0x314c   :  { %v16885_v24 = vsub.f32 %v16793_v2, %v9242_v6  ;;  %v9273_v13 = vmul.f32 %v16882_v3, %v16882_v3  ;;  %11051 = vmatpush3.bf16.msra.mxu0 %v11530_v37  ;;  %v11531_v2 = vld [vmem:[%s17103_s15 + $0x8] sm:$0xff]  }
0x314d   :  { %11052 = vmatprep.subr.bf16.mxu0 %v11531_v2 }
0x314e   :  { %v9301_v38 = vsel %vm511_vm2, %v9273_v13, 0.0  ;;  %v9274_v31 = vmul.f32 %v16885_v24, %v16885_v24 }
0x314f   :  { %9302 = vadd.xlane.f32.xlu0 %v9301_v38 }
0x3150   :  { %v9304_v30 = vsel %vm511_vm2, %v9274_v31, 0.0  ;;  %11053 = vmatpush3.bf16.msra.mxu0 %v11531_v2 }
0x3151   :  { %9305 = vadd.xlane.f32.xlu1 %v9304_v30  ;;  %11054 = vmatprep.subr.bf16.mxu0 %v11532_v62 }
0x3154   :  { %11055 = vmatpush3.bf16.msra.mxu0 %v11532_v62 }
0x3155   :  { %11056 = vmatprep.subr.bf16.mxu0 %v11533_v52 }
0x3158   :  { %11057 = vmatpush3.bf16.msra.mxu0 %v11533_v52 }
0x31af   :  { %v9213_v54 = vpop.xlane.xlu0 %9212 }
0x31b0   :  { %v9243_v11 = vmul.f32 0.015625, %v9213_v54 }
0x31b1   :  { %v9216_v20 = vpop.xlane.xlu1 %9215 }
0x31b2   :  { %v16906_v12 = vsub.f32 %v16800_v21, %v9243_v11  ;;  %v9244_v27 = vmul.f32 0.015625, %v9216_v20 }
0x31b4   :  { %v16909_v46 = vsub.f32 %v16805_v23, %v9244_v27  ;;  %v9275_v35 = vmul.f32 %v16906_v12, %v16906_v12 }
0x31b6   :  { %v9307_v15 = vsel %vm511_vm2, %v9275_v35, 0.0  ;;  %v9276_v43 = vmul.f32 %v16909_v46, %v16909_v46 }
0x31b7   :  { %v9219_v19 = vpop.xlane.xlu0 %9218  ;;  %9308 = vadd.xlane.f32.xlu0 %v9307_v15 }
0x31b8   :  { %v9245_v9 = vmul.f32 0.015625, %v9219_v19  ;;  %v9310_v25 = vsel %vm511_vm2, %v9276_v43, 0.0  ;;  %v16956_v43 = vld [vmem:[%s17093_s7] sm:$0x3f] }
0x31b9   :  { %9311 = vadd.xlane.f32.xlu1 %v9310_v25  ;;  %v9222_v21 = vpop.xlane.xlu1 %9221  ;;  %v16960_v19 = vrot.slane %v16956_v43, %v17374_v55 }
0x31ba   :  { %v16918_v44 = vsub.f32 %v16812_v10, %v9245_v9  ;;  %v9246_v23 = vmul.f32 0.015625, %v9222_v21 }
0x31bc   :  { %v16921_v16 = vsub.f32 %v16817_v7, %v9246_v23  ;;  %v9277_v28 = vmul.f32 %v16918_v44, %v16918_v44 }
0x31be   :  { %v9313_v0 = vsel %vm511_vm2, %v9277_v28, 0.0  ;;  %v9278_v59 = vmul.f32 %v16921_v16, %v16921_v16 }
0x31bf   :  { %v9225_v8 = vpop.xlane.xlu0 %9224  ;;  %9314 = vadd.xlane.f32.xlu0 %v9313_v0 }
0x31c0   :  { %v9247_v53 = vmul.f32 0.015625, %v9225_v8  ;;  %v9316_v18 = vsel %vm511_vm2, %v9278_v59, 0.0  ;;  %v16966_v59 = vrot.slane %v16956_v43, %v17348_v22 }
0x31c1   :  { %9317 = vadd.xlane.f32.xlu1 %v9316_v18  ;;  %v9228_v10 = vpop.xlane.xlu1 %9227 }
0x31c2   :  { %v16930_v41 = vsub.f32 %v16824_v49, %v9247_v53  ;;  %v9248_v7 = vmul.f32 0.015625, %v9228_v10 }
0x31c4   :  { %v16933_v1 = vsub.f32 %v16829_v33, %v9248_v7  ;;  %v9279_v42 = vmul.f32 %v16930_v41, %v16930_v41 }
0x31c6   :  { %v9319_v40 = vsel %vm511_vm2, %v9279_v42, 0.0  ;;  %v9280_v17 = vmul.f32 %v16933_v1, %v16933_v1 }
0x31c7   :  { %9320 = vadd.xlane.f32.xlu0 %v9319_v40  ;;  %v9231_v47 = vpop.xlane.xlu0 %9230 }
0x31c8   :  { %v9249_v60 = vmul.f32 0.015625, %v9231_v47  ;;  %v9322_v26 = vsel %vm511_vm2, %v9280_v17, 0.0 }
0x31c9   :  { %9323 = vadd.xlane.f32.xlu1 %v9322_v26  ;;  %v9234_v49 = vpop.xlane.xlu1 %9233 }
0x31ca   :  { %v16942_v63 = vsub.f32 %v16842_v4, %v9249_v60  ;;  %v9250_v33 = vmul.f32 0.015625, %v9234_v49 }
0x31cb   :  { %v9285_v51 = vpop.xlane.xlu0 %9284 }
0x31cc   :  { %v16945_v48 = vsub.f32 %v16847_v45, %v9250_v33  ;;  %v9331_v29 = vmul.f32 0.015625, %v9285_v51  ;;  %v9281_v5 = vmul.f32 %v16942_v63, %v16942_v63 }
0x31cd   :  { %v9288_v14 = vpop.xlane.xlu1 %9287 }
0x31ce   :  { %v9347_v50 = vadd.f32 1e-05, %v9331_v29  ;;  %v9332_v57 = vmul.f32 0.015625, %v9288_v14  ;;  %v9325_v6 = vsel %vm511_vm2, %v9281_v5, 0.0  ;;  %v9282_v13 = vmul.f32 %v16945_v48, %v16945_v48 }
0x31cf   :  { %9326 = vadd.xlane.f32.xlu0 %v9325_v6  ;;  %v9291_v4 = vpop.xlane.xlu0 %9290 }
0x31d0   :  { %12306 = vrsqrt.f32 %v9347_v50  ;;  %v9348_v38 = vadd.f32 1e-05, %v9332_v57  ;;  %v9333_v31 = vmul.f32 0.015625, %v9291_v4  ;;  %v9328_v45 = vsel %vm511_vm2, %v9282_v13, 0.0 }
0x31d1   :  { %9329 = vadd.xlane.f32.xlu1 %v9328_v45  ;;  %v9294_v30 = vpop.xlane.xlu1 %9293 }
0x31d2   :  { %12308 = vrsqrt.f32 %v9348_v38  ;;  %v9349_v37 = vadd.f32 1e-05, %v9333_v31  ;;  %v9334_v2 = vmul.f32 0.015625, %v9294_v30 }
0x31d4   :  { %12310 = vrsqrt.f32 %v9349_v37  ;;  %v9350_v62 = vadd.f32 1e-05, %v9334_v2  ;;  %v9297_v52 = vpop.xlane.xlu0 %9296 }
0x31d5   :  { %v9335_v54 = vmul.f32 0.015625, %v9297_v52 }
0x31d6   :  { %12312 = vrsqrt.f32 %v9350_v62  ;;  %v9300_v11 = vpop.xlane.xlu1 %9299 }
0x31d7   :  { %v9351_v20 = vadd.f32 1e-05, %v9335_v54  ;;  %v9336_v27 = vmul.f32 0.015625, %v9300_v11 }
0x31d9   :  { %12314 = vrsqrt.f32 %v9351_v20  ;;  %v9352_v35 = vadd.f32 1e-05, %v9336_v27 }
0x31da   :  { %v12307_v15 = vpop.eup %12306 }
0x31db   :  { %v9379_v9 = vmul.f32 %v12307_v15, %v16834_v56  ;;  %12316 = vrsqrt.f32 %v9352_v35 }
0x31dc   :  { %v12309_v25 = vpop.eup %12308  ;;  %v9303_v21 = vpop.xlane.xlu0 %9302 }
0x31dd   :  { %v9380_v23 = vmul.f32 %v12309_v25, %v16838_v36  ;;  %v9337_v28 = vmul.f32 0.015625, %v9303_v21  ;;  %v9399_v53 = vmul.f32 %v16960_v19, %v9379_v9 }
0x31de   :  { %v12311_v0 = vpop.eup %12310  ;;  %v9306_v8 = vpop.xlane.xlu1 %9305 }
0x31df   :  { %v9381_v18 = vmul.f32 %v12311_v0, %v16852_v39  ;;  %v9353_v55 = vadd.f32 1e-05, %v9337_v28  ;;  %v9338_v10 = vmul.f32 0.015625, %v9306_v8  ;;  %v9400_v56 = vmul.f32 %v16960_v19, %v9380_v23 }
0x31e0   :  { %v12313_v7 = vpop.eup %12312  ;;  %v9419_v17 = vadd.f32 %v16966_v59, %v9399_v53 }
0x31e1   :  { %v9401_v42 = vmul.f32 %v16960_v19, %v9381_v18  ;;  %v9382_v36 = vmul.f32 %v12313_v7, %v16859_v58  ;;  %12318 = vrsqrt.f32 %v9353_v55  ;;  %v9354_v40 = vadd.f32 1e-05, %v9338_v10 }
0x31e2   :  { %v9420_v22 = vadd.f32 %v16966_v59, %v9400_v56 }
0x31e3   :  { %v12315_v47 = vpop.eup %12314  ;;  %v9402_v60 = vmul.f32 %v16960_v19, %v9382_v36  ;;  %12320 = vrsqrt.f32 %v9354_v40  ;;  %v9421_v33 = vadd.f32 %v16966_v59, %v9401_v42 }
0x31e4   :  { %v9383_v39 = vmul.f32 %v12315_v47, %v16869_v34  ;;  %v9435_v26 = vpack.c.bf16 %v9420_v22, %v9419_v17 }
0x31e5   :  { %v12317_v49 = vpop.eup %12316  ;;  %v9422_v51 = vadd.f32 %v16966_v59, %v9402_v60 }
0x31e6   :  { %v9384_v58 = vmul.f32 %v12317_v49, %v16873_v61  ;;  %11058 = vmatprep.mubr.msk.bf16.mxu0 %vm511_vm2, %v9435_v26  ;;  %v9403_v29 = vmul.f32 %v16960_v19, %v9383_v39 }
0x31e7   :  { %v9436_v5 = vpack.c.bf16 %v9422_v51, %v9421_v33 }
0x31e8   :  { %v9404_v14 = vmul.f32 %v16960_v19, %v9384_v58  ;;  %v9423_v50 = vadd.f32 %v16966_v59, %v9403_v29 }
0x31e9   :  { %11059 = vmatmul.mubr.msk.bf16.vlgmr.msra.gmra.mrb[8].mxu0 %vm511_vm2, %v9436_v5 }
0x31ea   :  { %v9424_v34 = vadd.f32 %v16966_v59, %v9404_v14 }
0x31eb   :  { %v12319_v57 = vpop.eup %12318 }
0x31ec   :  { %v9385_v6 = vmul.f32 %v12319_v57, %v16882_v3  ;;  %v9437_v13 = vpack.c.bf16 %v9424_v34, %v9423_v50 }
0x31ed   :  { %v12321_v4 = vpop.eup %12320 }
0x31ee   :  { %v9405_v61 = vmul.f32 %v16960_v19, %v9385_v6  ;;  %v9386_v38 = vmul.f32 %v12321_v4, %v16885_v24  ;;  %11062 = vmatprep.mubr.msk.bf16.mxu0 %vm511_vm2, %v9437_v13 }
0x31f0   :  { %v9406_v31 = vmul.f32 %v16960_v19, %v9386_v38  ;;  %v9425_v45 = vadd.f32 %v16966_v59, %v9405_v61 }
0x31f2   :  { %v9426_v30 = vadd.f32 %v16966_v59, %v9406_v31 }
0x31f4   :  { %v9438_v37 = vpack.c.bf16 %v9426_v30, %v9425_v45 }
0x31f6   :  { %11063 = vmatmul.mubr.msk.bf16.gmra.mrb[12].mxu0 %vm511_vm2, %v9438_v37 }
0x3244   :  { %v9309_v2 = vpop.xlane.xlu0 %9308 }
0x3245   :  { %v9339_v62 = vmul.f32 0.015625, %v9309_v2 }
0x3246   :  { %v9312_v3 = vpop.xlane.xlu1 %9311 }
0x3247   :  { %v9355_v52 = vadd.f32 1e-05, %v9339_v62  ;;  %v9340_v54 = vmul.f32 0.015625, %v9312_v3 }
0x3249   :  { %12322 = vrsqrt.f32 %v9355_v52  ;;  %v9356_v11 = vadd.f32 1e-05, %v9340_v54 }
0x324b   :  { %12324 = vrsqrt.f32 %v9356_v11 }
0x324c   :  { %v9315_v24 = vpop.xlane.xlu0 %9314 }
0x324d   :  { %v9341_v20 = vmul.f32 0.015625, %v9315_v24 }
0x324e   :  { %v9318_v27 = vpop.xlane.xlu1 %9317 }
0x324f   :  { %v9357_v35 = vadd.f32 1e-05, %v9341_v20  ;;  %v9342_v15 = vmul.f32 0.015625, %v9318_v27 }
0x3251   :  { %12326 = vrsqrt.f32 %v9357_v35  ;;  %v9358_v9 = vadd.f32 1e-05, %v9342_v15 }
0x3253   :  { %v12323_v25 = vpop.eup %12322  ;;  %12328 = vrsqrt.f32 %v9358_v9 }
0x3254   :  { %v9387_v21 = vmul.f32 %v12323_v25, %v16906_v12  ;;  %v9321_v23 = vpop.xlane.xlu0 %9320 }
0x3255   :  { %v12325_v28 = vpop.eup %12324  ;;  %v9343_v0 = vmul.f32 0.015625, %v9321_v23 }
0x3256   :  { %v9388_v8 = vmul.f32 %v12325_v28, %v16909_v46  ;;  %v9324_v53 = vpop.xlane.xlu1 %9323  ;;  %v9407_v18 = vmul.f32 %v16960_v19, %v9387_v21 }
0x3257   :  { %v9359_v55 = vadd.f32 1e-05, %v9343_v0  ;;  %v9344_v10 = vmul.f32 0.015625, %v9324_v53 }
0x3258   :  { %v9408_v56 = vmul.f32 %v16960_v19, %v9388_v8  ;;  %v9427_v42 = vadd.f32 %v16966_v59, %v9407_v18 }
0x3259   :  { %12330 = vrsqrt.f32 %v9359_v55  ;;  %v9360_v7 = vadd.f32 1e-05, %v9344_v10 }
0x325a   :  { %v9428_v36 = vadd.f32 %v16966_v59, %v9408_v56 }
0x325b   :  { %v12327_v40 = vpop.eup %12326  ;;  %12332 = vrsqrt.f32 %v9360_v7 }
0x325c   :  { %v9389_v12 = vmul.f32 %v12327_v40, %v16918_v44  ;;  %v9327_v17 = vpop.xlane.xlu0 %9326  ;;  %v9439_v22 = vpack.c.bf16 %v9428_v36, %v9427_v42 }
0x325d   :  { %v12329_v46 = vpop.eup %12328  ;;  %v9345_v47 = vmul.f32 0.015625, %v9327_v17 }
0x325e   :  { %v9409_v60 = vmul.f32 %v16960_v19, %v9389_v12  ;;  %v9390_v39 = vmul.f32 %v12329_v46, %v16921_v16  ;;  %11066 = vmatprep.mubr.msk.bf16.mxu0 %vm511_vm2, %v9439_v22  ;;  %v9330_v26 = vpop.xlane.xlu1 %9329 }
0x325f   :  { %v9361_v49 = vadd.f32 1e-05, %v9345_v47  ;;  %v9346_v33 = vmul.f32 0.015625, %v9330_v26 }
0x3260   :  { %v9410_v51 = vmul.f32 %v16960_v19, %v9390_v39  ;;  %v9429_v29 = vadd.f32 %v16966_v59, %v9409_v60 }
0x3261   :  { %12334 = vrsqrt.f32 %v9361_v49  ;;  %v9362_v58 = vadd.f32 1e-05, %v9346_v33 }
0x3262   :  { %v9430_v44 = vadd.f32 %v16966_v59, %v9410_v51 }
0x3263   :  { %v12331_v5 = vpop.eup %12330  ;;  %12336 = vrsqrt.f32 %v9362_v58 }
0x3264   :  { %v9440_v14 = vpack.c.bf16 %v9430_v44, %v9429_v29  ;;  %v9391_v50 = vmul.f32 %v12331_v5, %v16930_v41 }
0x3265   :  { %v12333_v34 = vpop.eup %12332 }
0x3266   :  { %v9392_v16 = vmul.f32 %v12333_v34, %v16933_v1  ;;  %11067 = vmatmul.mubr.msk.bf16.gmra.mrb[16].mxu0 %vm511_vm2, %v9440_v14  ;;  %v9411_v57 = vmul.f32 %v16960_v19, %v9391_v50 }
0x3268   :  { %v9412_v6 = vmul.f32 %v16960_v19, %v9392_v16  ;;  %v9431_v13 = vadd.f32 %v16966_v59, %v9411_v57 }
0x326a   :  { %v9432_v4 = vadd.f32 %v16966_v59, %v9412_v6 }
0x326b   :  { %v12335_v61 = vpop.eup %12334 }
0x326c   :  { %v9393_v38 = vmul.f32 %v12335_v61, %v16942_v63  ;;  %v9441_v31 = vpack.c.bf16 %v9432_v4, %v9431_v13  ;;  %v9454_v63 = vrot.slane %v16956_v43, %v17377_v32 }
0x326d   :  { %v12337_v45 = vpop.eup %12336 }
0x326e   :  { %v9413_v41 = vmul.f32 %v16960_v19, %v9393_v38  ;;  %v9394_v30 = vmul.f32 %v12337_v45, %v16945_v48  ;;  %11070 = vmatprep.mubr.msk.bf16.mxu0 %vm511_vm2, %v9441_v31 }
0x3270   :  { %v9414_v1 = vmul.f32 %v16960_v19, %v9394_v30  ;;  %v9433_v37 = vadd.f32 %v16966_v59, %v9413_v41 }
0x3272   :  { %v9434_v2 = vadd.f32 %v16966_v59, %v9414_v1 }
0x3274   :  { %v9442_v62 = vpack.c.bf16 %v9434_v2, %v9433_v37 }
0x3276   :  { %11071 = vmatmul.mubr.msk.bf16.gmra.mrb[20].mxu0 %vm511_vm2, %v9442_v62 }
0x32bc   :  { %v11060_v3 = vpop.f32.mrb[8].mxu0 }
0x32bd   :  { %v9546_v52 = vadd.f32 %v11060_v3, %v9454_v63  ;;  %v9537_v54 = vpop.f32.mrb[9].mxu0 }
0x32be   :  { %v9538_v11 = vadd.f32 %v9537_v54, %v9454_v63  ;;  %v11061_v24 = vpop.f32.mrb[10].mxu0 }
0x32bf   :  { %9602 = vst.msk [vmem:[%s17104_s16 + $0x10] sm:$0xff] %vm123_vm0, %v9546_v52  ;;  %v9549_v48 = vadd.f32 %v11061_v24, %v9454_v63  ;;  %v9540_v19 = vpop.f32.mrb[11].mxu0 }
0x32c0   :  { %9600 = vst.msk [vmem:[%s17104_s16] sm:$0xff] %vm123_vm0, %v9538_v11  ;;  %v9541_v59 = vadd.f32 %v9540_v19, %v9454_v63 }
0x32c1   :  { %9603 = vst.msk [vmem:[%s17104_s16 + $0x18] sm:$0xff] %vm123_vm0, %v9549_v48 }
0x32c2   :  { %9601 = vst.msk [vmem:[%s17104_s16 + $0x8] sm:$0xff] %vm123_vm0, %v9541_v59 }
0x32c9   :  { %v11064_v32 = vpop.f32.mrb[12].mxu0 }
0x32ca   :  { %v9562_v43 = vadd.f32 %v11064_v32, %v9454_v63  ;;  %v9553_v20 = vpop.f32.mrb[13].mxu0 }
0x32cb   :  { %v9554_v27 = vadd.f32 %v9553_v20, %v9454_v63  ;;  %v11065_v35 = vpop.f32.mrb[14].mxu0 }
0x32cc   :  { %9606 = vst.msk [vmem:[%s17104_s16 + $0x30] sm:$0xff] %vm123_vm0, %v9562_v43  ;;  %v9565_v15 = vadd.f32 %v11065_v35, %v9454_v63  ;;  %v9556_v9 = vpop.f32.mrb[15].mxu0 }
0x32cd   :  { %9604 = vst.msk [vmem:[%s17104_s16 + $0x20] sm:$0xff] %vm123_vm0, %v9554_v27  ;;  %v9557_v25 = vadd.f32 %v9556_v9, %v9454_v63 }
0x32ce   :  { %9607 = vst.msk [vmem:[%s17104_s16 + $0x38] sm:$0xff] %vm123_vm0, %v9565_v15 }
0x32cf   :  { %9605 = vst.msk [vmem:[%s17104_s16 + $0x28] sm:$0xff] %vm123_vm0, %v9557_v25 }
0x3339   :  { %v11068_v21 = vpop.f32.mrb[16].mxu0 }
0x333a   :  { %v9578_v23 = vadd.f32 %v11068_v21, %v9454_v63  ;;  %v9569_v28 = vpop.f32.mrb[17].mxu0 }
0x333b   :  { %v9570_v0 = vadd.f32 %v9569_v28, %v9454_v63  ;;  %v11069_v8 = vpop.f32.mrb[18].mxu0 }
0x333c   :  { %9610 = vst.msk [vmem:[%s17104_s16 + $0x50] sm:$0xff] %vm123_vm0, %v9578_v23  ;;  %v9581_v53 = vadd.f32 %v11069_v8, %v9454_v63  ;;  %v9572_v18 = vpop.f32.mrb[19].mxu0 }
0x333d   :  { %9608 = vst.msk [vmem:[%s17104_s16 + $0x40] sm:$0xff] %vm123_vm0, %v9570_v0  ;;  %v9573_v55 = vadd.f32 %v9572_v18, %v9454_v63 }
0x333e   :  { %9611 = vst.msk [vmem:[%s17104_s16 + $0x58] sm:$0xff] %vm123_vm0, %v9581_v53 }
0x333f   :  { %9609 = vst.msk [vmem:[%s17104_s16 + $0x48] sm:$0xff] %vm123_vm0, %v9573_v55 }
0x3349   :  { %v11072_v10 = vpop.f32.mrb[20].mxu0 }
0x334a   :  { %v9594_v56 = vadd.f32 %v11072_v10, %v9454_v63  ;;  %v9585_v7 = vpop.f32.mrb[21].mxu0 }
0x334b   :  { %v9586_v42 = vadd.f32 %v9585_v7, %v9454_v63  ;;  %v11073_v36 = vpop.f32.mrb[22].mxu0 }
0x334c   :  { %9614 = vst.msk [vmem:[%s17104_s16 + $0x70] sm:$0xff] %vm123_vm0, %v9594_v56  ;;  %v9597_v40 = vadd.f32 %v11073_v36, %v9454_v63  ;;  %v9588_v12 = vpop.f32.mrb[23].mxu0 }
0x334d   :  { %9612 = vst.msk [vmem:[%s17104_s16 + $0x60] sm:$0xff] %vm123_vm0, %v9586_v42  ;;  %v9589_v17 = vadd.f32 %v9588_v12, %v9454_v63 }
0x334e   :  { %9615 = vst.msk [vmem:[%s17104_s16 + $0x78] sm:$0xff] %vm123_vm0, %v9597_v40 }
0x334f   :  { %9613 = vst.msk [vmem:[%s17104_s16 + $0x68] sm:$0xff] %vm123_vm0, %v9589_v17 }

</bundles_post_ra>
